<compile_context>
chip_gen: v5e
topology: v5e:2x2
jax: 0.10.0
libtpu: 0.0.40
codegen_flags: <defaults>
</compile_context>

<pallas_src>
import functools
import math

import jax
import jax.numpy as jnp
from jax import lax
from jax.experimental import pallas as pl
from jax.experimental.pallas import tpu as pltpu


def _round_up(x, m):
    return (x + m - 1) // m * m


# ----------------------------------------------------------------------------
# Pallas kernels
# ----------------------------------------------------------------------------
def _mm_kernel(x_ref, w_ref, b_ref, o_ref, *, act):
    """(bm, K)bf16 @ (K, N)bf16 -> f32 accumulate, + bias, optional relu/sigmoid."""
    y = jnp.dot(x_ref[...], w_ref[...], preferred_element_type=jnp.float32)
    y = y + b_ref[...]
    if act == "relu":
        y = jnp.maximum(y, 0.0)
    elif act == "sigmoid":
        y = jax.nn.sigmoid(y)
    o_ref[...] = y


def matmul_bias_act(x, w, b, act="none", bm_max=256):
    """x:(M,K) @ w:(K,N) + b:(N,).  bf16 operands on the MXU, f32 output."""
    M, K = x.shape
    N = w.shape[1]
    x = x.astype(jnp.bfloat16)
    w = w.astype(jnp.bfloat16)
    b2 = b.reshape(1, N).astype(jnp.float32)
    bm = bm_max if M >= bm_max else _round_up(M, 8)
    Mp = _round_up(M, bm)
    if Mp != M:
        x = jnp.pad(x, ((0, Mp - M), (0, 0)))
    out = pl.pallas_call(
        functools.partial(_mm_kernel, act=act),
        out_shape=jax.ShapeDtypeStruct((Mp, N), jnp.float32),
        grid=(Mp // bm,),
        in_specs=[
            pl.BlockSpec((bm, K), lambda i: (i, 0)),
            pl.BlockSpec((K, N), lambda i: (0, 0)),
            pl.BlockSpec((1, N), lambda i: (0, 0)),
        ],
        out_specs=pl.BlockSpec((bm, N), lambda i: (i, 0)),
        compiler_params=pltpu.CompilerParams(dimension_semantics=("parallel",)),
    )(x, w, b2)
    return out[:M]


def _conv3x3_kernel(xcol_ref, w_ref, b_ref, o_ref, *, H, W, act):
    """'same' 3x3 conv for one batch image: 3 shifted matmuls accumulated in VMEM."""
    K3 = xcol_ref.shape[-1]
    Cout = w_ref.shape[-1]
    xb = xcol_ref[0]                                    # (H+2, W, 3*Cin) bf16
    acc = jnp.zeros((H * W, Cout), jnp.float32)
    for dy in range(3):
        patch = xb[dy:dy + H].reshape(H * W, K3)
        acc = acc + jnp.dot(patch, w_ref[dy], preferred_element_type=jnp.float32)
    y = acc + b_ref[...]
    if act == "relu":
        y = jnp.maximum(y, 0.0)
    o_ref[0] = y.reshape(H, W, Cout)


def conv3x3_weight_to_taps(w):
    """torch (Cout, Cin, 3, 3) -> (3, 3*Cin, Cout); row index = dx*Cin + c."""
    Cout, Cin = w.shape[0], w.shape[1]
    t = jnp.transpose(w, (2, 3, 1, 0))                  # (dy, dx, Cin, Cout)
    return t.reshape(3, 3 * Cin, Cout)


def conv3x3_fused(x, w_taps, b, act="relu"):
    """x: (B,H,W,Cin) NHWC, 'same' 3x3 conv + bias + activation."""
    B, H, W, Cin = x.shape
    Cout = w_taps.shape[-1]
    xp = jnp.pad(x, ((0, 0), (1, 1), (1, 1), (0, 0)))
    # 3-column arrangement (channel index dx*Cin + c): no 9x im2col in HBM.
    xcol = jnp.concatenate([xp[:, :, dx:dx + W, :] for dx in range(3)], axis=-1)
    xcol = xcol.astype(jnp.bfloat16)
    return pl.pallas_call(
        functools.partial(_conv3x3_kernel, H=H, W=W, act=act),
        out_shape=jax.ShapeDtypeStruct((B, H, W, Cout), jnp.float32),
        grid=(B,),
        in_specs=[
            pl.BlockSpec((1, H + 2, W, 3 * Cin), lambda i: (i, 0, 0, 0)),
            pl.BlockSpec((3, 3 * Cin, Cout), lambda i: (0, 0, 0)),
            pl.BlockSpec((1, Cout), lambda i: (0, 0)),
        ],
        out_specs=pl.BlockSpec((1, H, W, Cout), lambda i: (i, 0, 0, 0)),
        compiler_params=pltpu.CompilerParams(dimension_semantics=("parallel",)),
    )(xcol, w_taps.astype(jnp.bfloat16), b.reshape(1, Cout).astype(jnp.float32))


def _hb_tail_kernel(h1col_ref, x_ref, gf_ref, gt_ref, w2_ref, b2_ref,
                    wfg_ref, wfx_ref, bf_ref, o_ref, *, H, W):
    """Fused HarmonicBlock tail for all 3 blocks of one image:
    x_conv2 (3x3, relu) -> freq/temporal gating -> concat+final 1x1 conv."""
    K3 = h1col_ref.shape[-1]
    C9 = w2_ref.shape[-1]
    Ce = x_ref.shape[-1]
    Nout = wfg_ref.shape[-1]
    hcol = h1col_ref[0]                                 # (H+2, W, 3*6C) bf16
    acc = jnp.zeros((H * W, C9), jnp.float32)
    for dy in range(3):
        patch = hcol[dy:dy + H].reshape(H * W, K3)
        acc = acc + jnp.dot(patch, w2_ref[dy], preferred_element_type=jnp.float32)
    h2 = jnp.maximum(acc + b2_ref[...], 0.0).reshape(H, W, C9)
    # gating: (H,W,9C) * (H,1,9C) * (1,W,9C)   (broadcast in VMEM, no HBM trips)
    gated = (h2 * gf_ref[0] * gt_ref[0]).reshape(H * W, C9)
    xr = x_ref[0].reshape(H * W, Ce)
    y = (jnp.dot(gated.astype(jnp.bfloat16), wfg_ref[...],
                 preferred_element_type=jnp.float32)
         + jnp.dot(xr, wfx_ref[...], preferred_element_type=jnp.float32)
         + bf_ref[...])
    o_ref[0] = y.reshape(H, W, Nout)


def hb_tail_fused(h1, x, gate_f, gate_t, w2_taps, b2, wfg, wfx, bfin):
    B, H, W, C6 = h1.shape
    C9 = w2_taps.shape[-1]
    Ce = x.shape[-1]
    Nout = wfg.shape[-1]
    h1p = jnp.pad(h1, ((0, 0), (1, 1), (1, 1), (0, 0)))
    h1col = jnp.concatenate([h1p[:, :, dx:dx + W, :] for dx in range(3)],
                            axis=-1).astype(jnp.bfloat16)      # (B, H+2, W, 3*6C)
    gf4 = gate_f[:, :, None, :].astype(jnp.float32)             # (B, H, 1, 9C)
    gt4 = gate_t[:, None, :, :].astype(jnp.float32)             # (B, 1, W, 9C)
    return pl.pallas_call(
        functools.partial(_hb_tail_kernel, H=H, W=W),
        out_shape=jax.ShapeDtypeStruct((B, H, W, Nout), jnp.float32),
        grid=(B,),
        in_specs=[
            pl.BlockSpec((1, H + 2, W, 3 * C6), lambda i: (i, 0, 0, 0)),
            pl.BlockSpec((1, H, W, Ce), lambda i: (i, 0, 0, 0)),
            pl.BlockSpec((1, H, 1, C9), lambda i: (i, 0, 0, 0)),
            pl.BlockSpec((1, 1, W, C9), lambda i: (i, 0, 0, 0)),
            pl.BlockSpec((3, 3 * C6, C9), lambda i: (0, 0, 0)),
            pl.BlockSpec((1, C9), lambda i: (0, 0)),
            pl.BlockSpec((C9, Nout), lambda i: (0, 0)),
            pl.BlockSpec((Ce, Nout), lambda i: (0, 0)),
            pl.BlockSpec((1, Nout), lambda i: (0, 0)),
        ],
        out_specs=pl.BlockSpec((1, H, W, Nout), lambda i: (i, 0, 0, 0)),
        compiler_params=pltpu.CompilerParams(dimension_semantics=("parallel",)),
    )(h1col, x.astype(jnp.bfloat16), gf4, gt4,
      w2_taps.astype(jnp.bfloat16), b2.reshape(1, C9).astype(jnp.float32),
      wfg.astype(jnp.bfloat16), wfx.astype(jnp.bfloat16),
      bfin.reshape(1, Nout).astype(jnp.float32))


def _da_up_kernel(fin_ref, x_ref, wA1, wA2, bA, wB1, wB2, bB,
                  wV1, wV2, bV, wUp, bUp, o_ref, *, H, W):
    """Fused DoubleAttention (BN folded into A/B/V) + UpSample 1x1 projection
    for one batch image."""
    HW = H * W
    Xf = fin_ref[0].reshape(HW, fin_ref.shape[-1])      # bf16 (HW, 3*emb)
    Xx = x_ref[0].reshape(HW, x_ref.shape[-1])          # bf16 (HW, emb)

    def proj(w1, w2, b):
        return (jnp.dot(Xf, w1[...], preferred_element_type=jnp.float32)
                + jnp.dot(Xx, w2[...], preferred_element_type=jnp.float32)
                + b[...])

    A = proj(wA1, wA2, bA)                              # (HW, c_m) f32
    Bm = proj(wB1, wB2, bB)                             # (HW, c_n) f32
    V = proj(wV1, wV2, bV)                              # (HW, c_n) f32

    # attention maps: softmax over the spatial axis
    be = jnp.exp(Bm - jnp.max(Bm, axis=0, keepdims=True))
    Bs = be * pl.reciprocal(jnp.sum(be, axis=0, keepdims=True), approx=True)
    # global descriptors: G = A^T @ Bs  -> (c_m, c_n)
    G = jnp.dot(A.T, Bs, preferred_element_type=jnp.float32)
    # attention vectors: softmax over channels
    ve = jnp.exp(V - jnp.max(V, axis=1, keepdims=True))
    Vs = ve * pl.reciprocal(jnp.sum(ve, axis=1, keepdims=True), approx=True)
    # Z^T = Vs @ G^T  -> (HW, c_m)
    Zt = lax.dot_general(Vs, G, (((1,), (1,)), ((), ())),
                         preferred_element_type=jnp.float32)
    # fused UpSample 1x1 projection
    Y = jnp.dot(Zt.astype(jnp.bfloat16), wUp[...],
                preferred_element_type=jnp.float32) + bUp[...]
    o_ref[0] = Y.reshape(H, W, Y.shape[-1])


def da_upsample_fused(fin, x, wA1, wA2, bA, wB1, wB2, bB, wV1, wV2, bV, wUp, bUp):
    B, H, W, C3 = fin.shape
    Ce = x.shape[-1]
    c_m = wA1.shape[-1]
    c_n = wB1.shape[-1]
    Nout = wUp.shape[-1]

    def wspec(shape):
        return pl.BlockSpec(shape, lambda i: (0, 0))

    return pl.pallas_call(
        functools.partial(_da_up_kernel, H=H, W=W),
        out_shape=jax.ShapeDtypeStruct((B, H, W, Nout), jnp.float32),
        grid=(B,),
        in_specs=[
            pl.BlockSpec((1, H, W, C3), lambda i: (i, 0, 0, 0)),
            pl.BlockSpec((1, H, W, Ce), lambda i: (i, 0, 0, 0)),
            wspec((C3, c_m)), wspec((Ce, c_m)), wspec((1, c_m)),
            wspec((C3, c_n)), wspec((Ce, c_n)), wspec((1, c_n)),
            wspec((C3, c_n)), wspec((Ce, c_n)), wspec((1, c_n)),
            wspec((c_m, Nout)), wspec((1, Nout)),
        ],
        out_specs=pl.BlockSpec((1, H, W, Nout), lambda i: (i, 0, 0, 0)),
        compiler_params=pltpu.CompilerParams(dimension_semantics=("parallel",)),
    )(fin.astype(jnp.bfloat16), x.astype(jnp.bfloat16),
      wA1.astype(jnp.bfloat16), wA2.astype(jnp.bfloat16),
      bA.reshape(1, c_m).astype(jnp.float32),
      wB1.astype(jnp.bfloat16), wB2.astype(jnp.bfloat16),
      bB.reshape(1, c_n).astype(jnp.float32),
      wV1.astype(jnp.bfloat16), wV2.astype(jnp.bfloat16),
      bV.reshape(1, c_n).astype(jnp.float32),
      wUp.astype(jnp.bfloat16), bUp.reshape(1, Nout).astype(jnp.float32))


# ----------------------------------------------------------------------------
# Small JAX glue: 1-D convs as fused matmuls, weight packing helpers
# ----------------------------------------------------------------------------
def conv1d_matmul(x, w, b, act="none"):
    """x: (B, L, Cin) channel-last; w: (Cout, Cin, k) torch layout; 'same' pad."""
    B, L, Cin = x.shape
    Cout, _, k = w.shape
    p = k // 2
    xp = jnp.pad(x, ((0, 0), (p, p), (0, 0)))
    pat = jnp.stack([xp[:, j:j + L, :] for j in range(k)], axis=-1)  # (B,L,Cin,k)
    pat = pat.reshape(B * L, Cin * k)
    y = matmul_bias_act(pat, w.reshape(Cout, Cin * k).T, b, act=act)
    return y.reshape(B, L, Cout)


def _pad_tap(w, kmax):
    """Zero-pad an odd-k conv1d kernel to odd kmax (keeps 'same' conv identical)."""
    k = w.shape[-1]
    off = (kmax - k) // 2
    return jnp.pad(w, ((0, 0), (0, 0), (off, kmax - k - off)))


def block_diag_conv1d(ws):
    k = ws[0].shape[-1]
    co = sum(w.shape[0] for w in ws)
    ci = sum(w.shape[1] for w in ws)
    out = jnp.zeros((co, ci, k), ws[0].dtype)
    r = c = 0
    for w in ws:
        out = out.at[r:r + w.shape[0], c:c + w.shape[1], :].set(w)
        r += w.shape[0]
        c += w.shape[1]
    return out


def block_diag_conv2d(ws):
    kh, kw = ws[0].shape[2], ws[0].shape[3]
    co = sum(w.shape[0] for w in ws)
    ci = sum(w.shape[1] for w in ws)
    out = jnp.zeros((co, ci, kh, kw), ws[0].dtype)
    r = c = 0
    for w in ws:
        out = out.at[r:r + w.shape[0], c:c + w.shape[1]].set(w)
        r += w.shape[0]
        c += w.shape[1]
    return out


def block_diag_2d(ms):
    rr = sum(m.shape[0] for m in ms)
    cc = sum(m.shape[1] for m in ms)
    out = jnp.zeros((rr, cc), ms[0].dtype)
    r = c = 0
    for m in ms:
        out = out.at[r:r + m.shape[0], c:c + m.shape[1]].set(m)
        r += m.shape[0]
        c += m.shape[1]
    return out


# ----------------------------------------------------------------------------
# Full forward pass
# ----------------------------------------------------------------------------
@jax.jit
def upsampling_forward(params, x_nchw):
    x = jnp.transpose(x_nchw, (0, 2, 3, 1))             # single NCHW -> NHWC
    B, H, W, Cin = x.shape
    emb = params["ted"]["w"].shape[0]
    C = emb

    # ---- TED stub: 1x1 conv + ReLU --------------------------------------
    # TODO(synk): stand-in for the undefined TED sub-module.
    tp = params["ted"]
    xemb = matmul_bias_act(x.reshape(B * H * W, Cin), tp["w"].T, tp["b"],
                           act="relu").reshape(B, H, W, emb)

    hb = [params["hb_full"], params["hb_mid"], params["hb_tiny"]]

    # ---- fused x_conv1 of the three HarmonicBlocks (C -> 6C, relu) ------
    w_c1 = jnp.concatenate([q["c1_w"] for q in hb], axis=0)
    b_c1 = jnp.concatenate([q["c1_b"] for q in hb], axis=0)
    h1 = conv3x3_fused(xemb, conv3x3_weight_to_taps(w_c1), b_c1, act="relu")

    # ---- pooled 1-D gate branches (pooling shared by all blocks) --------
    x_temp = jnp.mean(xemb, axis=1)                     # (B, T=W, C)
    x_freq = jnp.mean(xemb, axis=2)                     # (B, F=H, C)

    # temporal gates: layer1 stacked over blocks, layer2 block-diagonal
    wt1 = jnp.concatenate([q["t1_w"] for q in hb], axis=0)
    bt1 = jnp.concatenate([q["t1_b"] for q in hb], axis=0)
    wt2 = block_diag_conv1d([q["t2_w"] for q in hb])
    bt2 = jnp.concatenate([q["t2_b"] for q in hb], axis=0)
    t1 = conv1d_matmul(x_temp, wt1, bt1, act="relu")             # (B, T, 3C)
    t2 = conv1d_matmul(t1, wt2, bt2, act="sigmoid")              # (B, T, 3C)
    gate_t = jnp.tile(t2.reshape(B, W, 3, 1, C),
                      (1, 1, 1, 3, 1)).reshape(B, W, 9 * C)      # (B, T, 9C)

    # frequency gates: 9 branches (3 blocks x large/mid/tiny), padded to kmax
    names = (("l1_w", "l1_b", "l2_w", "l2_b"),
             ("m1_w", "m1_b", "m2_w", "m2_b"),
             ("y1_w", "y1_b", "y2_w", "y2_b"))
    kmax = max(q[n[0]].shape[-1] for q in hb for n in names)
    wf1_l, bf1_l, wf2_l, bf2_l = [], [], [], []
    for q in hb:
        for n1w, n1b, n2w, n2b in names:
            wf1_l.append(_pad_tap(q[n1w], kmax))
            bf1_l.append(q[n1b])
            wf2_l.append(_pad_tap(q[n2w], kmax))
            bf2_l.append(q[n2b])
    wf1 = jnp.concatenate(wf1_l, axis=0)
    bf1 = jnp.concatenate(bf1_l, axis=0)
    wf2 = block_diag_conv1d(wf2_l)
    bf2 = jnp.concatenate(bf2_l, axis=0)
    f1 = conv1d_matmul(x_freq, wf1, bf1, act="relu")             # (B, F, 9C)
    gate_f = conv1d_matmul(f1, wf2, bf2, act="sigmoid")          # (B, F, 9C)

    # ---- fused x_conv2 + gating + (concat, final 1x1 conv) --------------
    w_c2 = block_diag_conv2d([q["c2_w"] for q in hb])            # (9C, 6C, 3, 3)
    b_c2 = jnp.concatenate([q["c2_b"] for q in hb], axis=0)
    wfg = block_diag_2d([q["fin_w"][:, :3 * C].T for q in hb])   # (9C, 3C)
    wfx = jnp.concatenate([q["fin_w"][:, 3 * C:].T for q in hb], axis=1)  # (C, 3C)
    bfin = jnp.concatenate([q["fin_b"] for q in hb], axis=0)
    fin_out = hb_tail_fused(h1, xemb, gate_f, gate_t,
                            conv3x3_weight_to_taps(w_c2), b_c2,
                            wfg, wfx, bfin)                      # (B,H,W,3*emb)

    # ---- DoubleAttention: BatchNorm (batch stats) folded into A/B/V -----
    da = params["da"]
    mu = jnp.concatenate([jnp.mean(fin_out, axis=(0, 1, 2)),
                          jnp.mean(xemb, axis=(0, 1, 2))])
    var = jnp.concatenate([jnp.var(fin_out, axis=(0, 1, 2)),
                           jnp.var(xemb, axis=(0, 1, 2))])
    s = da["gamma"] * lax.rsqrt(var + 1e-5)
    t = da["beta"] - mu * s

    def fold(wc, bc):
        wf = (wc * s[None, :]).T                        # (4*emb, cout)
        bf = bc + wc @ t
        return wf[:3 * emb], wf[3 * emb:], bf

    wA1, wA2, bA = fold(da["wA"], da["bA"])
    wB1, wB2, bB = fold(da["wB"], da["bB"])
    wV1, wV2, bV = fold(da["wV"], da["bV"])
    up = params["up"]
    y = da_upsample_fused(fin_out, xemb, wA1, wA2, bA, wB1, wB2, bB,
                          wV1, wV2, bV, up["w"].T, up["b"])      # (B,H,W,4*c_m)

    # ---- PixelShuffle(2), emitted directly in NCHW ----------------------
    c_m = up["w"].shape[1]
    r = 2
    y = y.reshape(B, H, W, c_m, r, r).transpose(0, 3, 1, 4, 2, 5)
    return y.reshape(B, c_m, H * r, W * r)


# ----------------------------------------------------------------------------
# Deterministic parameter initialisation (PyTorch-like layouts)
# ----------------------------------------------------------------------------
def conv_init(key, cout, cin, *ks):
    fan_in = cin
    for k in ks:
        fan_in *= k
    kw, kb = jax.random.split(key)
    w = jax.random.normal(kw, (cout, cin) + tuple(ks), jnp.float32) / math.sqrt(fan_in)
    b = jax.random.uniform(kb, (cout,), jnp.float32, -0.1, 0.1)
    return w, b


def init_harmonic_block(key, C, ks):
    k = jax.random.split(key, 11)
    p = {}
    p["c1_w"], p["c1_b"] = conv_init(k[0], 2 * C, C, 3, 3)
    p["c2_w"], p["c2_b"] = conv_init(k[1], 3 * C, 2 * C, 3, 3)
    p["t1_w"], p["t1_b"] = conv_init(k[2], C, C, 3)
    p["t2_w"], p["t2_b"] = conv_init(k[3], C, C, 3)
    p["l1_w"], p["l1_b"] = conv_init(k[4], C, C, ks[0])
    p["l2_w"], p["l2_b"] = conv_init(k[5], C, C, ks[0])
    p["m1_w"], p["m1_b"] = conv_init(k[6], C, C, ks[1])
    p["m2_w"], p["m2_b"] = conv_init(k[7], C, C, ks[1])
    p["y1_w"], p["y1_b"] = conv_init(k[8], C, C, ks[2])
    p["y2_w"], p["y2_b"] = conv_init(k[9], C, C, ks[2])
    p["fin_w"], p["fin_b"] = conv_init(k[10], C, 4 * C)
    return p


def init_upsampling(key, in_ch, emb, out_ch, ks_full, ks_mid, ks_tiny):
    k = jax.random.split(key, 6)
    p = {}
    w, b = conv_init(k[0], emb, in_ch)
    p["ted"] = {"w": w, "b": b}
    p["hb_full"] = init_harmonic_block(k[1], emb, ks_full)
    p["hb_mid"] = init_harmonic_block(k[2], emb, ks_mid)
    p["hb_tiny"] = init_harmonic_block(k[3], emb, ks_tiny)

    da_in = emb * 4
    c_m, c_n = out_ch, emb // 2
    kk = jax.random.split(k[4], 3)
    wA, bA = conv_init(kk[0], c_m, da_in)
    wB, bB = conv_init(kk[1], c_n, da_in)
    wV, bV = conv_init(kk[2], c_n, da_in)
    p["da"] = {"gamma": jnp.ones((da_in,), jnp.float32),
               "beta": jnp.zeros((da_in,), jnp.float32),
               "wA": wA, "bA": bA, "wB": wB, "bB": bB, "wV": wV, "bV": bV}

    fan_in, fan_out = out_ch, out_ch * 4
    kw_, kb_ = jax.random.split(k[5])
    w_up = jax.random.normal(kw_, (out_ch * 4, out_ch), jnp.float32) * math.sqrt(
        2.0 / (fan_in + fan_out))
    b_up = jax.random.uniform(kb_, (out_ch * 4,), jnp.float32, -0.1, 0.1)
    p["up"] = {"w": w_up, "b": b_up}
    return p


# ----------------------------------------------------------------------------
if __name__ == "__main__":
    input_channels, emb_channels, output_channels = 3, 8, 4
    ks_full, ks_mid, ks_tiny = (7, 5, 3), (5, 3, 3), (3, 3, 3)

    x = jax.random.normal(jax.random.PRNGKey(0), (2, input_channels, 16, 16),
                          jnp.float32)
    params = init_upsampling(jax.random.PRNGKey(1), input_channels, emb_channels,
                             output_channels, ks_full, ks_mid, ks_tiny)

    out = upsampling_forward(params, x)
    out = jax.block_until_ready(out)
    assert out.shape == (2, output_channels, 32, 32), out.shape
    assert bool(jnp.all(jnp.isfinite(out)))
    print("KERNEL_OK")
</pallas_src>

<mosaic_0001>
module attributes {stable_mosaic.version = 11 : i64} {
  func.func @_mm_kernel(%arg0: i32, %arg1: memref<256x3xbf16, #tpu.memory_space<vmem>>, %arg2: memref<3x8xbf16, #tpu.memory_space<vmem>>, %arg3: memref<1x8xf32, #tpu.memory_space<vmem>>, %arg4: memref<256x8xf32, #tpu.memory_space<vmem>>) attributes {dimension_semantics = [#tpu.dimension_semantics<parallel>], iteration_bounds = array<i64: 2>, scalar_prefetch = 0 : i64, scratch_operands = 0 : i64, tpu.core_type = #tpu.core_type<tc>, window_params = [{transform_indices = @transform_0, window_bounds = array<i64: 256, 3>}, {pipeline_mode = #tpu.pipeline_mode<synchronous>, transform_indices = @transform_1, window_bounds = array<i64: 3, 8>}, {pipeline_mode = #tpu.pipeline_mode<synchronous>, transform_indices = @transform_2, window_bounds = array<i64: 1, 8>}, {transform_indices = @transform_3, window_bounds = array<i64: 256, 8>}]} {
    %c0 = arith.constant 0 : index
    %c0_0 = arith.constant 0 : index
    %0 = vector.load %arg1[%c0, %c0_0] : memref<256x3xbf16, #tpu.memory_space<vmem>>, vector<256x3xbf16>
    %c0_1 = arith.constant 0 : index
    %c0_2 = arith.constant 0 : index
    %1 = vector.load %arg2[%c0_1, %c0_2] : memref<3x8xbf16, #tpu.memory_space<vmem>>, vector<3x8xbf16>
    %cst = arith.constant dense<0.000000e+00> : vector<256x8xf32>
    %2 = tpu.matmul %0, %1, %cst {dimension_numbers = #tpu.dot_dimension_numbers<[1], [0], [0], [1], [0, 0, 1, 1], [], []>} : vector<256x3xbf16>, vector<3x8xbf16>, vector<256x8xf32> -> vector<256x8xf32>
    %c0_3 = arith.constant 0 : index
    %c0_4 = arith.constant 0 : index
    %3 = vector.load %arg3[%c0_3, %c0_4] : memref<1x8xf32, #tpu.memory_space<vmem>>, vector<1x8xf32>
    %4 = vector.broadcast %3 : vector<1x8xf32> to vector<256x8xf32>
    %5 = arith.addf %2, %4 : vector<256x8xf32>
    %cst_5 = arith.constant 0.000000e+00 : f32
    %6 = vector.broadcast %cst_5 : f32 to vector<256x8xf32>
    %7 = arith.maximumf %5, %6 : vector<256x8xf32>
    %c0_6 = arith.constant 0 : index
    %c0_7 = arith.constant 0 : index
    %8 = vector.load %arg4[%c0_6, %c0_7] : memref<256x8xf32, #tpu.memory_space<vmem>>, vector<256x8xf32>
    tpu.vector_store %arg4[%c0_6, %c0_7], %7 {strides = array<i32>} : memref<256x8xf32, #tpu.memory_space<vmem>>, vector<256x8xf32>,
    return
  }
  func.func @transform_0(%arg0: i32) -> (i32, i32) {
    %c0_i32 = arith.constant 0 : i32
    %c0_i32_0 = arith.constant 0 : i32
    return %arg0, %c0_i32 : i32, i32
  }
  func.func @transform_1(%arg0: i32) -> (i32, i32) {
    %c0_i32 = arith.constant 0 : i32
    %c0_i32_0 = arith.constant 0 : i32
    %c0_i32_1 = arith.constant 0 : i32
    return %c0_i32, %c0_i32_0 : i32, i32
  }
  func.func @transform_2(%arg0: i32) -> (i32, i32) {
    %c0_i32 = arith.constant 0 : i32
    %c0_i32_0 = arith.constant 0 : i32
    %c0_i32_1 = arith.constant 0 : i32
    return %c0_i32, %c0_i32_0 : i32, i32
  }
  func.func @transform_3(%arg0: i32) -> (i32, i32) {
    %c0_i32 = arith.constant 0 : i32
    %c0_i32_0 = arith.constant 0 : i32
    return %arg0, %c0_i32 : i32, i32
  }
}

module attributes {stable_mosaic.version = 11 : i64} {
  func.func @_mm_kernel(%arg0: i32, %arg1: memref<32x24xbf16, #tpu.memory_space<vmem>>, %arg2: memref<24x24xbf16, #tpu.memory_space<vmem>>, %arg3: memref<1x24xf32, #tpu.memory_space<vmem>>, %arg4: memref<32x24xf32, #tpu.memory_space<vmem>>) attributes {dimension_semantics = [#tpu.dimension_semantics<parallel>], iteration_bounds = array<i64: 1>, scalar_prefetch = 0 : i64, scratch_operands = 0 : i64, tpu.core_type = #tpu.core_type<tc>, window_params = [{transform_indices = @transform_0, window_bounds = array<i64: 32, 24>}, {pipeline_mode = #tpu.pipeline_mode<synchronous>, transform_indices = @transform_1, window_bounds = array<i64: 24, 24>}, {pipeline_mode = #tpu.pipeline_mode<synchronous>, transform_indices = @transform_2, window_bounds = array<i64: 1, 24>}, {transform_indices = @transform_3, window_bounds = array<i64: 32, 24>}]} {
    %c0 = arith.constant 0 : index
    %c0_0 = arith.constant 0 : index
    %0 = vector.load %arg1[%c0, %c0_0] : memref<32x24xbf16, #tpu.memory_space<vmem>>, vector<32x24xbf16>
    %c0_1 = arith.constant 0 : index
    %c0_2 = arith.constant 0 : index
    %1 = vector.load %arg2[%c0_1, %c0_2] : memref<24x24xbf16, #tpu.memory_space<vmem>>, vector<24x24xbf16>
    %cst = arith.constant dense<0.000000e+00> : vector<32x24xf32>
    %2 = tpu.matmul %0, %1, %cst {dimension_numbers = #tpu.dot_dimension_numbers<[1], [0], [0], [1], [0, 0, 1, 1], [], []>} : vector<32x24xbf16>, vector<24x24xbf16>, vector<32x24xf32> -> vector<32x24xf32>
    %c0_3 = arith.constant 0 : index
    %c0_4 = arith.constant 0 : index
    %3 = vector.load %arg3[%c0_3, %c0_4] : memref<1x24xf32, #tpu.memory_space<vmem>>, vector<1x24xf32>
    %4 = vector.broadcast %3 : vector<1x24xf32> to vector<32x24xf32>
    %5 = arith.addf %2, %4 : vector<32x24xf32>
    %cst_5 = arith.constant 0.000000e+00 : f32
    %6 = vector.broadcast %cst_5 : f32 to vector<32x24xf32>
    %7 = arith.maximumf %5, %6 : vector<32x24xf32>
    %c0_6 = arith.constant 0 : index
    %c0_7 = arith.constant 0 : index
    %8 = vector.load %arg4[%c0_6, %c0_7] : memref<32x24xf32, #tpu.memory_space<vmem>>, vector<32x24xf32>
    tpu.vector_store %arg4[%c0_6, %c0_7], %7 {strides = array<i32>} : memref<32x24xf32, #tpu.memory_space<vmem>>, vector<32x24xf32>,
    return
  }
  func.func @transform_0(%arg0: i32) -> (i32, i32) {
    %c0_i32 = arith.constant 0 : i32
    %c0_i32_0 = arith.constant 0 : i32
    return %arg0, %c0_i32 : i32, i32
  }
  func.func @transform_1(%arg0: i32) -> (i32, i32) {
    %c0_i32 = arith.constant 0 : i32
    %c0_i32_0 = arith.constant 0 : i32
    %c0_i32_1 = arith.constant 0 : i32
    return %c0_i32, %c0_i32_0 : i32, i32
  }
  func.func @transform_2(%arg0: i32) -> (i32, i32) {
    %c0_i32 = arith.constant 0 : i32
    %c0_i32_0 = arith.constant 0 : i32
    %c0_i32_1 = arith.constant 0 : i32
    return %c0_i32, %c0_i32_0 : i32, i32
  }
  func.func @transform_3(%arg0: i32) -> (i32, i32) {
    %c0_i32 = arith.constant 0 : i32
    %c0_i32_0 = arith.constant 0 : i32
    return %arg0, %c0_i32 : i32, i32
  }
}

module attributes {stable_mosaic.version = 11 : i64} {
  func.func @_mm_kernel(%arg0: i32, %arg1: memref<32x72xbf16, #tpu.memory_space<vmem>>, %arg2: memref<72x24xbf16, #tpu.memory_space<vmem>>, %arg3: memref<1x24xf32, #tpu.memory_space<vmem>>, %arg4: memref<32x24xf32, #tpu.memory_space<vmem>>) attributes {dimension_semantics = [#tpu.dimension_semantics<parallel>], iteration_bounds = array<i64: 1>, scalar_prefetch = 0 : i64, scratch_operands = 0 : i64, tpu.core_type = #tpu.core_type<tc>, window_params = [{transform_indices = @transform_0, window_bounds = array<i64: 32, 72>}, {pipeline_mode = #tpu.pipeline_mode<synchronous>, transform_indices = @transform_1, window_bounds = array<i64: 72, 24>}, {pipeline_mode = #tpu.pipeline_mode<synchronous>, transform_indices = @transform_2, window_bounds = array<i64: 1, 24>}, {transform_indices = @transform_3, window_bounds = array<i64: 32, 24>}]} {
    %c0 = arith.constant 0 : index
    %c0_0 = arith.constant 0 : index
    %0 = vector.load %arg1[%c0, %c0_0] : memref<32x72xbf16, #tpu.memory_space<vmem>>, vector<32x72xbf16>
    %c0_1 = arith.constant 0 : index
    %c0_2 = arith.constant 0 : index
    %1 = vector.load %arg2[%c0_1, %c0_2] : memref<72x24xbf16, #tpu.memory_space<vmem>>, vector<72x24xbf16>
    %cst = arith.constant dense<0.000000e+00> : vector<32x24xf32>
    %2 = tpu.matmul %0, %1, %cst {dimension_numbers = #tpu.dot_dimension_numbers<[1], [0], [0], [1], [0, 0, 1, 1], [], []>} : vector<32x72xbf16>, vector<72x24xbf16>, vector<32x24xf32> -> vector<32x24xf32>
    %c0_3 = arith.constant 0 : index
    %c0_4 = arith.constant 0 : index
    %3 = vector.load %arg3[%c0_3, %c0_4] : memref<1x24xf32, #tpu.memory_space<vmem>>, vector<1x24xf32>
    %4 = vector.broadcast %3 : vector<1x24xf32> to vector<32x24xf32>
    %5 = arith.addf %2, %4 : vector<32x24xf32>
    %6 = arith.negf %5 : vector<32x24xf32>
    %7 = math.exp %6 : vector<32x24xf32>
    %cst_5 = arith.constant 1.000000e+00 : f32
    %8 = vector.broadcast %cst_5 : f32 to vector<32x24xf32>
    %9 = arith.addf %8, %7 : vector<32x24xf32>
    %10 = arith.divf %8, %9 : vector<32x24xf32>
    %c0_6 = arith.constant 0 : index
    %c0_7 = arith.constant 0 : index
    %11 = vector.load %arg4[%c0_6, %c0_7] : memref<32x24xf32, #tpu.memory_space<vmem>>, vector<32x24xf32>
    tpu.vector_store %arg4[%c0_6, %c0_7], %10 {strides = array<i32>} : memref<32x24xf32, #tpu.memory_space<vmem>>, vector<32x24xf32>,
    return
  }
  func.func @transform_0(%arg0: i32) -> (i32, i32) {
    %c0_i32 = arith.constant 0 : i32
    %c0_i32_0 = arith.constant 0 : i32
    return %arg0, %c0_i32 : i32, i32
  }
  func.func @transform_1(%arg0: i32) -> (i32, i32) {
    %c0_i32 = arith.constant 0 : i32
    %c0_i32_0 = arith.constant 0 : i32
    %c0_i32_1 = arith.constant 0 : i32
    return %c0_i32, %c0_i32_0 : i32, i32
  }
  func.func @transform_2(%arg0: i32) -> (i32, i32) {
    %c0_i32 = arith.constant 0 : i32
    %c0_i32_0 = arith.constant 0 : i32
    %c0_i32_1 = arith.constant 0 : i32
    return %c0_i32, %c0_i32_0 : i32, i32
  }
  func.func @transform_3(%arg0: i32) -> (i32, i32) {
    %c0_i32 = arith.constant 0 : i32
    %c0_i32_0 = arith.constant 0 : i32
    return %arg0, %c0_i32 : i32, i32
  }
}

module attributes {stable_mosaic.version = 11 : i64} {
  func.func @_mm_kernel(%arg0: i32, %arg1: memref<32x56xbf16, #tpu.memory_space<vmem>>, %arg2: memref<56x72xbf16, #tpu.memory_space<vmem>>, %arg3: memref<1x72xf32, #tpu.memory_space<vmem>>, %arg4: memref<32x72xf32, #tpu.memory_space<vmem>>) attributes {dimension_semantics = [#tpu.dimension_semantics<parallel>], iteration_bounds = array<i64: 1>, scalar_prefetch = 0 : i64, scratch_operands = 0 : i64, tpu.core_type = #tpu.core_type<tc>, window_params = [{transform_indices = @transform_0, window_bounds = array<i64: 32, 56>}, {pipeline_mode = #tpu.pipeline_mode<synchronous>, transform_indices = @transform_1, window_bounds = array<i64: 56, 72>}, {pipeline_mode = #tpu.pipeline_mode<synchronous>, transform_indices = @transform_2, window_bounds = array<i64: 1, 72>}, {transform_indices = @transform_3, window_bounds = array<i64: 32, 72>}]} {
    %c0 = arith.constant 0 : index
    %c0_0 = arith.constant 0 : index
    %0 = vector.load %arg1[%c0, %c0_0] : memref<32x56xbf16, #tpu.memory_space<vmem>>, vector<32x56xbf16>
    %c0_1 = arith.constant 0 : index
    %c0_2 = arith.constant 0 : index
    %1 = vector.load %arg2[%c0_1, %c0_2] : memref<56x72xbf16, #tpu.memory_space<vmem>>, vector<56x72xbf16>
    %cst = arith.constant dense<0.000000e+00> : vector<32x72xf32>
    %2 = tpu.matmul %0, %1, %cst {dimension_numbers = #tpu.dot_dimension_numbers<[1], [0], [0], [1], [0, 0, 1, 1], [], []>} : vector<32x56xbf16>, vector<56x72xbf16>, vector<32x72xf32> -> vector<32x72xf32>
    %c0_3 = arith.constant 0 : index
    %c0_4 = arith.constant 0 : index
    %3 = vector.load %arg3[%c0_3, %c0_4] : memref<1x72xf32, #tpu.memory_space<vmem>>, vector<1x72xf32>
    %4 = vector.broadcast %3 : vector<1x72xf32> to vector<32x72xf32>
    %5 = arith.addf %2, %4 : vector<32x72xf32>
    %cst_5 = arith.constant 0.000000e+00 : f32
    %6 = vector.broadcast %cst_5 : f32 to vector<32x72xf32>
    %7 = arith.maximumf %5, %6 : vector<32x72xf32>
    %c0_6 = arith.constant 0 : index
    %c0_7 = arith.constant 0 : index
    %8 = vector.load %arg4[%c0_6, %c0_7] : memref<32x72xf32, #tpu.memory_space<vmem>>, vector<32x72xf32>
    tpu.vector_store %arg4[%c0_6, %c0_7], %7 {strides = array<i32>} : memref<32x72xf32, #tpu.memory_space<vmem>>, vector<32x72xf32>,
    return
  }
  func.func @transform_0(%arg0: i32) -> (i32, i32) {
    %c0_i32 = arith.constant 0 : i32
    %c0_i32_0 = arith.constant 0 : i32
    return %arg0, %c0_i32 : i32, i32
  }
  func.func @transform_1(%arg0: i32) -> (i32, i32) {
    %c0_i32 = arith.constant 0 : i32
    %c0_i32_0 = arith.constant 0 : i32
    %c0_i32_1 = arith.constant 0 : i32
    return %c0_i32, %c0_i32_0 : i32, i32
  }
  func.func @transform_2(%arg0: i32) -> (i32, i32) {
    %c0_i32 = arith.constant 0 : i32
    %c0_i32_0 = arith.constant 0 : i32
    %c0_i32_1 = arith.constant 0 : i32
    return %c0_i32, %c0_i32_0 : i32, i32
  }
  func.func @transform_3(%arg0: i32) -> (i32, i32) {
    %c0_i32 = arith.constant 0 : i32
    %c0_i32_0 = arith.constant 0 : i32
    return %arg0, %c0_i32 : i32, i32
  }
}

module attributes {stable_mosaic.version = 11 : i64} {
  func.func @_mm_kernel(%arg0: i32, %arg1: memref<32x504xbf16, #tpu.memory_space<vmem>>, %arg2: memref<504x72xbf16, #tpu.memory_space<vmem>>, %arg3: memref<1x72xf32, #tpu.memory_space<vmem>>, %arg4: memref<32x72xf32, #tpu.memory_space<vmem>>) attributes {dimension_semantics = [#tpu.dimension_semantics<parallel>], iteration_bounds = array<i64: 1>, scalar_prefetch = 0 : i64, scratch_operands = 0 : i64, tpu.core_type = #tpu.core_type<tc>, window_params = [{transform_indices = @transform_0, window_bounds = array<i64: 32, 504>}, {pipeline_mode = #tpu.pipeline_mode<synchronous>, transform_indices = @transform_1, window_bounds = array<i64: 504, 72>}, {pipeline_mode = #tpu.pipeline_mode<synchronous>, transform_indices = @transform_2, window_bounds = array<i64: 1, 72>}, {transform_indices = @transform_3, window_bounds = array<i64: 32, 72>}]} {
    %c0 = arith.constant 0 : index
    %c0_0 = arith.constant 0 : index
    %0 = vector.load %arg1[%c0, %c0_0] : memref<32x504xbf16, #tpu.memory_space<vmem>>, vector<32x504xbf16>
    %c0_1 = arith.constant 0 : index
    %c0_2 = arith.constant 0 : index
    %1 = vector.load %arg2[%c0_1, %c0_2] : memref<504x72xbf16, #tpu.memory_space<vmem>>, vector<504x72xbf16>
    %cst = arith.constant dense<0.000000e+00> : vector<32x72xf32>
    %2 = tpu.matmul %0, %1, %cst {dimension_numbers = #tpu.dot_dimension_numbers<[1], [0], [0], [1], [0, 0, 1, 1], [], []>} : vector<32x504xbf16>, vector<504x72xbf16>, vector<32x72xf32> -> vector<32x72xf32>
    %c0_3 = arith.constant 0 : index
    %c0_4 = arith.constant 0 : index
    %3 = vector.load %arg3[%c0_3, %c0_4] : memref<1x72xf32, #tpu.memory_space<vmem>>, vector<1x72xf32>
    %4 = vector.broadcast %3 : vector<1x72xf32> to vector<32x72xf32>
    %5 = arith.addf %2, %4 : vector<32x72xf32>
    %6 = arith.negf %5 : vector<32x72xf32>
    %7 = math.exp %6 : vector<32x72xf32>
    %cst_5 = arith.constant 1.000000e+00 : f32
    %8 = vector.broadcast %cst_5 : f32 to vector<32x72xf32>
    %9 = arith.addf %8, %7 : vector<32x72xf32>
    %10 = arith.divf %8, %9 : vector<32x72xf32>
    %c0_6 = arith.constant 0 : index
    %c0_7 = arith.constant 0 : index
    %11 = vector.load %arg4[%c0_6, %c0_7] : memref<32x72xf32, #tpu.memory_space<vmem>>, vector<32x72xf32>
    tpu.vector_store %arg4[%c0_6, %c0_7], %10 {strides = array<i32>} : memref<32x72xf32, #tpu.memory_space<vmem>>, vector<32x72xf32>,
    return
  }
  func.func @transform_0(%arg0: i32) -> (i32, i32) {
    %c0_i32 = arith.constant 0 : i32
    %c0_i32_0 = arith.constant 0 : i32
    return %arg0, %c0_i32 : i32, i32
  }
  func.func @transform_1(%arg0: i32) -> (i32, i32) {
    %c0_i32 = arith.constant 0 : i32
    %c0_i32_0 = arith.constant 0 : i32
    %c0_i32_1 = arith.constant 0 : i32
    return %c0_i32, %c0_i32_0 : i32, i32
  }
  func.func @transform_2(%arg0: i32) -> (i32, i32) {
    %c0_i32 = arith.constant 0 : i32
    %c0_i32_0 = arith.constant 0 : i32
    %c0_i32_1 = arith.constant 0 : i32
    return %c0_i32, %c0_i32_0 : i32, i32
  }
  func.func @transform_3(%arg0: i32) -> (i32, i32) {
    %c0_i32 = arith.constant 0 : i32
    %c0_i32_0 = arith.constant 0 : i32
    return %arg0, %c0_i32 : i32, i32
  }
}

module attributes {stable_mosaic.version = 11 : i64} {
  func.func @_conv3x3_kernel(%arg0: i32, %arg1: memref<1x18x16x24xbf16, #tpu.memory_space<vmem>>, %arg2: memref<3x24x48xbf16, #tpu.memory_space<vmem>>, %arg3: memref<1x48xf32, #tpu.memory_space<vmem>>, %arg4: memref<1x16x16x48xf32, #tpu.memory_space<vmem>>) attributes {dimension_semantics = [#tpu.dimension_semantics<parallel>], iteration_bounds = array<i64: 2>, scalar_prefetch = 0 : i64, scratch_operands = 0 : i64, tpu.core_type = #tpu.core_type<tc>, window_params = [{transform_indices = @transform_0, window_bounds = array<i64: 1, 18, 16, 24>}, {pipeline_mode = #tpu.pipeline_mode<synchronous>, transform_indices = @transform_1, window_bounds = array<i64: 3, 24, 48>}, {pipeline_mode = #tpu.pipeline_mode<synchronous>, transform_indices = @transform_2, window_bounds = array<i64: 1, 48>}, {transform_indices = @transform_3, window_bounds = array<i64: 1, 16, 16, 48>}]} {
    %c0 = arith.constant 0 : index
    %c0_0 = arith.constant 0 : index
    %c0_1 = arith.constant 0 : index
    %c0_2 = arith.constant 0 : index
    %0 = vector.load %arg1[%c0, %c0_0, %c0_1, %c0_2] : memref<1x18x16x24xbf16, #tpu.memory_space<vmem>>, vector<1x18x16x24xbf16>
    %1 = vector.shape_cast %0 : vector<1x18x16x24xbf16> to vector<18x16x24xbf16>
    %cst = arith.constant 0.000000e+00 : f32
    %2 = vector.broadcast %cst : f32 to vector<256x48xf32>
    %3 = vector.extract_strided_slice %1 {offsets = [0, 0, 0], sizes = [16, 16, 24], strides = [1, 1, 1]} : vector<18x16x24xbf16> to vector<16x16x24xbf16>
    %4 = vector.shape_cast %3 : vector<16x16x24xbf16> to vector<256x24xbf16>
    %c0_3 = arith.constant 0 : index
    %c0_4 = arith.constant 0 : index
    %c0_5 = arith.constant 0 : index
    %5 = vector.load %arg2[%c0_3, %c0_4, %c0_5] : memref<3x24x48xbf16, #tpu.memory_space<vmem>>, vector<1x24x48xbf16>
    %6 = vector.shape_cast %5 : vector<1x24x48xbf16> to vector<24x48xbf16>
    %cst_6 = arith.constant dense<0.000000e+00> : vector<256x48xf32>
    %7 = tpu.matmul %4, %6, %cst_6 {dimension_numbers = #tpu.dot_dimension_numbers<[1], [0], [0], [1], [0, 0, 1, 1], [], []>} : vector<256x24xbf16>, vector<24x48xbf16>, vector<256x48xf32> -> vector<256x48xf32>
    %8 = arith.addf %2, %7 : vector<256x48xf32>
    %9 = vector.extract_strided_slice %1 {offsets = [1, 0, 0], sizes = [16, 16, 24], strides = [1, 1, 1]} : vector<18x16x24xbf16> to vector<16x16x24xbf16>
    %10 = vector.shape_cast %9 : vector<16x16x24xbf16> to vector<256x24xbf16>
    %c1 = arith.constant 1 : index
    %c0_7 = arith.constant 0 : index
    %c0_8 = arith.constant 0 : index
    %11 = vector.load %arg2[%c1, %c0_7, %c0_8] : memref<3x24x48xbf16, #tpu.memory_space<vmem>>, vector<1x24x48xbf16>
    %12 = vector.shape_cast %11 : vector<1x24x48xbf16> to vector<24x48xbf16>
    %cst_9 = arith.constant dense<0.000000e+00> : vector<256x48xf32>
    %13 = tpu.matmul %10, %12, %cst_9 {dimension_numbers = #tpu.dot_dimension_numbers<[1], [0], [0], [1], [0, 0, 1, 1], [], []>} : vector<256x24xbf16>, vector<24x48xbf16>, vector<256x48xf32> -> vector<256x48xf32>
    %14 = arith.addf %8, %13 : vector<256x48xf32>
    %15 = vector.extract_strided_slice %1 {offsets = [2, 0, 0], sizes = [16, 16, 24], strides = [1, 1, 1]} : vector<18x16x24xbf16> to vector<16x16x24xbf16>
    %16 = vector.shape_cast %15 : vector<16x16x24xbf16> to vector<256x24xbf16>
    %c2 = arith.constant 2 : index
    %c0_10 = arith.constant 0 : index
    %c0_11 = arith.constant 0 : index
    %17 = vector.load %arg2[%c2, %c0_10, %c0_11] : memref<3x24x48xbf16, #tpu.memory_space<vmem>>, vector<1x24x48xbf16>
    %18 = vector.shape_cast %17 : vector<1x24x48xbf16> to vector<24x48xbf16>
    %cst_12 = arith.constant dense<0.000000e+00> : vector<256x48xf32>
    %19 = tpu.matmul %16, %18, %cst_12 {dimension_numbers = #tpu.dot_dimension_numbers<[1], [0], [0], [1], [0, 0, 1, 1], [], []>} : vector<256x24xbf16>, vector<24x48xbf16>, vector<256x48xf32> -> vector<256x48xf32>
    %20 = arith.addf %14, %19 : vector<256x48xf32>
    %c0_13 = arith.constant 0 : index
    %c0_14 = arith.constant 0 : index
    %21 = vector.load %arg3[%c0_13, %c0_14] : memref<1x48xf32, #tpu.memory_space<vmem>>, vector<1x48xf32>
    %22 = vector.broadcast %21 : vector<1x48xf32> to vector<256x48xf32>
    %23 = arith.addf %20, %22 : vector<256x48xf32>
    %cst_15 = arith.constant 0.000000e+00 : f32
    %24 = vector.broadcast %cst_15 : f32 to vector<256x48xf32>
    %25 = arith.maximumf %23, %24 : vector<256x48xf32>
    %26 = vector.shape_cast %25 : vector<256x48xf32> to vector<16x16x48xf32>
    %c0_16 = arith.constant 0 : index
    %c0_17 = arith.constant 0 : index
    %c0_18 = arith.constant 0 : index
    %c0_19 = arith.constant 0 : index
    %27 = vector.load %arg4[%c0_16, %c0_17, %c0_18, %c0_19] : memref<1x16x16x48xf32, #tpu.memory_space<vmem>>, vector<1x16x16x48xf32>
    %28 = vector.shape_cast %27 : vector<1x16x16x48xf32> to vector<16x16x48xf32>
    %29 = vector.shape_cast %26 : vector<16x16x48xf32> to vector<1x16x16x48xf32>
    tpu.vector_store %arg4[%c0_16, %c0_17, %c0_18, %c0_19], %29 {strides = array<i32>} : memref<1x16x16x48xf32, #tpu.memory_space<vmem>>, vector<1x16x16x48xf32>,
    return
  }
  func.func @transform_0(%arg0: i32) -> (i32, i32, i32, i32) {
    %c0_i32 = arith.constant 0 : i32
    %c0_i32_0 = arith.constant 0 : i32
    %c0_i32_1 = arith.constant 0 : i32
    %c0_i32_2 = arith.constant 0 : i32
    return %arg0, %c0_i32, %c0_i32_0, %c0_i32_1 : i32, i32, i32, i32
  }
  func.func @transform_1(%arg0: i32) -> (i32, i32, i32) {
    %c0_i32 = arith.constant 0 : i32
    %c0_i32_0 = arith.constant 0 : i32
    %c0_i32_1 = arith.constant 0 : i32
    %c0_i32_2 = arith.constant 0 : i32
    return %c0_i32, %c0_i32_0, %c0_i32_1 : i32, i32, i32
  }
  func.func @transform_2(%arg0: i32) -> (i32, i32) {
    %c0_i32 = arith.constant 0 : i32
    %c0_i32_0 = arith.constant 0 : i32
    %c0_i32_1 = arith.constant 0 : i32
    return %c0_i32, %c0_i32_0 : i32, i32
  }
  func.func @transform_3(%arg0: i32) -> (i32, i32, i32, i32) {
    %c0_i32 = arith.constant 0 : i32
    %c0_i32_0 = arith.constant 0 : i32
    %c0_i32_1 = arith.constant 0 : i32
    %c0_i32_2 = arith.constant 0 : i32
    return %arg0, %c0_i32, %c0_i32_0, %c0_i32_1 : i32, i32, i32, i32
  }
}

module attributes {stable_mosaic.version = 11 : i64} {
  func.func @_hb_tail_kernel(%arg0: i32, %arg1: memref<1x18x16x144xbf16, #tpu.memory_space<vmem>>, %arg2: memref<1x16x16x8xbf16, #tpu.memory_space<vmem>>, %arg3: memref<1x16x1x72xf32, #tpu.memory_space<vmem>>, %arg4: memref<1x1x16x72xf32, #tpu.memory_space<vmem>>, %arg5: memref<3x144x72xbf16, #tpu.memory_space<vmem>>, %arg6: memref<1x72xf32, #tpu.memory_space<vmem>>, %arg7: memref<72x24xbf16, #tpu.memory_space<vmem>>, %arg8: memref<8x24xbf16, #tpu.memory_space<vmem>>, %arg9: memref<1x24xf32, #tpu.memory_space<vmem>>, %arg10: memref<1x16x16x24xf32, #tpu.memory_space<vmem>>) attributes {dimension_semantics = [#tpu.dimension_semantics<parallel>], iteration_bounds = array<i64: 2>, scalar_prefetch = 0 : i64, scratch_operands = 0 : i64, tpu.core_type = #tpu.core_type<tc>, window_params = [{transform_indices = @transform_0, window_bounds = array<i64: 1, 18, 16, 144>}, {transform_indices = @transform_1, window_bounds = array<i64: 1, 16, 16, 8>}, {transform_indices = @transform_2, window_bounds = array<i64: 1, 16, 1, 72>}, {transform_indices = @transform_3, window_bounds = array<i64: 1, 1, 16, 72>}, {pipeline_mode = #tpu.pipeline_mode<synchronous>, transform_indices = @transform_4, window_bounds = array<i64: 3, 144, 72>}, {pipeline_mode = #tpu.pipeline_mode<synchronous>, transform_indices = @transform_5, window_bounds = array<i64: 1, 72>}, {pipeline_mode = #tpu.pipeline_mode<synchronous>, transform_indices = @transform_6, window_bounds = array<i64: 72, 24>}, {pipeline_mode = #tpu.pipeline_mode<synchronous>, transform_indices = @transform_7, window_bounds = array<i64: 8, 24>}, {pipeline_mode = #tpu.pipeline_mode<synchronous>, transform_indices = @transform_8, window_bounds = array<i64: 1, 24>}, {transform_indices = @transform_9, window_bounds = array<i64: 1, 16, 16, 24>}]} {
    %c0 = arith.constant 0 : index
    %c0_0 = arith.constant 0 : index
    %c0_1 = arith.constant 0 : index
    %c0_2 = arith.constant 0 : index
    %0 = vector.load %arg1[%c0, %c0_0, %c0_1, %c0_2] : memref<1x18x16x144xbf16, #tpu.memory_space<vmem>>, vector<1x18x16x144xbf16>
    %1 = vector.shape_cast %0 : vector<1x18x16x144xbf16> to vector<18x16x144xbf16>
    %cst = arith.constant 0.000000e+00 : f32
    %2 = vector.broadcast %cst : f32 to vector<256x72xf32>
    %3 = vector.extract_strided_slice %1 {offsets = [0, 0, 0], sizes = [16, 16, 144], strides = [1, 1, 1]} : vector<18x16x144xbf16> to vector<16x16x144xbf16>
    %4 = vector.shape_cast %3 : vector<16x16x144xbf16> to vector<256x144xbf16>
    %c0_3 = arith.constant 0 : index
    %c0_4 = arith.constant 0 : index
    %c0_5 = arith.constant 0 : index
    %5 = vector.load %arg5[%c0_3, %c0_4, %c0_5] : memref<3x144x72xbf16, #tpu.memory_space<vmem>>, vector<1x144x72xbf16>
    %6 = vector.shape_cast %5 : vector<1x144x72xbf16> to vector<144x72xbf16>
    %cst_6 = arith.constant dense<0.000000e+00> : vector<256x72xf32>
    %7 = tpu.matmul %4, %6, %cst_6 {dimension_numbers = #tpu.dot_dimension_numbers<[1], [0], [0], [1], [0, 0, 1, 1], [], []>} : vector<256x144xbf16>, vector<144x72xbf16>, vector<256x72xf32> -> vector<256x72xf32>
    %8 = arith.addf %2, %7 : vector<256x72xf32>
    %9 = vector.extract_strided_slice %1 {offsets = [1, 0, 0], sizes = [16, 16, 144], strides = [1, 1, 1]} : vector<18x16x144xbf16> to vector<16x16x144xbf16>
    %10 = vector.shape_cast %9 : vector<16x16x144xbf16> to vector<256x144xbf16>
    %c1 = arith.constant 1 : index
    %c0_7 = arith.constant 0 : index
    %c0_8 = arith.constant 0 : index
    %11 = vector.load %arg5[%c1, %c0_7, %c0_8] : memref<3x144x72xbf16, #tpu.memory_space<vmem>>, vector<1x144x72xbf16>
    %12 = vector.shape_cast %11 : vector<1x144x72xbf16> to vector<144x72xbf16>
    %cst_9 = arith.constant dense<0.000000e+00> : vector<256x72xf32>
    %13 = tpu.matmul %10, %12, %cst_9 {dimension_numbers = #tpu.dot_dimension_numbers<[1], [0], [0], [1], [0, 0, 1, 1], [], []>} : vector<256x144xbf16>, vector<144x72xbf16>, vector<256x72xf32> -> vector<256x72xf32>
    %14 = arith.addf %8, %13 : vector<256x72xf32>
    %15 = vector.extract_strided_slice %1 {offsets = [2, 0, 0], sizes = [16, 16, 144], strides = [1, 1, 1]} : vector<18x16x144xbf16> to vector<16x16x144xbf16>
    %16 = vector.shape_cast %15 : vector<16x16x144xbf16> to vector<256x144xbf16>
    %c2 = arith.constant 2 : index
    %c0_10 = arith.constant 0 : index
    %c0_11 = arith.constant 0 : index
    %17 = vector.load %arg5[%c2, %c0_10, %c0_11] : memref<3x144x72xbf16, #tpu.memory_space<vmem>>, vector<1x144x72xbf16>
    %18 = vector.shape_cast %17 : vector<1x144x72xbf16> to vector<144x72xbf16>
    %cst_12 = arith.constant dense<0.000000e+00> : vector<256x72xf32>
    %19 = tpu.matmul %16, %18, %cst_12 {dimension_numbers = #tpu.dot_dimension_numbers<[1], [0], [0], [1], [0, 0, 1, 1], [], []>} : vector<256x144xbf16>, vector<144x72xbf16>, vector<256x72xf32> -> vector<256x72xf32>
    %20 = arith.addf %14, %19 : vector<256x72xf32>
    %c0_13 = arith.constant 0 : index
    %c0_14 = arith.constant 0 : index
    %21 = vector.load %arg6[%c0_13, %c0_14] : memref<1x72xf32, #tpu.memory_space<vmem>>, vector<1x72xf32>
    %22 = vector.broadcast %21 : vector<1x72xf32> to vector<256x72xf32>
    %23 = arith.addf %20, %22 : vector<256x72xf32>
    %cst_15 = arith.constant 0.000000e+00 : f32
    %24 = vector.broadcast %cst_15 : f32 to vector<256x72xf32>
    %25 = arith.maximumf %23, %24 : vector<256x72xf32>
    %26 = vector.shape_cast %25 : vector<256x72xf32> to vector<16x16x72xf32>
    %c0_16 = arith.constant 0 : index
    %c0_17 = arith.constant 0 : index
    %c0_18 = arith.constant 0 : index
    %c0_19 = arith.constant 0 : index
    %27 = vector.load %arg3[%c0_16, %c0_17, %c0_18, %c0_19] : memref<1x16x1x72xf32, #tpu.memory_space<vmem>>, vector<1x16x1x72xf32>
    %28 = vector.shape_cast %27 : vector<1x16x1x72xf32> to vector<16x1x72xf32>
    %29 = vector.broadcast %28 : vector<16x1x72xf32> to vector<16x16x72xf32>
    %30 = arith.mulf %26, %29 : vector<16x16x72xf32>
    %c0_20 = arith.constant 0 : index
    %c0_21 = arith.constant 0 : index
    %c0_22 = arith.constant 0 : index
    %c0_23 = arith.constant 0 : index
    %31 = vector.load %arg4[%c0_20, %c0_21, %c0_22, %c0_23] : memref<1x1x16x72xf32, #tpu.memory_space<vmem>>, vector<1x1x16x72xf32>
    %32 = vector.shape_cast %31 : vector<1x1x16x72xf32> to vector<1x16x72xf32>
    %33 = vector.broadcast %32 : vector<1x16x72xf32> to vector<16x16x72xf32>
    %34 = arith.mulf %30, %33 : vector<16x16x72xf32>
    %35 = vector.shape_cast %34 : vector<16x16x72xf32> to vector<256x72xf32>
    %c0_24 = arith.constant 0 : index
    %c0_25 = arith.constant 0 : index
    %c0_26 = arith.constant 0 : index
    %c0_27 = arith.constant 0 : index
    %36 = vector.load %arg2[%c0_24, %c0_25, %c0_26, %c0_27] : memref<1x16x16x8xbf16, #tpu.memory_space<vmem>>, vector<1x16x16x8xbf16>
    %37 = vector.shape_cast %36 : vector<1x16x16x8xbf16> to vector<16x16x8xbf16>
    %38 = vector.shape_cast %37 : vector<16x16x8xbf16> to vector<256x8xbf16>
    %39 = arith.truncf %35 : vector<256x72xf32> to vector<256x72xbf16>
    %c0_28 = arith.constant 0 : index
    %c0_29 = arith.constant 0 : index
    %40 = vector.load %arg7[%c0_28, %c0_29] : memref<72x24xbf16, #tpu.memory_space<vmem>>, vector<72x24xbf16>
    %cst_30 = arith.constant dense<0.000000e+00> : vector<256x24xf32>
    %41 = tpu.matmul %39, %40, %cst_30 {dimension_numbers = #tpu.dot_dimension_numbers<[1], [0], [0], [1], [0, 0, 1, 1], [], []>} : vector<256x72xbf16>, vector<72x24xbf16>, vector<256x24xf32> -> vector<256x24xf32>
    %c0_31 = arith.constant 0 : index
    %c0_32 = arith.constant 0 : index
    %42 = vector.load %arg8[%c0_31, %c0_32] : memref<8x24xbf16, #tpu.memory_space<vmem>>, vector<8x24xbf16>
    %cst_33 = arith.constant dense<0.000000e+00> : vector<256x24xf32>
    %43 = tpu.matmul %38, %42, %cst_33 {dimension_numbers = #tpu.dot_dimension_numbers<[1], [0], [0], [1], [0, 0, 1, 1], [], []>} : vector<256x8xbf16>, vector<8x24xbf16>, vector<256x24xf32> -> vector<256x24xf32>
    %44 = arith.addf %41, %43 : vector<256x24xf32>
    %c0_34 = arith.constant 0 : index
    %c0_35 = arith.constant 0 : index
    %45 = vector.load %arg9[%c0_34, %c0_35] : memref<1x24xf32, #tpu.memory_space<vmem>>, vector<1x24xf32>
    %46 = vector.broadcast %45 : vector<1x24xf32> to vector<256x24xf32>
    %47 = arith.addf %44, %46 : vector<256x24xf32>
    %48 = vector.shape_cast %47 : vector<256x24xf32> to vector<16x16x24xf32>
    %c0_36 = arith.constant 0 : index
    %c0_37 = arith.constant 0 : index
    %c0_38 = arith.constant 0 : index
    %c0_39 = arith.constant 0 : index
    %49 = vector.load %arg10[%c0_36, %c0_37, %c0_38, %c0_39] : memref<1x16x16x24xf32, #tpu.memory_space<vmem>>, vector<1x16x16x24xf32>
    %50 = vector.shape_cast %49 : vector<1x16x16x24xf32> to vector<16x16x24xf32>
    %51 = vector.shape_cast %48 : vector<16x16x24xf32> to vector<1x16x16x24xf32>
    tpu.vector_store %arg10[%c0_36, %c0_37, %c0_38, %c0_39], %51 {strides = array<i32>} : memref<1x16x16x24xf32, #tpu.memory_space<vmem>>, vector<1x16x16x24xf32>,
    return
  }
  func.func @transform_0(%arg0: i32) -> (i32, i32, i32, i32) {
    %c0_i32 = arith.constant 0 : i32
    %c0_i32_0 = arith.constant 0 : i32
    %c0_i32_1 = arith.constant 0 : i32
    %c0_i32_2 = arith.constant 0 : i32
    return %arg0, %c0_i32, %c0_i32_0, %c0_i32_1 : i32, i32, i32, i32
  }
  func.func @transform_1(%arg0: i32) -> (i32, i32, i32, i32) {
    %c0_i32 = arith.constant 0 : i32
    %c0_i32_0 = arith.constant 0 : i32
    %c0_i32_1 = arith.constant 0 : i32
    %c0_i32_2 = arith.constant 0 : i32
    return %arg0, %c0_i32, %c0_i32_0, %c0_i32_1 : i32, i32, i32, i32
  }
  func.func @transform_2(%arg0: i32) -> (i32, i32, i32, i32) {
    %c0_i32 = arith.constant 0 : i32
    %c0_i32_0 = arith.constant 0 : i32
    %c0_i32_1 = arith.constant 0 : i32
    %c0_i32_2 = arith.constant 0 : i32
    return %arg0, %c0_i32, %c0_i32_0, %c0_i32_1 : i32, i32, i32, i32
  }
  func.func @transform_3(%arg0: i32) -> (i32, i32, i32, i32) {
    %c0_i32 = arith.constant 0 : i32
    %c0_i32_0 = arith.constant 0 : i32
    %c0_i32_1 = arith.constant 0 : i32
    %c0_i32_2 = arith.constant 0 : i32
    return %arg0, %c0_i32, %c0_i32_0, %c0_i32_1 : i32, i32, i32, i32
  }
  func.func @transform_4(%arg0: i32) -> (i32, i32, i32) {
    %c0_i32 = arith.constant 0 : i32
    %c0_i32_0 = arith.constant 0 : i32
    %c0_i32_1 = arith.constant 0 : i32
    %c0_i32_2 = arith.constant 0 : i32
    return %c0_i32, %c0_i32_0, %c0_i32_1 : i32, i32, i32
  }
  func.func @transform_5(%arg0: i32) -> (i32, i32) {
    %c0_i32 = arith.constant 0 : i32
    %c0_i32_0 = arith.constant 0 : i32
    %c0_i32_1 = arith.constant 0 : i32
    return %c0_i32, %c0_i32_0 : i32, i32
  }
  func.func @transform_6(%arg0: i32) -> (i32, i32) {
    %c0_i32 = arith.constant 0 : i32
    %c0_i32_0 = arith.constant 0 : i32
    %c0_i32_1 = arith.constant 0 : i32
    return %c0_i32, %c0_i32_0 : i32, i32
  }
  func.func @transform_7(%arg0: i32) -> (i32, i32) {
    %c0_i32 = arith.constant 0 : i32
    %c0_i32_0 = arith.constant 0 : i32
    %c0_i32_1 = arith.constant 0 : i32
    return %c0_i32, %c0_i32_0 : i32, i32
  }
  func.func @transform_8(%arg0: i32) -> (i32, i32) {
    %c0_i32 = arith.constant 0 : i32
    %c0_i32_0 = arith.constant 0 : i32
    %c0_i32_1 = arith.constant 0 : i32
    return %c0_i32, %c0_i32_0 : i32, i32
  }
  func.func @transform_9(%arg0: i32) -> (i32, i32, i32, i32) {
    %c0_i32 = arith.constant 0 : i32
    %c0_i32_0 = arith.constant 0 : i32
    %c0_i32_1 = arith.constant 0 : i32
    %c0_i32_2 = arith.constant 0 : i32
    return %arg0, %c0_i32, %c0_i32_0, %c0_i32_1 : i32, i32, i32, i32
  }
}

module attributes {stable_mosaic.version = 11 : i64} {
  func.func @_da_up_kernel(%arg0: i32, %arg1: memref<1x16x16x24xbf16, #tpu.memory_space<vmem>>, %arg2: memref<1x16x16x8xbf16, #tpu.memory_space<vmem>>, %arg3: memref<24x4xbf16, #tpu.memory_space<vmem>>, %arg4: memref<8x4xbf16, #tpu.memory_space<vmem>>, %arg5: memref<1x4xf32, #tpu.memory_space<vmem>>, %arg6: memref<24x4xbf16, #tpu.memory_space<vmem>>, %arg7: memref<8x4xbf16, #tpu.memory_space<vmem>>, %arg8: memref<1x4xf32, #tpu.memory_space<vmem>>, %arg9: memref<24x4xbf16, #tpu.memory_space<vmem>>, %arg10: memref<8x4xbf16, #tpu.memory_space<vmem>>, %arg11: memref<1x4xf32, #tpu.memory_space<vmem>>, %arg12: memref<4x16xbf16, #tpu.memory_space<vmem>>, %arg13: memref<1x16xf32, #tpu.memory_space<vmem>>, %arg14: memref<1x16x16x16xf32, #tpu.memory_space<vmem>>) attributes {dimension_semantics = [#tpu.dimension_semantics<parallel>], iteration_bounds = array<i64: 2>, scalar_prefetch = 0 : i64, scratch_operands = 0 : i64, tpu.core_type = #tpu.core_type<tc>, window_params = [{transform_indices = @transform_0, window_bounds = array<i64: 1, 16, 16, 24>}, {transform_indices = @transform_1, window_bounds = array<i64: 1, 16, 16, 8>}, {pipeline_mode = #tpu.pipeline_mode<synchronous>, transform_indices = @transform_2, window_bounds = array<i64: 24, 4>}, {pipeline_mode = #tpu.pipeline_mode<synchronous>, transform_indices = @transform_3, window_bounds = array<i64: 8, 4>}, {pipeline_mode = #tpu.pipeline_mode<synchronous>, transform_indices = @transform_4, window_bounds = array<i64: 1, 4>}, {pipeline_mode = #tpu.pipeline_mode<synchronous>, transform_indices = @transform_5, window_bounds = array<i64: 24, 4>}, {pipeline_mode = #tpu.pipeline_mode<synchronous>, transform_indices = @transform_6, window_bounds = array<i64: 8, 4>}, {pipeline_mode = #tpu.pipeline_mode<synchronous>, transform_indices = @transform_7, window_bounds = array<i64: 1, 4>}, {pipeline_mode = #tpu.pipeline_mode<synchronous>, transform_indices = @transform_8, window_bounds = array<i64: 24, 4>}, {pipeline_mode = #tpu.pipeline_mode<synchronous>, transform_indices = @transform_9, window_bounds = array<i64: 8, 4>}, {pipeline_mode = #tpu.pipeline_mode<synchronous>, transform_indices = @transform_10, window_bounds = array<i64: 1, 4>}, {pipeline_mode = #tpu.pipeline_mode<synchronous>, transform_indices = @transform_11, window_bounds = array<i64: 4, 16>}, {pipeline_mode = #tpu.pipeline_mode<synchronous>, transform_indices = @transform_12, window_bounds = array<i64: 1, 16>}, {transform_indices = @transform_13, window_bounds = array<i64: 1, 16, 16, 16>}]} {
    %c0 = arith.constant 0 : index
    %c0_0 = arith.constant 0 : index
    %c0_1 = arith.constant 0 : index
    %c0_2 = arith.constant 0 : index
    %0 = vector.load %arg1[%c0, %c0_0, %c0_1, %c0_2] : memref<1x16x16x24xbf16, #tpu.memory_space<vmem>>, vector<1x16x16x24xbf16>
    %1 = vector.shape_cast %0 : vector<1x16x16x24xbf16> to vector<16x16x24xbf16>
    %2 = vector.shape_cast %1 : vector<16x16x24xbf16> to vector<256x24xbf16>
    %c0_3 = arith.constant 0 : index
    %c0_4 = arith.constant 0 : index
    %c0_5 = arith.constant 0 : index
    %c0_6 = arith.constant 0 : index
    %3 = vector.load %arg2[%c0_3, %c0_4, %c0_5, %c0_6] : memref<1x16x16x8xbf16, #tpu.memory_space<vmem>>, vector<1x16x16x8xbf16>
    %4 = vector.shape_cast %3 : vector<1x16x16x8xbf16> to vector<16x16x8xbf16>
    %5 = vector.shape_cast %4 : vector<16x16x8xbf16> to vector<256x8xbf16>
    %c0_7 = arith.constant 0 : index
    %c0_8 = arith.constant 0 : index
    %6 = vector.load %arg3[%c0_7, %c0_8] : memref<24x4xbf16, #tpu.memory_space<vmem>>, vector<24x4xbf16>
    %cst = arith.constant dense<0.000000e+00> : vector<256x4xf32>
    %7 = tpu.matmul %2, %6, %cst {dimension_numbers = #tpu.dot_dimension_numbers<[1], [0], [0], [1], [0, 0, 1, 1], [], []>} : vector<256x24xbf16>, vector<24x4xbf16>, vector<256x4xf32> -> vector<256x4xf32>
    %c0_9 = arith.constant 0 : index
    %c0_10 = arith.constant 0 : index
    %8 = vector.load %arg4[%c0_9, %c0_10] : memref<8x4xbf16, #tpu.memory_space<vmem>>, vector<8x4xbf16>
    %cst_11 = arith.constant dense<0.000000e+00> : vector<256x4xf32>
    %9 = tpu.matmul %5, %8, %cst_11 {dimension_numbers = #tpu.dot_dimension_numbers<[1], [0], [0], [1], [0, 0, 1, 1], [], []>} : vector<256x8xbf16>, vector<8x4xbf16>, vector<256x4xf32> -> vector<256x4xf32>
    %10 = arith.addf %7, %9 : vector<256x4xf32>
    %c0_12 = arith.constant 0 : index
    %c0_13 = arith.constant 0 : index
    %11 = vector.load %arg5[%c0_12, %c0_13] : memref<1x4xf32, #tpu.memory_space<vmem>>, vector<1x4xf32>
    %12 = vector.broadcast %11 : vector<1x4xf32> to vector<256x4xf32>
    %13 = arith.addf %10, %12 : vector<256x4xf32>
    %c0_14 = arith.constant 0 : index
    %c0_15 = arith.constant 0 : index
    %14 = vector.load %arg6[%c0_14, %c0_15] : memref<24x4xbf16, #tpu.memory_space<vmem>>, vector<24x4xbf16>
    %cst_16 = arith.constant dense<0.000000e+00> : vector<256x4xf32>
    %15 = tpu.matmul %2, %14, %cst_16 {dimension_numbers = #tpu.dot_dimension_numbers<[1], [0], [0], [1], [0, 0, 1, 1], [], []>} : vector<256x24xbf16>, vector<24x4xbf16>, vector<256x4xf32> -> vector<256x4xf32>
    %c0_17 = arith.constant 0 : index
    %c0_18 = arith.constant 0 : index
    %16 = vector.load %arg7[%c0_17, %c0_18] : memref<8x4xbf16, #tpu.memory_space<vmem>>, vector<8x4xbf16>
    %cst_19 = arith.constant dense<0.000000e+00> : vector<256x4xf32>
    %17 = tpu.matmul %5, %16, %cst_19 {dimension_numbers = #tpu.dot_dimension_numbers<[1], [0], [0], [1], [0, 0, 1, 1], [], []>} : vector<256x8xbf16>, vector<8x4xbf16>, vector<256x4xf32> -> vector<256x4xf32>
    %18 = arith.addf %15, %17 : vector<256x4xf32>
    %c0_20 = arith.constant 0 : index
    %c0_21 = arith.constant 0 : index
    %19 = vector.load %arg8[%c0_20, %c0_21] : memref<1x4xf32, #tpu.memory_space<vmem>>, vector<1x4xf32>
    %20 = vector.broadcast %19 : vector<1x4xf32> to vector<256x4xf32>
    %21 = arith.addf %18, %20 : vector<256x4xf32>
    %c0_22 = arith.constant 0 : index
    %c0_23 = arith.constant 0 : index
    %22 = vector.load %arg9[%c0_22, %c0_23] : memref<24x4xbf16, #tpu.memory_space<vmem>>, vector<24x4xbf16>
    %cst_24 = arith.constant dense<0.000000e+00> : vector<256x4xf32>
    %23 = tpu.matmul %2, %22, %cst_24 {dimension_numbers = #tpu.dot_dimension_numbers<[1], [0], [0], [1], [0, 0, 1, 1], [], []>} : vector<256x24xbf16>, vector<24x4xbf16>, vector<256x4xf32> -> vector<256x4xf32>
    %c0_25 = arith.constant 0 : index
    %c0_26 = arith.constant 0 : index
    %24 = vector.load %arg10[%c0_25, %c0_26] : memref<8x4xbf16, #tpu.memory_space<vmem>>, vector<8x4xbf16>
    %cst_27 = arith.constant dense<0.000000e+00> : vector<256x4xf32>
    %25 = tpu.matmul %5, %24, %cst_27 {dimension_numbers = #tpu.dot_dimension_numbers<[1], [0], [0], [1], [0, 0, 1, 1], [], []>} : vector<256x8xbf16>, vector<8x4xbf16>, vector<256x4xf32> -> vector<256x4xf32>
    %26 = arith.addf %23, %25 : vector<256x4xf32>
    %c0_28 = arith.constant 0 : index
    %c0_29 = arith.constant 0 : index
    %27 = vector.load %arg11[%c0_28, %c0_29] : memref<1x4xf32, #tpu.memory_space<vmem>>, vector<1x4xf32>
    %28 = vector.broadcast %27 : vector<1x4xf32> to vector<256x4xf32>
    %29 = arith.addf %26, %28 : vector<256x4xf32>
    %cst_30 = arith.constant dense<0xFF800000> : vector<4xf32>
    %30 = vector.multi_reduction <maximumf>, %21, %cst_30 [0] : vector<256x4xf32> to vector<4xf32>
    %31 = vector.shape_cast %30 : vector<4xf32> to vector<1x4xf32>
    %32 = vector.broadcast %31 : vector<1x4xf32> to vector<256x4xf32>
    %33 = arith.subf %21, %32 : vector<256x4xf32>
    %34 = math.exp %33 : vector<256x4xf32>
    %cst_31 = arith.constant dense<0.000000e+00> : vector<4xf32>
    %35 = vector.multi_reduction <add>, %34, %cst_31 [0] : vector<256x4xf32> to vector<4xf32>
    %36 = vector.shape_cast %35 : vector<4xf32> to vector<1x4xf32>
    %37 = tpu.reciprocal %36 {approx = true} : vector<1x4xf32> -> vector<1x4xf32>
    %38 = vector.broadcast %37 : vector<1x4xf32> to vector<256x4xf32>
    %39 = arith.mulf %34, %38 : vector<256x4xf32>
    %40 = tpu.transpose %13, [1, 0] : vector<256x4xf32> -> vector<4x256xf32>
    %cst_32 = arith.constant dense<0.000000e+00> : vector<4x4xf32>
    %41 = tpu.matmul %40, %39, %cst_32 {dimension_numbers = #tpu.dot_dimension_numbers<[1], [0], [0], [1], [0, 0, 1, 1], [], []>} : vector<4x256xf32>, vector<256x4xf32>, vector<4x4xf32> -> vector<4x4xf32>
    %cst_33 = arith.constant dense<0xFF800000> : vector<256xf32>
    %42 = vector.multi_reduction <maximumf>, %29, %cst_33 [1] : vector<256x4xf32> to vector<256xf32>
    %43 = vector.shape_cast %42 : vector<256xf32> to vector<256x1xf32>
    %44 = vector.broadcast %43 : vector<256x1xf32> to vector<256x4xf32>
    %45 = arith.subf %29, %44 : vector<256x4xf32>
    %46 = math.exp %45 : vector<256x4xf32>
    %cst_34 = arith.constant dense<0.000000e+00> : vector<256xf32>
    %47 = vector.multi_reduction <add>, %46, %cst_34 [1] : vector<256x4xf32> to vector<256xf32>
    %48 = vector.shape_cast %47 : vector<256xf32> to vector<256x1xf32>
    %49 = tpu.reciprocal %48 {approx = true} : vector<256x1xf32> -> vector<256x1xf32>
    %50 = vector.broadcast %49 : vector<256x1xf32> to vector<256x4xf32>
    %51 = arith.mulf %46, %50 : vector<256x4xf32>
    %cst_35 = arith.constant dense<0.000000e+00> : vector<256x4xf32>
    %52 = tpu.matmul %51, %41, %cst_35 {dimension_numbers = #tpu.dot_dimension_numbers<[1], [1], [0], [0], [0, 0, 1, 0], [], []>} : vector<256x4xf32>, vector<4x4xf32>, vector<256x4xf32> -> vector<256x4xf32>
    %53 = arith.truncf %52 : vector<256x4xf32> to vector<256x4xbf16>
    %c0_36 = arith.constant 0 : index
    %c0_37 = arith.constant 0 : index
    %54 = vector.load %arg12[%c0_36, %c0_37] : memref<4x16xbf16, #tpu.memory_space<vmem>>, vector<4x16xbf16>
    %cst_38 = arith.constant dense<0.000000e+00> : vector<256x16xf32>
    %55 = tpu.matmul %53, %54, %cst_38 {dimension_numbers = #tpu.dot_dimension_numbers<[1], [0], [0], [1], [0, 0, 1, 1], [], []>} : vector<256x4xbf16>, vector<4x16xbf16>, vector<256x16xf32> -> vector<256x16xf32>
    %c0_39 = arith.constant 0 : index
    %c0_40 = arith.constant 0 : index
    %56 = vector.load %arg13[%c0_39, %c0_40] : memref<1x16xf32, #tpu.memory_space<vmem>>, vector<1x16xf32>
    %57 = vector.broadcast %56 : vector<1x16xf32> to vector<256x16xf32>
    %58 = arith.addf %55, %57 : vector<256x16xf32>
    %59 = vector.shape_cast %58 : vector<256x16xf32> to vector<16x16x16xf32>
    %c0_41 = arith.constant 0 : index
    %c0_42 = arith.constant 0 : index
    %c0_43 = arith.constant 0 : index
    %c0_44 = arith.constant 0 : index
    %60 = vector.load %arg14[%c0_41, %c0_42, %c0_43, %c0_44] : memref<1x16x16x16xf32, #tpu.memory_space<vmem>>, vector<1x16x16x16xf32>
    %61 = vector.shape_cast %60 : vector<1x16x16x16xf32> to vector<16x16x16xf32>
    %62 = vector.shape_cast %59 : vector<16x16x16xf32> to vector<1x16x16x16xf32>
    tpu.vector_store %arg14[%c0_41, %c0_42, %c0_43, %c0_44], %62 {strides = array<i32>} : memref<1x16x16x16xf32, #tpu.memory_space<vmem>>, vector<1x16x16x16xf32>,
    return
  }
  func.func @transform_0(%arg0: i32) -> (i32, i32, i32, i32) {
    %c0_i32 = arith.constant 0 : i32
    %c0_i32_0 = arith.constant 0 : i32
    %c0_i32_1 = arith.constant 0 : i32
    %c0_i32_2 = arith.constant 0 : i32
    return %arg0, %c0_i32, %c0_i32_0, %c0_i32_1 : i32, i32, i32, i32
  }
  func.func @transform_1(%arg0: i32) -> (i32, i32, i32, i32) {
    %c0_i32 = arith.constant 0 : i32
    %c0_i32_0 = arith.constant 0 : i32
    %c0_i32_1 = arith.constant 0 : i32
    %c0_i32_2 = arith.constant 0 : i32
    return %arg0, %c0_i32, %c0_i32_0, %c0_i32_1 : i32, i32, i32, i32
  }
  func.func @transform_2(%arg0: i32) -> (i32, i32) {
    %c0_i32 = arith.constant 0 : i32
    %c0_i32_0 = arith.constant 0 : i32
    %c0_i32_1 = arith.constant 0 : i32
    return %c0_i32, %c0_i32_0 : i32, i32
  }
  func.func @transform_3(%arg0: i32) -> (i32, i32) {
    %c0_i32 = arith.constant 0 : i32
    %c0_i32_0 = arith.constant 0 : i32
    %c0_i32_1 = arith.constant 0 : i32
    return %c0_i32, %c0_i32_0 : i32, i32
  }
  func.func @transform_4(%arg0: i32) -> (i32, i32) {
    %c0_i32 = arith.constant 0 : i32
    %c0_i32_0 = arith.constant 0 : i32
    %c0_i32_1 = arith.constant 0 : i32
    return %c0_i32, %c0_i32_0 : i32, i32
  }
  func.func @transform_5(%arg0: i32) -> (i32, i32) {
    %c0_i32 = arith.constant 0 : i32
    %c0_i32_0 = arith.constant 0 : i32
    %c0_i32_1 = arith.constant 0 : i32
    return %c0_i32, %c0_i32_0 : i32, i32
  }
  func.func @transform_6(%arg0: i32) -> (i32, i32) {
    %c0_i32 = arith.constant 0 : i32
    %c0_i32_0 = arith.constant 0 : i32
    %c0_i32_1 = arith.constant 0 : i32
    return %c0_i32, %c0_i32_0 : i32, i32
  }
  func.func @transform_7(%arg0: i32) -> (i32, i32) {
    %c0_i32 = arith.constant 0 : i32
    %c0_i32_0 = arith.constant 0 : i32
    %c0_i32_1 = arith.constant 0 : i32
    return %c0_i32, %c0_i32_0 : i32, i32
  }
  func.func @transform_8(%arg0: i32) -> (i32, i32) {
    %c0_i32 = arith.constant 0 : i32
    %c0_i32_0 = arith.constant 0 : i32
    %c0_i32_1 = arith.constant 0 : i32
    return %c0_i32, %c0_i32_0 : i32, i32
  }
  func.func @transform_9(%arg0: i32) -> (i32, i32) {
    %c0_i32 = arith.constant 0 : i32
    %c0_i32_0 = arith.constant 0 : i32
    %c0_i32_1 = arith.constant 0 : i32
    return %c0_i32, %c0_i32_0 : i32, i32
  }
  func.func @transform_10(%arg0: i32) -> (i32, i32) {
    %c0_i32 = arith.constant 0 : i32
    %c0_i32_0 = arith.constant 0 : i32
    %c0_i32_1 = arith.constant 0 : i32
    return %c0_i32, %c0_i32_0 : i32, i32
  }
  func.func @transform_11(%arg0: i32) -> (i32, i32) {
    %c0_i32 = arith.constant 0 : i32
    %c0_i32_0 = arith.constant 0 : i32
    %c0_i32_1 = arith.constant 0 : i32
    return %c0_i32, %c0_i32_0 : i32, i32
  }
  func.func @transform_12(%arg0: i32) -> (i32, i32) {
    %c0_i32 = arith.constant 0 : i32
    %c0_i32_0 = arith.constant 0 : i32
    %c0_i32_1 = arith.constant 0 : i32
    return %c0_i32, %c0_i32_0 : i32, i32
  }
  func.func @transform_13(%arg0: i32) -> (i32, i32, i32, i32) {
    %c0_i32 = arith.constant 0 : i32
    %c0_i32_0 = arith.constant 0 : i32
    %c0_i32_1 = arith.constant 0 : i32
    %c0_i32_2 = arith.constant 0 : i32
    return %arg0, %c0_i32, %c0_i32_0, %c0_i32_1 : i32, i32, i32, i32
  }
}

</mosaic_0001>

<bundles_post_ra>
// kernel: upsampling_forward.10
= control target key start
LH: loop header
LB: loop body
LE: loop exit
PB: predicated region body
PF: predicated region fallthrough
CT: control target
= control target key end

     0   :  { %vm52_vm0 = vcmask 1043456   ;;  %vm45_vm1 = vcmask 195584   ;;  %s160_s1 = inlined_call_operand.vmem [shape: bf16[24,24], index: 1, kind: input, shape index: {}]   ;;  %s161_s2 = inlined_call_operand.vmem [shape: f32[1,24], index: 2, kind: input, shape index: {}]   ;;  %s162_s0 = inlined_call_operand.vmem [shape: bf16[32,24], index: 0, kind: input, shape index: {}]   ;;  %s163_s3 = inlined_call_operand.vmem [shape: f32[32,24], index: 3, kind: output, shape index: {}]  }
   0x1   :  { %v21_v0 = vld [vmem:[%s160_s1 + $0x8] sm:$0xf]  ;;  %v103_v4 = vld [vmem:[%s160_s1] sm:$0xff] }
   0x2   :  { %v41_v1 = vunpack.c.l.b16 %v21_v0  ;;  %v101_v5 = vld [vmem:[%s162_s0] sm:$0xff]  ;;  %v102_v6 = vld [vmem:[%s162_s0 + $0x8] sm:$0xff] }
   0x3   :  { %v106_v7 = vld [vmem:[%s161_s2] ss:$0 sm:$0xff] }
   0x4   :  { %v43_v2 = vpack.c.b16 %v41_v1, %v41_v1 }
   0x6   :  { %v54_v3 = vsel %vm52_vm0, %v43_v2, 0 }
   0x7   :  { %62 = vmatpush.bf16.msra.mxu0 %v54_v3  ;;  %104 = vmatpush.bf16.msra.mxu1 %v54_v3 }
   0xb   :  { %63 = vmatpush.bf16.msra.mxu0 %v103_v4  ;;  %105 = vmatpush.bf16.msra.mxu1 %v103_v4 }
   0xe   :  { %99 = vmatmul.msk.bf16.vlgmr.msra.gmra.mxu0 %vm45_vm1, %v101_v5  ;;  %100 = vmatmul.msk.bf16.vlgmr.msra.gmra.mxu1 %vm45_vm1, %v102_v6 }
  0x8b   :  { %v65_v8 = vpop.f32.mrf.mxu0  ;;  %v70_v9 = vpop.f32.mrf.mxu1 }
  0x8c   :  { %v66_v10 = vadd.f32 %v106_v7, %v65_v8  ;;  %v71_v11 = vadd.f32 %v106_v7, %v70_v9 }
  0x8e   :  { %v75_v12 = vmax.f32 %v66_v10, 0.0  ;;  %v77_v13 = vmax.f32 %v71_v11, 0.0 }
  0x90   :  { %79 = vst.msk [vmem:[%s163_s3] sm:$0xff] %vm45_vm1, %v75_v12 }
  0x91   :  { %81 = vst.msk [vmem:[%s163_s3 + $0x10] sm:$0xff] %vm45_vm1, %v77_v13 }
  0x93   :  { %v67_v14 = vpop.f32.mrf.mxu0  ;;  %v72_v15 = vpop.f32.mrf.mxu1 }
  0x94   :  { %v68_v16 = vadd.f32 %v106_v7, %v67_v14  ;;  %v73_v17 = vadd.f32 %v106_v7, %v72_v15 }
  0x96   :  { %v76_v18 = vmax.f32 %v68_v16, 0.0  ;;  %v78_v19 = vmax.f32 %v73_v17, 0.0 }
  0x98   :  { %80 = vst.msk [vmem:[%s163_s3 + $0x8] sm:$0xff] %vm45_vm1, %v76_v18 }
  0x99   :  { %82 = vst.msk [vmem:[%s163_s3 + $0x18] sm:$0xff] %vm45_vm1, %v78_v19 }

// kernel: upsampling_forward.8
= control target key start
LH: loop header
LB: loop body
LE: loop exit
PB: predicated region body
PF: predicated region fallthrough
CT: control target
= control target key end

     0   :  { %s707_s12 = smov 0   ;;  %s850_s0 = inlined_call_operand.vmem [shape: bf16[512,3], index: 0, kind: input, shape index: {}]   ;;  %s851_s1 = inlined_call_operand.vmem [shape: bf16[3,8], index: 1, kind: input, shape index: {}]   ;;  %s852_s2 = inlined_call_operand.vmem [shape: f32[1,8], index: 2, kind: input, shape index: {}]   ;;  %s853_s3 = inlined_call_operand.vmem [shape: f32[512,8], index: 3, kind: output, shape index: {}]  }
   0x1 LB: > { %s558_s13 = sadd.s32 4294967295, %s684_s12   ;;  %p562_p0 = scmp.ge.s32.totalorder %s684_s12, 1  ;;  %s684_s12 = sphi %s707_s12, %s13_s12  }
   0x2   : > { %p138_p1 = scmp.lt.s32.totalorder %s684_s12, 3 }
   0x4   : > { %p139_p2 = pnand %p562_p0, %p138_p1 }
   0x5   : > { %s563_s16 = sshll.u32 (!%p139_p2), %s558_s13, 5 }
   0x6   : > { %142 = sbr.rel (%p139_p2) target bundleno = 214 (0xd6), region = 32  ;;  %p163_p3 = scmp.lt.s32.totalorder (!%p139_p2), %s563_s16, 63 }
   0xb   : > { %v207_v0 = vld [vmem:[%s851_s1] sm:$0x3]  ;;  %vm341_vm0 = vcmask 1040384   ;;  %vm342_vm1 = vcmask 1041408   ;;  %v686_v1 = vmov 65535   ;;  %s855_s16 = smov (!%p163_p3, %s563_s16), 63 }
   0xc   : > { %v343_v2 = vsel %vm341_vm0, 4294967295, %v686_v1  ;;  %s564_s17 = sshll.u32 %s855_s16, 2  ;;  %vm292_vm2 = vcmask 23552   ;;  %v743_v21 = vld [vmem:[%s852_s2] ss:$0 sm:$0xff]  ;;  %s566_s23 = sshll.u32 %s855_s16, 3 }
   0xd   : > { %v344_v3 = vsel %vm342_vm1, %v343_v2, 0  ;;  %s166_s20 = scalar_lea.vmem %s850_s0, %s564_s17  ;;  %s751_s26 = scalar_lea.vmem %s853_s3, %s566_s23  ;;  %vm469_vm3 = vcmask 64512  }
   0xe   : > { %v346_v4 = vand.u32 %v344_v3, %v207_v0  ;;  %v649_v5 = vld [vmem:[%s166_s20] sm:$0xff]  ;;  %v650_v9 = vld [vmem:[%s166_s20 + $0x8] sm:$0xff]  ;;  %v651_v13 = vld [vmem:[%s166_s20 + $0x10] sm:$0xff] }
   0xf   : > { %v653_v6 = vld [vmem:[%s166_s20 + $0x20] sm:$0xff]  ;;  %v654_v10 = vld [vmem:[%s166_s20 + $0x28] sm:$0xff]  ;;  %v655_v14 = vld [vmem:[%s166_s20 + $0x30] sm:$0xff] }
  0x10   : > { %355 = vmatpush.bf16.msra.mxu0 %v346_v4  ;;  %665 = vmatpush.bf16.msra.mxu1 %v346_v4  ;;  %v657_v7 = vld [vmem:[%s166_s20 + $0x40] sm:$0xff]  ;;  %v658_v11 = vld [vmem:[%s166_s20 + $0x48] sm:$0xff]  ;;  %v659_v15 = vld [vmem:[%s166_s20 + $0x50] sm:$0xff] }
  0x11   : > { %666 = vmatpush.bf16.msra.mxu2 %v346_v4  ;;  %667 = vmatpush.bf16.msra.mxu3 %v346_v4  ;;  %v661_v8 = vld [vmem:[%s166_s20 + $0x60] sm:$0xff]  ;;  %v662_v12 = vld [vmem:[%s166_s20 + $0x68] sm:$0xff]  ;;  %v663_v16 = vld [vmem:[%s166_s20 + $0x70] sm:$0xff] }
  0x12   : > { %v652_v17 = vld [vmem:[%s166_s20 + $0x18] sm:$0xff] }
  0x13   : > { %631 = vmatmul.msk.bf16.vlgmr.msra.gmra.mxu0 %vm292_vm2, %v649_v5  ;;  %635 = vmatmul.msk.bf16.vlgmr.msra.gmra.mxu1 %vm292_vm2, %v653_v6  ;;  %v656_v18 = vld [vmem:[%s166_s20 + $0x38] sm:$0xff] }
  0x14   : > { %639 = vmatmul.msk.bf16.vlgmr.msra.gmra.mxu2 %vm292_vm2, %v657_v7  ;;  %643 = vmatmul.msk.bf16.vlgmr.msra.gmra.mxu3 %vm292_vm2, %v661_v8  ;;  %v660_v19 = vld [vmem:[%s166_s20 + $0x58] sm:$0xff] }
  0x15   : > { %v664_v20 = vld [vmem:[%s166_s20 + $0x78] sm:$0xff] }
  0x23   : > { %632 = vmatmul.msk.bf16.gmra.mxu0 %vm292_vm2, %v650_v9  ;;  %636 = vmatmul.msk.bf16.gmra.mxu1 %vm292_vm2, %v654_v10 }
  0x24   : > { %640 = vmatmul.msk.bf16.gmra.mxu2 %vm292_vm2, %v658_v11  ;;  %644 = vmatmul.msk.bf16.gmra.mxu3 %vm292_vm2, %v662_v12 }
  0x33   : > { %633 = vmatmul.msk.bf16.gmra.mxu0 %vm292_vm2, %v651_v13  ;;  %637 = vmatmul.msk.bf16.gmra.mxu1 %vm292_vm2, %v655_v14 }
  0x34   : > { %641 = vmatmul.msk.bf16.gmra.mxu2 %vm292_vm2, %v659_v15  ;;  %645 = vmatmul.msk.bf16.gmra.mxu3 %vm292_vm2, %v663_v16 }
  0x43   : > { %634 = vmatmul.msk.bf16.gmra.mxu0 %vm292_vm2, %v652_v17  ;;  %638 = vmatmul.msk.bf16.gmra.mxu1 %vm292_vm2, %v656_v18 }
  0x44   : > { %642 = vmatmul.msk.bf16.gmra.mxu2 %vm292_vm2, %v660_v19  ;;  %646 = vmatmul.msk.bf16.gmra.mxu3 %vm292_vm2, %v664_v20 }
  0x90   : > { %v357_v22 = vpop.f32.mrf.mxu0  ;;  %v377_v23 = vpop.f32.mrf.mxu1 }
  0x91   : > { %v358_v24 = vadd.f32 %v743_v21, %v357_v22  ;;  %v378_v25 = vadd.f32 %v743_v21, %v377_v23 }
  0x93   : > { %v437_v26 = vmax.f32 %v358_v24, 0.0  ;;  %v445_v27 = vmax.f32 %v378_v25, 0.0 }
  0x95   : > { %470 = vst.msk [vmem:[%s751_s26] sm:$0xff] %vm469_vm3, %v437_v26 }
  0x96   : > { %478 = vst.msk [vmem:[%s751_s26 + $0x40] sm:$0xff] %vm469_vm3, %v445_v27 }
  0x97   : > { %v397_v28 = vpop.f32.mrf.mxu2  ;;  %v417_v29 = vpop.f32.mrf.mxu3 }
  0x98   : > { %v398_v30 = vadd.f32 %v743_v21, %v397_v28  ;;  %v418_v31 = vadd.f32 %v743_v21, %v417_v29  ;;  %v359_v32 = vpop.f32.mrf.mxu0  ;;  %v379_v33 = vpop.f32.mrf.mxu1 }
  0x99   : > { %v360_v34 = vadd.f32 %v743_v21, %v359_v32  ;;  %v380_v35 = vadd.f32 %v743_v21, %v379_v33 }
  0x9a   : > { %v453_v36 = vmax.f32 %v398_v30, 0.0  ;;  %v461_v37 = vmax.f32 %v418_v31, 0.0 }
  0x9b   : > { %v438_v38 = vmax.f32 %v360_v34, 0.0  ;;  %v446_v39 = vmax.f32 %v380_v35, 0.0 }
  0x9c   : > { %486 = vst.msk [vmem:[%s751_s26 + $0x80] sm:$0xff] %vm469_vm3, %v453_v36 }
  0x9d   : > { %494 = vst.msk [vmem:[%s751_s26 + $0xc0] sm:$0xff] %vm469_vm3, %v461_v37 }
  0x9e   : > { %471 = vst.msk [vmem:[%s751_s26 + $0x8] sm:$0xff] %vm469_vm3, %v438_v38 }
  0x9f   : > { %479 = vst.msk [vmem:[%s751_s26 + $0x48] sm:$0xff] %vm469_vm3, %v446_v39  ;;  %v399_v40 = vpop.f32.mrf.mxu2  ;;  %v419_v41 = vpop.f32.mrf.mxu3 }
  0xa0   : > { %v400_v42 = vadd.f32 %v743_v21, %v399_v40  ;;  %v420_v43 = vadd.f32 %v743_v21, %v419_v41  ;;  %v362_v44 = vpop.f32.mrf.mxu0  ;;  %v382_v45 = vpop.f32.mrf.mxu1 }
  0xa1   : > { %v363_v46 = vadd.f32 %v743_v21, %v362_v44  ;;  %v383_v47 = vadd.f32 %v743_v21, %v382_v45 }
  0xa2   : > { %v454_v48 = vmax.f32 %v400_v42, 0.0  ;;  %v462_v49 = vmax.f32 %v420_v43, 0.0 }
  0xa3   : > { %v439_v50 = vmax.f32 %v363_v46, 0.0  ;;  %v447_v51 = vmax.f32 %v383_v47, 0.0 }
  0xa4   : > { %487 = vst.msk [vmem:[%s751_s26 + $0x88] sm:$0xff] %vm469_vm3, %v454_v48 }
  0xa5   : > { %495 = vst.msk [vmem:[%s751_s26 + $0xc8] sm:$0xff] %vm469_vm3, %v462_v49 }
  0xa6   : > { %472 = vst.msk [vmem:[%s751_s26 + $0x10] sm:$0xff] %vm469_vm3, %v439_v50 }
  0xa7   : > { %480 = vst.msk [vmem:[%s751_s26 + $0x50] sm:$0xff] %vm469_vm3, %v447_v51  ;;  %v402_v52 = vpop.f32.mrf.mxu2  ;;  %v422_v53 = vpop.f32.mrf.mxu3 }
  0xa8   : > { %v403_v54 = vadd.f32 %v743_v21, %v402_v52  ;;  %v423_v55 = vadd.f32 %v743_v21, %v422_v53  ;;  %v364_v56 = vpop.f32.mrf.mxu0  ;;  %v384_v57 = vpop.f32.mrf.mxu1 }
  0xa9   : > { %v365_v58 = vadd.f32 %v743_v21, %v364_v56  ;;  %v385_v59 = vadd.f32 %v743_v21, %v384_v57 }
  0xaa   : > { %v455_v60 = vmax.f32 %v403_v54, 0.0  ;;  %v463_v61 = vmax.f32 %v423_v55, 0.0 }
  0xab   : > { %v440_v62 = vmax.f32 %v365_v58, 0.0  ;;  %v448_v63 = vmax.f32 %v385_v59, 0.0 }
  0xac   : > { %488 = vst.msk [vmem:[%s751_s26 + $0x90] sm:$0xff] %vm469_vm3, %v455_v60 }
  0xad   : > { %496 = vst.msk [vmem:[%s751_s26 + $0xd0] sm:$0xff] %vm469_vm3, %v463_v61 }
  0xae   : > { %473 = vst.msk [vmem:[%s751_s26 + $0x18] sm:$0xff] %vm469_vm3, %v440_v62 }
  0xaf   : > { %481 = vst.msk [vmem:[%s751_s26 + $0x58] sm:$0xff] %vm469_vm3, %v448_v63  ;;  %v404_v0 = vpop.f32.mrf.mxu2  ;;  %v424_v1 = vpop.f32.mrf.mxu3 }
  0xb0   : > { %v405_v2 = vadd.f32 %v743_v21, %v404_v0  ;;  %v425_v3 = vadd.f32 %v743_v21, %v424_v1  ;;  %v367_v4 = vpop.f32.mrf.mxu0  ;;  %v387_v5 = vpop.f32.mrf.mxu1 }
  0xb1   : > { %v368_v6 = vadd.f32 %v743_v21, %v367_v4  ;;  %v388_v7 = vadd.f32 %v743_v21, %v387_v5 }
  0xb2   : > { %v456_v8 = vmax.f32 %v405_v2, 0.0  ;;  %v464_v9 = vmax.f32 %v425_v3, 0.0 }
  0xb3   : > { %v441_v10 = vmax.f32 %v368_v6, 0.0  ;;  %v449_v11 = vmax.f32 %v388_v7, 0.0 }
  0xb4   : > { %489 = vst.msk [vmem:[%s751_s26 + $0x98] sm:$0xff] %vm469_vm3, %v456_v8 }
  0xb5   : > { %497 = vst.msk [vmem:[%s751_s26 + $0xd8] sm:$0xff] %vm469_vm3, %v464_v9 }
  0xb6   : > { %474 = vst.msk [vmem:[%s751_s26 + $0x20] sm:$0xff] %vm469_vm3, %v441_v10 }
  0xb7   : > { %482 = vst.msk [vmem:[%s751_s26 + $0x60] sm:$0xff] %vm469_vm3, %v449_v11  ;;  %v407_v12 = vpop.f32.mrf.mxu2  ;;  %v427_v13 = vpop.f32.mrf.mxu3 }
  0xb8   : > { %v408_v14 = vadd.f32 %v743_v21, %v407_v12  ;;  %v428_v15 = vadd.f32 %v743_v21, %v427_v13  ;;  %v369_v16 = vpop.f32.mrf.mxu0  ;;  %v389_v17 = vpop.f32.mrf.mxu1 }
  0xb9   : > { %v370_v18 = vadd.f32 %v743_v21, %v369_v16  ;;  %v390_v19 = vadd.f32 %v743_v21, %v389_v17 }
  0xba   : > { %v457_v20 = vmax.f32 %v408_v14, 0.0  ;;  %v465_v22 = vmax.f32 %v428_v15, 0.0 }
  0xbb   : > { %v442_v23 = vmax.f32 %v370_v18, 0.0  ;;  %v450_v24 = vmax.f32 %v390_v19, 0.0 }
  0xbc   : > { %490 = vst.msk [vmem:[%s751_s26 + $0xa0] sm:$0xff] %vm469_vm3, %v457_v20 }
  0xbd   : > { %498 = vst.msk [vmem:[%s751_s26 + $0xe0] sm:$0xff] %vm469_vm3, %v465_v22 }
  0xbe   : > { %475 = vst.msk [vmem:[%s751_s26 + $0x28] sm:$0xff] %vm469_vm3, %v442_v23 }
  0xbf   : > { %483 = vst.msk [vmem:[%s751_s26 + $0x68] sm:$0xff] %vm469_vm3, %v450_v24  ;;  %v409_v25 = vpop.f32.mrf.mxu2  ;;  %v429_v26 = vpop.f32.mrf.mxu3 }
  0xc0   : > { %v410_v27 = vadd.f32 %v743_v21, %v409_v25  ;;  %v430_v28 = vadd.f32 %v743_v21, %v429_v26  ;;  %v372_v29 = vpop.f32.mrf.mxu0  ;;  %v392_v30 = vpop.f32.mrf.mxu1 }
  0xc1   : > { %v373_v31 = vadd.f32 %v743_v21, %v372_v29  ;;  %v393_v32 = vadd.f32 %v743_v21, %v392_v30 }
  0xc2   : > { %v458_v33 = vmax.f32 %v410_v27, 0.0  ;;  %v466_v34 = vmax.f32 %v430_v28, 0.0 }
  0xc3   : > { %v443_v35 = vmax.f32 %v373_v31, 0.0  ;;  %v451_v36 = vmax.f32 %v393_v32, 0.0 }
  0xc4   : > { %491 = vst.msk [vmem:[%s751_s26 + $0xa8] sm:$0xff] %vm469_vm3, %v458_v33 }
  0xc5   : > { %499 = vst.msk [vmem:[%s751_s26 + $0xe8] sm:$0xff] %vm469_vm3, %v466_v34 }
  0xc6   : > { %476 = vst.msk [vmem:[%s751_s26 + $0x30] sm:$0xff] %vm469_vm3, %v443_v35 }
  0xc7   : > { %484 = vst.msk [vmem:[%s751_s26 + $0x70] sm:$0xff] %vm469_vm3, %v451_v36  ;;  %v412_v37 = vpop.f32.mrf.mxu2  ;;  %v432_v38 = vpop.f32.mrf.mxu3 }
  0xc8   : > { %v413_v39 = vadd.f32 %v743_v21, %v412_v37  ;;  %v433_v40 = vadd.f32 %v743_v21, %v432_v38  ;;  %v374_v41 = vpop.f32.mrf.mxu0  ;;  %v394_v42 = vpop.f32.mrf.mxu1 }
  0xc9   : > { %v375_v43 = vadd.f32 %v743_v21, %v374_v41  ;;  %v395_v44 = vadd.f32 %v743_v21, %v394_v42 }
  0xca   : > { %v459_v45 = vmax.f32 %v413_v39, 0.0  ;;  %v467_v46 = vmax.f32 %v433_v40, 0.0 }
  0xcb   : > { %v444_v47 = vmax.f32 %v375_v43, 0.0  ;;  %v452_v48 = vmax.f32 %v395_v44, 0.0 }
  0xcc   : > { %492 = vst.msk [vmem:[%s751_s26 + $0xb0] sm:$0xff] %vm469_vm3, %v459_v45 }
  0xcd   : > { %500 = vst.msk [vmem:[%s751_s26 + $0xf0] sm:$0xff] %vm469_vm3, %v467_v46 }
  0xce   : > { %477 = vst.msk [vmem:[%s751_s26 + $0x38] sm:$0xff] %vm469_vm3, %v444_v47 }
  0xcf   : > { %485 = vst.msk [vmem:[%s751_s26 + $0x78] sm:$0xff] %vm469_vm3, %v452_v48  ;;  %v414_v49 = vpop.f32.mrf.mxu2  ;;  %v434_v50 = vpop.f32.mrf.mxu3 }
  0xd0   : > { %v415_v51 = vadd.f32 %v743_v21, %v414_v49  ;;  %v435_v52 = vadd.f32 %v743_v21, %v434_v50 }
  0xd2   : > { %v460_v53 = vmax.f32 %v415_v51, 0.0  ;;  %v468_v54 = vmax.f32 %v435_v52, 0.0 }
  0xd4   : > { %493 = vst.msk [vmem:[%s751_s26 + $0xb8] sm:$0xff] %vm469_vm3, %v460_v53 }
  0xd5   : > { %501 = vst.msk [vmem:[%s751_s26 + $0xf8] sm:$0xff] %vm469_vm3, %v468_v54 }
  0xd6 PF: > { %s13_s12 = sadd.s32 1, %s684_s12  }
  0xd7   : > { %p10_p4 = scmp.ge.s32.totalorder %s13_s12, 4  }
  0xd9   :  { %12 = sbr.rel (!%p10_p4) target bundleno = 1 (0x1), region = 62 }

// kernel: upsampling_forward.11
= control target key start
LH: loop header
LB: loop body
LE: loop exit
PB: predicated region body
PF: predicated region fallthrough
CT: control target
= control target key end

     0   :  { %vm76_vm0 = vcmask 1043456   ;;  %vm69_vm1 = vcmask 588800   ;;  %vm175_vm6 = vcmask 195584   ;;  %s302_s1 = inlined_call_operand.vmem [shape: bf16[72,24], index: 1, kind: input, shape index: {}]   ;;  %s303_s2 = inlined_call_operand.vmem [shape: f32[1,24], index: 2, kind: input, shape index: {}]   ;;  %s304_s0 = inlined_call_operand.vmem [shape: bf16[32,72], index: 0, kind: input, shape index: {}]   ;;  %s305_s3 = inlined_call_operand.vmem [shape: f32[32,24], index: 3, kind: output, shape index: {}]  }
   0x1   :  { %v27_v0 = vld [vmem:[%s302_s1 + $0x20] sm:$0xf]  ;;  %v219_v4 = vld [vmem:[%s302_s1 + $0x18] sm:$0xff]  ;;  %v218_v5 = vld [vmem:[%s302_s1 + $0x10] sm:$0xff] }
   0x2   :  { %v59_v1 = vunpack.c.l.b16 %v27_v0  ;;  %v217_v6 = vld [vmem:[%s302_s1 + $0x8] sm:$0xff]  ;;  %v216_v7 = vld [vmem:[%s302_s1] sm:$0xff] }
   0x3   :  { %v214_v8 = vld [vmem:[%s304_s0] sm:$0xff]  ;;  %v215_v9 = vld [vmem:[%s304_s0 + $0x8] sm:$0xff] }
   0x4   :  { %v64_v2 = vpack.c.b16 %v59_v1, %v59_v1  ;;  %v225_v10 = vld [vmem:[%s303_s2] ss:$0 sm:$0xff] }
   0x6   :  { %v78_v3 = vsel %vm76_vm0, %v64_v2, 0 }
   0x7   :  { %83 = vmatpush.bf16.msra.mxu0 %v78_v3  ;;  %220 = vmatpush.bf16.msra.mxu1 %v78_v3 }
   0xb   :  { %84 = vmatpush.bf16.msra.mxu0 %v219_v4  ;;  %221 = vmatpush.bf16.msra.mxu1 %v219_v4 }
   0xf   :  { %85 = vmatpush.bf16.msra.mxu0 %v218_v5  ;;  %222 = vmatpush.bf16.msra.mxu1 %v218_v5 }
  0x13   :  { %86 = vmatpush.bf16.msra.mxu0 %v217_v6  ;;  %223 = vmatpush.bf16.msra.mxu1 %v217_v6 }
  0x17   :  { %87 = vmatpush.bf16.msra.mxu0 %v216_v7  ;;  %224 = vmatpush.bf16.msra.mxu1 %v216_v7 }
  0x1a   :  { %208 = vmatmul.msk.bf16.vlgmr.msra.gmra.mxu0 %vm69_vm1, %v214_v8  ;;  %209 = vmatmul.msk.bf16.vlgmr.msra.gmra.mxu1 %vm69_vm1, %v215_v9 }
  0x97   :  { %v89_v11 = vpop.f32.mrf.mxu0  ;;  %v94_v12 = vpop.f32.mrf.mxu1 }
  0x98   :  { %v90_v13 = vadd.f32 %v225_v10, %v89_v11  ;;  %v95_v14 = vadd.f32 %v225_v10, %v94_v12 }
  0x9a   :  { %v210_v15 = vmul.f32 -1.442695, %v90_v13  ;;  %v212_v16 = vmul.f32 -1.442695, %v95_v14 }
  0x9c   :  { %226 = vpow2.f32 %v210_v15 }
  0x9d   :  { %228 = vpow2.f32 %v212_v16 }
  0x9f   :  { %v91_v17 = vpop.f32.mrf.mxu0  ;;  %v96_v18 = vpop.f32.mrf.mxu1 }
  0xa0   :  { %v92_v19 = vadd.f32 %v225_v10, %v91_v17  ;;  %v97_v20 = vadd.f32 %v225_v10, %v96_v18 }
  0xa2   :  { %v227_v21 = vpop.eup %226  ;;  %v211_v22 = vmul.f32 -1.442695, %v92_v19  ;;  %v213_v25 = vmul.f32 -1.442695, %v97_v20 }
  0xa3   :  { %v229_v23 = vpop.eup %228  ;;  %v111_v24 = vadd.f32 1.0, %v227_v21 }
  0xa4   :  { %v113_v26 = vadd.f32 1.0, %v229_v23  ;;  %230 = vpow2.f32 %v211_v22 }
  0xa5   :  { %232 = vrcp.f32 %v111_v24  ;;  %v124_v36 = vand.u32 2147483647, %v111_v24  ;;  %v126_v37 = vand.u32 2147483648, %v111_v24  ;;  %vm120_vm4 = vweird.f32 %v111_v24 }
  0xa6   :  { %234 = vrcp.f32 %v113_v26  ;;  %v156_v40 = vand.u32 2147483648, %v113_v26  ;;  %v154_v42 = vand.u32 2147483647, %v113_v26  ;;  %vm150_vm7 = vweird.f32 %v113_v26 }
  0xa7   :  { %236 = vpow2.f32 %v213_v25  ;;  %v127_v45 = vor.u32 1.1754944e-38, %v126_v37  ;;  %vm125_vm8 = vcmp.eq.f32.partialorder %v124_v36, 8.507059e+37 }
  0xa8   :  { %v157_v48 = vor.u32 1.1754944e-38, %v156_v40  ;;  %vm155_vm10 = vcmp.eq.f32.partialorder %v154_v42, 8.507059e+37 }
  0xaa   :  { %v231_v27 = vpop.eup %230 }
  0xab   :  { %v233_v28 = vpop.eup %232  ;;  %v112_v29 = vadd.f32 1.0, %v231_v27 }
  0xac   :  { %v235_v30 = vpop.eup %234  ;;  %v116_v31 = vmul.f32 %v233_v28, %v111_v24  ;;  %vm121_vm2 = vweird.f32 %v233_v28 }
  0xad   :  { %v237_v32 = vpop.eup %236  ;;  %v146_v33 = vmul.f32 %v235_v30, %v113_v26  ;;  %238 = vrcp.f32 %v112_v29  ;;  %vm151_vm3 = vweird.f32 %v235_v30  ;;  %vm122_vm5 = vmor %vm120_vm4, %vm121_vm2  ;;  %v141_v55 = vand.u32 2147483648, %v112_v29 }
  0xae   :  { %v117_v34 = vsub.f32 1.0, %v116_v31  ;;  %v114_v35 = vadd.f32 1.0, %v237_v32  ;;  %vm152_vm9 = vmor %vm150_vm7, %vm151_vm3  ;;  %v139_v58 = vand.u32 2147483647, %v112_v29  ;;  %vm135_vm12 = vweird.f32 %v112_v29 }
  0xaf   :  { %v147_v38 = vsub.f32 1.0, %v146_v33  ;;  %v142_v62 = vor.u32 1.1754944e-38, %v141_v55 }
  0xb0   :  { %v118_v39 = vmul.f32 %v233_v28, %v117_v34  ;;  %240 = vrcp.f32 %v114_v35  ;;  %v171_v61 = vand.u32 2147483648, %v114_v35  ;;  %v169_v0 = vand.u32 2147483647, %v114_v35 }
  0xb1   :  { %v148_v41 = vmul.f32 %v235_v30, %v147_v38  ;;  %vm140_vm15 = vcmp.eq.f32.partialorder %v139_v58, 8.507059e+37  ;;  %vm165_vm0 = vweird.f32 %v114_v35 }
  0xb2   :  { %v119_v43 = vadd.f32 %v233_v28, %v118_v39  ;;  %v172_v4 = vor.u32 1.1754944e-38, %v171_v61  ;;  %vm170_vm2 = vcmp.eq.f32.partialorder %v169_v0, 8.507059e+37 }
  0xb3   :  { %v239_v44 = vpop.eup %238  ;;  %v149_v46 = vadd.f32 %v235_v30, %v148_v41 }
  0xb4   :  { %v123_v47 = vsel %vm122_vm5, %v233_v28, %v119_v43  ;;  %v131_v49 = vmul.f32 %v239_v44, %v112_v29  ;;  %vm136_vm11 = vweird.f32 %v239_v44 }
  0xb5   :  { %v128_v50 = vsel %vm125_vm8, %v127_v45, %v123_v47  ;;  %v153_v51 = vsel %vm152_vm9, %v235_v30, %v149_v46  ;;  %vm137_vm13 = vmor %vm135_vm12, %vm136_vm11 }
  0xb6   :  { %v241_v52 = vpop.eup %240  ;;  %176 = vst.msk [vmem:[%s305_s3] sm:$0xff] %vm175_vm6, %v128_v50  ;;  %v158_v53 = vsel %vm155_vm10, %v157_v48, %v153_v51  ;;  %v132_v54 = vsub.f32 1.0, %v131_v49 }
  0xb7   :  { %178 = vst.msk [vmem:[%s305_s3 + $0x10] sm:$0xff] %vm175_vm6, %v158_v53  ;;  %v161_v56 = vmul.f32 %v241_v52, %v114_v35  ;;  %vm166_vm14 = vweird.f32 %v241_v52 }
  0xb8   :  { %v133_v57 = vmul.f32 %v239_v44, %v132_v54  ;;  %vm167_vm1 = vmor %vm165_vm0, %vm166_vm14 }
  0xb9   :  { %v162_v59 = vsub.f32 1.0, %v161_v56 }
  0xba   :  { %v134_v60 = vadd.f32 %v239_v44, %v133_v57 }
  0xbb   :  { %v163_v63 = vmul.f32 %v241_v52, %v162_v59 }
  0xbc   :  { %v138_v1 = vsel %vm137_vm13, %v239_v44, %v134_v60 }
  0xbd   :  { %v143_v2 = vsel %vm140_vm15, %v142_v62, %v138_v1  ;;  %v164_v3 = vadd.f32 %v241_v52, %v163_v63 }
  0xbe   :  { %177 = vst.msk [vmem:[%s305_s3 + $0x8] sm:$0xff] %vm175_vm6, %v143_v2 }
  0xbf   :  { %v168_v5 = vsel %vm167_vm1, %v241_v52, %v164_v3 }
  0xc0   :  { %v173_v6 = vsel %vm170_vm2, %v172_v4, %v168_v5 }
  0xc1   :  { %179 = vst.msk [vmem:[%s305_s3 + $0x18] sm:$0xff] %vm175_vm6, %v173_v6 }

// kernel: upsampling_forward.12
= control target key start
LH: loop header
LB: loop body
LE: loop exit
PB: predicated region body
PF: predicated region fallthrough
CT: control target
= control target key end

     0   :  { %vm68_vm0 = vcmask 1043456   ;;  %vm61_vm1 = vcmask 457728   ;;  %vm95_vm2 = vcmask 588800   ;;  %s189_s1 = inlined_call_operand.vmem [shape: bf16[56,72], index: 1, kind: input, shape index: {}]   ;;  %s190_s2 = inlined_call_operand.vmem [shape: f32[1,72], index: 2, kind: input, shape index: {}]   ;;  %s191_s0 = inlined_call_operand.vmem [shape: bf16[32,56], index: 0, kind: input, shape index: {}]   ;;  %s192_s3 = inlined_call_operand.vmem [shape: f32[32,72], index: 3, kind: output, shape index: {}]  }
   0x1   :  { %v25_v0 = vld [vmem:[%s189_s1 + $0x18] sm:$0xf]  ;;  %v130_v4 = vld [vmem:[%s189_s1 + $0x10] sm:$0xff]  ;;  %v129_v5 = vld [vmem:[%s189_s1 + $0x8] sm:$0xff] }
   0x2   :  { %v53_v1 = vunpack.c.l.b16 %v25_v0  ;;  %v128_v6 = vld [vmem:[%s189_s1] sm:$0xff]  ;;  %v127_v8 = vld [vmem:[%s191_s0 + $0x8] sm:$0xff] }
   0x3   :  { %v126_v7 = vld [vmem:[%s191_s0] sm:$0xff] }
   0x4   :  { %v57_v2 = vpack.c.b16 %v53_v1, %v53_v1  ;;  %v135_v9 = vld [vmem:[%s190_s2] ss:$0 sm:$0xff] }
   0x6   :  { %v70_v3 = vsel %vm68_vm0, %v57_v2, 0 }
   0x7   :  { %76 = vmatpush.bf16.msra.mxu0 %v70_v3  ;;  %131 = vmatpush.bf16.msra.mxu1 %v70_v3 }
   0xb   :  { %77 = vmatpush.bf16.msra.mxu0 %v130_v4  ;;  %132 = vmatpush.bf16.msra.mxu1 %v130_v4 }
   0xf   :  { %78 = vmatpush.bf16.msra.mxu0 %v129_v5  ;;  %133 = vmatpush.bf16.msra.mxu1 %v129_v5 }
  0x13   :  { %79 = vmatpush.bf16.msra.mxu0 %v128_v6  ;;  %134 = vmatpush.bf16.msra.mxu1 %v128_v6 }
  0x16   :  { %124 = vmatmul.msk.bf16.vlgmr.msra.gmra.mxu0 %vm61_vm1, %v126_v7  ;;  %125 = vmatmul.msk.bf16.vlgmr.msra.gmra.mxu1 %vm61_vm1, %v127_v8 }
  0x93   :  { %v81_v10 = vpop.f32.mrf.mxu0  ;;  %v86_v11 = vpop.f32.mrf.mxu1 }
  0x94   :  { %v82_v12 = vadd.f32 %v135_v9, %v81_v10  ;;  %v87_v13 = vadd.f32 %v135_v9, %v86_v11 }
  0x96   :  { %v91_v14 = vmax.f32 %v82_v12, 0.0  ;;  %v93_v15 = vmax.f32 %v87_v13, 0.0 }
  0x98   :  { %96 = vst.msk [vmem:[%s192_s3] sm:$0xff] %vm95_vm2, %v91_v14 }
  0x99   :  { %98 = vst.msk [vmem:[%s192_s3 + $0x10] sm:$0xff] %vm95_vm2, %v93_v15 }
  0x9b   :  { %v83_v16 = vpop.f32.mrf.mxu0  ;;  %v88_v17 = vpop.f32.mrf.mxu1 }
  0x9c   :  { %v84_v18 = vadd.f32 %v135_v9, %v83_v16  ;;  %v89_v19 = vadd.f32 %v135_v9, %v88_v17 }
  0x9e   :  { %v92_v20 = vmax.f32 %v84_v18, 0.0  ;;  %v94_v21 = vmax.f32 %v89_v19, 0.0 }
  0xa0   :  { %97 = vst.msk [vmem:[%s192_s3 + $0x8] sm:$0xff] %vm95_vm2, %v92_v20 }
  0xa1   :  { %99 = vst.msk [vmem:[%s192_s3 + $0x18] sm:$0xff] %vm95_vm2, %v94_v21 }

// kernel: upsampling_forward.13
= control target key start
LH: loop header
LB: loop body
LE: loop exit
PB: predicated region body
PF: predicated region fallthrough
CT: control target
= control target key end

     0   :  { %vm323_vm0 = vcmask 1043456   ;;  %vm316_vm1 = vcmask 982016   ;;  %vm479_vm5 = vcmask 588800   ;;  %s891_s1 = inlined_call_operand.vmem [shape: bf16[504,72], index: 1, kind: input, shape index: {}]   ;;  %s892_s2 = inlined_call_operand.vmem [shape: f32[1,72], index: 2, kind: input, shape index: {}]   ;;  %s893_s0 = inlined_call_operand.vmem [shape: bf16[32,504], index: 0, kind: input, shape index: {}]   ;;  %s894_s3 = inlined_call_operand.vmem [shape: f32[32,72], index: 3, kind: output, shape index: {}]  }
   0x1   :  { %v665_v0 = vld [vmem:[%s891_s1 + $0x38] sm:$0xff]  ;;  %v664_v5 = vld [vmem:[%s891_s1 + $0x30] sm:$0xff]  ;;  %v663_v10 = vld [vmem:[%s891_s1 + $0x28] sm:$0xff] }
   0x2   :  { %v673_v1 = vld [vmem:[%s891_s1 + $0x78] sm:$0xff]  ;;  %327 = vmatpush.bf16.msra.mxu0 %v665_v0  ;;  %v672_v6 = vld [vmem:[%s891_s1 + $0x70] sm:$0xff]  ;;  %v671_v11 = vld [vmem:[%s891_s1 + $0x68] sm:$0xff] }
   0x3   :  { %v681_v2 = vld [vmem:[%s891_s1 + $0xb8] sm:$0xff]  ;;  %346 = vmatpush.bf16.msra.mxu1 %v673_v1  ;;  %v680_v7 = vld [vmem:[%s891_s1 + $0xb0] sm:$0xff]  ;;  %v679_v13 = vld [vmem:[%s891_s1 + $0xa8] sm:$0xff] }
   0x4   :  { %v84_v3 = vld [vmem:[%s891_s1 + $0xf8] sm:$0xf]  ;;  %365 = vmatpush.bf16.msra.mxu2 %v681_v2  ;;  %v688_v12 = vld [vmem:[%s891_s1 + $0xf0] sm:$0xff]  ;;  %v662_v14 = vld [vmem:[%s891_s1 + $0x20] sm:$0xff] }
   0x5   :  { %v252_v4 = vunpack.c.l.b16 %v84_v3  ;;  %v670_v15 = vld [vmem:[%s891_s1 + $0x60] sm:$0xff]  ;;  %v687_v16 = vld [vmem:[%s891_s1 + $0xe8] sm:$0xff]  ;;  %v661_v18 = vld [vmem:[%s891_s1 + $0x18] sm:$0xff] }
   0x6   :  { %328 = vmatpush.bf16.msra.mxu0 %v664_v5  ;;  %v678_v17 = vld [vmem:[%s891_s1 + $0xa0] sm:$0xff]  ;;  %v669_v19 = vld [vmem:[%s891_s1 + $0x58] sm:$0xff]  ;;  %v660_v22 = vld [vmem:[%s891_s1 + $0x10] sm:$0xff] }
   0x7   :  { %v284_v8 = vpack.c.b16 %v252_v4, %v252_v4  ;;  %347 = vmatpush.bf16.msra.mxu1 %v672_v6  ;;  %v686_v20 = vld [vmem:[%s891_s1 + $0xe0] sm:$0xff]  ;;  %v677_v21 = vld [vmem:[%s891_s1 + $0x98] sm:$0xff]  ;;  %v668_v23 = vld [vmem:[%s891_s1 + $0x50] sm:$0xff] }
   0x8   :  { %366 = vmatpush.bf16.msra.mxu2 %v680_v7  ;;  %v685_v24 = vld [vmem:[%s891_s1 + $0xd8] sm:$0xff]  ;;  %v676_v25 = vld [vmem:[%s891_s1 + $0x90] sm:$0xff]  ;;  %v659_v26 = vld [vmem:[%s891_s1 + $0x8] sm:$0xff] }
   0x9   :  { %v325_v9 = vsel %vm323_vm0, %v284_v8, 0  ;;  %v667_v27 = vld [vmem:[%s891_s1 + $0x48] sm:$0xff]  ;;  %v684_v28 = vld [vmem:[%s891_s1 + $0xd0] sm:$0xff]  ;;  %v658_v31 = vld [vmem:[%s891_s1] sm:$0xff] }
   0xa   :  { %384 = vmatpush.bf16.msra.mxu3 %v325_v9  ;;  %329 = vmatpush.bf16.msra.mxu0 %v663_v10  ;;  %v675_v29 = vld [vmem:[%s891_s1 + $0x88] sm:$0xff]  ;;  %v666_v32 = vld [vmem:[%s891_s1 + $0x40] sm:$0xff]  ;;  %v652_v34 = vld [vmem:[%s893_s0 + $0xc] sm:$0xf0] }
   0xb   :  { %348 = vmatpush.bf16.msra.mxu1 %v671_v11  ;;  %v683_v30 = vld [vmem:[%s891_s1 + $0xc8] sm:$0xff]  ;;  %v490_v33 = vld [vmem:[%s893_s0] sm:$0xf]  ;;  %v650_v35 = vld [vmem:[%s893_s0 + $0x4] sm:$0xf] }
   0xc   :  { %367 = vmatpush.bf16.msra.mxu2 %v679_v13  ;;  %v492_v36 = vld [vmem:[%s893_s0 + $0x10] sm:$0xf0]  ;;  %v674_v37 = vld [vmem:[%s891_s1 + $0x80] sm:$0xff]  ;;  %v498_v38 = vld [vmem:[%s893_s0 + $0x8] sm:$0xf]  ;;  %v491_v40 = vor.u32 %v652_v34, %v490_v33 }
   0xd   :  { %v653_v39 = vld [vmem:[%s893_s0 + $0x14] sm:$0xf0]  ;;  %v495_v41 = vor.u32 %v650_v35, %v492_v36  ;;  %v682_v43 = vld [vmem:[%s891_s1 + $0xc0] sm:$0xff]  ;;  %v651_v44 = vld [vmem:[%s893_s0 + $0xc] sm:$0xf] }
   0xe   :  { %385 = vmatpush.bf16.msra.mxu3 %v688_v12  ;;  %330 = vmatpush.bf16.msra.mxu0 %v662_v14  ;;  %v499_v42 = vor.u32 %v653_v39, %v498_v38  ;;  %v500_v45 = vld [vmem:[%s893_s0 + $0x18] sm:$0xf0]  ;;  %v506_v47 = vld [vmem:[%s893_s0 + $0x20] sm:$0xf]  ;;  %v656_v48 = vld [vmem:[%s893_s0 + $0x2c] sm:$0xf0] }
   0xf   :  { %349 = vmatpush.bf16.msra.mxu1 %v670_v15  ;;  %v503_v46 = vor.u32 %v651_v44, %v500_v45  ;;  %v654_v49 = vld [vmem:[%s893_s0 + $0x24] sm:$0xf]  ;;  %v508_v50 = vld [vmem:[%s893_s0 + $0x30] sm:$0xf0]  ;;  %v514_v51 = vld [vmem:[%s893_s0 + $0x28] sm:$0xf]  ;;  %v507_v53 = vor.u32 %v656_v48, %v506_v47 }
  0x10   :  { %368 = vmatpush.bf16.msra.mxu2 %v678_v17  ;;  %v657_v52 = vld [vmem:[%s893_s0 + $0x34] sm:$0xf0]  ;;  %v511_v54 = vor.u32 %v654_v49, %v508_v50  ;;  %v655_v56 = vld [vmem:[%s893_s0 + $0x2c] sm:$0xf]  ;;  %v516_v57 = vld [vmem:[%s893_s0 + $0x38] sm:$0xf0] }
  0x11   :  { %v515_v55 = vor.u32 %v657_v52, %v514_v51  ;;  %v519_v58 = vor.u32 %v655_v56, %v516_v57  ;;  %v689_v59 = vld [vmem:[%s892_s2] ss:$0 sm:$0xff] }
  0x12   :  { %386 = vmatpush.bf16.msra.mxu3 %v687_v16  ;;  %331 = vmatpush.bf16.msra.mxu0 %v661_v18 }
  0x13   :  { %350 = vmatpush.bf16.msra.mxu1 %v669_v19 }
  0x14   :  { %369 = vmatpush.bf16.msra.mxu2 %v677_v21 }
  0x16   :  { %387 = vmatpush.bf16.msra.mxu3 %v686_v20  ;;  %332 = vmatpush.bf16.msra.mxu0 %v660_v22 }
  0x17   :  { %351 = vmatpush.bf16.msra.mxu1 %v668_v23 }
  0x18   :  { %370 = vmatpush.bf16.msra.mxu2 %v676_v25 }
  0x1a   :  { %388 = vmatpush.bf16.msra.mxu3 %v685_v24  ;;  %333 = vmatpush.bf16.msra.mxu0 %v659_v26 }
  0x1b   :  { %352 = vmatpush.bf16.msra.mxu1 %v667_v27 }
  0x1c   :  { %371 = vmatpush.bf16.msra.mxu2 %v675_v29 }
  0x1e   :  { %389 = vmatpush.bf16.msra.mxu3 %v684_v28  ;;  %334 = vmatpush.bf16.msra.mxu0 %v658_v31 }
  0x1f   :  { %353 = vmatpush.bf16.msra.mxu1 %v666_v32 }
  0x20   :  { %372 = vmatpush.bf16.msra.mxu2 %v674_v37 }
  0x21   :  { %335 = vmatmul.bf16.vlgmr.msra.gmra.mxu0 %v491_v40 }
  0x22   :  { %390 = vmatpush.bf16.msra.mxu3 %v683_v30  ;;  %354 = vmatmul.bf16.vlgmr.msra.gmra.mxu1 %v495_v41 }
  0x23   :  { %373 = vmatmul.bf16.vlgmr.msra.gmra.mxu2 %v499_v42 }
  0x26   :  { %391 = vmatpush.bf16.msra.mxu3 %v682_v43 }
  0x29   :  { %644 = vmatmul.msk.bf16.vlgmr.msra.gmra.mxu3 %vm316_vm1, %v503_v46 }
  0x31   :  { %340 = vmatmul.bf16.gmra.mxu0 %v507_v53 }
  0x32   :  { %359 = vmatmul.bf16.gmra.mxu1 %v511_v54 }
  0x33   :  { %378 = vmatmul.bf16.gmra.mxu2 %v515_v55 }
  0x39   :  { %645 = vmatmul.msk.bf16.gmra.mxu3 %vm316_vm1, %v519_v58 }
  0x9e   :  { %v336_v60 = vpop.f32.mrf.mxu0 }
  0x9f   :  { %v355_v61 = vpop.f32.mrf.mxu1  ;;  %v337_v62 = vadd.f32 %v689_v59, %v336_v60 }
  0xa1   :  { %v356_v63 = vadd.f32 %v355_v61, %v337_v62 }
  0xa6   :  { %v374_v0 = vpop.f32.mrf.mxu2  ;;  %v338_v2 = vpop.f32.mrf.mxu0 }
  0xa7   :  { %v375_v1 = vadd.f32 %v374_v0, %v356_v63  ;;  %v357_v3 = vpop.f32.mrf.mxu1  ;;  %v339_v5 = vadd.f32 %v689_v59, %v338_v2 }
  0xa9   :  { %v358_v9 = vadd.f32 %v357_v3, %v339_v5 }
  0xac   :  { %v393_v4 = vpop.f32.mrf.mxu3 }
  0xad   :  { %v394_v6 = vadd.f32 %v393_v4, %v375_v1 }
  0xae   :  { %v376_v8 = vpop.f32.mrf.mxu2  ;;  %v341_v10 = vpop.f32.mrf.mxu0 }
  0xaf   :  { %v646_v7 = vmul.f32 -1.442695, %v394_v6  ;;  %v342_v11 = vadd.f32 %v689_v59, %v341_v10  ;;  %v377_v12 = vadd.f32 %v376_v8, %v358_v9  ;;  %v360_v13 = vpop.f32.mrf.mxu1 }
  0xb1   :  { %690 = vpow2.f32 %v646_v7  ;;  %v361_v15 = vadd.f32 %v360_v13, %v342_v11 }
  0xb4   :  { %v395_v14 = vpop.f32.mrf.mxu3 }
  0xb5   :  { %v396_v16 = vadd.f32 %v395_v14, %v377_v12 }
  0xb6   :  { %v379_v20 = vpop.f32.mrf.mxu2  ;;  %v343_v22 = vpop.f32.mrf.mxu0 }
  0xb7   :  { %v691_v17 = vpop.eup %690  ;;  %v647_v18 = vmul.f32 -1.442695, %v396_v16  ;;  %v380_v21 = vadd.f32 %v379_v20, %v361_v15  ;;  %v344_v24 = vadd.f32 %v689_v59, %v343_v22  ;;  %v362_v30 = vpop.f32.mrf.mxu1 }
  0xb8   :  { %v415_v19 = vadd.f32 1.0, %v691_v17 }
  0xb9   :  { %692 = vpow2.f32 %v647_v18  ;;  %v363_v33 = vadd.f32 %v362_v30, %v344_v24 }
  0xba   :  { %694 = vrcp.f32 %v415_v19  ;;  %v430_v36 = vand.u32 2147483648, %v415_v19  ;;  %v428_v39 = vand.u32 2147483647, %v415_v19  ;;  %vm424_vm3 = vweird.f32 %v415_v19 }
  0xbc   :  { %v398_v23 = vpop.f32.mrf.mxu3  ;;  %v431_v45 = vor.u32 1.1754944e-38, %v430_v36  ;;  %vm429_vm6 = vcmp.eq.f32.partialorder %v428_v39, 8.507059e+37 }
  0xbd   :  { %v399_v25 = vadd.f32 %v398_v23, %v380_v21 }
  0xbe   :  { %v381_v31 = vpop.f32.mrf.mxu2 }
  0xbf   :  { %v693_v26 = vpop.eup %692  ;;  %v648_v27 = vmul.f32 -1.442695, %v399_v25  ;;  %v382_v35 = vadd.f32 %v381_v31, %v363_v33 }
  0xc0   :  { %v695_v28 = vpop.eup %694  ;;  %v416_v29 = vadd.f32 1.0, %v693_v26 }
  0xc1   :  { %v420_v32 = vmul.f32 %v695_v28, %v415_v19  ;;  %696 = vpow2.f32 %v648_v27  ;;  %vm425_vm2 = vweird.f32 %v695_v28 }
  0xc2   :  { %698 = vrcp.f32 %v416_v29  ;;  %vm426_vm4 = vmor %vm424_vm3, %vm425_vm2  ;;  %v445_v51 = vand.u32 2147483648, %v416_v29  ;;  %v443_v53 = vand.u32 2147483647, %v416_v29  ;;  %vm439_vm8 = vweird.f32 %v416_v29 }
  0xc3   :  { %v421_v34 = vsub.f32 1.0, %v420_v32 }
  0xc4   :  { %v400_v37 = vpop.f32.mrf.mxu3  ;;  %v446_v57 = vor.u32 1.1754944e-38, %v445_v51  ;;  %vm444_vm10 = vcmp.eq.f32.partialorder %v443_v53, 8.507059e+37 }
  0xc5   :  { %v422_v38 = vmul.f32 %v695_v28, %v421_v34  ;;  %v401_v40 = vadd.f32 %v400_v37, %v382_v35 }
  0xc7   :  { %v697_v41 = vpop.eup %696  ;;  %v423_v42 = vadd.f32 %v695_v28, %v422_v38  ;;  %v649_v43 = vmul.f32 -1.442695, %v401_v40 }
  0xc8   :  { %v699_v44 = vpop.eup %698  ;;  %v417_v46 = vadd.f32 1.0, %v697_v41 }
  0xc9   :  { %v427_v47 = vsel %vm426_vm4, %v695_v28, %v423_v42  ;;  %v435_v48 = vmul.f32 %v699_v44, %v416_v29  ;;  %700 = vpow2.f32 %v649_v43  ;;  %vm440_vm7 = vweird.f32 %v699_v44 }
  0xca   :  { %v432_v49 = vsel %vm429_vm6, %v431_v45, %v427_v47  ;;  %702 = vrcp.f32 %v417_v46  ;;  %vm441_vm9 = vmor %vm439_vm8, %vm440_vm7  ;;  %v460_v63 = vand.u32 2147483648, %v417_v46  ;;  %v458_v1 = vand.u32 2147483647, %v417_v46 }
  0xcb   :  { %480 = vst.msk [vmem:[%s894_s3] sm:$0xff] %vm479_vm5, %v432_v49  ;;  %v436_v50 = vsub.f32 1.0, %v435_v48  ;;  %vm454_vm12 = vweird.f32 %v417_v46 }
  0xcc   :  { %v461_v4 = vor.u32 1.1754944e-38, %v460_v63  ;;  %vm459_vm14 = vcmp.eq.f32.partialorder %v458_v1, 8.507059e+37 }
  0xcd   :  { %v437_v52 = vmul.f32 %v699_v44, %v436_v50 }
  0xcf   :  { %v701_v54 = vpop.eup %700  ;;  %v438_v55 = vadd.f32 %v699_v44, %v437_v52 }
  0xd0   :  { %v703_v56 = vpop.eup %702  ;;  %v418_v58 = vadd.f32 1.0, %v701_v54 }
  0xd1   :  { %v442_v59 = vsel %vm441_vm9, %v699_v44, %v438_v55  ;;  %v450_v60 = vmul.f32 %v703_v56, %v417_v46  ;;  %vm455_vm11 = vweird.f32 %v703_v56 }
  0xd2   :  { %v447_v61 = vsel %vm444_vm10, %v446_v57, %v442_v59  ;;  %704 = vrcp.f32 %v418_v58  ;;  %vm456_vm13 = vmor %vm454_vm12, %vm455_vm11  ;;  %v475_v9 = vand.u32 2147483648, %v418_v58  ;;  %v473_v11 = vand.u32 2147483647, %v418_v58 }
  0xd3   :  { %481 = vst.msk [vmem:[%s894_s3 + $0x8] sm:$0xff] %vm479_vm5, %v447_v61  ;;  %v451_v62 = vsub.f32 1.0, %v450_v60  ;;  %vm469_vm0 = vweird.f32 %v418_v58 }
  0xd4   :  { %v476_v13 = vor.u32 1.1754944e-38, %v475_v9  ;;  %vm474_vm2 = vcmp.eq.f32.partialorder %v473_v11, 8.507059e+37 }
  0xd5   :  { %v452_v0 = vmul.f32 %v703_v56, %v451_v62 }
  0xd7   :  { %v453_v2 = vadd.f32 %v703_v56, %v452_v0 }
  0xd8   :  { %v705_v3 = vpop.eup %704 }
  0xd9   :  { %v457_v5 = vsel %vm456_vm13, %v703_v56, %v453_v2  ;;  %v465_v6 = vmul.f32 %v705_v3, %v418_v58  ;;  %vm470_vm15 = vweird.f32 %v705_v3 }
  0xda   :  { %v462_v7 = vsel %vm459_vm14, %v461_v4, %v457_v5  ;;  %vm471_vm1 = vmor %vm469_vm0, %vm470_vm15 }
  0xdb   :  { %482 = vst.msk [vmem:[%s894_s3 + $0x10] sm:$0xff] %vm479_vm5, %v462_v7  ;;  %v466_v8 = vsub.f32 1.0, %v465_v6 }
  0xdd   :  { %v467_v10 = vmul.f32 %v705_v3, %v466_v8 }
  0xdf   :  { %v468_v12 = vadd.f32 %v705_v3, %v467_v10 }
  0xe1   :  { %v472_v14 = vsel %vm471_vm1, %v705_v3, %v468_v12 }
  0xe2   :  { %v477_v15 = vsel %vm474_vm2, %v476_v13, %v472_v14 }
  0xe3   :  { %483 = vst.msk [vmem:[%s894_s3 + $0x18] sm:$0xff] %vm479_vm5, %v477_v15 }

// kernel: upsampling_forward.9
= control target key start
LH: loop header
LB: loop body
LE: loop exit
PB: predicated region body
PF: predicated region fallthrough
CT: control target
= control target key end

     0   :  { %s1070_s12 = smov 0   ;;  %s1342_s0 = inlined_call_operand.vmem [shape: bf16[2,18,16,24], index: 0, kind: input, shape index: {}]   ;;  %s1343_s1 = inlined_call_operand.vmem [shape: bf16[3,24,48], index: 1, kind: input, shape index: {}]   ;;  %s1344_s2 = inlined_call_operand.vmem [shape: f32[1,48], index: 2, kind: input, shape index: {}]   ;;  %s1345_s3 = inlined_call_operand.vmem [shape: f32[2,16,16,48], index: 3, kind: output, shape index: {}]  }
   0x1 LB: > { %s856_s13 = sadd.s32 4294967295, %s1048_s12   ;;  %p860_p0 = scmp.ge.s32.totalorder %s1048_s12, 1  ;;  %s1048_s12 = sphi %s1070_s12, %s13_s12  }
   0x2   : > { %p137_p1 = scmp.lt.s32.totalorder %s1048_s12, 3 }
   0x4   : > { %p138_p2 = pnand %p860_p0, %p137_p1 }
   0x5   : > { %p161_p3 = scmp.lt.s32.totalorder (!%p138_p2), %s856_s13, 1 }
   0x6   : > { %141 = sbr.rel (%p138_p2) target bundleno = 349 (0x15d), region = 32 }
   0xb   : > { %v866_v0 = vld [vmem:[%s1343_s1 + $0x14] sm:$0xf]  ;;  %v210_v1 = vld [vmem:[%s1343_s1 + $0x8] sm:$0xf]  ;;  %v977_v4 = vld [vmem:[%s1343_s1 + $0x20] sm:$0xf] }
   0xc   : > { %v300_v2 = vunpack.c.l.b16 %v866_v0  ;;  %v456_v3 = vunpack.c.l.b16 %v210_v1  ;;  %vm353_vm0 = vcmask 1043456   ;;  %v569_v5 = vunpack.c.l.b16 %v977_v4  ;;  %s1347_s13 = smov (!%p161_p3, %s856_s13), 1  ;;  %v1024_v12 = vld [vmem:[%s1343_s1 + $0xc] sm:$0xff]  ;;  %v1023_v13 = vld [vmem:[%s1343_s1] sm:$0xff]  ;;  %v1025_v14 = vld [vmem:[%s1343_s1 + $0x18] sm:$0xff] }
   0xd   : > { %s1032_s20 = smul.u32 144, %s1347_s13  ;;  %vm304_vm1 = vcmask 195584   ;;  %v1171_v35 = vld [vmem:[%s1344_s2] ss:$0 sm:$0xff]  ;;  %s1004_s5 = sshll.u32 %s1347_s13, 8  ;;  %vm768_vm2 = vcmask 392192  }
   0xe   : > { %v302_v6 = vpack.c.b16 %v300_v2, %v300_v2  ;;  %v458_v7 = vpack.c.b16 %v456_v3, %v456_v3  ;;  %v571_v8 = vpack.c.b16 %v569_v5, %v569_v5  ;;  %s1178_s8 = scalar_lea.vmem %s1345_s3, %s1004_s5 }
   0xf   : > { %s1102_s29 = scalar_lea.vmem %s1342_s0, %s1032_s20 }
  0x10   : > { %v355_v9 = vsel %vm353_vm0, %v302_v6, 0  ;;  %v464_v10 = vsel %vm353_vm0, %v458_v7, 0  ;;  %v577_v11 = vsel %vm353_vm0, %v571_v8, 0  ;;  %v1006_v15 = vld [vmem:[%s1102_s29 + $0x8] sm:$0xff]  ;;  %v1005_v17 = vld [vmem:[%s1102_s29] sm:$0xff]  ;;  %v1007_v18 = vld [vmem:[%s1102_s29 + $0x10] sm:$0xff] }
  0x11   : > { %363 = vmatpush.bf16.msra.mxu0 %v355_v9  ;;  %1026 = vmatpush.bf16.msra.mxu3 %v355_v9  ;;  %v1106_v16 = vld [vmem:[%s1102_s29 + $0x68] sm:$0xff]  ;;  %v1019_v19 = vld [vmem:[%s1102_s29 + $0x70] sm:$0xff]  ;;  %v1008_v20 = vld [vmem:[%s1102_s29 + $0x18] sm:$0xff] }
  0x12   : > { %472 = vmatpush.bf16.msra.mxu1 %v464_v10  ;;  %585 = vmatpush.bf16.msra.mxu2 %v577_v11  ;;  %v1020_v21 = vld [vmem:[%s1102_s29 + $0x78] sm:$0xff]  ;;  %v1009_v22 = vld [vmem:[%s1102_s29 + $0x20] sm:$0xff]  ;;  %v1010_v24 = vld [vmem:[%s1102_s29 + $0x28] sm:$0xff] }
  0x13   : > { %v1128_v23 = vld [vmem:[%s1102_s29 + $0x80] sm:$0xff]  ;;  %v1011_v26 = vld [vmem:[%s1102_s29 + $0x30] sm:$0xff]  ;;  %v1012_v27 = vld [vmem:[%s1102_s29 + $0x38] sm:$0xff] }
  0x14   : > { %v1137_v25 = vld [vmem:[%s1102_s29 + $0x60] sm:$0xff]  ;;  %v1014_v29 = vld [vmem:[%s1102_s29 + $0x48] sm:$0xff]  ;;  %v1015_v31 = vld [vmem:[%s1102_s29 + $0x50] sm:$0xff] }
  0x15   : > { %364 = vmatpush.bf16.msra.mxu0 %v1024_v12  ;;  %1027 = vmatpush.bf16.msra.mxu3 %v1024_v12  ;;  %v1013_v28 = vld [vmem:[%s1102_s29 + $0x40] sm:$0xff]  ;;  %v1016_v47 = vld [vmem:[%s1102_s29 + $0x58] sm:$0xff] }
  0x16   : > { %473 = vmatpush.bf16.msra.mxu1 %v1023_v13  ;;  %586 = vmatpush.bf16.msra.mxu2 %v1025_v14 }
  0x18   : > { %935 = vmatmul.msk.bf16.vlgmr.msra.gmra.mxu0 %vm304_vm1, %v1006_v15  ;;  %947 = vmatmul.msk.bf16.vlgmr.msra.gmra.mxu3 %vm304_vm1, %v1106_v16 }
  0x19   : > { %1028 = vmatpush.bf16.msrb.mxu3 %v464_v10  ;;  %959 = vmatmul.msk.bf16.vlgmr.msra.gmra.mxu1 %vm304_vm1, %v1005_v17 }
  0x1a   : > { %986 = vmatmul.msk.bf16.vlgmr.msra.gmra.mxu2 %vm304_vm1, %v1007_v18 }
  0x1d   : > { %1029 = vmatpush.bf16.msrb.mxu3 %v1023_v13 }
  0x21   : > { %1030 = vmatpush.bf16.msra.mxu3 %v577_v11 }
  0x25   : > { %1031 = vmatpush.bf16.msra.mxu3 %v1025_v14  ;;  %v1022_v14 = vld [vmem:[%s1102_s29 + $0x88] sm:$0xff] }
  0x28   : > { %936 = vmatmul.msk.bf16.gmra.mxu0 %vm304_vm1, %v1007_v18  ;;  %948 = vmatmul.msk.bf16.gmra.mxu3 %vm304_vm1, %v1019_v19 }
  0x29   : > { %960 = vmatmul.msk.bf16.gmra.mxu1 %vm304_vm1, %v1006_v15 }
  0x2a   : > { %987 = vmatmul.msk.bf16.gmra.mxu2 %vm304_vm1, %v1008_v20 }
  0x38   : > { %937 = vmatmul.msk.bf16.gmra.mxu0 %vm304_vm1, %v1008_v20  ;;  %949 = vmatmul.msk.bf16.gmra.mxu3 %vm304_vm1, %v1020_v21 }
  0x39   : > { %961 = vmatmul.msk.bf16.gmra.mxu1 %vm304_vm1, %v1007_v18 }
  0x3a   : > { %988 = vmatmul.msk.bf16.gmra.mxu2 %vm304_vm1, %v1009_v22 }
  0x48   : > { %938 = vmatmul.msk.bf16.gmra.mxu0 %vm304_vm1, %v1009_v22  ;;  %950 = vmatmul.msk.bf16.gmra.mxu3 %vm304_vm1, %v1128_v23 }
  0x49   : > { %962 = vmatmul.msk.bf16.gmra.mxu1 %vm304_vm1, %v1008_v20 }
  0x4a   : > { %989 = vmatmul.msk.bf16.gmra.mxu2 %vm304_vm1, %v1010_v24 }
  0x58   : > { %939 = vmatmul.msk.bf16.gmra.mxu0 %vm304_vm1, %v1010_v24  ;;  %971 = vmatmul.msk.bf16.vlgmr.msrb.gmra.mxu3 %vm304_vm1, %v1137_v25 }
  0x59   : > { %963 = vmatmul.msk.bf16.gmra.mxu1 %vm304_vm1, %v1009_v22 }
  0x5a   : > { %990 = vmatmul.msk.bf16.gmra.mxu2 %vm304_vm1, %v1011_v26 }
  0x68   : > { %940 = vmatmul.msk.bf16.gmra.mxu0 %vm304_vm1, %v1011_v26  ;;  %972 = vmatmul.msk.bf16.gmra.mxu3 %vm304_vm1, %v1106_v16 }
  0x69   : > { %964 = vmatmul.msk.bf16.gmra.mxu1 %vm304_vm1, %v1010_v24 }
  0x6a   : > { %991 = vmatmul.msk.bf16.gmra.mxu2 %vm304_vm1, %v1012_v27 }
  0x78   : > { %941 = vmatmul.msk.bf16.gmra.mxu0 %vm304_vm1, %v1012_v27  ;;  %973 = vmatmul.msk.bf16.gmra.mxu3 %vm304_vm1, %v1019_v19 }
  0x79   : > { %965 = vmatmul.msk.bf16.gmra.mxu1 %vm304_vm1, %v1011_v26 }
  0x7a   : > { %992 = vmatmul.msk.bf16.gmra.mxu2 %vm304_vm1, %v1013_v28 }
  0x88   : > { %942 = vmatmul.msk.bf16.gmra.mxu0 %vm304_vm1, %v1013_v28  ;;  %974 = vmatmul.msk.bf16.gmra.mxu3 %vm304_vm1, %v1020_v21 }
  0x89   : > { %966 = vmatmul.msk.bf16.gmra.mxu1 %vm304_vm1, %v1012_v27 }
  0x8a   : > { %993 = vmatmul.msk.bf16.gmra.mxu2 %vm304_vm1, %v1014_v29 }
  0x95   : > { %v366_v30 = vpop.f32.mrf.mxu0 }
  0x96   : > { %v475_v32 = vpop.f32.mrf.mxu1 }
  0x97   : > { %v476_v33 = vadd.f32 %v475_v32, %v366_v30 }
  0x98   : > { %943 = vmatmul.msk.bf16.gmra.mxu0 %vm304_vm1, %v1014_v29  ;;  %998 = vmatmul.msk.bf16.vlgmr.msra.gmra.mxu3 %vm304_vm1, %v1019_v19 }
  0x99   : > { %967 = vmatmul.msk.bf16.gmra.mxu1 %vm304_vm1, %v1013_v28 }
  0x9a   : > { %994 = vmatmul.msk.bf16.gmra.mxu2 %vm304_vm1, %v1015_v31 }
  0x9b   : > { %v1166_v34 = vpop.f32.mrf.mxu3 }
  0x9d   : > { %v588_v36 = vpop.f32.mrf.mxu2  ;;  %v368_v38 = vpop.f32.mrf.mxu0 }
  0x9e   : > { %v668_v37 = vadd.f32 %v588_v36, %v476_v33  ;;  %v477_v39 = vpop.f32.mrf.mxu1 }
  0x9f   : > { %v478_v42 = vadd.f32 %v477_v39, %v368_v38 }
  0xa0   : > { %v704_v40 = vadd.f32 %v1171_v35, %v668_v37 }
  0xa2   : > { %v736_v41 = vmax.f32 %v704_v40, 0.0 }
  0xa3   : > { %v1182_v43 = vpop.f32.mrf.mxu3 }
  0xa4   : > { %769 = vst.msk [vmem:[%s1178_s8] sm:$0xff] %vm768_vm2, %v736_v41 }
  0xa5   : > { %v590_v44 = vpop.f32.mrf.mxu2  ;;  %v371_v46 = vpop.f32.mrf.mxu0 }
  0xa6   : > { %v669_v45 = vadd.f32 %v590_v44, %v478_v42  ;;  %v480_v48 = vpop.f32.mrf.mxu1 }
  0xa7   : > { %v481_v51 = vadd.f32 %v480_v48, %v371_v46 }
  0xa8   : > { %v705_v49 = vadd.f32 %v1171_v35, %v669_v45  ;;  %944 = vmatmul.msk.bf16.gmra.mxu0 %vm304_vm1, %v1015_v31  ;;  %999 = vmatmul.msk.bf16.gmra.mxu3 %vm304_vm1, %v1020_v21 }
  0xa9   : > { %968 = vmatmul.msk.bf16.gmra.mxu1 %vm304_vm1, %v1014_v29 }
  0xaa   : > { %v737_v50 = vmax.f32 %v705_v49, 0.0  ;;  %995 = vmatmul.msk.bf16.gmra.mxu2 %vm304_vm1, %v1016_v47 }
  0xab   : > { %v1192_v52 = vpop.f32.mrf.mxu3 }
  0xac   : > { %770 = vst.msk [vmem:[%s1178_s8 + $0x8] sm:$0xff] %vm768_vm2, %v737_v50 }
  0xad   : > { %v593_v53 = vpop.f32.mrf.mxu2  ;;  %v373_v55 = vpop.f32.mrf.mxu0 }
  0xae   : > { %v670_v54 = vadd.f32 %v593_v53, %v481_v51  ;;  %v482_v56 = vpop.f32.mrf.mxu1 }
  0xaf   : > { %v483_v59 = vadd.f32 %v482_v56, %v373_v55 }
  0xb0   : > { %v706_v57 = vadd.f32 %v1171_v35, %v670_v54 }
  0xb2   : > { %v738_v58 = vmax.f32 %v706_v57, 0.0 }
  0xb3   : > { %v1197_v60 = vpop.f32.mrf.mxu3 }
  0xb4   : > { %771 = vst.msk [vmem:[%s1178_s8 + $0x10] sm:$0xff] %vm768_vm2, %v738_v58 }
  0xb5   : > { %v595_v61 = vpop.f32.mrf.mxu2  ;;  %v376_v63 = vpop.f32.mrf.mxu0 }
  0xb6   : > { %v671_v62 = vadd.f32 %v595_v61, %v483_v59  ;;  %v485_v0 = vpop.f32.mrf.mxu1 }
  0xb7   : > { %v486_v3 = vadd.f32 %v485_v0, %v376_v63 }
  0xb8   : > { %v707_v1 = vadd.f32 %v1171_v35, %v671_v62  ;;  %945 = vmatmul.msk.bf16.gmra.mxu0 %vm304_vm1, %v1016_v47  ;;  %1000 = vmatmul.msk.bf16.gmra.mxu3 %vm304_vm1, %v1128_v23 }
  0xb9   : > { %969 = vmatmul.msk.bf16.gmra.mxu1 %vm304_vm1, %v1015_v31 }
  0xba   : > { %v739_v2 = vmax.f32 %v707_v1, 0.0  ;;  %996 = vmatmul.msk.bf16.gmra.mxu2 %vm304_vm1, %v1137_v25 }
  0xbb   : > { %v1208_v4 = vpop.f32.mrf.mxu3 }
  0xbc   : > { %772 = vst.msk [vmem:[%s1178_s8 + $0x18] sm:$0xff] %vm768_vm2, %v739_v2 }
  0xbd   : > { %v598_v5 = vpop.f32.mrf.mxu2  ;;  %v378_v7 = vpop.f32.mrf.mxu0 }
  0xbe   : > { %v672_v6 = vadd.f32 %v598_v5, %v486_v3  ;;  %v487_v8 = vpop.f32.mrf.mxu1 }
  0xbf   : > { %v488_v11 = vadd.f32 %v487_v8, %v378_v7 }
  0xc0   : > { %v708_v9 = vadd.f32 %v1171_v35, %v672_v6 }
  0xc2   : > { %v740_v10 = vmax.f32 %v708_v9, 0.0 }
  0xc3   : > { %v1213_v12 = vpop.f32.mrf.mxu3 }
  0xc4   : > { %773 = vst.msk [vmem:[%s1178_s8 + $0x20] sm:$0xff] %vm768_vm2, %v740_v10 }
  0xc5   : > { %v600_v13 = vpop.f32.mrf.mxu2  ;;  %v381_v17 = vpop.f32.mrf.mxu0 }
  0xc6   : > { %v673_v15 = vadd.f32 %v600_v13, %v488_v11  ;;  %v490_v18 = vpop.f32.mrf.mxu1 }
  0xc7   : > { %v491_v21 = vadd.f32 %v490_v18, %v381_v17 }
  0xc8   : > { %v709_v19 = vadd.f32 %v1171_v35, %v673_v15  ;;  %946 = vmatmul.msk.bf16.gmra.mxu0 %vm304_vm1, %v1137_v25  ;;  %1001 = vmatmul.msk.bf16.gmra.mxu3 %vm304_vm1, %v1022_v14 }
  0xc9   : > { %970 = vmatmul.msk.bf16.gmra.mxu1 %vm304_vm1, %v1016_v47 }
  0xca   : > { %v741_v20 = vmax.f32 %v709_v19, 0.0  ;;  %997 = vmatmul.msk.bf16.gmra.mxu2 %vm304_vm1, %v1106_v16 }
  0xcb   : > { %v1225_v22 = vpop.f32.mrf.mxu3 }
  0xcc   : > { %774 = vst.msk [vmem:[%s1178_s8 + $0x28] sm:$0xff] %vm768_vm2, %v741_v20 }
  0xcd   : > { %v603_v23 = vpop.f32.mrf.mxu2  ;;  %v383_v26 = vpop.f32.mrf.mxu0 }
  0xce   : > { %v674_v24 = vadd.f32 %v603_v23, %v491_v21  ;;  %v492_v27 = vpop.f32.mrf.mxu1 }
  0xcf   : > { %v493_v29 = vadd.f32 %v492_v27, %v383_v26 }
  0xd0   : > { %v710_v25 = vadd.f32 %v1171_v35, %v674_v24 }
  0xd2   : > { %v742_v28 = vmax.f32 %v710_v25, 0.0 }
  0xd3   : > { %v1230_v30 = vpop.f32.mrf.mxu3 }
  0xd4   : > { %775 = vst.msk [vmem:[%s1178_s8 + $0x30] sm:$0xff] %vm768_vm2, %v742_v28 }
  0xd5   : > { %v605_v31 = vpop.f32.mrf.mxu2  ;;  %v386_v32 = vpop.f32.mrf.mxu0 }
  0xd6   : > { %v675_v16 = vadd.f32 %v605_v31, %v493_v29  ;;  %v495_v33 = vpop.f32.mrf.mxu1 }
  0xd7   : > { %v496_v38 = vadd.f32 %v495_v33, %v386_v32 }
  0xd8   : > { %v711_v36 = vadd.f32 %v1171_v35, %v675_v16 }
  0xda   : > { %v743_v37 = vmax.f32 %v711_v36, 0.0 }
  0xdb   : > { %v1235_v39 = vpop.f32.mrf.mxu3 }
  0xdc   : > { %776 = vst.msk [vmem:[%s1178_s8 + $0x38] sm:$0xff] %vm768_vm2, %v743_v37 }
  0xdd   : > { %v608_v40 = vpop.f32.mrf.mxu2  ;;  %v388_v42 = vpop.f32.mrf.mxu0 }
  0xde   : > { %v676_v41 = vadd.f32 %v608_v40, %v496_v38  ;;  %v497_v44 = vpop.f32.mrf.mxu1 }
  0xdf   : > { %v498_v47 = vadd.f32 %v497_v44, %v388_v42 }
  0xe0   : > { %v712_v45 = vadd.f32 %v1171_v35, %v676_v41 }
  0xe2   : > { %v744_v46 = vmax.f32 %v712_v45, 0.0 }
  0xe3   : > { %v1240_v48 = vpop.f32.mrf.mxu3 }
  0xe4   : > { %777 = vst.msk [vmem:[%s1178_s8 + $0x40] sm:$0xff] %vm768_vm2, %v744_v46 }
  0xe5   : > { %v610_v49 = vpop.f32.mrf.mxu2  ;;  %v391_v51 = vpop.f32.mrf.mxu0 }
  0xe6   : > { %v677_v50 = vadd.f32 %v610_v49, %v498_v47  ;;  %v500_v53 = vpop.f32.mrf.mxu1 }
  0xe7   : > { %v501_v56 = vadd.f32 %v500_v53, %v391_v51  ;;  %v536_v51 = vadd.f32 %v1235_v39, %v1166_v34 }
  0xe8   : > { %v713_v54 = vadd.f32 %v1171_v35, %v677_v50 }
  0xea   : > { %v745_v55 = vmax.f32 %v713_v54, 0.0 }
  0xeb   : > { %v1245_v57 = vpop.f32.mrf.mxu3 }
  0xec   : > { %778 = vst.msk [vmem:[%s1178_s8 + $0x48] sm:$0xff] %vm768_vm2, %v745_v55 }
  0xed   : > { %v613_v58 = vpop.f32.mrf.mxu2  ;;  %v393_v61 = vpop.f32.mrf.mxu0 }
  0xee   : > { %v678_v59 = vadd.f32 %v613_v58, %v501_v56  ;;  %v502_v62 = vpop.f32.mrf.mxu1 }
  0xef   : > { %v503_v1 = vadd.f32 %v502_v62, %v393_v61 }
  0xf0   : > { %v714_v63 = vadd.f32 %v1171_v35, %v678_v59 }
  0xf2   : > { %v746_v0 = vmax.f32 %v714_v63, 0.0 }
  0xf3   : > { %v1250_v2 = vpop.f32.mrf.mxu3 }
  0xf4   : > { %779 = vst.msk [vmem:[%s1178_s8 + $0x50] sm:$0xff] %vm768_vm2, %v746_v0 }
  0xf5   : > { %v615_v3 = vpop.f32.mrf.mxu2  ;;  %v396_v6 = vpop.f32.mrf.mxu0 }
  0xf6   : > { %v679_v5 = vadd.f32 %v615_v3, %v503_v1  ;;  %v505_v7 = vpop.f32.mrf.mxu1  ;;  %v538_v1 = vadd.f32 %v1240_v48, %v1182_v43  ;;  %v541_v48 = vadd.f32 %v1245_v57, %v1192_v52 }
  0xf7   : > { %v506_v10 = vadd.f32 %v505_v7, %v396_v6 }
  0xf8   : > { %v715_v8 = vadd.f32 %v1171_v35, %v679_v5 }
  0xfa   : > { %v747_v9 = vmax.f32 %v715_v8, 0.0 }
  0xfb   : > { %v1255_v11 = vpop.f32.mrf.mxu3 }
  0xfc   : > { %780 = vst.msk [vmem:[%s1178_s8 + $0x58] sm:$0xff] %vm768_vm2, %v747_v9 }
  0xfd   : > { %v618_v13 = vpop.f32.mrf.mxu2  ;;  %v398_v15 = vpop.f32.mrf.mxu0 }
  0xfe   : > { %v680_v14 = vadd.f32 %v618_v13, %v506_v10  ;;  %v507_v17 = vpop.f32.mrf.mxu1 }
  0xff   : > { %v508_v20 = vadd.f32 %v507_v17, %v398_v15 }
 0x100   : > { %v716_v18 = vadd.f32 %v1171_v35, %v680_v14 }
 0x102   : > { %v748_v19 = vmax.f32 %v716_v18, 0.0 }
 0x103   : > { %v1260_v21 = vpop.f32.mrf.mxu3 }
 0x104   : > { %781 = vst.msk [vmem:[%s1178_s8 + $0x60] sm:$0xff] %vm768_vm2, %v748_v19 }
 0x105   : > { %v620_v23 = vpop.f32.mrf.mxu2  ;;  %v401_v26 = vpop.f32.mrf.mxu0 }
 0x106   : > { %v681_v24 = vadd.f32 %v620_v23, %v508_v20  ;;  %v510_v27 = vpop.f32.mrf.mxu1 }
 0x107   : > { %v511_v29 = vadd.f32 %v510_v27, %v401_v26 }
 0x108   : > { %v717_v25 = vadd.f32 %v1171_v35, %v681_v24 }
 0x10a   : > { %v749_v28 = vmax.f32 %v717_v25, 0.0 }
 0x10b   : > { %v1265_v31 = vpop.f32.mrf.mxu3 }
 0x10c   : > { %782 = vst.msk [vmem:[%s1178_s8 + $0x68] sm:$0xff] %vm768_vm2, %v749_v28  ;;  %v543_v28 = vadd.f32 %v1250_v2, %v1197_v60  ;;  %v546_v2 = vadd.f32 %v1255_v11, %v1208_v4 }
 0x10d   : > { %v623_v16 = vpop.f32.mrf.mxu2  ;;  %v403_v33 = vpop.f32.mrf.mxu0 }
 0x10e   : > { %v682_v32 = vadd.f32 %v623_v16, %v511_v29  ;;  %v512_v36 = vpop.f32.mrf.mxu1 }
 0x10f   : > { %v513_v40 = vadd.f32 %v512_v36, %v403_v33 }
 0x110   : > { %v718_v37 = vadd.f32 %v1171_v35, %v682_v32 }
 0x112   : > { %v750_v38 = vmax.f32 %v718_v37, 0.0 }
 0x113   : > { %v1270_v41 = vpop.f32.mrf.mxu3 }
 0x114   : > { %783 = vst.msk [vmem:[%s1178_s8 + $0x70] sm:$0xff] %vm768_vm2, %v750_v38 }
 0x115   : > { %v625_v42 = vpop.f32.mrf.mxu2  ;;  %v406_v45 = vpop.f32.mrf.mxu0 }
 0x116   : > { %v683_v44 = vadd.f32 %v625_v42, %v513_v40  ;;  %v515_v46 = vpop.f32.mrf.mxu1 }
 0x117   : > { %v516_v50 = vadd.f32 %v515_v46, %v406_v45 }
 0x118   : > { %v719_v47 = vadd.f32 %v1171_v35, %v683_v44 }
 0x11a   : > { %v751_v49 = vmax.f32 %v719_v47, 0.0 }
 0x11b   : > { %v648_v53 = vpop.f32.mrf.mxu3 }
 0x11c   : > { %784 = vst.msk [vmem:[%s1178_s8 + $0x78] sm:$0xff] %vm768_vm2, %v751_v49  ;;  %v692_v55 = vadd.f32 %v648_v53, %v536_v51 }
 0x11d   : > { %v628_v54 = vpop.f32.mrf.mxu2  ;;  %v408_v58 = vpop.f32.mrf.mxu0 }
 0x11e   : > { %v684_v56 = vadd.f32 %v628_v54, %v516_v50  ;;  %v728_v59 = vadd.f32 %v1171_v35, %v692_v55  ;;  %v517_v61 = vpop.f32.mrf.mxu1 }
 0x11f   : > { %v518_v34 = vadd.f32 %v517_v61, %v408_v58 }
 0x120   : > { %v720_v62 = vadd.f32 %v1171_v35, %v684_v56  ;;  %v760_v63 = vmax.f32 %v728_v59, 0.0  ;;  %v548_v56 = vadd.f32 %v1260_v21, %v1213_v12  ;;  %v551_v21 = vadd.f32 %v1265_v31, %v1225_v22 }
 0x121   : > { %v553_v22 = vadd.f32 %v1270_v41, %v1230_v30 }
 0x122   : > { %v752_v0 = vmax.f32 %v720_v62, 0.0  ;;  %793 = vst.msk [vmem:[%s1178_s8 + $0xc0] sm:$0xff] %vm768_vm2, %v760_v63 }
 0x123   : > { %v650_v39 = vpop.f32.mrf.mxu3 }
 0x124   : > { %785 = vst.msk [vmem:[%s1178_s8 + $0x80] sm:$0xff] %vm768_vm2, %v752_v0  ;;  %v693_v5 = vadd.f32 %v650_v39, %v538_v1 }
 0x125   : > { %v630_v3 = vpop.f32.mrf.mxu2  ;;  %v411_v7 = vpop.f32.mrf.mxu0 }
 0x126   : > { %v685_v6 = vadd.f32 %v630_v3, %v518_v34  ;;  %v729_v8 = vadd.f32 %v1171_v35, %v693_v5  ;;  %v520_v9 = vpop.f32.mrf.mxu1 }
 0x127   : > { %v521_v43 = vadd.f32 %v520_v9, %v411_v7 }
 0x128   : > { %v721_v10 = vadd.f32 %v1171_v35, %v685_v6  ;;  %v761_v13 = vmax.f32 %v729_v8, 0.0 }
 0x12a   : > { %v753_v14 = vmax.f32 %v721_v10, 0.0  ;;  %794 = vst.msk [vmem:[%s1178_s8 + $0xc8] sm:$0xff] %vm768_vm2, %v761_v13 }
 0x12b   : > { %v653_v15 = vpop.f32.mrf.mxu3 }
 0x12c   : > { %786 = vst.msk [vmem:[%s1178_s8 + $0x88] sm:$0xff] %vm768_vm2, %v753_v14  ;;  %v694_v18 = vadd.f32 %v653_v15, %v541_v48 }
 0x12d   : > { %v633_v17 = vpop.f32.mrf.mxu2  ;;  %v413_v20 = vpop.f32.mrf.mxu0 }
 0x12e   : > { %v686_v19 = vadd.f32 %v633_v17, %v521_v43  ;;  %v730_v23 = vadd.f32 %v1171_v35, %v694_v18  ;;  %v522_v24 = vpop.f32.mrf.mxu1 }
 0x12f   : > { %v523_v52 = vadd.f32 %v522_v24, %v413_v20 }
 0x130   : > { %v722_v26 = vadd.f32 %v1171_v35, %v686_v19  ;;  %v762_v27 = vmax.f32 %v730_v23, 0.0 }
 0x132   : > { %v754_v25 = vmax.f32 %v722_v26, 0.0  ;;  %795 = vst.msk [vmem:[%s1178_s8 + $0xd0] sm:$0xff] %vm768_vm2, %v762_v27 }
 0x133   : > { %v655_v57 = vpop.f32.mrf.mxu3 }
 0x134   : > { %787 = vst.msk [vmem:[%s1178_s8 + $0x90] sm:$0xff] %vm768_vm2, %v754_v25  ;;  %v695_v16 = vadd.f32 %v655_v57, %v543_v28 }
 0x135   : > { %v635_v29 = vpop.f32.mrf.mxu2  ;;  %v416_v33 = vpop.f32.mrf.mxu0 }
 0x136   : > { %v687_v32 = vadd.f32 %v635_v29, %v523_v52  ;;  %v731_v36 = vadd.f32 %v1171_v35, %v695_v16  ;;  %v525_v37 = vpop.f32.mrf.mxu1 }
 0x137   : > { %v526_v60 = vadd.f32 %v525_v37, %v416_v33 }
 0x138   : > { %v723_v38 = vadd.f32 %v1171_v35, %v687_v32  ;;  %v763_v40 = vmax.f32 %v731_v36, 0.0 }
 0x13a   : > { %v755_v42 = vmax.f32 %v723_v38, 0.0  ;;  %796 = vst.msk [vmem:[%s1178_s8 + $0xd8] sm:$0xff] %vm768_vm2, %v763_v40 }
 0x13b   : > { %v658_v44 = vpop.f32.mrf.mxu3 }
 0x13c   : > { %788 = vst.msk [vmem:[%s1178_s8 + $0x98] sm:$0xff] %vm768_vm2, %v755_v42  ;;  %v696_v46 = vadd.f32 %v658_v44, %v546_v2 }
 0x13d   : > { %v638_v45 = vpop.f32.mrf.mxu2  ;;  %v418_v49 = vpop.f32.mrf.mxu0 }
 0x13e   : > { %v688_v47 = vadd.f32 %v638_v45, %v526_v60  ;;  %v732_v50 = vadd.f32 %v1171_v35, %v696_v46  ;;  %v527_v51 = vpop.f32.mrf.mxu1 }
 0x13f   : > { %v528_v4 = vadd.f32 %v527_v51, %v418_v49 }
 0x140   : > { %v724_v53 = vadd.f32 %v1171_v35, %v688_v47  ;;  %v764_v54 = vmax.f32 %v732_v50, 0.0 }
 0x142   : > { %v756_v55 = vmax.f32 %v724_v53, 0.0  ;;  %797 = vst.msk [vmem:[%s1178_s8 + $0xe0] sm:$0xff] %vm768_vm2, %v764_v54 }
 0x143   : > { %v660_v11 = vpop.f32.mrf.mxu3 }
 0x144   : > { %789 = vst.msk [vmem:[%s1178_s8 + $0xa0] sm:$0xff] %vm768_vm2, %v756_v55  ;;  %v697_v59 = vadd.f32 %v660_v11, %v548_v56 }
 0x145   : > { %v640_v58 = vpop.f32.mrf.mxu2  ;;  %v421_v63 = vpop.f32.mrf.mxu0 }
 0x146   : > { %v689_v61 = vadd.f32 %v640_v58, %v528_v4  ;;  %v733_v62 = vadd.f32 %v1171_v35, %v697_v59  ;;  %v530_v0 = vpop.f32.mrf.mxu1 }
 0x147   : > { %v531_v12 = vadd.f32 %v530_v0, %v421_v63 }
 0x148   : > { %v725_v1 = vadd.f32 %v1171_v35, %v689_v61  ;;  %v765_v34 = vmax.f32 %v733_v62, 0.0 }
 0x14a   : > { %v757_v39 = vmax.f32 %v725_v1, 0.0  ;;  %798 = vst.msk [vmem:[%s1178_s8 + $0xe8] sm:$0xff] %vm768_vm2, %v765_v34 }
 0x14b   : > { %v663_v3 = vpop.f32.mrf.mxu3 }
 0x14c   : > { %790 = vst.msk [vmem:[%s1178_s8 + $0xa8] sm:$0xff] %vm768_vm2, %v757_v39  ;;  %v698_v6 = vadd.f32 %v663_v3, %v551_v21 }
 0x14d   : > { %v643_v5 = vpop.f32.mrf.mxu2  ;;  %v423_v13 = vpop.f32.mrf.mxu0 }
 0x14e   : > { %v690_v7 = vadd.f32 %v643_v5, %v531_v12  ;;  %v734_v8 = vadd.f32 %v1171_v35, %v698_v6  ;;  %v532_v14 = vpop.f32.mrf.mxu1 }
 0x14f   : > { %v533_v31 = vadd.f32 %v532_v14, %v423_v13 }
 0x150   : > { %v726_v9 = vadd.f32 %v1171_v35, %v690_v7  ;;  %v766_v10 = vmax.f32 %v734_v8, 0.0 }
 0x152   : > { %v758_v43 = vmax.f32 %v726_v9, 0.0  ;;  %799 = vst.msk [vmem:[%s1178_s8 + $0xf0] sm:$0xff] %vm768_vm2, %v766_v10 }
 0x153   : > { %v665_v48 = vpop.f32.mrf.mxu3 }
 0x154   : > { %791 = vst.msk [vmem:[%s1178_s8 + $0xb0] sm:$0xff] %vm768_vm2, %v758_v43  ;;  %v699_v17 = vadd.f32 %v665_v48, %v553_v22 }
 0x155   : > { %v645_v15 = vpop.f32.mrf.mxu2 }
 0x156   : > { %v691_v18 = vadd.f32 %v645_v15, %v533_v31  ;;  %v735_v19 = vadd.f32 %v1171_v35, %v699_v17 }
 0x158   : > { %v727_v20 = vadd.f32 %v1171_v35, %v691_v18  ;;  %v767_v23 = vmax.f32 %v735_v19, 0.0 }
 0x15a   : > { %v759_v24 = vmax.f32 %v727_v20, 0.0  ;;  %800 = vst.msk [vmem:[%s1178_s8 + $0xf8] sm:$0xff] %vm768_vm2, %v767_v23 }
 0x15c   : > { %792 = vst.msk [vmem:[%s1178_s8 + $0xb8] sm:$0xff] %vm768_vm2, %v759_v24 }
 0x15d PF: > { %s13_s12 = sadd.s32 1, %s1048_s12  }
 0x15e   : > { %p10_p4 = scmp.ge.s32.totalorder %s13_s12, 4  }
 0x160   :  { %12 = sbr.rel (!%p10_p4) target bundleno = 1 (0x1), region = 64 }

// kernel: upsampling_forward.14
= control target key start
LH: loop header
LB: loop body
LE: loop exit
PB: predicated region body
PF: predicated region fallthrough
CT: control target
= control target key end

     0   :  { %s2868_s30 = smov 0   ;;  %s3655_s0 = inlined_call_operand.vmem [shape: bf16[2,18,16,144], index: 0, kind: input, shape index: {}]   ;;  %s3656_s1 = inlined_call_operand.vmem [shape: bf16[2,16,16,8], index: 1, kind: input, shape index: {}]   ;;  %s3657_s2 = inlined_call_operand.vmem [shape: f32[2,16,1,72], index: 2, kind: input, shape index: {}]   ;;  %s3658_s3 = inlined_call_operand.vmem [shape: f32[2,1,16,72], index: 3, kind: input, shape index: {}]   ;;  %s3659_s4 = inlined_call_operand.vmem [shape: bf16[3,144,72], index: 4, kind: input, shape index: {}]   ;;  %s3660_s5 = inlined_call_operand.vmem [shape: f32[1,72], index: 5, kind: input, shape index: {}]   ;;  %s3661_s6 = inlined_call_operand.vmem [shape: bf16[72,24], index: 6, kind: input, shape index: {}]   ;;  %s3662_s7 = inlined_call_operand.vmem [shape: bf16[8,24], index: 7, kind: input, shape index: {}]   ;;  %s3663_s8 = inlined_call_operand.vmem [shape: f32[1,24], index: 8, kind: input, shape index: {}]   ;;  %s3664_s9 = inlined_call_operand.vmem [shape: f32[2,16,16,24], index: 9, kind: output, shape index: {}]  }
   0x1 LB: > { %s2234_s10 = sadd.s32 4294967295, %s2816_s30   ;;  %p2238_p0 = scmp.ge.s32.totalorder %s2816_s30, 1  ;;  %s2816_s30 = sphi %s2868_s30, %s19_s30  }
   0x2   : > { %p316_p1 = scmp.lt.s32.totalorder %s2816_s30, 3 }
   0x4   : > { %p317_p2 = pnand %p2238_p0, %p316_p1 }
   0x6   : > { %320 = sbr.rel (%p317_p2) target bundleno = 816 (0x330), region = 56 }
   0xb   : > { %v2752_v0 = vld [vmem:[%s3659_s4 + $0x80] sm:$0xff]  ;;  %v2743_v1 = vld [vmem:[%s3659_s4 + $0x38] sm:$0xff]  ;;  %p366_p3 = scmp.lt.s32.totalorder %s2234_s10, 1  ;;  %v2753_v2 = vld [vmem:[%s3659_s4 + $0x88] sm:$0xff]  ;;  %vm662_vm0 = vcmask 130048   ;;  %vm1813_vm1 = vcmask 1043456  }
   0xc   : > { %v2744_v3 = vld [vmem:[%s3659_s4 + $0x40] sm:$0xff]  ;;  %711 = vmatpush.bf16.msra.mxu0 %v2752_v0  ;;  %955 = vmatpush.bf16.msra.mxu2 %v2743_v1  ;;  %v2751_v4 = vld [vmem:[%s3659_s4 + $0x78] sm:$0xff]  ;;  %v2742_v5 = vld [vmem:[%s3659_s4 + $0x30] sm:$0xff]  ;;  %vm1764_vm2 = vcmask 64512   ;;  %vm1933_vm3 = vcmask 588800   ;;  %vm2110_vm4 = vcmask 195584  }
   0xd   : > { %s3668_s10 = smov (!%p366_p3, %s2234_s10), 1  ;;  %v2762_v6 = vld [vmem:[%s3659_s4 + $0xd0] sm:$0xff]  ;;  %807 = vmatpush.bf16.msra.mxu1 %v2753_v2  ;;  %1051 = vmatpush.bf16.msra.mxu3 %v2744_v3  ;;  %v2761_v7 = vld [vmem:[%s3659_s4 + $0xc8] sm:$0xff]  ;;  %v2740_v17 = vld [vmem:[%s3659_s4 + $0x20] sm:$0xff] }
   0xe   : > { %s2783_s27 = smul.u32 288, %s3668_s10  ;;  %v2750_v8 = vld [vmem:[%s3659_s4 + $0x70] sm:$0xff]  ;;  %v2741_v9 = vld [vmem:[%s3659_s4 + $0x28] sm:$0xff]  ;;  %v2760_v18 = vld [vmem:[%s3659_s4 + $0xc0] sm:$0xff]  ;;  %s2242_s22 = sshll.u32 %s3668_s10, 4 }
   0xf   : > { %v2749_v16 = vld [vmem:[%s3659_s4 + $0x68] sm:$0xff]  ;;  %v2748_v19 = vld [vmem:[%s3659_s4 + $0x60] sm:$0xff]  ;;  %v2739_v20 = vld [vmem:[%s3659_s4 + $0x18] sm:$0xff]  ;;  %s3231_s25 = scalar_lea.vmem %s3657_s2, %s2242_s22  ;;  %s2697_s12 = sshll.u32 %s3668_s10, 7 }
  0x10   : > { %712 = vmatpush.bf16.msra.mxu0 %v2751_v4  ;;  %956 = vmatpush.bf16.msra.mxu2 %v2742_v5  ;;  %s2906_s11 = scalar_lea.vmem %s3655_s0, %s2783_s27  ;;  %v2747_v21 = vld [vmem:[%s3659_s4 + $0x58] sm:$0xff]  ;;  %v2738_v22 = vld [vmem:[%s3659_s4 + $0x10] sm:$0xff]  ;;  %v2737_v27 = vld [vmem:[%s3659_s4 + $0x8] sm:$0xff]  ;;  %s3291_s15 = scalar_lea.vmem %s3656_s1, %s2697_s12 }
  0x11   : > { %1314 = vmatpush.bf16.msrb.mxu3 %v2762_v6  ;;  %1218 = vmatpush.bf16.msrb.mxu1 %v2761_v7  ;;  %v2702_v10 = vld [vmem:[%s2906_s11 + $0x14] sm:$0xf]  ;;  %v2269_v11 = vld [vmem:[%s2906_s11 + $0x18] sm:$0xf0]  ;;  %v2700_v12 = vld [vmem:[%s2906_s11 + $0x4] sm:$0xf]  ;;  %s384_s20 = scalar_lea.vmem %s3658_s3, %s2242_s22 }
  0x12   : > { %v2272_v13 = vor.u32 %v2702_v10, %v2269_v11  ;;  %v2449_v14 = vld [vmem:[%s2906_s11 + $0x8] sm:$0xf0]  ;;  %v2704_v23 = vld [vmem:[%s2906_s11 + $0x24] sm:$0xf]  ;;  %v2746_v26 = vld [vmem:[%s3659_s4 + $0x50] sm:$0xff] }
  0x13   : > { %v2452_v15 = vor.u32 %v2700_v12, %v2449_v14  ;;  %v2277_v24 = vld [vmem:[%s2906_s11 + $0x28] sm:$0xf0]  ;;  %v2267_v29 = vld [vmem:[%s2906_s11 + $0x10] sm:$0xf]  ;;  %v2703_v30 = vld [vmem:[%s2906_s11 + $0x14] sm:$0xf0] }
  0x14   : > { %2429 = vmatmul.msk.bf16.vlgmr.msra.gmra.mxu1 %vm662_vm0, %v2272_v13  ;;  %713 = vmatpush.bf16.msra.mxu0 %v2750_v8  ;;  %v2943_v25 = vor.u32 %v2704_v23, %v2277_v24  ;;  %v2745_v28 = vld [vmem:[%s3659_s4 + $0x48] sm:$0xff]  ;;  %v2736_v31 = vld [vmem:[%s3659_s4] sm:$0xff]  ;;  %v2268_v34 = vor.u32 %v2703_v30, %v2267_v29  ;;  %v2706_v36 = vld [vmem:[%s2906_s11 + $0x34] sm:$0xf] }
  0x15   : > { %2489 = vmatmul.msk.bf16.vlgmr.msra.gmra.mxu3 %vm662_vm0, %v2452_v15  ;;  %957 = vmatpush.bf16.msra.mxu2 %v2741_v9  ;;  %v2447_v32 = vld [vmem:[%s2906_s11] sm:$0xf]  ;;  %v2701_v33 = vld [vmem:[%s2906_s11 + $0x4] sm:$0xf0]  ;;  %v2285_v37 = vld [vmem:[%s2906_s11 + $0x38] sm:$0xf0] }
  0x16   : > { %1219 = vmatpush.bf16.msrb.mxu1 %v2760_v18  ;;  %v2448_v35 = vor.u32 %v2701_v33, %v2447_v32  ;;  %v2966_v38 = vor.u32 %v2706_v36, %v2285_v37  ;;  %v2275_v39 = vld [vmem:[%s2906_s11 + $0x20] sm:$0xf]  ;;  %v2705_v40 = vld [vmem:[%s2906_s11 + $0x24] sm:$0xf0]  ;;  %v2759_v41 = vld [vmem:[%s3659_s4 + $0xb8] sm:$0xff] }
  0x17   : > { %v2977_v42 = vor.u32 %v2705_v40, %v2275_v39  ;;  %v2708_v43 = vld [vmem:[%s2906_s11 + $0x44] sm:$0xf]  ;;  %v2293_v44 = vld [vmem:[%s2906_s11 + $0x48] sm:$0xf0]  ;;  %v2283_v46 = vld [vmem:[%s2906_s11 + $0x30] sm:$0xf] }
  0x18   : > { %714 = vmatpush.bf16.msra.mxu0 %v2749_v16  ;;  %v2982_v45 = vor.u32 %v2708_v43, %v2293_v44  ;;  %v2707_v47 = vld [vmem:[%s2906_s11 + $0x34] sm:$0xf0]  ;;  %v2710_v49 = vld [vmem:[%s2906_s11 + $0x54] sm:$0xf]  ;;  %v2301_v50 = vld [vmem:[%s2906_s11 + $0x58] sm:$0xf0] }
  0x19   : > { %958 = vmatpush.bf16.msra.mxu2 %v2740_v17  ;;  %v2990_v48 = vor.u32 %v2707_v47, %v2283_v46  ;;  %v2996_v51 = vor.u32 %v2710_v49, %v2301_v50  ;;  %v2291_v52 = vld [vmem:[%s2906_s11 + $0x40] sm:$0xf]  ;;  %v2709_v53 = vld [vmem:[%s2906_s11 + $0x44] sm:$0xf0]  ;;  %v2758_v54 = vld [vmem:[%s3659_s4 + $0xb0] sm:$0xff] }
  0x1a   : > { %1220 = vmatpush.bf16.msrb.mxu1 %v2759_v41  ;;  %v3007_v55 = vor.u32 %v2709_v53, %v2291_v52  ;;  %v2712_v56 = vld [vmem:[%s2906_s11 + $0x64] sm:$0xf]  ;;  %v2309_v57 = vld [vmem:[%s2906_s11 + $0x68] sm:$0xf0]  ;;  %v2299_v59 = vld [vmem:[%s2906_s11 + $0x50] sm:$0xf] }
  0x1b   : > { %v3013_v58 = vor.u32 %v2712_v56, %v2309_v57  ;;  %v2711_v60 = vld [vmem:[%s2906_s11 + $0x54] sm:$0xf0]  ;;  %v2714_v62 = vld [vmem:[%s2906_s11 + $0x74] sm:$0xf]  ;;  %v2317_v63 = vld [vmem:[%s2906_s11 + $0x78] sm:$0xf0] }
  0x1c   : > { %715 = vmatpush.bf16.msra.mxu0 %v2748_v19  ;;  %v3021_v61 = vor.u32 %v2711_v60, %v2299_v59  ;;  %v3027_v0 = vor.u32 %v2714_v62, %v2317_v63  ;;  %v2307_v1 = vld [vmem:[%s2906_s11 + $0x60] sm:$0xf]  ;;  %v2713_v2 = vld [vmem:[%s2906_s11 + $0x64] sm:$0xf0]  ;;  %v2716_v5 = vld [vmem:[%s2906_s11 + $0x84] sm:$0xf] }
  0x1d   : > { %959 = vmatpush.bf16.msra.mxu2 %v2739_v20  ;;  %v3035_v3 = vor.u32 %v2713_v2, %v2307_v1  ;;  %v2757_v4 = vld [vmem:[%s3659_s4 + $0xa8] sm:$0xff]  ;;  %v2315_v8 = vld [vmem:[%s2906_s11 + $0x70] sm:$0xf]  ;;  %v2715_v9 = vld [vmem:[%s2906_s11 + $0x74] sm:$0xf0] }
  0x1e   : > { %1221 = vmatpush.bf16.msrb.mxu1 %v2758_v54  ;;  %v2325_v6 = vld [vmem:[%s2906_s11 + $0x88] sm:$0xf0]  ;;  %v3052_v10 = vor.u32 %v2715_v9, %v2315_v8  ;;  %v1682_v11 = vld [vmem:[%s3661_s6 + $0x20] sm:$0xf]  ;;  %v2718_v12 = vld [vmem:[%s2906_s11 + $0x94] sm:$0xf] }
  0x1f   : > { %v3044_v7 = vor.u32 %v2716_v5, %v2325_v6  ;;  %v1923_v14 = vunpack.c.l.b16 %v1682_v11  ;;  %v2323_v19 = vld [vmem:[%s2906_s11 + $0x80] sm:$0xf]  ;;  %v2717_v20 = vld [vmem:[%s2906_s11 + $0x84] sm:$0xf0]  ;;  %v2341_v29 = vld [vmem:[%s2906_s11 + $0xa8] sm:$0xf0] }
  0x20   : > { %716 = vmatpush.bf16.msra.mxu0 %v2747_v21  ;;  %v1683_v21 = vld [vmem:[%s3662_s7] sm:$0xf]  ;;  %v3072_v23 = vor.u32 %v2717_v20, %v2323_v19  ;;  %v2331_v33 = vld [vmem:[%s2906_s11 + $0x90] sm:$0xf]  ;;  %v2722_v41 = vld [vmem:[%s2906_s11 + $0xb4] sm:$0xf] }
  0x21   : > { %960 = vmatpush.bf16.msra.mxu2 %v2738_v22  ;;  %v1928_v15 = vpack.c.b16 %v1923_v14, %v1923_v14  ;;  %v1815_v22 = vsel %vm1813_vm1, %v1683_v21, 0  ;;  %v2349_v43 = vld [vmem:[%s2906_s11 + $0xb8] sm:$0xf0]  ;;  %v2339_v56 = vld [vmem:[%s2906_s11 + $0xa0] sm:$0xf] }
  0x22   : > { %1222 = vmatpush.bf16.msrb.mxu1 %v2757_v4  ;;  %v3095_v50 = vor.u32 %v2722_v41, %v2349_v43  ;;  %v2721_v57 = vld [vmem:[%s2906_s11 + $0xa4] sm:$0xf0]  ;;  %v2755_v6 = vld [vmem:[%s3659_s4 + $0x98] sm:$0xff]  ;;  %v2724_v8 = vld [vmem:[%s2906_s11 + $0xc4] sm:$0xf] }
  0x23   : > { %v1983_v18 = vsel %vm1813_vm1, %v1928_v15, 0  ;;  %v3105_v60 = vor.u32 %v2721_v57, %v2339_v56  ;;  %v2357_v9 = vld [vmem:[%s2906_s11 + $0xc8] sm:$0xf0]  ;;  %v2782_v20 = vld [vmem:[%s3661_s6 + $0x18] sm:$0xff]  ;;  %v2347_v21 = vld [vmem:[%s2906_s11 + $0xb0] sm:$0xf] }
  0x24   : > { %2430 = vmatmul.msk.bf16.gmra.mxu1 %vm662_vm0, %v2943_v25  ;;  %717 = vmatpush.bf16.msra.mxu0 %v2746_v26  ;;  %v3116_v15 = vor.u32 %v2724_v8, %v2357_v9  ;;  %v2373_v8 = vld [vmem:[%s2906_s11 + $0xe8] sm:$0xf0] }
  0x25   : > { %2490 = vmatmul.msk.bf16.gmra.mxu3 %vm662_vm0, %v2272_v13  ;;  %961 = vmatpush.bf16.msra.mxu2 %v2737_v27  ;;  %v2333_v13 = vld [vmem:[%s2906_s11 + $0x98] sm:$0xf0]  ;;  %v2756_v27 = vld [vmem:[%s3659_s4 + $0xa0] sm:$0xff] }
  0x26   : > { %v3061_v16 = vor.u32 %v2718_v12, %v2333_v13  ;;  %1223 = vmatpush.bf16.msrb.mxu1 %v2756_v27 }
  0x28   : > { %718 = vmatpush.bf16.msra.mxu0 %v2745_v28  ;;  %v2720_v28 = vld [vmem:[%s2906_s11 + $0xa4] sm:$0xf] }
  0x29   : > { %962 = vmatpush.bf16.msra.mxu2 %v2736_v31  ;;  %v3081_v31 = vor.u32 %v2720_v28, %v2341_v29 }
  0x2a   : > { %1224 = vmatpush.bf16.msrb.mxu1 %v2755_v6  ;;  %v2728_v6 = vld [vmem:[%s2906_s11 + $0xe4] sm:$0xf] }
  0x2b   : > { %719 = vmatmul.bf16.vlgmr.msra.gmra.mxu0 %v2268_v34 }
  0x2c   : > { %963 = vmatmul.bf16.vlgmr.msra.gmra.mxu2 %v2448_v35  ;;  %1824 = vmatpush.bf16.msrb.mxu0 %v1815_v22  ;;  %v2723_v22 = vld [vmem:[%s2906_s11 + $0xb4] sm:$0xf0] }
  0x2d   : > { %1988 = vmatpush.bf16.msrb.mxu2 %v1983_v18 }
  0x31   : > { %1989 = vmatpush.bf16.msrb.mxu2 %v2782_v20 }
  0x34   : > { %2431 = vmatmul.msk.bf16.gmra.mxu1 %vm662_vm0, %v2966_v38 }
  0x35   : > { %2491 = vmatmul.msk.bf16.gmra.mxu3 %vm662_vm0, %v2943_v25 }
  0x3b   : > { %724 = vmatmul.bf16.gmra.mxu0 %v2977_v42 }
  0x3c   : > { %968 = vmatmul.bf16.gmra.mxu2 %v2268_v34  ;;  %v2719_v34 = vld [vmem:[%s2906_s11 + $0x94] sm:$0xf0] }
  0x3d   : > { %v3089_v35 = vor.u32 %v2719_v34, %v2331_v33  ;;  %v2726_v34 = vld [vmem:[%s2906_s11 + $0xd4] sm:$0xf] }
  0x44   : > { %2432 = vmatmul.msk.bf16.gmra.mxu1 %vm662_vm0, %v2982_v45 }
  0x45   : > { %2492 = vmatmul.msk.bf16.gmra.mxu3 %vm662_vm0, %v2966_v38 }
  0x4b   : > { %729 = vmatmul.bf16.gmra.mxu0 %v2990_v48 }
  0x4c   : > { %973 = vmatmul.bf16.gmra.mxu2 %v2977_v42 }
  0x54   : > { %2433 = vmatmul.msk.bf16.gmra.mxu1 %vm662_vm0, %v2996_v51 }
  0x55   : > { %2493 = vmatmul.msk.bf16.gmra.mxu3 %vm662_vm0, %v2982_v45 }
  0x5b   : > { %734 = vmatmul.bf16.gmra.mxu0 %v3007_v55 }
  0x5c   : > { %978 = vmatmul.bf16.gmra.mxu2 %v2990_v48 }
  0x64   : > { %2434 = vmatmul.msk.bf16.gmra.mxu1 %vm662_vm0, %v3013_v58 }
  0x65   : > { %2494 = vmatmul.msk.bf16.gmra.mxu3 %vm662_vm0, %v2996_v51 }
  0x6b   : > { %739 = vmatmul.bf16.gmra.mxu0 %v3021_v61 }
  0x6c   : > { %983 = vmatmul.bf16.gmra.mxu2 %v3007_v55 }
  0x74   : > { %2435 = vmatmul.msk.bf16.gmra.mxu1 %vm662_vm0, %v3027_v0 }
  0x75   : > { %2495 = vmatmul.msk.bf16.gmra.mxu3 %vm662_vm0, %v3013_v58 }
  0x7b   : > { %744 = vmatmul.bf16.gmra.mxu0 %v3035_v3 }
  0x7c   : > { %988 = vmatmul.bf16.gmra.mxu2 %v3021_v61 }
  0x84   : > { %2436 = vmatmul.msk.bf16.gmra.mxu1 %vm662_vm0, %v3044_v7 }
  0x85   : > { %2496 = vmatmul.msk.bf16.gmra.mxu3 %vm662_vm0, %v3027_v0 }
  0x8b   : > { %749 = vmatmul.bf16.gmra.mxu0 %v3052_v10 }
  0x8c   : > { %993 = vmatmul.bf16.gmra.mxu2 %v3035_v3 }
  0x91   : > { %v809_v17 = vpop.f32.mrf.mxu1 }
  0x94   : > { %2437 = vmatmul.msk.bf16.gmra.mxu1 %vm662_vm0, %v3061_v16 }
  0x95   : > { %2497 = vmatmul.msk.bf16.gmra.mxu3 %vm662_vm0, %v3044_v7 }
  0x98   : > { %v1053_v24 = vpop.f32.mrf.mxu3 }
  0x99   : > { %v811_v26 = vpop.f32.mrf.mxu1 }
  0x9b   : > { %754 = vmatmul.bf16.gmra.mxu0 %v3072_v23 }
  0x9c   : > { %998 = vmatmul.bf16.gmra.mxu2 %v3052_v10 }
  0xa0   : > { %v1055_v30 = vpop.f32.mrf.mxu3 }
  0xa1   : > { %v814_v32 = vpop.f32.mrf.mxu1 }
  0xa4   : > { %2438 = vmatmul.msk.bf16.gmra.mxu1 %vm662_vm0, %v3081_v31 }
  0xa5   : > { %2498 = vmatmul.msk.bf16.gmra.mxu3 %vm662_vm0, %v3061_v16 }
  0xa8   : > { %v1058_v36 = vpop.f32.mrf.mxu3  ;;  %v720_v37 = vpop.f32.mrf.mxu0 }
  0xa9   : > { %v810_v39 = vadd.f32 %v809_v17, %v720_v37  ;;  %v816_v40 = vpop.f32.mrf.mxu1 }
  0xab   : > { %759 = vmatmul.bf16.gmra.mxu0 %v3089_v35 }
  0xac   : > { %1003 = vmatmul.bf16.gmra.mxu2 %v3072_v23 }
  0xaf   : > { %v964_v44 = vpop.f32.mrf.mxu2 }
  0xb0   : > { %v965_v46 = vadd.f32 %v964_v44, %v810_v39  ;;  %v1060_v47 = vpop.f32.mrf.mxu3  ;;  %v722_v49 = vpop.f32.mrf.mxu0 }
  0xb1   : > { %v812_v52 = vadd.f32 %v811_v26, %v722_v49  ;;  %v819_v53 = vpop.f32.mrf.mxu1  ;;  %v3129_v26 = vor.u32 %v2723_v22, %v2347_v21  ;;  %v2363_v21 = vld [vmem:[%s2906_s11 + $0xd0] sm:$0xf]  ;;  %v2727_v22 = vld [vmem:[%s2906_s11 + $0xd4] sm:$0xf0] }
  0xb2   : > { %v3097_v54 = vadd.f32 %v1053_v24, %v965_v46 }
  0xb4   : > { %2439 = vmatmul.msk.bf16.gmra.mxu1 %vm662_vm0, %v3095_v50 }
  0xb5   : > { %2499 = vmatmul.msk.bf16.gmra.mxu3 %vm662_vm0, %v3081_v31 }
  0xb7   : > { %v966_v59 = vpop.f32.mrf.mxu2 }
  0xb8   : > { %v967_v62 = vadd.f32 %v966_v59, %v812_v52  ;;  %v1063_v63 = vpop.f32.mrf.mxu3  ;;  %v725_v1 = vpop.f32.mrf.mxu0  ;;  %v2725_v52 = vld [vmem:[%s2906_s11 + $0xc4] sm:$0xf0] }
  0xb9   : > { %v815_v2 = vadd.f32 %v814_v32, %v725_v1  ;;  %v821_v4 = vpop.f32.mrf.mxu1 }
  0xba   : > { %v3107_v5 = vadd.f32 %v1055_v30, %v967_v62 }
  0xbb   : > { %764 = vmatmul.bf16.gmra.mxu0 %v3105_v60 }
  0xbc   : > { %1008 = vmatmul.bf16.gmra.mxu2 %v3089_v35 }
  0xbf   : > { %v969_v11 = vpop.f32.mrf.mxu2 }
  0xc0   : > { %v970_v12 = vadd.f32 %v969_v11, %v815_v2  ;;  %v1065_v13 = vpop.f32.mrf.mxu3  ;;  %v727_v14 = vpop.f32.mrf.mxu0 }
  0xc1   : > { %v817_v17 = vadd.f32 %v816_v40, %v727_v14  ;;  %v824_v18 = vpop.f32.mrf.mxu1 }
  0xc2   : > { %v3118_v19 = vadd.f32 %v1058_v36, %v970_v12  ;;  %v2365_v36 = vld [vmem:[%s2906_s11 + $0xd8] sm:$0xf0] }
  0xc3   : > { %v3137_v43 = vor.u32 %v2726_v34, %v2365_v36 }
  0xc4   : > { %2440 = vmatmul.msk.bf16.gmra.mxu1 %vm662_vm0, %v3116_v15 }
  0xc5   : > { %2500 = vmatmul.msk.bf16.gmra.mxu3 %vm662_vm0, %v3095_v50 }
  0xc7   : > { %v971_v24 = vpop.f32.mrf.mxu2 }
  0xc8   : > { %v972_v27 = vadd.f32 %v971_v24, %v817_v17  ;;  %v1068_v28 = vpop.f32.mrf.mxu3  ;;  %v730_v29 = vpop.f32.mrf.mxu0  ;;  %v3158_v17 = vor.u32 %v2728_v6, %v2373_v8 }
  0xc9   : > { %v820_v30 = vadd.f32 %v819_v53, %v730_v29  ;;  %v826_v32 = vpop.f32.mrf.mxu1 }
  0xca   : > { %v3131_v33 = vadd.f32 %v1060_v47, %v972_v27  ;;  %v2355_v47 = vld [vmem:[%s2906_s11 + $0xc0] sm:$0xf]  ;;  %v3168_v27 = vor.u32 %v2727_v22, %v2363_v21  ;;  %v2732_v22 = vld [vmem:[%s2906_s11 + $0x104] sm:$0xf] }
  0xcb   : > { %769 = vmatmul.bf16.gmra.mxu0 %v3129_v26  ;;  %v3147_v56 = vor.u32 %v2725_v52, %v2355_v47 }
  0xcc   : > { %1013 = vmatmul.bf16.gmra.mxu2 %v3105_v60 }
  0xcf   : > { %v974_v37 = vpop.f32.mrf.mxu2 }
  0xd0   : > { %v975_v39 = vadd.f32 %v974_v37, %v820_v30  ;;  %v1070_v40 = vpop.f32.mrf.mxu3  ;;  %v732_v41 = vpop.f32.mrf.mxu0  ;;  %v2730_v37 = vld [vmem:[%s2906_s11 + $0xf4] sm:$0xf] }
  0xd1   : > { %v822_v44 = vadd.f32 %v821_v4, %v732_v41  ;;  %v829_v46 = vpop.f32.mrf.mxu1  ;;  %v2754_v4 = vld [vmem:[%s3659_s4 + $0x90] sm:$0xff] }
  0xd2   : > { %v3139_v49 = vadd.f32 %v1063_v63, %v975_v39  ;;  %1225 = vmatpush.bf16.msrb.mxu1 %v2754_v4  ;;  %v2381_v39 = vld [vmem:[%s2906_s11 + $0xf8] sm:$0xf0] }
  0xd4   : > { %2441 = vmatmul.msk.bf16.gmra.mxu1 %vm662_vm0, %v3137_v43 }
  0xd5   : > { %2501 = vmatmul.msk.bf16.gmra.mxu3 %vm662_vm0, %v3116_v15 }
  0xd7   : > { %v976_v53 = vpop.f32.mrf.mxu2 }
  0xd8   : > { %v977_v57 = vadd.f32 %v976_v53, %v822_v44  ;;  %v1073_v59 = vpop.f32.mrf.mxu3  ;;  %v735_v62 = vpop.f32.mrf.mxu0  ;;  %v3176_v53 = vor.u32 %v2730_v37, %v2381_v39 }
  0xd9   : > { %v825_v1 = vadd.f32 %v824_v18, %v735_v62  ;;  %v831_v2 = vpop.f32.mrf.mxu1 }
  0xda   : > { %v3149_v63 = vadd.f32 %v1065_v13, %v977_v57 }
  0xdb   : > { %774 = vmatmul.bf16.gmra.mxu0 %v3147_v56 }
  0xdc   : > { %1018 = vmatmul.bf16.gmra.mxu2 %v3129_v26 }
  0xdf   : > { %v979_v9 = vpop.f32.mrf.mxu2 }
  0xe0   : > { %v980_v11 = vadd.f32 %v979_v9, %v825_v1  ;;  %v1075_v12 = vpop.f32.mrf.mxu3  ;;  %v737_v14 = vpop.f32.mrf.mxu0  ;;  %v2781_v1 = vld [vmem:[%s3661_s6 + $0x10] sm:$0xff] }
  0xe1   : > { %v827_v13 = vadd.f32 %v826_v32, %v737_v14  ;;  %v834_v18 = vpop.f32.mrf.mxu1  ;;  %1990 = vmatpush.bf16.msrb.mxu2 %v2781_v1 }
  0xe2   : > { %v3160_v20 = vadd.f32 %v1068_v28, %v980_v11 }
  0xe4   : > { %2442 = vmatmul.msk.bf16.gmra.mxu1 %vm662_vm0, %v3158_v17 }
  0xe5   : > { %2502 = vmatmul.msk.bf16.gmra.mxu3 %vm662_vm0, %v3137_v43 }
  0xe7   : > { %v981_v24 = vpop.f32.mrf.mxu2 }
  0xe8   : > { %v982_v29 = vadd.f32 %v981_v24, %v827_v13  ;;  %v1078_v30 = vpop.f32.mrf.mxu3  ;;  %v740_v34 = vpop.f32.mrf.mxu0  ;;  %v2389_v24 = vld [vmem:[%s2906_s11 + $0x108] sm:$0xf0] }
  0xe9   : > { %v830_v32 = vadd.f32 %v829_v46, %v740_v34  ;;  %v836_v28 = vpop.f32.mrf.mxu1  ;;  %v2729_v46 = vld [vmem:[%s2906_s11 + $0xe4] sm:$0xf0]  ;;  %v3197_v37 = vor.u32 %v2732_v22, %v2389_v24 }
  0xea   : > { %v3170_v36 = vadd.f32 %v1070_v40, %v982_v29  ;;  %v2371_v40 = vld [vmem:[%s2906_s11 + $0xe0] sm:$0xf] }
  0xeb   : > { %779 = vmatmul.bf16.gmra.mxu0 %v3168_v27  ;;  %v3189_v8 = vor.u32 %v2729_v46, %v2371_v40 }
  0xec   : > { %1023 = vmatmul.bf16.gmra.mxu2 %v3147_v56 }
  0xef   : > { %v984_v41 = vpop.f32.mrf.mxu2 }
  0xf0   : > { %v985_v44 = vadd.f32 %v984_v41, %v830_v32  ;;  %v1080_v47 = vpop.f32.mrf.mxu3  ;;  %v742_v52 = vpop.f32.mrf.mxu0 }
  0xf1   : > { %v839_v57 = vpop.f32.mrf.mxu1  ;;  %v832_v4 = vadd.f32 %v831_v2, %v742_v52 }
  0xf2   : > { %v3178_v62 = vadd.f32 %v1073_v59, %v985_v44 }
  0xf4   : > { %2443 = vmatmul.msk.bf16.gmra.mxu1 %vm662_vm0, %v3176_v53 }
  0xf5   : > { %2503 = vmatmul.msk.bf16.gmra.mxu3 %vm662_vm0, %v3158_v17 }
  0xf7   : > { %v986_v6 = vpop.f32.mrf.mxu2 }
  0xf8   : > { %v987_v59 = vadd.f32 %v986_v6, %v832_v4  ;;  %v1083_v9 = vpop.f32.mrf.mxu3  ;;  %v745_v11 = vpop.f32.mrf.mxu0 }
  0xf9   : > { %v835_v14 = vadd.f32 %v834_v18, %v745_v11  ;;  %v841_v13 = vpop.f32.mrf.mxu1  ;;  %v2731_v18 = vld [vmem:[%s2906_s11 + $0xf4] sm:$0xf0] }
  0xfa   : > { %v3191_v21 = vadd.f32 %v1075_v12, %v987_v59  ;;  %v2379_v12 = vld [vmem:[%s2906_s11 + $0xf0] sm:$0xf] }
  0xfb   : > { %784 = vmatmul.bf16.gmra.mxu0 %v3189_v8  ;;  %v3207_v40 = vor.u32 %v2731_v18, %v2379_v12 }
  0xfc   : > { %1028 = vmatmul.bf16.gmra.mxu2 %v3168_v27 }
  0xff   : > { %v989_v2 = vpop.f32.mrf.mxu2 }
 0x100   : > { %v990_v29 = vadd.f32 %v989_v2, %v835_v14  ;;  %v1085_v34 = vpop.f32.mrf.mxu3  ;;  %v747_v32 = vpop.f32.mrf.mxu0 }
 0x101   : > { %v844_v39 = vpop.f32.mrf.mxu1  ;;  %v837_v44 = vadd.f32 %v836_v28, %v747_v32 }
 0x102   : > { %v3199_v41 = vadd.f32 %v1078_v30, %v990_v29  ;;  %v2387_v29 = vld [vmem:[%s2906_s11 + $0x100] sm:$0xf] }
 0x104   : > { %2444 = vmatmul.msk.bf16.gmra.mxu1 %vm662_vm0, %v3197_v37 }
 0x105   : > { %2504 = vmatmul.msk.bf16.gmra.mxu3 %vm662_vm0, %v3176_v53 }
 0x107   : > { %v991_v52 = vpop.f32.mrf.mxu2 }
 0x108   : > { %v992_v46 = vadd.f32 %v991_v52, %v837_v44  ;;  %v1088_v1 = vpop.f32.mrf.mxu3  ;;  %v750_v4 = vpop.f32.mrf.mxu0 }
 0x109   : > { %v840_v6 = vadd.f32 %v839_v57, %v750_v4  ;;  %v846_v30 = vpop.f32.mrf.mxu1  ;;  %v2733_v57 = vld [vmem:[%s2906_s11 + $0x104] sm:$0xf0] }
 0x10a   : > { %v3209_v59 = vadd.f32 %v1080_v47, %v992_v46  ;;  %v3220_v12 = vor.u32 %v2733_v57, %v2387_v29 }
 0x10b   : > { %789 = vmatmul.bf16.gmra.mxu0 %v3207_v40 }
 0x10c   : > { %1033 = vmatmul.bf16.gmra.mxu2 %v3189_v8 }
 0x10f   : > { %v994_v11 = vpop.f32.mrf.mxu2 }
 0x110   : > { %v995_v14 = vadd.f32 %v994_v11, %v840_v6  ;;  %v1090_v22 = vpop.f32.mrf.mxu3  ;;  %v752_v28 = vpop.f32.mrf.mxu0 }
 0x111   : > { %v849_v24 = vpop.f32.mrf.mxu1  ;;  %v842_v47 = vadd.f32 %v841_v13, %v752_v28 }
 0x112   : > { %v3213_v2 = vadd.f32 %v1083_v9, %v995_v14 }
 0x114   : > { %1226 = vmatmul.bf16.vlgmr.msrb.gmra.mxu1 %v2977_v42 }
 0x115   : > { %2567 = vmatmul.msk.bf16.vlgmr.msrb.gmra.mxu3 %vm662_vm0, %v2943_v25 }
 0x117   : > { %v996_v32 = vpop.f32.mrf.mxu2 }
 0x118   : > { %v997_v18 = vadd.f32 %v996_v32, %v842_v47  ;;  %v1093_v44 = vpop.f32.mrf.mxu3  ;;  %v755_v52 = vpop.f32.mrf.mxu0 }
 0x119   : > { %v845_v46 = vadd.f32 %v844_v39, %v755_v52  ;;  %v851_v4 = vpop.f32.mrf.mxu1  ;;  %v2780_v52 = vld [vmem:[%s3661_s6 + $0x8] sm:$0xff] }
 0x11a   : > { %v3222_v6 = vadd.f32 %v1085_v34, %v997_v18  ;;  %1991 = vmatpush.bf16.msrb.mxu2 %v2780_v52 }
 0x11b   : > { %794 = vmatmul.bf16.gmra.mxu0 %v3220_v12 }
 0x11c   : > { %1038 = vmatmul.bf16.gmra.mxu2 %v3207_v40 }
 0x11f   : > { %v999_v25 = vpop.f32.mrf.mxu2 }
 0x120   : > { %v1000_v42 = vadd.f32 %v999_v25, %v845_v46  ;;  %v1095_v9 = vpop.f32.mrf.mxu3  ;;  %v757_v13 = vpop.f32.mrf.mxu0 }
 0x121   : > { %v854_v11 = vpop.f32.mrf.mxu1  ;;  %v847_v34 = vadd.f32 %v846_v30, %v757_v13 }
 0x122   : > { %v3234_v39 = vadd.f32 %v1088_v1, %v1000_v42 }
 0x124   : > { %1231 = vmatmul.bf16.gmra.mxu1 %v2990_v48 }
 0x125   : > { %2568 = vmatmul.msk.bf16.gmra.mxu3 %vm662_vm0, %v2966_v38 }
 0x127   : > { %v1001_v14 = vpop.f32.mrf.mxu2 }
 0x128   : > { %v1002_v28 = vadd.f32 %v1001_v14, %v847_v34  ;;  %v1098_v29 = vpop.f32.mrf.mxu3  ;;  %v760_v57 = vpop.f32.mrf.mxu0 }
 0x129   : > { %v850_v47 = vadd.f32 %v849_v24, %v760_v57  ;;  %v856_v32 = vpop.f32.mrf.mxu1 }
 0x12a   : > { %v3239_v18 = vadd.f32 %v1090_v22, %v1002_v28 }
 0x12c   : > { %3665 = vst [vmem:[#allocation2_spill] sm:$0xff] %v3239_v18 }
 0x12f   : > { %v1004_v1 = vpop.f32.mrf.mxu2 }
 0x130   : > { %v1005_v46 = vadd.f32 %v1004_v1, %v850_v47  ;;  %v1100_v48 = vpop.f32.mrf.mxu3  ;;  %v762_v25 = vpop.f32.mrf.mxu0 }
 0x131   : > { %v859_v42 = vpop.f32.mrf.mxu1  ;;  %v852_v30 = vadd.f32 %v851_v4, %v762_v25 }
 0x132   : > { %v3244_v38 = vadd.f32 %v1093_v44, %v1005_v46 }
 0x134   : > { %1236 = vmatmul.bf16.gmra.mxu1 %v3007_v55 }
 0x135   : > { %2569 = vmatmul.msk.bf16.gmra.mxu3 %vm662_vm0, %v2982_v45 }
 0x137   : > { %v1006_v22 = vpop.f32.mrf.mxu2 }
 0x138   : > { %v1007_v24 = vadd.f32 %v1006_v22, %v852_v30  ;;  %v1103_v13 = vpop.f32.mrf.mxu3  ;;  %v765_v34 = vpop.f32.mrf.mxu0 }
 0x139   : > { %v855_v14 = vadd.f32 %v854_v11, %v765_v34  ;;  %v861_v28 = vpop.f32.mrf.mxu1 }
 0x13a   : > { %v3249_v57 = vadd.f32 %v1095_v9, %v1007_v24 }
 0x13f   : > { %v1009_v47 = vpop.f32.mrf.mxu2 }
 0x140   : > { %v1010_v52 = vadd.f32 %v1009_v47, %v855_v14  ;;  %v1105_v1 = vpop.f32.mrf.mxu3  ;;  %v767_v18 = vpop.f32.mrf.mxu0 }
 0x141   : > { %v864_v44 = vpop.f32.mrf.mxu1  ;;  %v857_v45 = vadd.f32 %v856_v32, %v767_v18 }
 0x142   : > { %v3251_v46 = vadd.f32 %v1098_v29, %v1010_v52 }
 0x144   : > { %1241 = vmatmul.bf16.gmra.mxu1 %v3021_v61 }
 0x145   : > { %2570 = vmatmul.msk.bf16.gmra.mxu3 %vm662_vm0, %v2996_v51 }
 0x147   : > { %v1011_v55 = vpop.f32.mrf.mxu2 }
 0x148   : > { %v1012_v4 = vadd.f32 %v1011_v55, %v857_v45  ;;  %v1108_v25 = vpop.f32.mrf.mxu3  ;;  %v770_v11 = vpop.f32.mrf.mxu0 }
 0x149   : > { %v860_v30 = vadd.f32 %v859_v42, %v770_v11  ;;  %v866_v9 = vpop.f32.mrf.mxu1 }
 0x14a   : > { %v3256_v22 = vadd.f32 %v1100_v48, %v1012_v4  ;;  %v2779_v4 = vld [vmem:[%s3661_s6] sm:$0xff] }
 0x14b   : > { %1992 = vmatpush.bf16.msrb.mxu2 %v2779_v4 }
 0x14f   : > { %v1014_v24 = vpop.f32.mrf.mxu2 }
 0x150   : > { %v1015_v34 = vadd.f32 %v1014_v24, %v860_v30  ;;  %v1110_v14 = vpop.f32.mrf.mxu3  ;;  %v772_v47 = vpop.f32.mrf.mxu0 }
 0x151   : > { %v869_v29 = vpop.f32.mrf.mxu1  ;;  %v862_v51 = vadd.f32 %v861_v28, %v772_v47 }
 0x152   : > { %v3258_v52 = vadd.f32 %v1103_v13, %v1015_v34 }
 0x154   : > { %1246 = vmatmul.bf16.gmra.mxu1 %v3035_v3 }
 0x155   : > { %2571 = vmatmul.msk.bf16.gmra.mxu3 %vm662_vm0, %v3013_v58 }
 0x157   : > { %v1016_v61 = vpop.f32.mrf.mxu2 }
 0x158   : > { %v1017_v32 = vadd.f32 %v1016_v61, %v862_v51  ;;  %v1113_v18 = vpop.f32.mrf.mxu3  ;;  %v775_v42 = vpop.f32.mrf.mxu0 }
 0x159   : > { %v865_v45 = vadd.f32 %v864_v44, %v775_v42  ;;  %v871_v48 = vpop.f32.mrf.mxu1 }
 0x15a   : > { %v3263_v55 = vadd.f32 %v1105_v1, %v1017_v32 }
 0x15f   : > { %v1019_v13 = vpop.f32.mrf.mxu2 }
 0x160   : > { %v1020_v11 = vadd.f32 %v1019_v13, %v865_v45  ;;  %v1115_v3 = vpop.f32.mrf.mxu3  ;;  %v777_v30 = vpop.f32.mrf.mxu0 }
 0x161   : > { %v874_v24 = vpop.f32.mrf.mxu1  ;;  %v867_v28 = vadd.f32 %v866_v9, %v777_v30 }
 0x162   : > { %v3268_v58 = vadd.f32 %v1108_v25, %v1020_v11 }
 0x164   : > { %1251 = vmatmul.bf16.gmra.mxu1 %v3052_v10 }
 0x165   : > { %2572 = vmatmul.msk.bf16.gmra.mxu3 %vm662_vm0, %v3027_v0 }
 0x167   : > { %v1021_v1 = vpop.f32.mrf.mxu2 }
 0x168   : > { %v1022_v44 = vadd.f32 %v1021_v1, %v867_v28  ;;  %v1118_v34 = vpop.f32.mrf.mxu3  ;;  %v780_v47 = vpop.f32.mrf.mxu0 }
 0x169   : > { %v870_v51 = vadd.f32 %v869_v29, %v780_v47  ;;  %v876_v61 = vpop.f32.mrf.mxu1 }
 0x16a   : > { %v3273_v32 = vadd.f32 %v1110_v14, %v1022_v44 }
 0x16f   : > { %v1024_v42 = vpop.f32.mrf.mxu2 }
 0x170   : > { %v1025_v45 = vadd.f32 %v1024_v42, %v870_v51  ;;  %v1120_v4 = vpop.f32.mrf.mxu3  ;;  %v782_v13 = vpop.f32.mrf.mxu0 }
 0x171   : > { %v879_v25 = vpop.f32.mrf.mxu1  ;;  %v872_v0 = vadd.f32 %v871_v48, %v782_v13 }
 0x172   : > { %v3275_v11 = vadd.f32 %v1113_v18, %v1025_v45 }
 0x174   : > { %1256 = vmatmul.bf16.gmra.mxu1 %v3072_v23 }
 0x175   : > { %2573 = vmatmul.msk.bf16.gmra.mxu3 %vm662_vm0, %v3044_v7 }
 0x177   : > { %v1026_v10 = vpop.f32.mrf.mxu2 }
 0x178   : > { %v1027_v9 = vadd.f32 %v1026_v10, %v872_v0  ;;  %v1123_v29 = vpop.f32.mrf.mxu3  ;;  %v785_v30 = vpop.f32.mrf.mxu0 }
 0x179   : > { %v875_v14 = vadd.f32 %v874_v24, %v785_v30  ;;  %v881_v28 = vpop.f32.mrf.mxu1 }
 0x17a   : > { %v3280_v1 = vadd.f32 %v1115_v3, %v1027_v9 }
 0x17f   : > { %v1029_v44 = vpop.f32.mrf.mxu2 }
 0x180   : > { %v1030_v47 = vadd.f32 %v1029_v44, %v875_v14  ;;  %v1125_v51 = vpop.f32.mrf.mxu3  ;;  %v787_v18 = vpop.f32.mrf.mxu0 }
 0x181   : > { %v884_v42 = vpop.f32.mrf.mxu1  ;;  %v877_v7 = vadd.f32 %v876_v61, %v787_v18 }
 0x182   : > { %v3282_v45 = vadd.f32 %v1118_v34, %v1030_v47 }
 0x184   : > { %1261 = vmatmul.bf16.gmra.mxu1 %v3089_v35  ;;  %v2763_v35 = vld [vmem:[%s3291_s15] sm:$0xff] }
 0x185   : > { %2574 = vmatmul.msk.bf16.gmra.mxu3 %vm662_vm0, %v3061_v16  ;;  %2647 = vmatmul.msk.bf16.vlgmr.msrb.gmra.mxu0 %vm1764_vm2, %v2763_v35 }
 0x187   : > { %v1031_v23 = vpop.f32.mrf.mxu2 }
 0x188   : > { %v1032_v48 = vadd.f32 %v1031_v23, %v877_v7  ;;  %v1128_v24 = vpop.f32.mrf.mxu3  ;;  %v790_v13 = vpop.f32.mrf.mxu0 }
 0x189   : > { %v880_v3 = vadd.f32 %v879_v25, %v790_v13  ;;  %v886_v34 = vpop.f32.mrf.mxu1 }
 0x18a   : > { %v3293_v0 = vadd.f32 %v1120_v4, %v1032_v48 }
 0x18f   : > { %v1034_v16 = vpop.f32.mrf.mxu2 }
 0x190   : > { %v1035_v61 = vadd.f32 %v1034_v16, %v880_v3  ;;  %v1130_v10 = vpop.f32.mrf.mxu3  ;;  %v792_v9 = vpop.f32.mrf.mxu0 }
 0x191   : > { %v1227_v30 = vpop.f32.mrf.mxu1  ;;  %v882_v25 = vadd.f32 %v881_v28, %v792_v9 }
 0x192   : > { %v3297_v14 = vadd.f32 %v1123_v29, %v1035_v61 }
 0x194   : > { %1266 = vmatmul.bf16.gmra.mxu1 %v3105_v60  ;;  %v3308_v60 = vld [vmem:[%s3660_s5] ss:$0 sm:$0xff] }
 0x195   : > { %2575 = vmatmul.msk.bf16.gmra.mxu3 %vm662_vm0, %v3081_v31  ;;  %v2764_v31 = vld [vmem:[%s3291_s15 + $0x8] sm:$0xff] }
 0x196   : > { %2648 = vmatmul.msk.bf16.gmra.mxu0 %vm1764_vm2, %v2764_v31 }
 0x197   : > { %v1036_v4 = vpop.f32.mrf.mxu2 }
 0x198   : > { %v1037_v44 = vadd.f32 %v1036_v4, %v882_v25  ;;  %v1316_v47 = vpop.f32.mrf.mxu3  ;;  %v795_v18 = vpop.f32.mrf.mxu0 }
 0x199   : > { %v1317_v7 = vadd.f32 %v1316_v47, %v1227_v30  ;;  %v885_v23 = vadd.f32 %v884_v42, %v795_v18  ;;  %v1229_v48 = vpop.f32.mrf.mxu1 }
 0x19a   : > { %v3302_v13 = vadd.f32 %v1125_v51, %v1037_v44 }
 0x19b   : > { %v1396_v3 = vadd.f32 %v1317_v7, %v3097_v54  ;;  %v2793_v54 = vld [vmem:[%s3231_s25] ss:$0 sm:$0xff] }
 0x19c   : > { %v3326_v7 = vld [vmem:[%s384_s20] sm:$0xff] }
 0x19d   : > { %v1432_v29 = vadd.f32 %v3308_v60, %v1396_v3 }
 0x19f   : > { %v1039_v28 = vpop.f32.mrf.mxu2  ;;  %v1464_v9 = vmax.f32 %v1432_v29, 0.0 }
 0x1a0   : > { %v1040_v35 = vadd.f32 %v1039_v28, %v885_v23  ;;  %v1318_v16 = vpop.f32.mrf.mxu3  ;;  %v797_v25 = vpop.f32.mrf.mxu0 }
 0x1a1   : > { %v1319_v42 = vadd.f32 %v1318_v16, %v1229_v48  ;;  %v1232_v61 = vpop.f32.mrf.mxu1  ;;  %v1560_v44 = vmul.f32 %v2793_v54, %v1464_v9 }
 0x1a2   : > { %v3313_v51 = vadd.f32 %v1128_v24, %v1040_v35  ;;  %v887_v24 = vadd.f32 %v886_v34, %v797_v25  ;;  %v2765_v35 = vld [vmem:[%s3291_s15 + $0x10] sm:$0xff] }
 0x1a3   : > { %v1397_v30 = vadd.f32 %v1319_v42, %v3107_v5  ;;  %v3328_v5 = vld [vmem:[%s384_s20 + $0x8] sm:$0xff]  ;;  %v1594_v28 = vmul.f32 %v3326_v7, %v1560_v44 }
 0x1a4   : > { %1271 = vmatmul.bf16.gmra.mxu1 %v3129_v26 }
 0x1a5   : > { %v1433_v4 = vadd.f32 %v3308_v60, %v1397_v30  ;;  %2576 = vmatmul.msk.bf16.gmra.mxu3 %vm662_vm0, %v3095_v50  ;;  %v2794_v30 = vld [vmem:[%s3231_s25 + $0x1] ss:$0 sm:$0xff] }
 0x1a6   : > { %2649 = vmatmul.msk.bf16.gmra.mxu0 %vm1764_vm2, %v2765_v35  ;;  %v2795_v35 = vld [vmem:[%s3231_s25 + $0x2] ss:$0 sm:$0xff] }
 0x1a7   : > { %v1465_v47 = vmax.f32 %v1433_v4, 0.0  ;;  %v1041_v18 = vpop.f32.mrf.mxu2 }
 0x1a8   : > { %v1042_v26 = vadd.f32 %v1041_v18, %v887_v24  ;;  %v1321_v23 = vpop.f32.mrf.mxu3 }
 0x1a9   : > { %v1561_v48 = vmul.f32 %v2793_v54, %v1465_v47  ;;  %v1322_v3 = vadd.f32 %v1321_v23, %v1232_v61  ;;  %v1234_v31 = vpop.f32.mrf.mxu1 }
 0x1aa   : > { %v3330_v29 = vadd.f32 %v1130_v10, %v1042_v26 }
 0x1ab   : > { %v1595_v50 = vmul.f32 %v3328_v5, %v1561_v48  ;;  %v1398_v34 = vadd.f32 %v1322_v3, %v3118_v19  ;;  %v2766_v3 = vld [vmem:[%s3291_s15 + $0x18] sm:$0xff] }
 0x1ad   : > { %v1658_v16 = vpack.c.bf16 %v1595_v50, %v1594_v28  ;;  %v1434_v42 = vadd.f32 %v3308_v60, %v1398_v34 }
 0x1af   : > { %2679 = vmatmul.msk.bf16.vlgmr.msrb.gmra.mxu2 %vm1933_vm3, %v1658_v16  ;;  %v1466_v10 = vmax.f32 %v1434_v42, 0.0 }
 0x1b0   : > { %v1323_v61 = vpop.f32.mrf.mxu3 }
 0x1b1   : > { %v1324_v9 = vadd.f32 %v1323_v61, %v1234_v31  ;;  %v1237_v54 = vpop.f32.mrf.mxu1  ;;  %v1562_v4 = vmul.f32 %v2794_v30, %v1466_v10 }
 0x1b3   : > { %v1399_v25 = vadd.f32 %v1324_v9, %v3131_v33  ;;  %v1596_v23 = vmul.f32 %v3326_v7, %v1562_v4  ;;  %v2767_v4 = vld [vmem:[%s3291_s15 + $0x20] sm:$0xff] }
 0x1b4   : > { %1276 = vmatmul.bf16.gmra.mxu1 %v3147_v56 }
 0x1b5   : > { %v1435_v19 = vadd.f32 %v3308_v60, %v1399_v25  ;;  %2577 = vmatmul.msk.bf16.gmra.mxu3 %vm662_vm0, %v3116_v15 }
 0x1b6   : > { %2650 = vmatmul.msk.bf16.gmra.mxu0 %vm1764_vm2, %v2766_v3 }
 0x1b7   : > { %v1467_v24 = vmax.f32 %v1435_v19, 0.0 }
 0x1b8   : > { %v1326_v44 = vpop.f32.mrf.mxu3 }
 0x1b9   : > { %v1563_v47 = vmul.f32 %v2794_v30, %v1467_v24  ;;  %v1327_v18 = vadd.f32 %v1326_v44, %v1237_v54  ;;  %v1239_v26 = vpop.f32.mrf.mxu1 }
 0x1bb   : > { %v1400_v48 = vadd.f32 %v1327_v18, %v3139_v49  ;;  %v1597_v33 = vmul.f32 %v3328_v5, %v1563_v47 }
 0x1bd   : > { %v1659_v56 = vpack.c.bf16 %v1597_v33, %v1596_v23  ;;  %v1436_v31 = vadd.f32 %v3308_v60, %v1400_v48 }
 0x1bf   : > { %2680 = vmatmul.msk.bf16.gmra.mxu2 %vm1933_vm3, %v1659_v56  ;;  %v1468_v34 = vmax.f32 %v1436_v31, 0.0 }
 0x1c0   : > { %v1328_v15 = vpop.f32.mrf.mxu3 }
 0x1c1   : > { %v1329_v28 = vadd.f32 %v1328_v15, %v1239_v26  ;;  %v1242_v50 = vpop.f32.mrf.mxu1  ;;  %v1564_v42 = vmul.f32 %v2795_v35, %v1468_v34  ;;  %v2796_v26 = vld [vmem:[%s3231_s25 + $0x3] ss:$0 sm:$0xff]  ;;  %v2768_v34 = vld [vmem:[%s3291_s15 + $0x28] sm:$0xff] }
 0x1c3   : > { %v1401_v16 = vadd.f32 %v1329_v28, %v3149_v63  ;;  %v1598_v25 = vmul.f32 %v3326_v7, %v1564_v42 }
 0x1c4   : > { %1281 = vmatmul.bf16.gmra.mxu1 %v3168_v27 }
 0x1c5   : > { %v1437_v49 = vadd.f32 %v3308_v60, %v1401_v16  ;;  %2578 = vmatmul.msk.bf16.gmra.mxu3 %vm662_vm0, %v3137_v43 }
 0x1c6   : > { %2651 = vmatmul.msk.bf16.gmra.mxu0 %vm1764_vm2, %v2767_v4 }
 0x1c7   : > { %v1469_v61 = vmax.f32 %v1437_v49, 0.0 }
 0x1c8   : > { %v1331_v9 = vpop.f32.mrf.mxu3 }
 0x1c9   : > { %v1565_v54 = vmul.f32 %v2795_v35, %v1469_v61  ;;  %v1332_v10 = vadd.f32 %v1331_v9, %v1242_v50  ;;  %v1244_v30 = vpop.f32.mrf.mxu1  ;;  %v2797_v61 = vld [vmem:[%s3231_s25 + $0x4] ss:$0 sm:$0xff] }
 0x1cb   : > { %v1402_v19 = vadd.f32 %v1332_v10, %v3160_v20  ;;  %v1599_v63 = vmul.f32 %v3328_v5, %v1565_v54 }
 0x1cd   : > { %v1660_v27 = vpack.c.bf16 %v1599_v63, %v1598_v25  ;;  %v1438_v24 = vadd.f32 %v3308_v60, %v1402_v19 }
 0x1cf   : > { %2681 = vmatmul.msk.bf16.gmra.mxu2 %vm1933_vm3, %v1660_v27  ;;  %v1470_v18 = vmax.f32 %v1438_v24, 0.0  ;;  %v2769_v24 = vld [vmem:[%s3291_s15 + $0x30] sm:$0xff] }
 0x1d0   : > { %v1333_v43 = vpop.f32.mrf.mxu3 }
 0x1d1   : > { %v1334_v44 = vadd.f32 %v1333_v43, %v1244_v30  ;;  %v1247_v47 = vpop.f32.mrf.mxu1  ;;  %v1566_v48 = vmul.f32 %v2796_v26, %v1470_v18 }
 0x1d3   : > { %v1403_v23 = vadd.f32 %v1334_v44, %v3170_v36  ;;  %v1600_v28 = vmul.f32 %v3326_v7, %v1566_v48 }
 0x1d4   : > { %1286 = vmatmul.bf16.gmra.mxu1 %v3189_v8 }
 0x1d5   : > { %v1439_v20 = vadd.f32 %v3308_v60, %v1403_v23  ;;  %2579 = vmatmul.msk.bf16.gmra.mxu3 %vm662_vm0, %v3158_v17 }
 0x1d6   : > { %2652 = vmatmul.msk.bf16.gmra.mxu0 %vm1764_vm2, %v2768_v34  ;;  %v2735_v34 = vld [vmem:[%s2906_s11 + $0x114] sm:$0xf0] }
 0x1d7   : > { %v1471_v33 = vmax.f32 %v1439_v20, 0.0 }
 0x1d8   : > { %v1336_v3 = vpop.f32.mrf.mxu3 }
 0x1d9   : > { %v1567_v56 = vmul.f32 %v2796_v26, %v1471_v33  ;;  %v1337_v31 = vadd.f32 %v1336_v3, %v1247_v47  ;;  %v1249_v15 = vpop.f32.mrf.mxu1  ;;  %v2798_v26 = vld [vmem:[%s3231_s25 + $0x5] ss:$0 sm:$0xff] }
 0x1db   : > { %v1404_v50 = vadd.f32 %v1337_v31, %v3178_v62  ;;  %v1601_v36 = vmul.f32 %v3328_v5, %v1567_v56 }
 0x1dd   : > { %v1661_v8 = vpack.c.bf16 %v1601_v36, %v1600_v28  ;;  %v1440_v35 = vadd.f32 %v3308_v60, %v1404_v50  ;;  %v2525_v36 = vld [vmem:[%s2906_s11 + $0x110] sm:$0xf] }
 0x1df   : > { %2682 = vmatmul.msk.bf16.gmra.mxu2 %vm1933_vm3, %v1661_v8  ;;  %v1472_v42 = vmax.f32 %v1440_v35, 0.0  ;;  %v2527_v8 = vld [vmem:[%s2906_s11 + $0x118] sm:$0xf0] }
 0x1e0   : > { %v1338_v17 = vpop.f32.mrf.mxu3 }
 0x1e1   : > { %v1339_v16 = vadd.f32 %v1338_v17, %v1249_v15  ;;  %v1252_v49 = vpop.f32.mrf.mxu1  ;;  %v1568_v54 = vmul.f32 %v2797_v61, %v1472_v42 }
 0x1e3   : > { %v1405_v9 = vadd.f32 %v1339_v16, %v3191_v21  ;;  %v1602_v4 = vmul.f32 %v3326_v7, %v1568_v54  ;;  %v2526_v16 = vor.u32 %v2735_v34, %v2525_v36  ;;  %v2772_v34 = vld [vmem:[%s3291_s15 + $0x48] sm:$0xff] }
 0x1e4   : > { %1291 = vmatmul.bf16.gmra.mxu1 %v3207_v40 }
 0x1e5   : > { %v1441_v62 = vadd.f32 %v3308_v60, %v1405_v9  ;;  %2580 = vmatmul.msk.bf16.gmra.mxu3 %vm662_vm0, %v3176_v53 }
 0x1e6   : > { %2653 = vmatmul.msk.bf16.gmra.mxu0 %vm1764_vm2, %v2769_v24 }
 0x1e7   : > { %v1473_v10 = vmax.f32 %v1441_v62, 0.0 }
 0x1e8   : > { %v1341_v30 = vpop.f32.mrf.mxu3 }
 0x1e9   : > { %v1569_v25 = vmul.f32 %v2797_v61, %v1473_v10  ;;  %v1342_v19 = vadd.f32 %v1341_v30, %v1252_v49  ;;  %v1254_v63 = vpop.f32.mrf.mxu1 }
 0x1eb   : > { %v1603_v27 = vmul.f32 %v3328_v5, %v1569_v25  ;;  %v1406_v21 = vadd.f32 %v1342_v19, %v3199_v41 }
 0x1ed   : > { %v1662_v40 = vpack.c.bf16 %v1603_v27, %v1602_v4  ;;  %v1442_v43 = vadd.f32 %v3308_v60, %v1406_v21 }
 0x1ef   : > { %2683 = vmatmul.msk.bf16.gmra.mxu2 %vm1933_vm3, %v1662_v40  ;;  %v1474_v18 = vmax.f32 %v1442_v43, 0.0  ;;  %v2771_v40 = vld [vmem:[%s3291_s15 + $0x40] sm:$0xff] }
 0x1f0   : > { %v1343_v53 = vpop.f32.mrf.mxu3 }
 0x1f1   : > { %v1344_v44 = vadd.f32 %v1343_v53, %v1254_v63  ;;  %v1257_v47 = vpop.f32.mrf.mxu1  ;;  %v1570_v20 = vmul.f32 %v2798_v26, %v1474_v18 }
 0x1f3   : > { %v1407_v23 = vadd.f32 %v1344_v44, %v3209_v59  ;;  %v1604_v15 = vmul.f32 %v3326_v7, %v1570_v20  ;;  %v3666_v20 = vld [vmem:[#allocation2_spill] sm:$0xff] }
 0x1f4   : > { %1296 = vmatmul.bf16.gmra.mxu1 %v3220_v12  ;;  %v2770_v12 = vld [vmem:[%s3291_s15 + $0x38] sm:$0xff] }
 0x1f5   : > { %v1443_v41 = vadd.f32 %v3308_v60, %v1407_v23  ;;  %2581 = vmatmul.msk.bf16.gmra.mxu3 %vm662_vm0, %v3197_v37  ;;  %v2734_v37 = vld [vmem:[%s2906_s11 + $0x114] sm:$0xf]  ;;  %s2699_s11 = sshll.u32 %s3668_s10, 8 }
 0x1f6   : > { %2654 = vmatmul.msk.bf16.gmra.mxu0 %vm1764_vm2, %v2770_v12  ;;  %v2530_v61 = vor.u32 %v2734_v37, %v2527_v8  ;;  %s3463_s26 = scalar_lea.vmem %s3664_s9, %s2699_s11 }
 0x1f7   : > { %v1475_v48 = vmax.f32 %v1443_v41, 0.0  ;;  %v2800_v41 = vld [vmem:[%s3231_s25 + $0x7] ss:$0 sm:$0xff] }
 0x1f8   : > { %v1346_v33 = vpop.f32.mrf.mxu3 }
 0x1f9   : > { %v1571_v3 = vmul.f32 %v2798_v26, %v1475_v48  ;;  %v1347_v56 = vadd.f32 %v1346_v33, %v1257_v47  ;;  %v1259_v31 = vpop.f32.mrf.mxu1 }
 0x1fb   : > { %v1605_v59 = vmul.f32 %v3328_v5, %v1571_v3  ;;  %v1408_v28 = vadd.f32 %v1347_v56, %v3213_v2  ;;  %v2799_v2 = vld [vmem:[%s3231_s25 + $0x6] ss:$0 sm:$0xff] }
 0x1fd   : > { %v1663_v50 = vpack.c.bf16 %v1605_v59, %v1604_v15  ;;  %v1444_v35 = vadd.f32 %v3308_v60, %v1408_v28 }
 0x1ff   : > { %2684 = vmatmul.msk.bf16.gmra.mxu2 %vm1933_vm3, %v1663_v50  ;;  %v1476_v9 = vmax.f32 %v1444_v35, 0.0 }
 0x200   : > { %v1348_v17 = vpop.f32.mrf.mxu3 }
 0x201   : > { %v1349_v49 = vadd.f32 %v1348_v17, %v1259_v31  ;;  %v1262_v42 = vpop.f32.mrf.mxu1  ;;  %v1572_v10 = vmul.f32 %v2799_v2, %v1476_v9 }
 0x202   : > { %v3412_v27 = vpop.f32.mrf.mxu0 }
 0x203   : > { %v1409_v62 = vadd.f32 %v1349_v49, %v3222_v6  ;;  %v1606_v21 = vmul.f32 %v3326_v7, %v1572_v10 }
 0x204   : > { %1301 = vmatmul.bf16.gmra.mxu1 %v2526_v16 }
 0x205   : > { %v1445_v54 = vadd.f32 %v3308_v60, %v1409_v62  ;;  %2582 = vmatmul.msk.bf16.gmra.mxu3 %vm662_vm0, %v2530_v61  ;;  %v2801_v61 = vld [vmem:[%s3231_s25 + $0x8] ss:$0 sm:$0xff] }
 0x206   : > { %2655 = vmatmul.msk.bf16.gmra.mxu0 %vm1764_vm2, %v2771_v40 }
 0x207   : > { %v1477_v30 = vmax.f32 %v1445_v54, 0.0 }
 0x208   : > { %v1351_v25 = vpop.f32.mrf.mxu3 }
 0x209   : > { %v1573_v19 = vmul.f32 %v2799_v2, %v1477_v30  ;;  %v1352_v63 = vadd.f32 %v1351_v25, %v1262_v42  ;;  %v1264_v4 = vpop.f32.mrf.mxu1 }
 0x20a   : > { %v3421_v26 = vpop.f32.mrf.mxu0 }
 0x20b   : > { %v1607_v24 = vmul.f32 %v3328_v5, %v1573_v19  ;;  %v1410_v6 = vadd.f32 %v1352_v63, %v3234_v39 }
 0x20d   : > { %v1664_v43 = vpack.c.bf16 %v1607_v24, %v1606_v21  ;;  %v1446_v53 = vadd.f32 %v3308_v60, %v1410_v6  ;;  %v2773_v24 = vld [vmem:[%s3291_s15 + $0x50] sm:$0xff] }
 0x20f   : > { %2685 = vmatmul.msk.bf16.gmra.mxu2 %vm1933_vm3, %v1664_v43  ;;  %v1478_v23 = vmax.f32 %v1446_v53, 0.0 }
 0x210   : > { %v1353_v44 = vpop.f32.mrf.mxu3 }
 0x211   : > { %v1354_v47 = vadd.f32 %v1353_v44, %v1264_v4  ;;  %v1267_v18 = vpop.f32.mrf.mxu1  ;;  %v1574_v33 = vmul.f32 %v2800_v41, %v1478_v23  ;;  %v3453_v44 = vld [vmem:[%s3663_s8] ss:$0 sm:$0xff]  ;;  %v2802_v23 = vld [vmem:[%s3231_s25 + $0x9] ss:$0 sm:$0xff] }
 0x213   : > { %v1411_v48 = vadd.f32 %v1354_v47, %v3666_v20  ;;  %v3426_v28 = vpop.f32.mrf.mxu0  ;;  %v1608_v12 = vmul.f32 %v3326_v7, %v1574_v33 }
 0x215   : > { %v1447_v39 = vadd.f32 %v3308_v60, %v1411_v48 }
 0x216   : > { %2656 = vmatmul.msk.bf16.gmra.mxu0 %vm1764_vm2, %v2772_v34 }
 0x217   : > { %v1479_v3 = vmax.f32 %v1447_v39, 0.0 }
 0x218   : > { %v1356_v56 = vpop.f32.mrf.mxu3 }
 0x219   : > { %v1575_v31 = vmul.f32 %v2800_v41, %v1479_v3  ;;  %v1357_v15 = vadd.f32 %v1356_v56, %v1267_v18  ;;  %v1269_v59 = vpop.f32.mrf.mxu1 }
 0x21b   : > { %v1609_v50 = vmul.f32 %v3328_v5, %v1575_v31  ;;  %v1412_v36 = vadd.f32 %v1357_v15, %v3244_v38  ;;  %v3435_v49 = vpop.f32.mrf.mxu0 }
 0x21d   : > { %v1665_v37 = vpack.c.bf16 %v1609_v50, %v1608_v12  ;;  %v1448_v8 = vadd.f32 %v3308_v60, %v1412_v36 }
 0x21f   : > { %2686 = vmatmul.msk.bf16.gmra.mxu2 %vm1933_vm3, %v1665_v37  ;;  %v1480_v42 = vmax.f32 %v1448_v8, 0.0  ;;  %v2774_v37 = vld [vmem:[%s3291_s15 + $0x58] sm:$0xff] }
 0x220   : > { %v1358_v35 = vpop.f32.mrf.mxu3 }
 0x221   : > { %v1359_v17 = vadd.f32 %v1358_v35, %v1269_v59  ;;  %v1272_v16 = vpop.f32.mrf.mxu1  ;;  %v1576_v2 = vmul.f32 %v2801_v61, %v1480_v42 }
 0x223   : > { %v1413_v9 = vadd.f32 %v1359_v17, %v3249_v57  ;;  %v3440_v19 = vpop.f32.mrf.mxu0  ;;  %v1610_v63 = vmul.f32 %v3326_v7, %v1576_v2 }
 0x225   : > { %v1449_v38 = vadd.f32 %v3308_v60, %v1413_v9 }
 0x226   : > { %2657 = vmatmul.msk.bf16.gmra.mxu0 %vm1764_vm2, %v2773_v24 }
 0x227   : > { %v1481_v62 = vmax.f32 %v1449_v38, 0.0  ;;  %v2804_v38 = vld [vmem:[%s3231_s25 + $0xa] ss:$0 sm:$0xff] }
 0x228   : > { %v1361_v54 = vpop.f32.mrf.mxu3 }
 0x229   : > { %v1577_v10 = vmul.f32 %v2801_v61, %v1481_v62  ;;  %v1362_v30 = vadd.f32 %v1361_v54, %v1272_v16  ;;  %v1274_v25 = vpop.f32.mrf.mxu1 }
 0x22b   : > { %v1611_v4 = vmul.f32 %v3328_v5, %v1577_v10  ;;  %v1414_v21 = vadd.f32 %v1362_v30, %v3251_v46  ;;  %v3455_v18 = vpop.f32.mrf.mxu0 }
 0x22d   : > { %v1666_v57 = vpack.c.bf16 %v1611_v4, %v1610_v63  ;;  %v1450_v6 = vadd.f32 %v3308_v60, %v1414_v21 }
 0x22f   : > { %2687 = vmatmul.msk.bf16.gmra.mxu2 %vm1933_vm3, %v1666_v57  ;;  %v1482_v46 = vmax.f32 %v1450_v6, 0.0 }
 0x230   : > { %v1363_v40 = vpop.f32.mrf.mxu3 }
 0x231   : > { %v1364_v43 = vadd.f32 %v1363_v40, %v1274_v25  ;;  %v1277_v53 = vpop.f32.mrf.mxu1  ;;  %v1578_v33 = vmul.f32 %v2802_v23, %v1482_v46 }
 0x232   : > { %v1994_v47 = vpop.f32.mrf.mxu2 }
 0x233   : > { %v1415_v41 = vadd.f32 %v1364_v43, %v3256_v22  ;;  %v1995_v20 = vadd.f32 %v1994_v47, %v3412_v27  ;;  %v3469_v59 = vpop.f32.mrf.mxu0  ;;  %v1612_v12 = vmul.f32 %v3326_v7, %v1578_v33  ;;  %v2805_v33 = vld [vmem:[%s3231_s25 + $0xb] ss:$0 sm:$0xff] }
 0x235   : > { %v1451_v48 = vadd.f32 %v3308_v60, %v1415_v41  ;;  %v2078_v39 = vadd.f32 %v3453_v44, %v1995_v20 }
 0x236   : > { %2658 = vmatmul.msk.bf16.gmra.mxu0 %vm1764_vm2, %v2774_v37 }
 0x237   : > { %v1483_v3 = vmax.f32 %v1451_v48, 0.0  ;;  %2111 = vst.msk [vmem:[%s3463_s26] sm:$0xff] %vm2110_vm4, %v2078_v39 }
 0x238   : > { %v1366_v22 = vpop.f32.mrf.mxu3 }
 0x239   : > { %v1579_v56 = vmul.f32 %v2802_v23, %v1483_v3  ;;  %v1367_v27 = vadd.f32 %v1366_v22, %v1277_v53  ;;  %v1279_v31 = vpop.f32.mrf.mxu1  ;;  %v2775_v53 = vld [vmem:[%s3291_s15 + $0x60] sm:$0xff] }
 0x23a   : > { %v1996_v15 = vpop.f32.mrf.mxu2 }
 0x23b   : > { %v1613_v50 = vmul.f32 %v3328_v5, %v1579_v56  ;;  %v1416_v36 = vadd.f32 %v1367_v27, %v3258_v52  ;;  %v1997_v34 = vadd.f32 %v1996_v15, %v3421_v26  ;;  %v3482_v52 = vpop.f32.mrf.mxu0 }
 0x23d   : > { %v2079_v8 = vadd.f32 %v3453_v44, %v1997_v34  ;;  %v1667_v35 = vpack.c.bf16 %v1613_v50, %v1612_v12  ;;  %v1452_v17 = vadd.f32 %v3308_v60, %v1416_v36 }
 0x23f   : > { %2112 = vst.msk [vmem:[%s3463_s26 + $0x8] sm:$0xff] %vm2110_vm4, %v2079_v8  ;;  %2688 = vmatmul.msk.bf16.gmra.mxu2 %vm1933_vm3, %v1667_v35  ;;  %v1484_v26 = vmax.f32 %v1452_v17, 0.0 }
 0x240   : > { %v1368_v16 = vpop.f32.mrf.mxu3 }
 0x241   : > { %v1369_v42 = vadd.f32 %v1368_v16, %v1279_v31  ;;  %v1282_v61 = vpop.f32.mrf.mxu1  ;;  %v1580_v30 = vmul.f32 %v2804_v38, %v1484_v26  ;;  %v2776_v16 = vld [vmem:[%s3291_s15 + $0x68] sm:$0xff] }
 0x242   : > { %v1999_v9 = vpop.f32.mrf.mxu2 }
 0x243   : > { %v1417_v2 = vadd.f32 %v1369_v42, %v3263_v55  ;;  %v2000_v62 = vadd.f32 %v1999_v9, %v3426_v28  ;;  %v3491_v6 = vpop.f32.mrf.mxu0  ;;  %v1614_v55 = vmul.f32 %v3326_v7, %v1580_v30 }
 0x245   : > { %v1453_v54 = vadd.f32 %v3308_v60, %v1417_v2  ;;  %v2080_v10 = vadd.f32 %v3453_v44, %v2000_v62 }
 0x246   : > { %2659 = vmatmul.msk.bf16.gmra.mxu0 %vm1764_vm2, %v2775_v53 }
 0x247   : > { %v1485_v25 = vmax.f32 %v1453_v54, 0.0  ;;  %2113 = vst.msk [vmem:[%s3463_s26 + $0x10] sm:$0xff] %vm2110_vm4, %v2080_v10  ;;  %v2806_v54 = vld [vmem:[%s3231_s25 + $0xc] ss:$0 sm:$0xff] }
 0x248   : > { %v1371_v63 = vpop.f32.mrf.mxu3 }
 0x249   : > { %v1581_v4 = vmul.f32 %v2804_v38, %v1485_v25  ;;  %v1372_v21 = vadd.f32 %v1371_v63, %v1282_v61  ;;  %v1284_v24 = vpop.f32.mrf.mxu1 }
 0x24a   : > { %v2001_v57 = vpop.f32.mrf.mxu2 }
 0x24b   : > { %v1615_v28 = vmul.f32 %v3328_v5, %v1581_v4  ;;  %v1418_v40 = vadd.f32 %v1372_v21, %v3268_v58  ;;  %v2002_v43 = vadd.f32 %v2001_v57, %v3435_v49  ;;  %v3504_v58 = vpop.f32.mrf.mxu0 }
 0x24d   : > { %v2081_v47 = vadd.f32 %v3453_v44, %v2002_v43  ;;  %v1668_v46 = vpack.c.bf16 %v1615_v28, %v1614_v55  ;;  %v1454_v23 = vadd.f32 %v3308_v60, %v1418_v40 }
 0x24f   : > { %2114 = vst.msk [vmem:[%s3463_s26 + $0x18] sm:$0xff] %vm2110_vm4, %v2081_v47  ;;  %2689 = vmatmul.msk.bf16.gmra.mxu2 %vm1933_vm3, %v1668_v46  ;;  %v1486_v49 = vmax.f32 %v1454_v23, 0.0  ;;  %v2777_v47 = vld [vmem:[%s3291_s15 + $0x70] sm:$0xff] }
 0x250   : > { %v1373_v41 = vpop.f32.mrf.mxu3 }
 0x251   : > { %v1374_v20 = vadd.f32 %v1373_v41, %v1284_v24  ;;  %v1287_v48 = vpop.f32.mrf.mxu1  ;;  %v1582_v31 = vmul.f32 %v2805_v33, %v1486_v49 }
 0x252   : > { %v2004_v39 = vpop.f32.mrf.mxu2 }
 0x253   : > { %v1419_v3 = vadd.f32 %v1374_v20, %v3273_v32  ;;  %v2005_v22 = vadd.f32 %v2004_v39, %v3440_v19  ;;  %v3513_v8 = vpop.f32.mrf.mxu0  ;;  %v1616_v32 = vmul.f32 %v3326_v7, %v1582_v31 }
 0x255   : > { %v1455_v56 = vadd.f32 %v3308_v60, %v1419_v3  ;;  %v2082_v27 = vadd.f32 %v3453_v44, %v2005_v22 }
 0x256   : > { %2660 = vmatmul.msk.bf16.gmra.mxu0 %vm1764_vm2, %v2776_v16 }
 0x257   : > { %v1487_v15 = vmax.f32 %v1455_v56, 0.0  ;;  %2115 = vst.msk [vmem:[%s3463_s26 + $0x20] sm:$0xff] %vm2110_vm4, %v2082_v27 }
 0x258   : > { %v1376_v12 = vpop.f32.mrf.mxu3 }
 0x259   : > { %v1583_v50 = vmul.f32 %v2805_v33, %v1487_v15  ;;  %v1377_v36 = vadd.f32 %v1376_v12, %v1287_v48  ;;  %v1289_v34 = vpop.f32.mrf.mxu1  ;;  %v2807_v33 = vld [vmem:[%s3231_s25 + $0xd] ss:$0 sm:$0xff] }
 0x25a   : > { %v2006_v37 = vpop.f32.mrf.mxu2 }
 0x25b   : > { %v1617_v19 = vmul.f32 %v3328_v5, %v1583_v50  ;;  %v1420_v35 = vadd.f32 %v1377_v36, %v3275_v11  ;;  %v2007_v17 = vadd.f32 %v2006_v37, %v3455_v18  ;;  %v3526_v11 = vpop.f32.mrf.mxu0 }
 0x25d   : > { %v2083_v42 = vadd.f32 %v3453_v44, %v2007_v17  ;;  %v1669_v61 = vpack.c.bf16 %v1617_v19, %v1616_v32  ;;  %v1456_v9 = vadd.f32 %v3308_v60, %v1420_v35  ;;  %v2778_v35 = vld [vmem:[%s3291_s15 + $0x78] sm:$0xff] }
 0x25f   : > { %2116 = vst.msk [vmem:[%s3463_s26 + $0x28] sm:$0xff] %vm2110_vm4, %v2083_v42  ;;  %2690 = vmatmul.msk.bf16.gmra.mxu2 %vm1933_vm3, %v1669_v61  ;;  %v1488_v18 = vmax.f32 %v1456_v9, 0.0 }
 0x260   : > { %v1378_v26 = vpop.f32.mrf.mxu3 }
 0x261   : > { %v1379_v38 = vadd.f32 %v1378_v26, %v1289_v34  ;;  %v1292_v2 = vpop.f32.mrf.mxu1  ;;  %v1584_v4 = vmul.f32 %v2806_v54, %v1488_v18 }
 0x262   : > { %v2009_v62 = vpop.f32.mrf.mxu2 }
 0x263   : > { %v1421_v10 = vadd.f32 %v1379_v38, %v3280_v1  ;;  %v2010_v30 = vadd.f32 %v2009_v62, %v3469_v59  ;;  %v1618_v43 = vmul.f32 %v3326_v7, %v1584_v4  ;;  %v3540_v46 = vpop.f32.mrf.mxu0 }
 0x265   : > { %v1457_v25 = vadd.f32 %v3308_v60, %v1421_v10  ;;  %v2084_v63 = vadd.f32 %v3453_v44, %v2010_v30 }
 0x266   : > { %2661 = vmatmul.msk.bf16.gmra.mxu0 %vm1764_vm2, %v2777_v47 }
 0x267   : > { %v1489_v21 = vmax.f32 %v1457_v25, 0.0  ;;  %2117 = vst.msk [vmem:[%s3463_s26 + $0x30] sm:$0xff] %vm2110_vm4, %v2084_v63 }
 0x268   : > { %v1381_v24 = vpop.f32.mrf.mxu3 }
 0x269   : > { %v1585_v57 = vmul.f32 %v2806_v54, %v1489_v21  ;;  %v1382_v55 = vadd.f32 %v1381_v24, %v1292_v2  ;;  %v1294_v28 = vpop.f32.mrf.mxu1 }
 0x26a   : > { %v2011_v40 = vpop.f32.mrf.mxu2 }
 0x26b   : > { %v1619_v1 = vmul.f32 %v3328_v5, %v1585_v57  ;;  %v1422_v59 = vadd.f32 %v1382_v55, %v3282_v45  ;;  %v2012_v53 = vadd.f32 %v2011_v40, %v3482_v52  ;;  %v3553_v31 = vpop.f32.mrf.mxu0 }
 0x26d   : > { %v2085_v23 = vadd.f32 %v3453_v44, %v2012_v53  ;;  %v1670_v41 = vpack.c.bf16 %v1619_v1, %v1618_v43  ;;  %v1458_v20 = vadd.f32 %v3308_v60, %v1422_v59 }
 0x26f   : > { %2118 = vst.msk [vmem:[%s3463_s26 + $0x38] sm:$0xff] %vm2110_vm4, %v2085_v23  ;;  %2691 = vmatmul.msk.bf16.gmra.mxu2 %vm1933_vm3, %v1670_v41  ;;  %v1490_v52 = vmax.f32 %v1458_v20, 0.0 }
 0x270   : > { %v1383_v48 = vpop.f32.mrf.mxu3 }
 0x271   : > { %v1384_v39 = vadd.f32 %v1383_v48, %v1294_v28  ;;  %v1297_v45 = vpop.f32.mrf.mxu1  ;;  %v1586_v15 = vmul.f32 %v2807_v33, %v1490_v52  ;;  %v2809_v48 = vld [vmem:[%s3231_s25 + $0xf] ss:$0 sm:$0xff] }
 0x272   : > { %v2014_v49 = vpop.f32.mrf.mxu2 }
 0x273   : > { %v1423_v3 = vadd.f32 %v1384_v39, %v3293_v0  ;;  %v2015_v22 = vadd.f32 %v2014_v49, %v3491_v6  ;;  %v1620_v0 = vmul.f32 %v3326_v7, %v1586_v15  ;;  %v1861_v26 = vpop.f32.mrf.mxu0 }
 0x275   : > { %v1459_v56 = vadd.f32 %v3308_v60, %v1423_v3  ;;  %v2086_v27 = vadd.f32 %v3453_v44, %v2015_v22 }
 0x276   : > { %2662 = vmatmul.msk.bf16.gmra.mxu0 %vm1764_vm2, %v2778_v35 }
 0x277   : > { %v1491_v12 = vmax.f32 %v1459_v56, 0.0  ;;  %2119 = vst.msk [vmem:[%s3463_s26 + $0x40] sm:$0xff] %vm2110_vm4, %v2086_v27 }
 0x278   : > { %v1386_v50 = vpop.f32.mrf.mxu3 }
 0x279   : > { %v1587_v36 = vmul.f32 %v2807_v33, %v1491_v12  ;;  %v1387_v34 = vadd.f32 %v1386_v50, %v1297_v45  ;;  %v1299_v17 = vpop.f32.mrf.mxu1 }
 0x27a   : > { %v2016_v37 = vpop.f32.mrf.mxu2 }
 0x27b   : > { %v1621_v32 = vmul.f32 %v3328_v5, %v1587_v36  ;;  %v1424_v6 = vadd.f32 %v1387_v34, %v3297_v14  ;;  %v2017_v19 = vadd.f32 %v2016_v37, %v3504_v58  ;;  %v2808_v58 = vld [vmem:[%s3231_s25 + $0xe] ss:$0 sm:$0xff]  ;;  %v1863_v55 = vpop.f32.mrf.mxu0 }
 0x27d   : > { %v2087_v16 = vadd.f32 %v3453_v44, %v2017_v19  ;;  %v1671_v42 = vpack.c.bf16 %v1621_v32, %v1620_v0  ;;  %v1460_v61 = vadd.f32 %v3308_v60, %v1424_v6 }
 0x27f   : > { %2120 = vst.msk [vmem:[%s3463_s26 + $0x48] sm:$0xff] %vm2110_vm4, %v2087_v16  ;;  %2692 = vmatmul.msk.bf16.gmra.mxu2 %vm1933_vm3, %v1671_v42  ;;  %v1492_v2 = vmax.f32 %v1460_v61, 0.0 }
 0x280   : > { %v1388_v9 = vpop.f32.mrf.mxu3 }
 0x281   : > { %v1389_v38 = vadd.f32 %v1388_v9, %v1299_v17  ;;  %v1302_v30 = vpop.f32.mrf.mxu1  ;;  %v1588_v25 = vmul.f32 %v2808_v58, %v1492_v2 }
 0x282   : > { %v2019_v14 = vpop.f32.mrf.mxu2 }
 0x283   : > { %v1425_v62 = vadd.f32 %v1389_v38, %v3302_v13  ;;  %v2020_v18 = vadd.f32 %v2019_v14, %v3513_v8  ;;  %v1622_v13 = vmul.f32 %v3326_v7, %v1588_v25  ;;  %v1866_v39 = vpop.f32.mrf.mxu0 }
 0x285   : > { %v1461_v54 = vadd.f32 %v3308_v60, %v1425_v62  ;;  %v2088_v10 = vadd.f32 %v3453_v44, %v2020_v18 }
 0x287   : > { %v1493_v63 = vmax.f32 %v1461_v54, 0.0  ;;  %2121 = vst.msk [vmem:[%s3463_s26 + $0x50] sm:$0xff] %vm2110_vm4, %v2088_v10 }
 0x288   : > { %v1391_v4 = vpop.f32.mrf.mxu3 }
 0x289   : > { %v1589_v21 = vmul.f32 %v2808_v58, %v1493_v63  ;;  %v1392_v24 = vadd.f32 %v1391_v4, %v1302_v30  ;;  %v1304_v53 = vpop.f32.mrf.mxu1 }
 0x28a   : > { %v2021_v57 = vpop.f32.mrf.mxu2 }
 0x28b   : > { %v1623_v8 = vmul.f32 %v3328_v5, %v1589_v21  ;;  %v1426_v28 = vadd.f32 %v1392_v24, %v3313_v51  ;;  %v2022_v40 = vadd.f32 %v2021_v57, %v3526_v11 }
 0x28d   : > { %v2089_v43 = vadd.f32 %v3453_v44, %v2022_v40  ;;  %v1672_v1 = vpack.c.bf16 %v1623_v8, %v1622_v13  ;;  %v1462_v59 = vadd.f32 %v3308_v60, %v1426_v28 }
 0x28f   : > { %2122 = vst.msk [vmem:[%s3463_s26 + $0x58] sm:$0xff] %vm2110_vm4, %v2089_v43  ;;  %2693 = vmatmul.msk.bf16.gmra.mxu2 %vm1933_vm3, %v1672_v1  ;;  %v1494_v20 = vmax.f32 %v1462_v59, 0.0 }
 0x290   : > { %v1393_v47 = vpop.f32.mrf.mxu3 }
 0x291   : > { %v1394_v23 = vadd.f32 %v1393_v47, %v1304_v53  ;;  %v1590_v52 = vmul.f32 %v2809_v48, %v1494_v20 }
 0x292   : > { %v2024_v41 = vpop.f32.mrf.mxu2 }
 0x293   : > { %v1427_v51 = vadd.f32 %v1394_v23, %v3330_v29  ;;  %v2025_v11 = vadd.f32 %v2024_v41, %v3540_v46  ;;  %v1624_v56 = vmul.f32 %v3326_v7, %v1590_v52 }
 0x295   : > { %v1463_v45 = vadd.f32 %v3308_v60, %v1427_v51  ;;  %v2090_v49 = vadd.f32 %v3453_v44, %v2025_v11  ;;  %v1868_v60 = vpop.f32.mrf.mxu0 }
 0x297   : > { %v1495_v33 = vmax.f32 %v1463_v45, 0.0  ;;  %2123 = vst.msk [vmem:[%s3463_s26 + $0x60] sm:$0xff] %vm2110_vm4, %v2090_v49 }
 0x299   : > { %v1591_v3 = vmul.f32 %v2809_v48, %v1495_v33 }
 0x29a   : > { %v2026_v22 = vpop.f32.mrf.mxu2 }
 0x29b   : > { %v1625_v29 = vmul.f32 %v3328_v5, %v1591_v3  ;;  %v2027_v27 = vadd.f32 %v2026_v22, %v3553_v31 }
 0x29d   : > { %v2091_v46 = vadd.f32 %v3453_v44, %v2027_v27  ;;  %v1673_v15 = vpack.c.bf16 %v1625_v29, %v1624_v56  ;;  %v1871_v7 = vpop.f32.mrf.mxu0 }
 0x29f   : > { %2124 = vst.msk [vmem:[%s3463_s26 + $0x68] sm:$0xff] %vm2110_vm4, %v2091_v46  ;;  %2694 = vmatmul.msk.bf16.gmra.mxu2 %vm1933_vm3, %v1673_v15 }
 0x2a2   : > { %v2029_v12 = vpop.f32.mrf.mxu2 }
 0x2a3   : > { %v2030_v50 = vadd.f32 %v2029_v12, %v1861_v26 }
 0x2a5   : > { %v2092_v36 = vadd.f32 %v3453_v44, %v2030_v50  ;;  %v1873_v0 = vpop.f32.mrf.mxu0 }
 0x2a7   : > { %2125 = vst.msk [vmem:[%s3463_s26 + $0x70] sm:$0xff] %vm2110_vm4, %v2092_v36 }
 0x2aa   : > { %v2031_v5 = vpop.f32.mrf.mxu2 }
 0x2ab   : > { %v2032_v34 = vadd.f32 %v2031_v5, %v1863_v55 }
 0x2ad   : > { %v2093_v31 = vadd.f32 %v3453_v44, %v2032_v34  ;;  %v1876_v17 = vpop.f32.mrf.mxu0 }
 0x2af   : > { %2126 = vst.msk [vmem:[%s3463_s26 + $0x78] sm:$0xff] %vm2110_vm4, %v2093_v31 }
 0x2b2   : > { %v2034_v37 = vpop.f32.mrf.mxu2 }
 0x2b3   : > { %v2035_v32 = vadd.f32 %v2034_v37, %v1866_v39 }
 0x2b5   : > { %v2094_v6 = vadd.f32 %v3453_v44, %v2035_v32  ;;  %v1878_v26 = vpop.f32.mrf.mxu0 }
 0x2b7   : > { %2127 = vst.msk [vmem:[%s3463_s26 + $0x80] sm:$0xff] %vm2110_vm4, %v2094_v6 }
 0x2ba   : > { %v2036_v19 = vpop.f32.mrf.mxu2 }
 0x2bb   : > { %v2037_v35 = vadd.f32 %v2036_v19, %v1868_v60 }
 0x2bd   : > { %v2095_v16 = vadd.f32 %v3453_v44, %v2037_v35  ;;  %v1881_v58 = vpop.f32.mrf.mxu0 }
 0x2bf   : > { %2128 = vst.msk [vmem:[%s3463_s26 + $0x88] sm:$0xff] %vm2110_vm4, %v2095_v16 }
 0x2c2   : > { %v2039_v42 = vpop.f32.mrf.mxu2 }
 0x2c3   : > { %v2040_v61 = vadd.f32 %v2039_v42, %v1871_v7 }
 0x2c5   : > { %v2096_v9 = vadd.f32 %v3453_v44, %v2040_v61  ;;  %v1883_v30 = vpop.f32.mrf.mxu0 }
 0x2c7   : > { %2129 = vst.msk [vmem:[%s3463_s26 + $0x90] sm:$0xff] %vm2110_vm4, %v2096_v9 }
 0x2ca   : > { %v2041_v38 = vpop.f32.mrf.mxu2 }
 0x2cb   : > { %v2042_v14 = vadd.f32 %v2041_v38, %v1873_v0 }
 0x2cd   : > { %v2097_v2 = vadd.f32 %v3453_v44, %v2042_v14  ;;  %v1886_v24 = vpop.f32.mrf.mxu0 }
 0x2cf   : > { %2130 = vst.msk [vmem:[%s3463_s26 + $0x98] sm:$0xff] %vm2110_vm4, %v2097_v2 }
 0x2d2   : > { %v2044_v62 = vpop.f32.mrf.mxu2 }
 0x2d3   : > { %v2045_v18 = vadd.f32 %v2044_v62, %v1876_v17 }
 0x2d5   : > { %v2098_v54 = vadd.f32 %v3453_v44, %v2045_v18  ;;  %v1888_v28 = vpop.f32.mrf.mxu0 }
 0x2d7   : > { %2131 = vst.msk [vmem:[%s3463_s26 + $0xa0] sm:$0xff] %vm2110_vm4, %v2098_v54 }
 0x2da   : > { %v2046_v10 = vpop.f32.mrf.mxu2 }
 0x2db   : > { %v2047_v25 = vadd.f32 %v2046_v10, %v1878_v26 }
 0x2dd   : > { %v2099_v63 = vadd.f32 %v3453_v44, %v2047_v25  ;;  %v1891_v59 = vpop.f32.mrf.mxu0 }
 0x2df   : > { %2132 = vst.msk [vmem:[%s3463_s26 + $0xa8] sm:$0xff] %vm2110_vm4, %v2099_v63 }
 0x2e2   : > { %v2049_v4 = vpop.f32.mrf.mxu2 }
 0x2e3   : > { %v2050_v21 = vadd.f32 %v2049_v4, %v1881_v58 }
 0x2e5   : > { %v2100_v57 = vadd.f32 %v3453_v44, %v2050_v21  ;;  %v1893_v41 = vpop.f32.mrf.mxu0 }
 0x2e7   : > { %2133 = vst.msk [vmem:[%s3463_s26 + $0xb0] sm:$0xff] %vm2110_vm4, %v2100_v57 }
 0x2ea   : > { %v2051_v55 = vpop.f32.mrf.mxu2 }
 0x2eb   : > { %v2052_v13 = vadd.f32 %v2051_v55, %v1883_v30 }
 0x2ed   : > { %v2101_v8 = vadd.f32 %v3453_v44, %v2052_v13  ;;  %v1896_v45 = vpop.f32.mrf.mxu0 }
 0x2ef   : > { %2134 = vst.msk [vmem:[%s3463_s26 + $0xb8] sm:$0xff] %vm2110_vm4, %v2101_v8 }
 0x2f2   : > { %v2054_v40 = vpop.f32.mrf.mxu2 }
 0x2f3   : > { %v2055_v43 = vadd.f32 %v2054_v40, %v1886_v24 }
 0x2f5   : > { %v2102_v1 = vadd.f32 %v3453_v44, %v2055_v43  ;;  %v1898_v22 = vpop.f32.mrf.mxu0 }
 0x2f7   : > { %2135 = vst.msk [vmem:[%s3463_s26 + $0xc0] sm:$0xff] %vm2110_vm4, %v2102_v1 }
 0x2fa   : > { %v2056_v53 = vpop.f32.mrf.mxu2 }
 0x2fb   : > { %v2057_v47 = vadd.f32 %v2056_v53, %v1888_v28 }
 0x2fd   : > { %v2103_v23 = vadd.f32 %v3453_v44, %v2057_v47  ;;  %v1901_v46 = vpop.f32.mrf.mxu0 }
 0x2ff   : > { %2136 = vst.msk [vmem:[%s3463_s26 + $0xc8] sm:$0xff] %vm2110_vm4, %v2103_v23 }
 0x302   : > { %v2059_v20 = vpop.f32.mrf.mxu2 }
 0x303   : > { %v2060_v48 = vadd.f32 %v2059_v20, %v1891_v59 }
 0x305   : > { %v2104_v51 = vadd.f32 %v3453_v44, %v2060_v48  ;;  %v1903_v50 = vpop.f32.mrf.mxu0 }
 0x307   : > { %2137 = vst.msk [vmem:[%s3463_s26 + $0xd0] sm:$0xff] %vm2110_vm4, %v2104_v51 }
 0x30a   : > { %v2061_v11 = vpop.f32.mrf.mxu2 }
 0x30b   : > { %v2062_v39 = vadd.f32 %v2061_v11, %v1893_v41 }
 0x30d   : > { %v2105_v49 = vadd.f32 %v3453_v44, %v2062_v39 }
 0x30f   : > { %2138 = vst.msk [vmem:[%s3463_s26 + $0xd8] sm:$0xff] %vm2110_vm4, %v2105_v49 }
 0x312   : > { %v2064_v52 = vpop.f32.mrf.mxu2 }
 0x313   : > { %v2065_v33 = vadd.f32 %v2064_v52, %v1896_v45 }
 0x315   : > { %v2106_v3 = vadd.f32 %v3453_v44, %v2065_v33 }
 0x317   : > { %2139 = vst.msk [vmem:[%s3463_s26 + $0xe0] sm:$0xff] %vm2110_vm4, %v2106_v3 }
 0x31a   : > { %v2066_v56 = vpop.f32.mrf.mxu2 }
 0x31b   : > { %v2067_v29 = vadd.f32 %v2066_v56, %v1898_v22 }
 0x31d   : > { %v2107_v27 = vadd.f32 %v3453_v44, %v2067_v29 }
 0x31f   : > { %2140 = vst.msk [vmem:[%s3463_s26 + $0xe8] sm:$0xff] %vm2110_vm4, %v2107_v27 }
 0x322   : > { %v2069_v15 = vpop.f32.mrf.mxu2 }
 0x323   : > { %v2070_v60 = vadd.f32 %v2069_v15, %v1901_v46 }
 0x325   : > { %v2108_v12 = vadd.f32 %v3453_v44, %v2070_v60 }
 0x327   : > { %2141 = vst.msk [vmem:[%s3463_s26 + $0xf0] sm:$0xff] %vm2110_vm4, %v2108_v12 }
 0x32a   : > { %v2071_v36 = vpop.f32.mrf.mxu2 }
 0x32b   : > { %v2072_v7 = vadd.f32 %v2071_v36, %v1903_v50 }
 0x32d   : > { %v2109_v5 = vadd.f32 %v3453_v44, %v2072_v7 }
 0x32f   : > { %2142 = vst.msk [vmem:[%s3463_s26 + $0xf8] sm:$0xff] %vm2110_vm4, %v2109_v5 }
 0x330 PF: > { %s19_s30 = sadd.s32 1, %s2816_s30  }
 0x331   : > { %p16_p4 = scmp.ge.s32.totalorder %s19_s30, 4  }
 0x333   :  { %18 = sbr.rel (!%p16_p4) target bundleno = 1 (0x1), region = 97 }

// kernel: upsampling_forward.15
= control target key start
LH: loop header
LB: loop body
LE: loop exit
PB: predicated region body
PF: predicated region fallthrough
CT: control target
= control target key end

     0   :  { %s3352_s25 = smov 0   ;;  %s4945_s0 = inlined_call_operand.vmem [shape: bf16[2,16,16,24], index: 0, kind: input, shape index: {}]   ;;  %s4946_s1 = inlined_call_operand.vmem [shape: bf16[2,16,16,8], index: 1, kind: input, shape index: {}]   ;;  %s4947_s2 = inlined_call_operand.vmem [shape: bf16[24,4], index: 2, kind: input, shape index: {}]   ;;  %s4948_s3 = inlined_call_operand.vmem [shape: bf16[8,4], index: 3, kind: input, shape index: {}]   ;;  %s4949_s4 = inlined_call_operand.vmem [shape: f32[1,4], index: 4, kind: input, shape index: {}]   ;;  %s4950_s5 = inlined_call_operand.vmem [shape: bf16[24,4], index: 5, kind: input, shape index: {}]   ;;  %s4951_s6 = inlined_call_operand.vmem [shape: bf16[8,4], index: 6, kind: input, shape index: {}]   ;;  %s4952_s7 = inlined_call_operand.vmem [shape: f32[1,4], index: 7, kind: input, shape index: {}]   ;;  %s4953_s8 = inlined_call_operand.vmem [shape: bf16[24,4], index: 8, kind: input, shape index: {}]   ;;  %s4954_s9 = inlined_call_operand.vmem [shape: bf16[8,4], index: 9, kind: input, shape index: {}]   ;;  %s4955_s10 = inlined_call_operand.vmem [shape: f32[1,4], index: 10, kind: input, shape index: {}]   ;;  %s4956_s11 = inlined_call_operand.vmem [shape: bf16[4,16], index: 11, kind: input, shape index: {}]   ;;  %s4957_s12 = inlined_call_operand.vmem [shape: f32[1,16], index: 12, kind: input, shape index: {}]   ;;  %s4958_s13 = inlined_call_operand.vmem [shape: f32[2,16,16,16], index: 13, kind: output, shape index: {}]  }
   0x1 LB: > { %s2682_s26 = sadd.s32 4294967295, %s3278_s25   ;;  %p2686_p0 = scmp.ge.s32.totalorder %s3278_s25, 1  ;;  %s3278_s25 = sphi %s3352_s25, %s23_s25  }
   0x2   : > { %p397_p1 = scmp.lt.s32.totalorder %s3278_s25, 3 }
   0x4   : > { %p398_p2 = pnand %p2686_p0, %p397_p1 }
   0x6   : > { %401 = sbr.rel (%p398_p2) target bundleno = 1413 (0x585), region = 72 }
   0xb   : > { %v528_v0 = vld [vmem:[%s4947_s2 + $0x8] sm:$0xf]  ;;  %vm659_vm0 = vcmask 1043456   ;;  %v1021_v1 = vld [vmem:[%s4951_s6] sm:$0xf]  ;;  %p446_p3 = scmp.lt.s32.totalorder %s2682_s26, 1 }
   0xc   : > { %v837_v2 = vunpack.c.l.b16 %v528_v0  ;;  %v1023_v3 = vsel %vm659_vm0, %v1021_v1, 0  ;;  %v1020_v4 = vld [vmem:[%s4950_s5 + $0x8] sm:$0xf]  ;;  %v529_v5 = vld [vmem:[%s4948_s3] sm:$0xf]  ;;  %vm610_vm1 = vcmask 64512  }
   0xd   : > { %1032 = vmatpush.bf16.msra.mxu2 %v1023_v3  ;;  %v1119_v6 = vunpack.c.l.b16 %v1020_v4  ;;  %s5078_s26 = smov (!%p446_p3, %s2682_s26), 1  ;;  %v661_v7 = vsel %vm659_vm0, %v529_v5, 0  ;;  %v3015_v13 = vld [vmem:[%s4947_s2] sm:$0xff]  ;;  %vm841_vm2 = vcmask 195584   ;;  %v1253_v18 = vld [vmem:[%s4953_s8 + $0x8] sm:$0xf] }
   0xe   : > { %v839_v8 = vpack.c.b16 %v837_v2, %v837_v2  ;;  %670 = vmatpush.bf16.msra.mxu0 %v661_v7  ;;  %s2980_s18 = sshll.u32 %s5078_s26, 7  ;;  %v3016_v14 = vld [vmem:[%s4950_s5] sm:$0xff]  ;;  %v1352_v19 = vunpack.c.l.b16 %v1253_v18  ;;  %vm1484_vm3 = vcmask 31744   ;;  %vm2489_vm4 = vcmask 1041408   ;;  %s2982_s15 = sshll.u32 %s5078_s26, 8 }
   0xf   : > { %v1121_v9 = vpack.c.b16 %v1119_v6, %v1119_v6  ;;  %s3381_s21 = scalar_lea.vmem %s4946_s1, %s2980_s18  ;;  %s3393_s28 = scalar_lea.vmem %s4945_s0, %s2980_s18  ;;  %v1254_v23 = vld [vmem:[%s4954_s9] sm:$0xf]  ;;  %vm2582_vm5 = vcmask 130048  }
  0x10   : > { %v891_v10 = vsel %vm659_vm0, %v839_v8, 0  ;;  %v3385_v12 = vld [vmem:[%s3381_s21] sm:$0xff]  ;;  %v3410_v16 = vld [vmem:[%s3381_s21 + $0x8] sm:$0xff]  ;;  %v1354_v20 = vpack.c.b16 %v1352_v19, %v1352_v19  ;;  %v3428_v22 = vld [vmem:[%s3381_s21 + $0x10] sm:$0xff]  ;;  %v1256_v25 = vsel %vm659_vm0, %v1254_v23, 0  ;;  %s4775_s20 = scalar_lea.vmem %s4958_s13, %s2982_s15 }
  0x11   : > { %899 = vmatpush.bf16.msra.mxu1 %v891_v10  ;;  %v1124_v11 = vsel %vm659_vm0, %v1121_v9, 0  ;;  %2857 = vmatmul.msk.bf16.vlgmr.msra.gmra.mxu2 %vm610_vm1, %v3385_v12  ;;  %v3403_v15 = vld [vmem:[%s3393_s28] sm:$0xff]  ;;  %v3417_v17 = vld [vmem:[%s3393_s28 + $0x8] sm:$0xff]  ;;  %v3438_v24 = vld [vmem:[%s3393_s28 + $0x10] sm:$0xff] }
  0x12   : > { %1132 = vmatpush.bf16.msra.mxu3 %v1124_v11  ;;  %2757 = vmatmul.msk.bf16.vlgmr.msra.gmra.mxu0 %vm610_vm1, %v3385_v12  ;;  %v1357_v21 = vsel %vm659_vm0, %v1354_v20, 0  ;;  %v3446_v26 = vld [vmem:[%s3381_s21 + $0x18] sm:$0xff]  ;;  %v3460_v28 = vld [vmem:[%s3381_s21 + $0x20] sm:$0xff]  ;;  %v3474_v30 = vld [vmem:[%s3381_s21 + $0x28] sm:$0xff] }
  0x13   : > { %1365 = vmatpush.bf16.msra.mxu2 %v1357_v21  ;;  %1265 = vmatpush.bf16.msra.mxu0 %v1256_v25  ;;  %v3453_v27 = vld [vmem:[%s3393_s28 + $0x18] sm:$0xff]  ;;  %v3467_v29 = vld [vmem:[%s3393_s28 + $0x20] sm:$0xff]  ;;  %v3481_v31 = vld [vmem:[%s3393_s28 + $0x28] sm:$0xff] }
  0x14   : > { %v3488_v32 = vld [vmem:[%s3381_s21 + $0x30] sm:$0xff]  ;;  %v3502_v34 = vld [vmem:[%s3381_s21 + $0x38] sm:$0xff]  ;;  %v3516_v36 = vld [vmem:[%s3381_s21 + $0x40] sm:$0xff] }
  0x15   : > { %900 = vmatpush.bf16.msra.mxu1 %v3015_v13  ;;  %v3495_v33 = vld [vmem:[%s3393_s28 + $0x30] sm:$0xff]  ;;  %v3509_v35 = vld [vmem:[%s3393_s28 + $0x38] sm:$0xff]  ;;  %v3523_v38 = vld [vmem:[%s3393_s28 + $0x40] sm:$0xff] }
  0x16   : > { %1133 = vmatpush.bf16.msra.mxu3 %v3016_v14  ;;  %v3534_v48 = vld [vmem:[%s3381_s21 + $0x48] sm:$0xff]  ;;  %v3552_v62 = vld [vmem:[%s3381_s21 + $0x50] sm:$0xff]  ;;  %v3017_v0 = vld [vmem:[%s4953_s8] sm:$0xff] }
  0x17   : > { %v3541_v51 = vld [vmem:[%s3393_s28 + $0x48] sm:$0xff]  ;;  %5004 = vst [vmem:[#allocation2_spill] sm:$0xff] %v3552_v62  ;;  %v3562_v2 = vld [vmem:[%s3393_s28 + $0x50] sm:$0xff]  ;;  %1366 = vmatpush.bf16.msra.mxu2 %v3017_v0  ;;  %v3571_v8 = vld [vmem:[%s4952_s7] ss:$0 sm:$0xff] }
  0x18   : > { %2841 = vmatmul.msk.bf16.vlgmr.msra.gmra.mxu1 %vm841_vm2, %v3403_v15  ;;  %5005 = vst [vmem:[#allocation3_spill] sm:$0xff] %v3562_v2  ;;  %v3584_v20 = vld [vmem:[%s3381_s21 + $0x58] sm:$0xff] }
  0x19   : > { %2877 = vmatmul.msk.bf16.vlgmr.msra.gmra.mxu3 %vm841_vm2, %v3403_v15  ;;  %5008 = vst [vmem:[#allocation6_spill] sm:$0xff] %v3584_v20 }
  0x21   : > { %2858 = vmatmul.msk.bf16.gmra.mxu2 %vm610_vm1, %v3410_v16 }
  0x22   : > { %2758 = vmatmul.msk.bf16.gmra.mxu0 %vm610_vm1, %v3410_v16 }
  0x28   : > { %2842 = vmatmul.msk.bf16.gmra.mxu1 %vm841_vm2, %v3417_v17 }
  0x29   : > { %2878 = vmatmul.msk.bf16.gmra.mxu3 %vm841_vm2, %v3417_v17 }
  0x31   : > { %2859 = vmatmul.msk.bf16.gmra.mxu2 %vm610_vm1, %v3428_v22 }
  0x32   : > { %2759 = vmatmul.msk.bf16.gmra.mxu0 %vm610_vm1, %v3428_v22 }
  0x38   : > { %2843 = vmatmul.msk.bf16.gmra.mxu1 %vm841_vm2, %v3438_v24 }
  0x39   : > { %2879 = vmatmul.msk.bf16.gmra.mxu3 %vm841_vm2, %v3438_v24 }
  0x41   : > { %2860 = vmatmul.msk.bf16.gmra.mxu2 %vm610_vm1, %v3446_v26 }
  0x42   : > { %2760 = vmatmul.msk.bf16.gmra.mxu0 %vm610_vm1, %v3446_v26 }
  0x48   : > { %2844 = vmatmul.msk.bf16.gmra.mxu1 %vm841_vm2, %v3453_v27 }
  0x49   : > { %2880 = vmatmul.msk.bf16.gmra.mxu3 %vm841_vm2, %v3453_v27 }
  0x51   : > { %2861 = vmatmul.msk.bf16.gmra.mxu2 %vm610_vm1, %v3460_v28 }
  0x52   : > { %2761 = vmatmul.msk.bf16.gmra.mxu0 %vm610_vm1, %v3460_v28 }
  0x58   : > { %2845 = vmatmul.msk.bf16.gmra.mxu1 %vm841_vm2, %v3467_v29 }
  0x59   : > { %2881 = vmatmul.msk.bf16.gmra.mxu3 %vm841_vm2, %v3467_v29 }
  0x61   : > { %2862 = vmatmul.msk.bf16.gmra.mxu2 %vm610_vm1, %v3474_v30 }
  0x62   : > { %2762 = vmatmul.msk.bf16.gmra.mxu0 %vm610_vm1, %v3474_v30 }
  0x68   : > { %2846 = vmatmul.msk.bf16.gmra.mxu1 %vm841_vm2, %v3481_v31 }
  0x69   : > { %2882 = vmatmul.msk.bf16.gmra.mxu3 %vm841_vm2, %v3481_v31 }
  0x71   : > { %2863 = vmatmul.msk.bf16.gmra.mxu2 %vm610_vm1, %v3488_v32 }
  0x72   : > { %2763 = vmatmul.msk.bf16.gmra.mxu0 %vm610_vm1, %v3488_v32 }
  0x78   : > { %2847 = vmatmul.msk.bf16.gmra.mxu1 %vm841_vm2, %v3495_v33 }
  0x79   : > { %2883 = vmatmul.msk.bf16.gmra.mxu3 %vm841_vm2, %v3495_v33 }
  0x81   : > { %2864 = vmatmul.msk.bf16.gmra.mxu2 %vm610_vm1, %v3502_v34 }
  0x82   : > { %2764 = vmatmul.msk.bf16.gmra.mxu0 %vm610_vm1, %v3502_v34 }
  0x88   : > { %2848 = vmatmul.msk.bf16.gmra.mxu1 %vm841_vm2, %v3509_v35 }
  0x89   : > { %2884 = vmatmul.msk.bf16.gmra.mxu3 %vm841_vm2, %v3509_v35 }
  0x8f   : > { %v672_v37 = vpop.f32.mrf.mxu0 }
  0x91   : > { %2865 = vmatmul.msk.bf16.gmra.mxu2 %vm610_vm1, %v3516_v36 }
  0x92   : > { %2765 = vmatmul.msk.bf16.gmra.mxu0 %vm610_vm1, %v3516_v36 }
  0x94   : > { %v1034_v41 = vpop.f32.mrf.mxu2 }
  0x95   : > { %v902_v39 = vpop.f32.mrf.mxu1 }
  0x96   : > { %v3525_v40 = vadd.f32 %v902_v39, %v672_v37 }
  0x97   : > { %v674_v42 = vpop.f32.mrf.mxu0 }
  0x98   : > { %2849 = vmatmul.msk.bf16.gmra.mxu1 %vm841_vm2, %v3523_v38 }
  0x99   : > { %2885 = vmatmul.msk.bf16.gmra.mxu3 %vm841_vm2, %v3523_v38 }
  0x9c   : > { %v1135_v43 = vpop.f32.mrf.mxu3  ;;  %v1036_v47 = vpop.f32.mrf.mxu2 }
  0x9d   : > { %v1136_v44 = vadd.f32 %v1135_v43, %v1034_v41  ;;  %v904_v45 = vpop.f32.mrf.mxu1  ;;  %v3595_v41 = vld [vmem:[%s3393_s28 + $0x58] sm:$0xff] }
  0x9e   : > { %v3531_v46 = vadd.f32 %v904_v45, %v674_v42  ;;  %5009 = vst [vmem:[#allocation7_spill] sm:$0xff] %v3595_v41 }
  0x9f   : > { %v677_v49 = vpop.f32.mrf.mxu0  ;;  %v3576_v10 = vadd.f32 %v3571_v8, %v1136_v44 }
  0xa1   : > { %2866 = vmatmul.msk.bf16.gmra.mxu2 %vm610_vm1, %v3534_v48  ;;  %5006 = vst [vmem:[#allocation4_spill] sm:$0xff] %v3576_v10  ;;  %v1485_v23 = vsel %vm1484_vm3, %v3576_v10, -inf }
  0xa2   : > { %2766 = vmatmul.msk.bf16.gmra.mxu0 %vm610_vm1, %v3534_v48 }
  0xa4   : > { %v1137_v50 = vpop.f32.mrf.mxu3  ;;  %v1039_v55 = vpop.f32.mrf.mxu2 }
  0xa5   : > { %v1138_v52 = vadd.f32 %v1137_v50, %v1036_v47  ;;  %v907_v53 = vpop.f32.mrf.mxu1 }
  0xa6   : > { %v3543_v54 = vadd.f32 %v907_v53, %v677_v49 }
  0xa7   : > { %v679_v56 = vpop.f32.mrf.mxu0  ;;  %v3598_v42 = vadd.f32 %v3571_v8, %v1138_v52 }
  0xa8   : > { %2850 = vmatmul.msk.bf16.gmra.mxu1 %vm841_vm2, %v3541_v51 }
  0xa9   : > { %2886 = vmatmul.msk.bf16.gmra.mxu3 %vm841_vm2, %v3541_v51  ;;  %5010 = vst [vmem:[#allocation8_spill] sm:$0xff] %v3598_v42  ;;  %v1486_v53 = vsel %vm1484_vm3, %v3598_v42, -inf }
  0xac   : > { %v1140_v57 = vpop.f32.mrf.mxu3  ;;  %v1041_v61 = vpop.f32.mrf.mxu2 }
  0xad   : > { %v1141_v58 = vadd.f32 %v1140_v57, %v1039_v55  ;;  %v909_v59 = vpop.f32.mrf.mxu1 }
  0xae   : > { %v3549_v60 = vadd.f32 %v909_v59, %v679_v56 }
  0xaf   : > { %v682_v63 = vpop.f32.mrf.mxu0  ;;  %v3614_v57 = vadd.f32 %v3571_v8, %v1141_v58 }
  0xb1   : > { %2867 = vmatmul.msk.bf16.gmra.mxu2 %vm610_vm1, %v3552_v62  ;;  %5012 = vst [vmem:[#allocation10_spill] sm:$0xff] %v3614_v57 }
  0xb2   : > { %2767 = vmatmul.msk.bf16.gmra.mxu0 %vm610_vm1, %v3552_v62 }
  0xb4   : > { %v1142_v1 = vpop.f32.mrf.mxu3  ;;  %v1044_v6 = vpop.f32.mrf.mxu2 }
  0xb5   : > { %v1143_v3 = vadd.f32 %v1142_v1, %v1041_v61  ;;  %v912_v4 = vpop.f32.mrf.mxu1 }
  0xb6   : > { %v3564_v5 = vadd.f32 %v912_v4, %v682_v63  ;;  %v3622_v4 = vld [vmem:[%s3381_s21 + $0x60] sm:$0xff] }
  0xb7   : > { %v684_v7 = vpop.f32.mrf.mxu0  ;;  %5014 = vst [vmem:[#allocation12_spill] sm:$0xff] %v3622_v4 }
  0xb8   : > { %2851 = vmatmul.msk.bf16.gmra.mxu1 %vm841_vm2, %v3562_v2 }
  0xb9   : > { %2887 = vmatmul.msk.bf16.gmra.mxu3 %vm841_vm2, %v3562_v2 }
  0xbc   : > { %v1145_v9 = vpop.f32.mrf.mxu3  ;;  %v1046_v18 = vpop.f32.mrf.mxu2 }
  0xbd   : > { %v1146_v11 = vadd.f32 %v1145_v9, %v1044_v6  ;;  %v914_v13 = vpop.f32.mrf.mxu1 }
  0xbe   : > { %v3578_v14 = vadd.f32 %v914_v13, %v684_v7  ;;  %v1487_v7 = vsel %vm1484_vm3, %v3614_v57, -inf  ;;  %v3635_v13 = vld [vmem:[%s3393_s28 + $0x60] sm:$0xff] }
  0xbf   : > { %v3581_v19 = vadd.f32 %v3571_v8, %v1146_v11  ;;  %v687_v21 = vpop.f32.mrf.mxu0  ;;  %5015 = vst [vmem:[#allocation13_spill] sm:$0xff] %v3635_v13 }
  0xc1   : > { %5007 = vst [vmem:[#allocation5_spill] sm:$0xff] %v3581_v19  ;;  %v1489_v25 = vsel %vm1484_vm3, %v3581_v19, -inf  ;;  %2868 = vmatmul.msk.bf16.gmra.mxu2 %vm610_vm1, %v3584_v20 }
  0xc2   : > { %v1490_v37 = vmax.f32 %v1485_v23, %v1489_v25  ;;  %2768 = vmatmul.msk.bf16.gmra.mxu0 %vm610_vm1, %v3584_v20 }
  0xc4   : > { %v1147_v39 = vpop.f32.mrf.mxu3  ;;  %v1049_v47 = vpop.f32.mrf.mxu2 }
  0xc5   : > { %v1148_v43 = vadd.f32 %v1147_v39, %v1046_v18  ;;  %v917_v44 = vpop.f32.mrf.mxu1  ;;  %v3638_v18 = vadd.f32 %v3571_v8, %v1143_v3 }
  0xc6   : > { %v3600_v45 = vadd.f32 %v917_v44, %v687_v21 }
  0xc7   : > { %v3603_v49 = vadd.f32 %v3571_v8, %v1148_v43  ;;  %v689_v50 = vpop.f32.mrf.mxu0  ;;  %5016 = vst [vmem:[#allocation14_spill] sm:$0xff] %v3638_v18  ;;  %v1488_v44 = vsel %vm1484_vm3, %v3638_v18, -inf }
  0xc8   : > { %2852 = vmatmul.msk.bf16.gmra.mxu1 %vm841_vm2, %v3595_v41 }
  0xc9   : > { %5011 = vst [vmem:[#allocation9_spill] sm:$0xff] %v3603_v49  ;;  %v1491_v52 = vsel %vm1484_vm3, %v3603_v49, -inf  ;;  %2888 = vmatmul.msk.bf16.gmra.mxu3 %vm841_vm2, %v3595_v41 }
  0xca   : > { %v1492_v55 = vmax.f32 %v1486_v53, %v1491_v52 }
  0xcc   : > { %v1150_v56 = vpop.f32.mrf.mxu3  ;;  %v1051_v0 = vpop.f32.mrf.mxu2 }
  0xcd   : > { %v1151_v59 = vadd.f32 %v1150_v56, %v1049_v47  ;;  %v919_v61 = vpop.f32.mrf.mxu1 }
  0xce   : > { %v3616_v63 = vadd.f32 %v919_v61, %v689_v50  ;;  %v3012_v61 = vld [vmem:[%s3381_s21 + $0x68] sm:$0xff] }
  0xcf   : > { %v3619_v1 = vadd.f32 %v3571_v8, %v1151_v59  ;;  %v3624_v6 = vpop.f32.mrf.mxu0 }
  0xd1   : > { %5013 = vst [vmem:[#allocation11_spill] sm:$0xff] %v3619_v1  ;;  %v1493_v9 = vsel %vm1484_vm3, %v3619_v1, -inf  ;;  %2869 = vmatmul.msk.bf16.gmra.mxu2 %vm610_vm1, %v3622_v4 }
  0xd2   : > { %v1494_v58 = vmax.f32 %v1487_v7, %v1493_v9  ;;  %2769 = vmatmul.msk.bf16.gmra.mxu0 %vm610_vm1, %v3622_v4 }
  0xd4   : > { %v1152_v11 = vpop.f32.mrf.mxu3  ;;  %v1054_v25 = vpop.f32.mrf.mxu2 }
  0xd5   : > { %v1153_v21 = vadd.f32 %v1152_v11, %v1051_v0  ;;  %v3640_v23 = vpop.f32.mrf.mxu1 }
  0xd7   : > { %v3643_v39 = vadd.f32 %v3571_v8, %v1153_v21  ;;  %v3647_v43 = vpop.f32.mrf.mxu0  ;;  %v3670_v21 = vld [vmem:[%s3393_s28 + $0x68] sm:$0xff] }
  0xd8   : > { %2853 = vmatmul.msk.bf16.gmra.mxu1 %vm841_vm2, %v3635_v13  ;;  %5019 = vst [vmem:[#allocation17_spill] sm:$0xff] %v3670_v21 }
  0xd9   : > { %5017 = vst [vmem:[#allocation15_spill] sm:$0xff] %v3643_v39  ;;  %v1495_v3 = vsel %vm1484_vm3, %v3643_v39, -inf  ;;  %2889 = vmatmul.msk.bf16.gmra.mxu3 %vm841_vm2, %v3635_v13  ;;  %v3013_v13 = vld [vmem:[%s3381_s21 + $0x70] sm:$0xff] }
  0xda   : > { %v1496_v47 = vmax.f32 %v1488_v44, %v1495_v3 }
  0xdc   : > { %v1155_v50 = vpop.f32.mrf.mxu3  ;;  %v1056_v56 = vpop.f32.mrf.mxu2 }
  0xdd   : > { %v1156_v53 = vadd.f32 %v1155_v50, %v1054_v25  ;;  %v3655_v52 = vpop.f32.mrf.mxu1 }
  0xdf   : > { %v3658_v59 = vadd.f32 %v3571_v8, %v1156_v53  ;;  %v3661_v0 = vpop.f32.mrf.mxu0 }
  0xe1   : > { %5018 = vst [vmem:[#allocation16_spill] sm:$0xff] %v3658_v59  ;;  %v1497_v7 = vsel %vm1484_vm3, %v3658_v59, -inf  ;;  %2870 = vmatmul.msk.bf16.gmra.mxu2 %vm610_vm1, %v3012_v61 }
  0xe2   : > { %v3665_v9 = vmax.f32 %v1490_v37, %v1497_v7  ;;  %2770 = vmatmul.msk.bf16.gmra.mxu0 %vm610_vm1, %v3012_v61 }
  0xe4   : > { %v1157_v11 = vpop.f32.mrf.mxu3  ;;  %v1059_v3 = vpop.f32.mrf.mxu2 }
  0xe5   : > { %v1158_v25 = vadd.f32 %v1157_v11, %v1056_v56  ;;  %v3672_v44 = vpop.f32.mrf.mxu1 }
  0xe7   : > { %v3675_v50 = vadd.f32 %v3571_v8, %v1158_v25  ;;  %v3679_v37 = vpop.f32.mrf.mxu0 }
  0xe8   : > { %2854 = vmatmul.msk.bf16.gmra.mxu1 %vm841_vm2, %v3670_v21 }
  0xe9   : > { %5020 = vst [vmem:[#allocation18_spill] sm:$0xff] %v3675_v50  ;;  %v1499_v53 = vsel %vm1484_vm3, %v3675_v50, -inf  ;;  %2890 = vmatmul.msk.bf16.gmra.mxu3 %vm841_vm2, %v3670_v21 }
  0xea   : > { %v3685_v61 = vmax.f32 %v1492_v55, %v1499_v53  ;;  %v2997_v53 = vld [vmem:[%s3393_s28 + $0x70] sm:$0xff] }
  0xec   : > { %v1160_v56 = vpop.f32.mrf.mxu3  ;;  %v1061_v4 = vpop.f32.mrf.mxu2 }
  0xed   : > { %v1161_v7 = vadd.f32 %v1160_v56, %v1059_v3  ;;  %v929_v11 = vpop.f32.mrf.mxu1 }
  0xef   : > { %v3688_v25 = vadd.f32 %v3571_v8, %v1161_v7  ;;  %v702_v20 = vpop.f32.mrf.mxu0 }
  0xf1   : > { %5021 = vst [vmem:[#allocation19_spill] sm:$0xff] %v3688_v25  ;;  %v1501_v41 = vsel %vm1484_vm3, %v3688_v25, -inf  ;;  %2871 = vmatmul.msk.bf16.gmra.mxu2 %vm610_vm1, %v3013_v13 }
  0xf2   : > { %v3693_v62 = vmax.f32 %v1494_v58, %v1501_v41  ;;  %2771 = vmatmul.msk.bf16.gmra.mxu0 %vm610_vm1, %v3013_v13 }
  0xf4   : > { %v1162_v55 = vpop.f32.mrf.mxu3  ;;  %v1064_v21 = vpop.f32.mrf.mxu2 }
  0xf5   : > { %v1163_v3 = vadd.f32 %v1162_v55, %v1061_v4  ;;  %v932_v56 = vpop.f32.mrf.mxu1 }
  0xf7   : > { %v3699_v7 = vadd.f32 %v3571_v8, %v1163_v3  ;;  %v704_v2 = vpop.f32.mrf.mxu0  ;;  %v3014_v3 = vld [vmem:[%s3381_s21 + $0x78] sm:$0xff] }
  0xf8   : > { %2855 = vmatmul.msk.bf16.gmra.mxu1 %vm841_vm2, %v2997_v53 }
  0xf9   : > { %5022 = vst [vmem:[#allocation20_spill] sm:$0xff] %v3699_v7  ;;  %v1503_v41 = vsel %vm1484_vm3, %v3699_v7, -inf  ;;  %2891 = vmatmul.msk.bf16.gmra.mxu3 %vm841_vm2, %v2997_v53 }
  0xfa   : > { %v3705_v58 = vmax.f32 %v1496_v47, %v1503_v41 }
  0xfc   : > { %v1165_v13 = vpop.f32.mrf.mxu3  ;;  %v1066_v4 = vpop.f32.mrf.mxu2 }
  0xfd   : > { %v1166_v25 = vadd.f32 %v1165_v13, %v1064_v21  ;;  %v934_v50 = vpop.f32.mrf.mxu1  ;;  %v2998_v21 = vld [vmem:[%s3393_s28 + $0x78] sm:$0xff] }
  0xff   : > { %v3708_v55 = vadd.f32 %v3571_v8, %v1166_v25  ;;  %v707_v59 = vpop.f32.mrf.mxu0 }
 0x101   : > { %5023 = vst [vmem:[#allocation21_spill] sm:$0xff] %v3708_v55  ;;  %v3713_v39 = vsel %vm1484_vm3, %v3708_v55, -inf  ;;  %2872 = vmatmul.msk.bf16.gmra.mxu2 %vm610_vm1, %v3014_v3 }
 0x102   : > { %2772 = vmatmul.msk.bf16.gmra.mxu0 %vm610_vm1, %v3014_v3 }
 0x104   : > { %v1167_v47 = vpop.f32.mrf.mxu3  ;;  %v1069_v13 = vpop.f32.mrf.mxu2 }
 0x105   : > { %v1168_v53 = vadd.f32 %v1167_v47, %v1066_v4  ;;  %v937_v41 = vpop.f32.mrf.mxu1 }
 0x106   : > { %v938_v47 = vadd.f32 %v937_v41, %v707_v59  ;;  %v933_v59 = vadd.f32 %v932_v56, %v702_v20  ;;  %v928_v56 = vadd.f32 %v3672_v44, %v3661_v0  ;;  %v923_v0 = vadd.f32 %v3640_v23, %v3624_v6 }
 0x107   : > { %v3721_v25 = vadd.f32 %v3571_v8, %v1168_v53  ;;  %v709_v1 = vpop.f32.mrf.mxu0  ;;  %v3734_v53 = vld [vmem:[%s4949_s4] ss:$0 sm:$0xff] }
 0x108   : > { %2856 = vmatmul.msk.bf16.gmra.mxu1 %vm841_vm2, %v2998_v21  ;;  %v1000_v41 = vadd.f32 %v3734_v53, %v938_v47  ;;  %v993_v6 = vadd.f32 %v3734_v53, %v3616_v63 }
 0x109   : > { %5024 = vst [vmem:[#allocation22_spill] sm:$0xff] %v3721_v25  ;;  %v3726_v55 = vsel %vm1484_vm3, %v3721_v25, -inf  ;;  %2892 = vmatmul.msk.bf16.gmra.mxu3 %vm841_vm2, %v2998_v21  ;;  %v935_v25 = vadd.f32 %v934_v50, %v704_v2  ;;  %v930_v2 = vadd.f32 %v929_v11, %v3679_v37 }
 0x10a   : > { %v1508_v3 = vmax.f32 %v3685_v61, %v3726_v55 }
 0x10b   : > { %v997_v37 = vadd.f32 %v3734_v53, %v930_v2 }
 0x10c   : > { %v1170_v7 = vpop.f32.mrf.mxu3  ;;  %v1071_v18 = vpop.f32.mrf.mxu2 }
 0x10d   : > { %v1171_v49 = vadd.f32 %v1170_v7, %v1069_v13  ;;  %v939_v4 = vpop.f32.mrf.mxu1 }
 0x10e   : > { %v940_v19 = vadd.f32 %v939_v4, %v709_v1  ;;  %v998_v4 = vadd.f32 %v3734_v53, %v933_v59 }
 0x10f   : > { %v3737_v57 = vadd.f32 %v3571_v8, %v1171_v49  ;;  %v3740_v42 = vpop.f32.mrf.mxu0  ;;  %v999_v49 = vadd.f32 %v3734_v53, %v935_v25  ;;  %v996_v25 = vadd.f32 %v3734_v53, %v928_v56  ;;  %v991_v56 = vadd.f32 %v3734_v53, %v3578_v14 }
 0x110   : > { %v1001_v21 = vadd.f32 %v3734_v53, %v940_v19 }
 0x111   : > { %5025 = vst [vmem:[#allocation23_spill] sm:$0xff] %v3737_v57  ;;  %v3744_v7 = vsel %vm1484_vm3, %v3737_v57, -inf  ;;  %2913 = vmatmul.msk.bf16.vlgmr.msra.gmra.mxu2 %vm841_vm2, %v3403_v15 }
 0x112   : > { %v1510_v1 = vmax.f32 %v3693_v62, %v3744_v7  ;;  %3021 = vmatpush.lsf.msrb.mxu0 %v1001_v21 }
 0x113   : > { %2893 = vmatmul.msk.bf16.vlgmr.msra.gmra.mxu0 %vm610_vm1, %v3385_v12  ;;  %v925_v12 = vadd.f32 %v3655_v52, %v3647_v43 }
 0x114   : > { %v1172_v19 = vpop.f32.mrf.mxu3  ;;  %3022 = vmatpush.lsf.msrb.mxu0 %v1000_v41  ;;  %v1074_v13 = vpop.f32.mrf.mxu2  ;;  %v994_v41 = vadd.f32 %v3734_v53, %v923_v0 }
 0x115   : > { %v1173_v50 = vadd.f32 %v1172_v19, %v1071_v18  ;;  %v3755_v20 = vpop.f32.mrf.mxu1  ;;  %v995_v43 = vadd.f32 %v3734_v53, %v925_v12  ;;  %v5031_v19 = vmax.f32 %v3665_v9, %v3713_v39  ;;  %v990_v9 = vadd.f32 %v3734_v53, %v3564_v5 }
 0x116   : > { %5026 = vst [vmem:[#allocation24_spill] sm:$0xff] %v3755_v20  ;;  %3023 = vmatpush.lsf.msrb.mxu0 %v999_v49  ;;  %v988_v5 = vadd.f32 %v3734_v53, %v3543_v54 }
 0x117   : > { %v3761_v15 = vadd.f32 %v3571_v8, %v1173_v50  ;;  %v3766_v11 = vpop.f32.mrf.mxu0  ;;  %v992_v50 = vadd.f32 %v3734_v53, %v3600_v45 }
 0x118   : > { %3024 = vmatpush.lsf.msrb.mxu0 %v998_v4  ;;  %5028 = vst [vmem:[#allocation26_spill] sm:$0xff] %v3766_v11 }
 0x119   : > { %5027 = vst [vmem:[#allocation25_spill] sm:$0xff] %v3761_v15  ;;  %v3770_v18 = vsel %vm1484_vm3, %v3761_v15, -inf }
 0x11a   : > { %v1512_v44 = vmax.f32 %v3705_v58, %v3770_v18  ;;  %3025 = vmatpush.lsf.msrb.mxu0 %v997_v37  ;;  %v987_v18 = vadd.f32 %v3734_v53, %v3531_v46 }
 0x11c   : > { %v1175_v47 = vpop.f32.mrf.mxu3  ;;  %3026 = vmatpush.lsf.msrb.mxu0 %v996_v25  ;;  %v1076_v59 = vpop.f32.mrf.mxu2 }
 0x11d   : > { %v1176_v52 = vadd.f32 %v1175_v47, %v1074_v13  ;;  %v3778_v21 = vpop.f32.mrf.mxu1  ;;  %v986_v47 = vadd.f32 %v3734_v53, %v3525_v40 }
 0x11e   : > { %5029 = vst [vmem:[#allocation27_spill] sm:$0xff] %v3778_v21  ;;  %3027 = vmatpush.lsf.msrb.mxu0 %v995_v43 }
 0x11f   : > { %v3782_v2 = vadd.f32 %v3571_v8, %v1176_v52  ;;  %v3786_v23 = vpop.f32.mrf.mxu0 }
 0x120   : > { %3028 = vmatpush.lsf.msrb.mxu0 %v994_v41 }
 0x121   : > { %5030 = vst [vmem:[#allocation28_spill] sm:$0xff] %v3782_v2  ;;  %v1513_v58 = vsel %vm1484_vm3, %v3782_v2, -inf  ;;  %2914 = vmatmul.msk.bf16.gmra.mxu2 %vm841_vm2, %v3417_v17 }
 0x122   : > { %v3793_v49 = vmax.f32 %v5031_v19, %v1513_v58  ;;  %3029 = vmatpush.lsf.msrb.mxu0 %v993_v6 }
 0x123   : > { %2894 = vmatmul.msk.bf16.gmra.mxu0 %vm610_vm1, %v3410_v16  ;;  %v989_v16 = vadd.f32 %v3734_v53, %v3549_v60 }
 0x124   : > { %v1177_v63 = vpop.f32.mrf.mxu3  ;;  %3030 = vmatpush.lsf.msrb.mxu0 %v992_v50  ;;  %v1079_v39 = vpop.f32.mrf.mxu2 }
 0x125   : > { %v1178_v13 = vadd.f32 %v1177_v63, %v1076_v59  ;;  %v3803_v4 = vpop.f32.mrf.mxu1 }
 0x126   : > { %3031 = vmatpush.lsf.msrb.mxu0 %v991_v56 }
 0x127   : > { %v3808_v45 = vadd.f32 %v3571_v8, %v1178_v13  ;;  %v3812_v17 = vpop.f32.mrf.mxu0 }
 0x128   : > { %3032 = vmatpush.lsf.msrb.mxu0 %v990_v9 }
 0x129   : > { %5032 = vst [vmem:[#allocation29_spill] sm:$0xff] %v3808_v45  ;;  %v1515_v14 = vsel %vm1484_vm3, %v3808_v45, -inf }
 0x12a   : > { %v3819_v12 = vmax.f32 %v1508_v3, %v1515_v14  ;;  %3033 = vmatpush.lsf.msrb.mxu0 %v989_v16 }
 0x12c   : > { %v1180_v37 = vpop.f32.mrf.mxu3  ;;  %3034 = vmatpush.lsf.msrb.mxu0 %v988_v5  ;;  %v1081_v25 = vpop.f32.mrf.mxu2 }
 0x12d   : > { %v1181_v60 = vadd.f32 %v1180_v37, %v1079_v39  ;;  %v3825_v0 = vpop.f32.mrf.mxu1 }
 0x12e   : > { %3035 = vmatpush.lsf.msrb.mxu0 %v987_v18 }
 0x12f   : > { %v3830_v61 = vadd.f32 %v3571_v8, %v1181_v60  ;;  %v3832_v55 = vpop.f32.mrf.mxu0 }
 0x130   : > { %3036 = vmatpush.lsf.msrb.mxu0 %v986_v47 }
 0x131   : > { %5033 = vst [vmem:[#allocation30_spill] sm:$0xff] %v3830_v61  ;;  %v1517_v54 = vsel %vm1484_vm3, %v3830_v61, -inf  ;;  %2915 = vmatmul.msk.bf16.gmra.mxu2 %vm841_vm2, %v3438_v24 }
 0x132   : > { %3037 = vllmr.1.mxu0  ;;  %v3839_v46 = vmax.f32 %v1510_v1, %v1517_v54 }
 0x133   : > { %2895 = vmatmul.msk.bf16.gmra.mxu0 %vm610_vm1, %v3428_v22 }
 0x134   : > { %v1182_v40 = vpop.f32.mrf.mxu3  ;;  %v1084_v52 = vpop.f32.mrf.mxu2 }
 0x135   : > { %v1183_v3 = vadd.f32 %v1182_v40, %v1081_v25  ;;  %v3845_v43 = vpop.f32.mrf.mxu1 }
 0x137   : > { %v3848_v59 = vadd.f32 %v3571_v8, %v1183_v3  ;;  %v3850_v41 = vpop.f32.mrf.mxu0 }
 0x139   : > { %5034 = vst [vmem:[#allocation31_spill] sm:$0xff] %v3848_v59  ;;  %v1519_v62 = vsel %vm1484_vm3, %v3848_v59, -inf }
 0x13a   : > { %v3854_v7 = vmax.f32 %v1512_v44, %v1519_v62 }
 0x13c   : > { %v1185_v1 = vpop.f32.mrf.mxu3  ;;  %v1086_v22 = vpop.f32.mrf.mxu2 }
 0x13d   : > { %v1186_v24 = vadd.f32 %v1185_v1, %v1084_v52  ;;  %v3856_v6 = vpop.f32.mrf.mxu1 }
 0x13f   : > { %v3859_v58 = vadd.f32 %v3571_v8, %v1186_v24  ;;  %v3861_v19 = vpop.f32.mrf.mxu0 }
 0x141   : > { %5035 = vst [vmem:[#allocation32_spill] sm:$0xff] %v3859_v58  ;;  %v3865_v50 = vsel %vm1484_vm3, %v3859_v58, -inf  ;;  %2916 = vmatmul.msk.bf16.gmra.mxu2 %vm841_vm2, %v3453_v27 }
 0x142   : > { %v1522_v63 = vmax.f32 %v3793_v49, %v3865_v50 }
 0x143   : > { %2896 = vmatmul.msk.bf16.gmra.mxu0 %vm610_vm1, %v3446_v26 }
 0x144   : > { %v1187_v44 = vpop.f32.mrf.mxu3  ;;  %v1089_v39 = vpop.f32.mrf.mxu2 }
 0x145   : > { %v1188_v56 = vadd.f32 %v1187_v44, %v1086_v22  ;;  %v3873_v13 = vpop.f32.mrf.mxu1 }
 0x147   : > { %v3876_v9 = vadd.f32 %v3571_v8, %v1188_v56  ;;  %v3878_v16 = vpop.f32.mrf.mxu0 }
 0x149   : > { %5036 = vst [vmem:[#allocation33_spill] sm:$0xff] %v3876_v9  ;;  %v1523_v14 = vsel %vm1484_vm3, %v3876_v9, -inf }
 0x14a   : > { %v1524_v49 = vmax.f32 %v3819_v12, %v1523_v14 }
 0x14c   : > { %v1190_v5 = vpop.f32.mrf.mxu3  ;;  %v1091_v26 = vpop.f32.mrf.mxu2 }
 0x14d   : > { %v3883_v27 = vadd.f32 %v1190_v5, %v1089_v39  ;;  %v3885_v37 = vpop.f32.mrf.mxu1 }
 0x14f   : > { %v3887_v18 = vpop.f32.mrf.mxu0 }
 0x151   : > { %2917 = vmatmul.msk.bf16.gmra.mxu2 %vm841_vm2, %v3467_v29 }
 0x153   : > { %2897 = vmatmul.msk.bf16.gmra.mxu0 %vm610_vm1, %v3460_v28 }
 0x154   : > { %v1192_v60 = vpop.f32.mrf.mxu3  ;;  %v1094_v47 = vpop.f32.mrf.mxu2 }
 0x155   : > { %v3893_v25 = vpop.f32.mrf.mxu1 }
 0x157   : > { %v3895_v54 = vpop.f32.mrf.mxu0 }
 0x15c   : > { %v1195_v12 = vpop.f32.mrf.mxu3  ;;  %v1096_v3 = vpop.f32.mrf.mxu2 }
 0x15d   : > { %v3897_v40 = vpop.f32.mrf.mxu1  ;;  %v1196_v5 = vadd.f32 %v1195_v12, %v1094_v47 }
 0x15f   : > { %v3899_v52 = vpop.f32.mrf.mxu0  ;;  %v3912_v45 = vadd.f32 %v3571_v8, %v1196_v5 }
 0x161   : > { %2918 = vmatmul.msk.bf16.gmra.mxu2 %vm841_vm2, %v3481_v31  ;;  %5037 = vst [vmem:[#allocation34_spill] sm:$0xff] %v3912_v45  ;;  %v1529_v47 = vsel %vm1484_vm3, %v3912_v45, -inf  ;;  %v1193_v45 = vadd.f32 %v1192_v60, %v1091_v26 }
 0x163   : > { %2898 = vmatmul.msk.bf16.gmra.mxu0 %vm610_vm1, %v3474_v30 }
 0x164   : > { %v1197_v29 = vpop.f32.mrf.mxu3  ;;  %v1099_v62 = vpop.f32.mrf.mxu2 }
 0x165   : > { %v3905_v28 = vpop.f32.mrf.mxu1  ;;  %v1198_v9 = vadd.f32 %v1197_v29, %v1096_v3 }
 0x167   : > { %v739_v1 = vpop.f32.mrf.mxu0  ;;  %v3915_v2 = vadd.f32 %v3571_v8, %v1198_v9 }
 0x169   : > { %5038 = vst [vmem:[#allocation35_spill] sm:$0xff] %v3915_v2  ;;  %v1531_v12 = vsel %vm1484_vm3, %v3915_v2, -inf }
 0x16c   : > { %v1200_v24 = vpop.f32.mrf.mxu3  ;;  %v1101_v50 = vpop.f32.mrf.mxu2 }
 0x16d   : > { %v969_v22 = vpop.f32.mrf.mxu1 }
 0x16f   : > { %v742_v44 = vpop.f32.mrf.mxu0 }
 0x171   : > { %2919 = vmatmul.msk.bf16.gmra.mxu2 %vm841_vm2, %v3495_v33 }
 0x173   : > { %2899 = vmatmul.msk.bf16.gmra.mxu0 %vm610_vm1, %v3488_v32 }
 0x174   : > { %v1202_v56 = vpop.f32.mrf.mxu3  ;;  %v1104_v39 = vpop.f32.mrf.mxu2 }
 0x175   : > { %v972_v31 = vpop.f32.mrf.mxu1 }
 0x176   : > { %v973_v60 = vadd.f32 %v972_v31, %v742_v44 }
 0x177   : > { %v744_v14 = vpop.f32.mrf.mxu0 }
 0x17c   : > { %v1205_v30 = vpop.f32.mrf.mxu3  ;;  %v1106_v59 = vpop.f32.mrf.mxu2 }
 0x17d   : > { %v974_v58 = vpop.f32.mrf.mxu1  ;;  %v1206_v61 = vadd.f32 %v1205_v30, %v1104_v39  ;;  %v1530_v39 = vmax.f32 %v1522_v63, %v1529_v47  ;;  %v3940_v63 = vadd.f32 %v3571_v8, %v1193_v45 }
 0x17e   : > { %v975_v47 = vadd.f32 %v974_v58, %v744_v14  ;;  %v965_v14 = vadd.f32 %v3897_v40, %v3895_v54 }
 0x17f   : > { %v747_v33 = vpop.f32.mrf.mxu0  ;;  %v3918_v15 = vadd.f32 %v3571_v8, %v1206_v61 }
 0x181   : > { %5039 = vst [vmem:[#allocation36_spill] sm:$0xff] %v3918_v15  ;;  %2920 = vmatmul.msk.bf16.gmra.mxu2 %vm841_vm2, %v3509_v35  ;;  %v1537_v29 = vsel %vm1484_vm3, %v3918_v15, -inf  ;;  %v1532_v35 = vmax.f32 %v1524_v49, %v1531_v12 }
 0x182   : > { %v1538_v5 = vmax.f32 %v1530_v39, %v1537_v29  ;;  %v960_v39 = vadd.f32 %v3885_v37, %v3878_v16  ;;  %v955_v37 = vadd.f32 %v3856_v6, %v3850_v41  ;;  %v950_v41 = vadd.f32 %v3825_v0, %v3812_v17 }
 0x183   : > { %2900 = vmatmul.msk.bf16.gmra.mxu0 %vm610_vm1, %v3502_v34 }
 0x184   : > { %v1207_v32 = vpop.f32.mrf.mxu3  ;;  %v1109_v30 = vpop.f32.mrf.mxu2 }
 0x185   : > { %v1208_v3 = vadd.f32 %v1207_v32, %v1106_v59  ;;  %v977_v9 = vpop.f32.mrf.mxu1  ;;  %v1201_v59 = vadd.f32 %v1200_v24, %v1099_v62  ;;  %v1203_v32 = vadd.f32 %v1202_v56, %v1101_v50 }
 0x186   : > { %v978_v20 = vadd.f32 %v977_v9, %v747_v33 }
 0x187   : > { %v3931_v61 = vadd.f32 %v3571_v8, %v1208_v3  ;;  %v749_v2 = vpop.f32.mrf.mxu0  ;;  %v3937_v3 = vadd.f32 %v3571_v8, %v3883_v27  ;;  %v3947_v26 = vadd.f32 %v3571_v8, %v1203_v32 }
 0x189   : > { %v1539_v34 = vsel %vm1484_vm3, %v3931_v61, -inf  ;;  %v1535_v24 = vsel %vm1484_vm3, %v3947_v26, -inf }
 0x18a   : > { %v1540_v57 = vmax.f32 %v1532_v35, %v1539_v34  ;;  %v1011_v35 = vadd.f32 %v3734_v53, %v965_v14  ;;  %v3990_v34 = vld [vmem:[%s4955_s10] ss:$0 sm:$0xff] }
 0x18c   : > { %v1545_v10 = vmax.f32 %v1538_v5, %v1540_v57  ;;  %v1210_v21 = vpop.f32.mrf.mxu3  ;;  %v3944_v57 = vadd.f32 %v3571_v8, %v1201_v59  ;;  %v1111_v62 = vpop.f32.mrf.mxu2 }
 0x18d   : > { %v979_v11 = vpop.f32.mrf.mxu1  ;;  %v1211_v49 = vadd.f32 %v1210_v21, %v1109_v30  ;;  %v1527_v21 = vsel %vm1484_vm3, %v3940_v63, -inf }
 0x18e   : > { %v980_v15 = vadd.f32 %v979_v11, %v749_v2  ;;  %v1016_v11 = vadd.f32 %v3734_v53, %v978_v20  ;;  %v1525_v2 = vsel %vm1484_vm3, %v3937_v3, -inf  ;;  %v1015_v20 = vadd.f32 %v3734_v53, %v975_v47 }
 0x18f   : > { %v3955_v45 = vadd.f32 %v3571_v8, %v1211_v49  ;;  %v1533_v27 = vsel %vm1484_vm3, %v3944_v57, -inf  ;;  %v1526_v44 = vmax.f32 %v3839_v46, %v1525_v2  ;;  %v1528_v56 = vmax.f32 %v3854_v7, %v1527_v21  ;;  %v5040_v2 = vld [vmem:[#allocation24_spill] sm:$0xff]  ;;  %v5041_v21 = vld [vmem:[#allocation26_spill] sm:$0xff] }
 0x190   : > { %v1017_v12 = vadd.f32 %v3734_v53, %v980_v15  ;;  %v970_v15 = vadd.f32 %v969_v22, %v739_v1  ;;  %v1014_v1 = vadd.f32 %v3734_v53, %v973_v60  ;;  %v1009_v49 = vadd.f32 %v3734_v53, %v960_v39  ;;  %v5051_v39 = vld [vmem:[#allocation16_spill] sm:$0xff] }
 0x191   : > { %2921 = vmatmul.msk.bf16.gmra.mxu2 %vm841_vm2, %v3523_v38  ;;  %v968_v38 = vadd.f32 %v3905_v28, %v3899_v52  ;;  %v1541_v22 = vsel %vm1484_vm3, %v3955_v45, -inf  ;;  %v1534_v33 = vmax.f32 %v1526_v44, %v1533_v27  ;;  %v1536_v46 = vmax.f32 %v1528_v56, %v1535_v24  ;;  %v5044_v56 = vld [vmem:[#allocation8_spill] sm:$0xff] }
 0x192   : > { %3042 = vmatpush.lsf.msrb.mxu2 %v1017_v12  ;;  %v1013_v7 = vadd.f32 %v3734_v53, %v970_v15  ;;  %v963_v28 = vadd.f32 %v3893_v25, %v3887_v18  ;;  %v958_v18 = vadd.f32 %v3873_v13, %v3861_v19  ;;  %v1007_v60 = vadd.f32 %v3734_v53, %v955_v37  ;;  %v5042_v15 = vld [vmem:[#allocation27_spill] sm:$0xff]  ;;  %v5055_v37 = vld [vmem:[#allocation21_spill] sm:$0xff] }
 0x193   : > { %2901 = vmatmul.msk.bf16.gmra.mxu0 %vm610_vm1, %v3516_v36  ;;  %v1267_v36 = vpop.f32.mrf.mxu0  ;;  %v1542_v9 = vmax.f32 %v1534_v33, %v1541_v22  ;;  %v945_v17 = vadd.f32 %v5042_v15, %v5041_v21  ;;  %v5046_v22 = vld [vmem:[#allocation14_spill] sm:$0xff]  ;;  %v5064_v15 = vld [vmem:[#allocation33_spill] sm:$0xff] }
 0x194   : > { %v1212_v58 = vpop.f32.mrf.mxu3  ;;  %3043 = vmatpush.lsf.msrb.mxu2 %v1016_v11  ;;  %v1368_v40 = vpop.f32.mrf.mxu2  ;;  %v1010_v59 = vadd.f32 %v3734_v53, %v963_v28  ;;  %v1008_v13 = vadd.f32 %v3734_v53, %v958_v18  ;;  %v5049_v28 = vld [vmem:[#allocation11_spill] sm:$0xff] }
 0x195   : > { %v1213_v50 = vadd.f32 %v1212_v58, %v1111_v62  ;;  %v1369_v30 = vadd.f32 %v1368_v40, %v1267_v36  ;;  %v5045_v36 = vld [vmem:[#allocation10_spill] sm:$0xff] }
 0x196   : > { %3044 = vmatpush.lsf.msrb.mxu2 %v1015_v20  ;;  %v1005_v20 = vadd.f32 %v3734_v53, %v950_v41  ;;  %v5052_v40 = vld [vmem:[#allocation18_spill] sm:$0xff] }
 0x197   : > { %v3974_v31 = vadd.f32 %v3571_v8, %v1213_v50  ;;  %v1012_v8 = vadd.f32 %v3734_v53, %v968_v38  ;;  %v3996_v16 = vadd.f32 %v3990_v34, %v1369_v30  ;;  %v5043_v50 = vld [vmem:[#allocation4_spill] sm:$0xff]  ;;  %v5053_v30 = vld [vmem:[#allocation19_spill] sm:$0xff] }
 0x198   : > { %3045 = vmatpush.lsf.msrb.mxu2 %v1014_v1 }
 0x199   : > { %v1543_v52 = vsel %vm1484_vm3, %v3974_v31, -inf  ;;  %v1856_v47 = vsel %vm1484_vm3, %v3996_v16, -inf }
 0x19a   : > { %v1544_v29 = vmax.f32 %v1536_v46, %v1543_v52  ;;  %3046 = vmatpush.lsf.msrb.mxu2 %v1013_v7  ;;  %1857 = vmax.xlane.f32.xlu0 %v1856_v47  ;;  %v5047_v46 = vld [vmem:[#allocation5_spill] sm:$0xff] }
 0x19b   : > { %v1269_v5 = vpop.f32.mrf.mxu0  ;;  %v5048_v52 = vld [vmem:[#allocation9_spill] sm:$0xff] }
 0x19c   : > { %v1546_v54 = vmax.f32 %v1542_v9, %v1544_v29  ;;  %3047 = vmatpush.lsf.msrb.mxu2 %v1012_v8  ;;  %v1370_v12 = vpop.f32.mrf.mxu2  ;;  %v5050_v29 = vld [vmem:[#allocation15_spill] sm:$0xff] }
 0x19e   : > { %v1547_v25 = vmax.f32 %v1545_v10, %v1546_v54  ;;  %3048 = vmatpush.lsf.msrb.mxu2 %v1011_v35  ;;  %v953_v10 = vadd.f32 %v3845_v43, %v3832_v55  ;;  %v1371_v55 = vadd.f32 %v1370_v12, %v1269_v5  ;;  %v948_v43 = vadd.f32 %v3803_v4, %v3786_v23 }
 0x1a0   : > { %v1548_v32 = vrot.slane %v1547_v25, 4  ;;  %3049 = vmatpush.lsf.msrb.mxu2 %v1010_v59  ;;  %v4021_v0 = vadd.f32 %v3990_v34, %v1371_v55  ;;  %v1004_v27 = vadd.f32 %v3734_v53, %v948_v43  ;;  %v5061_v43 = vld [vmem:[#allocation30_spill] sm:$0xff] }
 0x1a1   : > { %2922 = vmatmul.msk.bf16.gmra.mxu2 %vm841_vm2, %v3541_v51  ;;  %v1006_v51 = vadd.f32 %v3734_v53, %v953_v10  ;;  %v5057_v10 = vld [vmem:[#allocation23_spill] sm:$0xff] }
 0x1a2   : > { %v1549_v19 = vmax.f32 %v1547_v25, %v1548_v32  ;;  %3050 = vmatpush.lsf.msrb.mxu2 %v1009_v49  ;;  %v1859_v23 = vsel %vm1484_vm3, %v4021_v0, -inf  ;;  %v5054_v25 = vld [vmem:[#allocation20_spill] sm:$0xff]  ;;  %v5056_v49 = vld [vmem:[#allocation22_spill] sm:$0xff] }
 0x1a3   : > { %2902 = vmatmul.msk.bf16.gmra.mxu0 %vm610_vm1, %v3534_v48  ;;  %v1272_v11 = vpop.f32.mrf.mxu0  ;;  %v943_v48 = vadd.f32 %v5040_v2, %v3740_v42  ;;  %1860 = vmax.xlane.f32.xlu0 %v1859_v23  ;;  %v1003_v42 = vadd.f32 %v3734_v53, %v945_v17 }
 0x1a4   : > { %v1550_v6 = vrot.slane %v1549_v19, 2  ;;  %3051 = vmatpush.lsf.msrb.mxu2 %v1008_v13  ;;  %v1373_v33 = vpop.f32.mrf.mxu2  ;;  %v5058_v13 = vld [vmem:[#allocation25_spill] sm:$0xff] }
 0x1a5   : > { %v1002_v24 = vadd.f32 %v3734_v53, %v943_v48  ;;  %v5063_v48 = vld [vmem:[#allocation32_spill] sm:$0xff] }
 0x1a6   : > { %v1551_v62 = vmax.f32 %v1549_v19, %v1550_v6  ;;  %3052 = vmatpush.lsf.msrb.mxu2 %v1007_v60  ;;  %v5059_v6 = vld [vmem:[#allocation28_spill] sm:$0xff]  ;;  %v5060_v60 = vld [vmem:[#allocation29_spill] sm:$0xff] }
 0x1a8   : > { %v1552_v58 = vrot.slane %v1551_v62, 1  ;;  %3053 = vmatpush.lsf.msrb.mxu2 %v1006_v51  ;;  %v5062_v51 = vld [vmem:[#allocation31_spill] sm:$0xff] }
 0x1aa   : > { %v4026_v4 = vmax.f32 %v1551_v62, %v1552_v58  ;;  %3054 = vmatpush.lsf.msrb.mxu2 %v1005_v20  ;;  %v5065_v20 = vld [vmem:[#allocation36_spill] sm:$0xff] }
 0x1ab   : > { %v1274_v59 = vpop.f32.mrf.mxu0 }
 0x1ac   : > { %v1554_v44 = vsub.f32 %v5043_v50, %v4026_v4  ;;  %v1555_v38 = vsub.f32 %v5044_v56, %v4026_v4  ;;  %v1556_v1 = vsub.f32 %v5045_v36, %v4026_v4  ;;  %v1557_v14 = vsub.f32 %v5046_v22, %v4026_v4  ;;  %3055 = vmatpush.lsf.msrb.mxu2 %v1004_v27  ;;  %v5066_v50 = vld [vmem:[#allocation3_spill] sm:$0xff] }
 0x1ad   : > { %v1558_v7 = vsub.f32 %v5047_v46, %v4026_v4  ;;  %v1559_v53 = vsub.f32 %v5048_v52, %v4026_v4  ;;  %v1560_v9 = vsub.f32 %v5049_v28, %v4026_v4  ;;  %v1561_v8 = vsub.f32 %v5050_v29, %v4026_v4  ;;  %v1375_v46 = vpop.f32.mrf.mxu2  ;;  %v5067_v52 = vld [vmem:[#allocation2_spill] sm:$0xff] }
 0x1ae   : > { %v1562_v54 = vsub.f32 %v5051_v39, %v4026_v4  ;;  %v1563_v35 = vsub.f32 %v5052_v40, %v4026_v4  ;;  %v1564_v18 = vsub.f32 %v5053_v30, %v4026_v4  ;;  %v1565_v5 = vsub.f32 %v5054_v25, %v4026_v4  ;;  %3056 = vmatpush.lsf.msrb.mxu2 %v1003_v42 }
 0x1af   : > { %v1566_v32 = vsub.f32 %v5055_v37, %v4026_v4  ;;  %v1567_v47 = vsub.f32 %v5056_v49, %v4026_v4  ;;  %v1568_v19 = vsub.f32 %v5057_v10, %v4026_v4  ;;  %v1569_v41 = vsub.f32 %v5058_v13, %v4026_v4 }
 0x1b0   : > { %v1570_v12 = vsub.f32 %v5059_v6, %v4026_v4  ;;  %v1571_v55 = vsub.f32 %v5060_v60, %v4026_v4  ;;  %v1572_v62 = vsub.f32 %v5061_v43, %v4026_v4  ;;  %v1573_v2 = vsub.f32 %v5062_v51, %v4026_v4  ;;  %3057 = vmatpush.lsf.msrb.mxu2 %v1002_v24  ;;  %v5071_v60 = vld [vmem:[#allocation12_spill] sm:$0xff] }
 0x1b1   : > { %v1574_v21 = vsub.f32 %v5063_v48, %v4026_v4  ;;  %v1575_v17 = vsub.f32 %v5064_v15, %v4026_v4  ;;  %3058 = vllmr.1.mxu2  ;;  %v1581_v58 = vsub.f32 %v3947_v26, %v4026_v4  ;;  %v1582_v23 = vsub.f32 %v5065_v20, %v4026_v4  ;;  %v5073_v15 = vld [vmem:[#allocation35_spill] sm:$0xff] }
 0x1b2   : > { %v1583_v27 = vsub.f32 %v3931_v61, %v4026_v4  ;;  %2923 = vmatmul.msk.bf16.gmra.mxu2 %vm841_vm2, %v5066_v50  ;;  %v1586_v56 = vmul.f32 1.442695, %v1554_v44  ;;  %v1588_v36 = vmul.f32 1.442695, %v1555_v38  ;;  %v1590_v22 = vmul.f32 1.442695, %v1556_v1 }
 0x1b3   : > { %2903 = vmatmul.msk.bf16.gmra.mxu0 %vm610_vm1, %v5067_v52  ;;  %v1592_v28 = vmul.f32 1.442695, %v1557_v14  ;;  %v1277_v29 = vpop.f32.mrf.mxu0  ;;  %v1594_v39 = vmul.f32 1.442695, %v1558_v7  ;;  %v1596_v40 = vmul.f32 1.442695, %v1559_v53  ;;  %v1374_v42 = vadd.f32 %v1373_v33, %v1272_v11 }
 0x1b4   : > { %3072 = vpow2.f32 %v1586_v56  ;;  %v1598_v50 = vmul.f32 1.442695, %v1560_v9  ;;  %v1600_v52 = vmul.f32 1.442695, %v1561_v8  ;;  %v1376_v11 = vadd.f32 %v1375_v46, %v1274_v59 }
 0x1b5   : > { %3074 = vpow2.f32 %v1588_v36  ;;  %v1378_v44 = vpop.f32.mrf.mxu2  ;;  %v4100_v53 = vadd.f32 %v3990_v34, %v1374_v42  ;;  %v1602_v9 = vmul.f32 1.442695, %v1562_v54  ;;  %v1608_v30 = vmul.f32 1.442695, %v1565_v5 }
 0x1b6   : > { %3076 = vpow2.f32 %v1590_v22  ;;  %v4113_v54 = vadd.f32 %v3990_v34, %v1376_v11  ;;  %v1644_v26 = vmul.f32 1.442695, %v1583_v27 }
 0x1b7   : > { %3078 = vpow2.f32 %v1592_v28  ;;  %v1862_v8 = vsel %vm1484_vm3, %v4100_v53, -inf  ;;  %v1379_v28 = vadd.f32 %v1378_v44, %v1277_v29 }
 0x1b8   : > { %3080 = vpow2.f32 %v1594_v39  ;;  %1863 = vmax.xlane.f32.xlu1 %v1862_v8  ;;  %v1865_v8 = vsel %vm1484_vm3, %v4113_v54, -inf }
 0x1b9   : > { %3082 = vpow2.f32 %v1596_v40  ;;  %v1604_v40 = vmul.f32 1.442695, %v1563_v35  ;;  %v4116_v46 = vadd.f32 %v3990_v34, %v1379_v28  ;;  %v1606_v35 = vmul.f32 1.442695, %v1564_v18 }
 0x1ba   : > { %v4089_v24 = vpop.eup %3072  ;;  %3084 = vpow2.f32 %v1598_v50  ;;  %v5068_v50 = vld [vmem:[#allocation7_spill] sm:$0xff] }
 0x1bb   : > { %v4091_v38 = vpop.eup %3074  ;;  %v1650_v14 = vsel %vm1484_vm3, %v4089_v24, 0.0  ;;  %v1279_v36 = vpop.f32.mrf.mxu0  ;;  %3086 = vpow2.f32 %v1600_v52  ;;  %v5069_v52 = vld [vmem:[#allocation6_spill] sm:$0xff]  ;;  %v1868_v11 = vsel %vm1484_vm3, %v4116_v46, -inf }
 0x1bc   : > { %v4093_v1 = vpop.eup %3076  ;;  %v1651_v7 = vsel %vm1484_vm3, %v4091_v38, 0.0  ;;  %3088 = vpow2.f32 %v1602_v9  ;;  %1869 = vmax.xlane.f32.xlu2 %v1868_v11 }
 0x1bd   : > { %v4102_v33 = vpop.eup %3078  ;;  %v1652_v56 = vadd.f32 %v1651_v7, %v1650_v14  ;;  %v1653_v22 = vsel %vm1484_vm3, %v4093_v1, 0.0  ;;  %v1380_v44 = vpop.f32.mrf.mxu2  ;;  %3090 = vpow2.f32 %v1604_v40 }
 0x1be   : > { %v4108_v39 = vpop.eup %3080  ;;  %v1655_v59 = vsel %vm1484_vm3, %v4102_v33, 0.0  ;;  %3092 = vpow2.f32 %v1606_v35 }
 0x1bf   : > { %v1654_v42 = vadd.f32 %v1653_v22, %v1652_v56  ;;  %v4120_v14 = vpop.eup %3082  ;;  %v1657_v7 = vsel %vm1484_vm3, %v4108_v39, 0.0  ;;  %v1381_v56 = vadd.f32 %v1380_v44, %v1279_v36  ;;  %v1610_v36 = vmul.f32 1.442695, %v1566_v32 }
 0x1c0   : > { %v4131_v22 = vpop.eup %3084  ;;  %v1659_v9 = vsel %vm1484_vm3, %v4120_v14, 0.0  ;;  %3094 = vpow2.f32 %v1608_v30  ;;  %1866 = vmax.xlane.f32.xlu1 %v1865_v8  ;;  %v1614_v44 = vmul.f32 1.442695, %v1568_v19 }
 0x1c1   : > { %v1656_v29 = vadd.f32 %v1655_v59, %v1654_v42  ;;  %v4141_v28 = vadd.f32 %v3990_v34, %v1381_v56  ;;  %v4143_v42 = vpop.eup %3086  ;;  %v1661_v5 = vsel %vm1484_vm3, %v4131_v22, 0.0  ;;  %v1612_v59 = vmul.f32 1.442695, %v1567_v47 }
 0x1c2   : > { %2924 = vmatmul.msk.bf16.gmra.mxu2 %vm841_vm2, %v5068_v50  ;;  %v4150_v40 = vpop.eup %3088  ;;  %v1663_v35 = vsel %vm1484_vm3, %v4143_v42, 0.0  ;;  %3096 = vpow2.f32 %v1610_v36  ;;  %v1616_v56 = vmul.f32 1.442695, %v1569_v41 }
 0x1c3   : > { %2904 = vmatmul.msk.bf16.gmra.mxu0 %vm610_vm1, %v5069_v52  ;;  %v1658_v18 = vadd.f32 %v1657_v7, %v1656_v29  ;;  %v1282_v29 = vpop.f32.mrf.mxu0  ;;  %v1871_v37 = vsel %vm1484_vm3, %v4141_v28, -inf  ;;  %v4159_v32 = vpop.eup %3090  ;;  %v1665_v49 = vsel %vm1484_vm3, %v4150_v40, 0.0  ;;  %3098 = vpow2.f32 %v1612_v59 }
 0x1c4   : > { %v4166_v11 = vpop.eup %3092  ;;  %1872 = vmax.xlane.f32.xlu2 %v1871_v37  ;;  %3100 = vpow2.f32 %v1614_v44 }
 0x1c5   : > { %v1660_v25 = vadd.f32 %v1659_v9, %v1658_v18  ;;  %v1383_v7 = vpop.f32.mrf.mxu2  ;;  %v1667_v18 = vsel %vm1484_vm3, %v4159_v32, 0.0  ;;  %v1618_v9 = vmul.f32 1.442695, %v1570_v12  ;;  %v1669_v13 = vsel %vm1484_vm3, %v4166_v11, 0.0  ;;  %v5070_v12 = vld [vmem:[#allocation13_spill] sm:$0xff] }
 0x1c6   : > { %v1384_v47 = vadd.f32 %v1383_v7, %v1282_v29  ;;  %v4176_v19 = vpop.eup %3094  ;;  %3102 = vpow2.f32 %v1616_v56  ;;  %v1624_v7 = vmul.f32 1.442695, %v1573_v2  ;;  %v1576_v56 = vsub.f32 %v3937_v3, %v4026_v4 }
 0x1c7   : > { %v1662_v50 = vadd.f32 %v1661_v5, %v1660_v25  ;;  %v1620_v25 = vmul.f32 1.442695, %v1571_v55  ;;  %v1671_v6 = vsel %vm1484_vm3, %v4176_v19, 0.0  ;;  %3104 = vpow2.f32 %v1618_v9 }
 0x1c8   : > { %v4174_v10 = vadd.f32 %v3990_v34, %v1384_v47  ;;  %v4185_v36 = vpop.eup %3096  ;;  %v1628_v3 = vmul.f32 1.442695, %v1575_v17  ;;  %v1579_v17 = vsub.f32 %v5073_v15, %v4026_v4 }
 0x1c9   : > { %v1664_v52 = vadd.f32 %v1663_v35, %v1662_v50  ;;  %v4194_v59 = vpop.eup %3098  ;;  %v1622_v50 = vmul.f32 1.442695, %v1572_v62  ;;  %v1673_v55 = vsel %vm1484_vm3, %v4185_v36, 0.0  ;;  %3106 = vpow2.f32 %v1620_v25 }
 0x1ca   : > { %v1874_v41 = vsel %vm1484_vm3, %v4174_v10, -inf  ;;  %v1675_v43 = vsel %vm1484_vm3, %v4194_v59, 0.0 }
 0x1cb   : > { %v1666_v30 = vadd.f32 %v1665_v49, %v1664_v52  ;;  %1875 = vmax.xlane.f32.xlu0 %v1874_v41  ;;  %v1284_v35 = vpop.f32.mrf.mxu0  ;;  %v4203_v52 = vpop.eup %3100  ;;  %3108 = vpow2.f32 %v1622_v50  ;;  %v5072_v41 = vld [vmem:[#allocation34_spill] sm:$0xff] }
 0x1cc   : > { %v4213_v47 = vpop.eup %3102  ;;  %v1677_v51 = vsel %vm1484_vm3, %v4203_v52, 0.0  ;;  %3110 = vpow2.f32 %v1624_v7  ;;  %v1578_v25 = vsub.f32 %v5072_v41, %v4026_v4 }
 0x1cd   : > { %v1668_v8 = vadd.f32 %v1667_v18, %v1666_v30  ;;  %v1385_v37 = vpop.f32.mrf.mxu2  ;;  %v1626_v30 = vmul.f32 1.442695, %v1574_v21  ;;  %v4224_v9 = vpop.eup %3104  ;;  %v1679_v48 = vsel %vm1484_vm3, %v4213_v47, 0.0 }
 0x1ce   : > { %v1386_v44 = vadd.f32 %v1385_v37, %v1284_v35 }
 0x1cf   : > { %v1670_v5 = vadd.f32 %v1669_v13, %v1668_v8  ;;  %v1577_v8 = vsub.f32 %v3940_v63, %v4026_v4  ;;  %v4233_v21 = vpop.eup %3106  ;;  %3112 = vpow2.f32 %v1626_v30  ;;  %v1681_v63 = vsel %vm1484_vm3, %v4224_v9, 0.0 }
 0x1d0   : > { %v4211_v62 = vadd.f32 %v3990_v34, %v1386_v44  ;;  %3114 = vpow2.f32 %v1628_v3  ;;  %v1683_v35 = vsel %vm1484_vm3, %v4233_v21, 0.0 }
 0x1d1   : > { %v1672_v29 = vadd.f32 %v1671_v6, %v1670_v5  ;;  %v1630_v5 = vmul.f32 1.442695, %v1576_v56  ;;  %v1632_v50 = vmul.f32 1.442695, %v1577_v8  ;;  %v3266_v8 = vld [vmem:[%s3381_s21 + $0x68] sm:$0xff] }
 0x1d2   : > { %2925 = vmatmul.msk.bf16.gmra.mxu2 %vm841_vm2, %v5070_v12  ;;  %v1877_v2 = vsel %vm1484_vm3, %v4211_v62, -inf  ;;  %v4239_v12 = vpop.eup %3108 }
 0x1d3   : > { %2905 = vmatmul.msk.bf16.gmra.mxu0 %vm610_vm1, %v5071_v60  ;;  %v1674_v49 = vadd.f32 %v1673_v55, %v1672_v29  ;;  %1878 = vmax.xlane.f32.xlu2 %v1877_v2  ;;  %v4245_v37 = vpop.eup %3110  ;;  %v1580_v60 = vsub.f32 %v3944_v57, %v4026_v4  ;;  %3116 = vpow2.f32 %v1630_v5  ;;  %v1634_v55 = vmul.f32 1.442695, %v1578_v25 }
 0x1d4   : > { %v1685_v7 = vsel %vm1484_vm3, %v4239_v12, 0.0  ;;  %3118 = vpow2.f32 %v1632_v50  ;;  %v1687_v30 = vsel %vm1484_vm3, %v4245_v37, 0.0  ;;  %v4282_v50 = vpop.f32.mrf.mxu0 }
 0x1d5   : > { %v1676_v18 = vadd.f32 %v1675_v43, %v1674_v49  ;;  %v4251_v49 = vpop.eup %3112  ;;  %v1636_v43 = vmul.f32 1.442695, %v1579_v17  ;;  %3120 = vpow2.f32 %v1634_v55  ;;  %v1638_v57 = vmul.f32 1.442695, %v1580_v60 }
 0x1d6   : > { %v1689_v3 = vsel %vm1484_vm3, %v4251_v49, 0.0 }
 0x1d7   : > { %v1678_v13 = vadd.f32 %v1677_v51, %v1676_v18  ;;  %v5074_v18 = vld [vmem:[#allocation17_spill] sm:$0xff]  ;;  %v4257_v51 = vpop.eup %3114  ;;  %3122 = vpow2.f32 %v1636_v43 }
 0x1d8   : > { %v1691_v25 = vsel %vm1484_vm3, %v4257_v51, 0.0  ;;  %3124 = vpow2.f32 %v1638_v57 }
 0x1d9   : > { %v1680_v6 = vadd.f32 %v1679_v48, %v1678_v13  ;;  %v4263_v13 = vpop.eup %3116  ;;  %v1640_v48 = vmul.f32 1.442695, %v1581_v58 }
 0x1da   : > { %v4270_v5 = vpop.eup %3118  ;;  %v1693_v15 = vsel %vm1484_vm3, %v4263_v13, 0.0 }
 0x1db   : > { %v1682_v29 = vadd.f32 %v1681_v63, %v1680_v6  ;;  %v1642_v6 = vmul.f32 1.442695, %v1582_v23  ;;  %v4277_v17 = vpop.eup %3120  ;;  %3126 = vpow2.f32 %v1640_v48  ;;  %v1695_v20 = vsel %vm1484_vm3, %v4270_v5, 0.0 }
 0x1dc   : > { %v1697_v61 = vsel %vm1484_vm3, %v4277_v17, 0.0 }
 0x1dd   : > { %v1684_v44 = vadd.f32 %v1683_v35, %v1682_v29  ;;  %v4284_v29 = vpop.f32.mrf.mxu2  ;;  %v4288_v23 = vpop.eup %3122  ;;  %3128 = vpow2.f32 %v1642_v6  ;;  %v5075_v35 = vsub.f32 %v3955_v45, %v4026_v4 }
 0x1de   : > { %v3125_v27 = vpop.eup %3124  ;;  %3130 = vpow2.f32 %v1644_v26 }
 0x1df   : > { %v1686_v56 = vadd.f32 %v1685_v7, %v1684_v44  ;;  %v1646_v60 = vmul.f32 1.442695, %v5075_v35  ;;  %v5076_v44 = vsub.f32 %v3974_v31, %v4026_v4  ;;  %v3267_v4 = vld [vmem:[%s3393_s28 + $0x70] sm:$0xff] }
 0x1e1   : > { %v1688_v2 = vadd.f32 %v1687_v30, %v1686_v56  ;;  %v1648_v7 = vmul.f32 1.442695, %v5076_v44  ;;  %v1699_v56 = vsel %vm1484_vm3, %v4288_v23, 0.0  ;;  %v3127_v30 = vpop.eup %3126  ;;  %3132 = vpow2.f32 %v1646_v60 }
 0x1e2   : > { %2926 = vmatmul.msk.bf16.gmra.mxu2 %vm841_vm2, %v5074_v18  ;;  %v1701_v18 = vsel %vm1484_vm3, %v3125_v27, 0.0  ;;  %v1703_v31 = vsel %vm1484_vm3, %v3127_v30, 0.0 }
 0x1e3   : > { %2906 = vmatmul.msk.bf16.gmra.mxu0 %vm610_vm1, %v3266_v8  ;;  %v1690_v41 = vadd.f32 %v1689_v3, %v1688_v2  ;;  %v3129_v57 = vpop.eup %3128  ;;  %3134 = vpow2.f32 %v1648_v7  ;;  %v4301_v8 = vpop.f32.mrf.mxu0 }
 0x1e4   : > { %v3131_v48 = vpop.eup %3130  ;;  %v1705_v6 = vsel %vm1484_vm3, %v3129_v57, 0.0 }
 0x1e5   : > { %v1692_v63 = vadd.f32 %v1691_v25, %v1690_v41  ;;  %v4303_v3 = vpop.f32.mrf.mxu2  ;;  %v3268_v25 = vld [vmem:[%s3381_s21 + $0x70] sm:$0xff]  ;;  %v1707_v26 = vsel %vm1484_vm3, %v3131_v48, 0.0 }
 0x1e7   : > { %v1694_v58 = vadd.f32 %v1693_v15, %v1692_v63  ;;  %v3133_v63 = vpop.eup %3132 }
 0x1e8   : > { %v1709_v35 = vsel %vm1484_vm3, %v3133_v63, 0.0 }
 0x1e9   : > { %v1696_v55 = vadd.f32 %v1695_v20, %v1694_v58  ;;  %v3135_v58 = vpop.eup %3134 }
 0x1ea   : > { %v1711_v44 = vsel %vm1484_vm3, %v3135_v58, 0.0 }
 0x1eb   : > { %v1698_v43 = vadd.f32 %v1697_v61, %v1696_v55  ;;  %v4313_v55 = vpop.f32.mrf.mxu0 }
 0x1ed   : > { %v1700_v45 = vadd.f32 %v1699_v56, %v1698_v43  ;;  %v4315_v61 = vpop.f32.mrf.mxu2 }
 0x1ef   : > { %v1702_v2 = vadd.f32 %v1701_v18, %v1700_v45 }
 0x1f1   : > { %v1704_v41 = vadd.f32 %v1703_v31, %v1702_v2  ;;  %v3269_v31 = vld [vmem:[%s3393_s28 + $0x78] sm:$0xff] }
 0x1f2   : > { %2927 = vmatmul.msk.bf16.gmra.mxu2 %vm841_vm2, %v3267_v4 }
 0x1f3   : > { %2907 = vmatmul.msk.bf16.gmra.mxu0 %vm610_vm1, %v3268_v25  ;;  %v1706_v15 = vadd.f32 %v1705_v6, %v1704_v41  ;;  %v4318_v18 = vpop.f32.mrf.mxu0  ;;  %v3270_v41 = vld [vmem:[%s3381_s21 + $0x78] sm:$0xff] }
 0x1f5   : > { %v1708_v20 = vadd.f32 %v1707_v26, %v1706_v15  ;;  %v4320_v2 = vpop.f32.mrf.mxu2 }
 0x1f7   : > { %v1710_v60 = vadd.f32 %v1709_v35, %v1708_v20 }
 0x1f9   : > { %v1712_v7 = vadd.f32 %v1711_v44, %v1710_v60 }
 0x1fb   : > { %v1713_v43 = vrot.slane %v1712_v7, 4  ;;  %v4326_v15 = vpop.f32.mrf.mxu0 }
 0x1fd   : > { %v1714_v56 = vadd.f32 %v1713_v43, %v1712_v7  ;;  %v4328_v26 = vpop.f32.mrf.mxu2 }
 0x1ff   : > { %v1715_v45 = vrot.slane %v1714_v56, 2 }
 0x201   : > { %v1716_v4 = vadd.f32 %v1715_v45, %v1714_v56 }
 0x202   : > { %2928 = vmatmul.msk.bf16.gmra.mxu2 %vm841_vm2, %v3269_v31 }
 0x203   : > { %2908 = vmatmul.msk.bf16.gmra.mxu0 %vm610_vm1, %v3270_v41  ;;  %v1717_v25 = vrot.slane %v1716_v4, 1  ;;  %v4338_v43 = vpop.f32.mrf.mxu0 }
 0x205   : > { %v1718_v6 = vadd.f32 %v1717_v25, %v1716_v4  ;;  %v4340_v56 = vpop.f32.mrf.mxu2 }
 0x207   : > { %3136 = vrcp.f32 %v1718_v6 }
 0x20d   : > { %v4330_v20 = vpop.eup %3136 }
 0x20e   : > { %v1735_v35 = vmul.f32 %v4330_v20, %v4213_v47  ;;  %v1751_v60 = vmul.f32 %v4330_v20, %v3135_v58  ;;  %v1734_v44 = vmul.f32 %v4330_v20, %v4203_v52  ;;  %v1750_v7 = vmul.f32 %v4330_v20, %v3133_v63  ;;  %v1858_v63 = vpop.xlane.xlu0 %1857 }
 0x20f   : > { %v1733_v45 = vmul.f32 %v4330_v20, %v4194_v59  ;;  %v1749_v31 = vmul.f32 %v4330_v20, %v3131_v48  ;;  %v1748_v4 = vmul.f32 %v4330_v20, %v3129_v57  ;;  %v1747_v47 = vmul.f32 %v4330_v20, %v3127_v30 }
 0x210   : > { %1816 = vmatpush.msra.mxu0 %v1735_v35  ;;  %1836 = vmatpush.msra.mxu2 %v1751_v60  ;;  %v1746_v58 = vmul.f32 %v4330_v20, %v3125_v27  ;;  %v1745_v52 = vmul.f32 %v4330_v20, %v4288_v23  ;;  %v1744_v41 = vmul.f32 %v4330_v20, %v4277_v17  ;;  %v4363_v17 = vpop.f32.mrf.mxu0 }
 0x211   : > { %v1952_v59 = vsub.f32 %v3996_v16, %v1858_v63  ;;  %v1743_v57 = vmul.f32 %v4330_v20, %v4270_v5  ;;  %v1742_v48 = vmul.f32 %v4330_v20, %v4263_v13  ;;  %v1732_v27 = vmul.f32 %v4330_v20, %v4185_v36  ;;  %v4365_v5 = vpop.f32.mrf.mxu2 }
 0x212   : > { %1817 = vmatpush.msra.mxu0 %v1734_v44  ;;  %1837 = vmatpush.msra.mxu2 %v1750_v7  ;;  %v1741_v23 = vmul.f32 %v4330_v20, %v4257_v51  ;;  %v1731_v16 = vmul.f32 %v4330_v20, %v4176_v19  ;;  %v1730_v13 = vmul.f32 %v4330_v20, %v4166_v11 }
 0x213   : > { %v1984_v30 = vmul.f32 1.442695, %v1952_v59  ;;  %v1729_v36 = vmul.f32 %v4330_v20, %v4159_v32  ;;  %v1389_v19 = vadd.f32 %v4284_v29, %v4282_v50  ;;  %v1728_v6 = vmul.f32 %v4330_v20, %v4150_v40 }
 0x214   : > { %1818 = vmatpush.msra.mxu0 %v1733_v45  ;;  %1838 = vmatpush.msra.mxu2 %v1749_v31  ;;  %v1727_v11 = vmul.f32 %v4330_v20, %v4143_v42  ;;  %v1726_v40 = vmul.f32 %v4330_v20, %v4131_v22  ;;  %v1725_v42 = vmul.f32 %v4330_v20, %v4120_v14 }
 0x215   : > { %3138 = vpow2.f32 %v1984_v30  ;;  %v4389_v29 = vadd.f32 %v3990_v34, %v1389_v19  ;;  %v1724_v44 = vmul.f32 %v4330_v20, %v4108_v39  ;;  %v1740_v7 = vmul.f32 %v4330_v20, %v4251_v49 }
 0x216   : > { %1819 = vmatpush.msra.mxu0 %v1732_v27  ;;  %1839 = vmatpush.msra.mxu2 %v1748_v4  ;;  %v1861_v51 = vpop.xlane.xlu0 %1860  ;;  %v1391_v31 = vadd.f32 %v4303_v3, %v4301_v8  ;;  %v1723_v14 = vmul.f32 %v4330_v20, %v4102_v33  ;;  %v1739_v4 = vmul.f32 %v4330_v20, %v4245_v37 }
 0x217   : > { %v1953_v25 = vsub.f32 %v4021_v0, %v1861_v51  ;;  %v1880_v45 = vsel %vm1484_vm3, %v4389_v29, -inf  ;;  %v1722_v8 = vmul.f32 %v4330_v20, %v4093_v1  ;;  %v1738_v33 = vmul.f32 %v4330_v20, %v4239_v12 }
 0x218   : > { %1820 = vmatpush.msra.mxu0 %v1731_v16  ;;  %1840 = vmatpush.msra.mxu2 %v1747_v47  ;;  %v4382_v0 = vpop.f32.mrf.mxu0  ;;  %v1721_v37 = vmul.f32 %v4330_v20, %v4091_v38  ;;  %v1737_v3 = vmul.f32 %v4330_v20, %v4233_v21  ;;  %v1720_v63 = vmul.f32 %v4330_v20, %v4089_v24 }
 0x219   : > { %v1986_v60 = vmul.f32 1.442695, %v1953_v25  ;;  %v4384_v50 = vpop.f32.mrf.mxu2  ;;  %v1736_v1 = vmul.f32 %v4330_v20, %v4224_v9 }
 0x21a   : > { %1821 = vmatpush.msra.mxu0 %v1730_v13  ;;  %1841 = vmatpush.msra.mxu2 %v1746_v58 }
 0x21b   : > { %v4376_v35 = vpop.eup %3138  ;;  %3140 = vpow2.f32 %v1986_v60 }
 0x21c   : > { %1822 = vmatpush.msra.mxu0 %v1729_v36  ;;  %1842 = vmatpush.msra.mxu2 %v1745_v52  ;;  %v2048_v32 = vsel %vm1484_vm3, %v4376_v35, 0.0  ;;  %v4420_v52 = vadd.f32 %v3990_v34, %v1391_v31  ;;  %v1394_v36 = vadd.f32 %v4315_v61, %v4313_v55 }
 0x21d   : > { %2049 = vadd.xlane.f32.xlu1 %v2048_v32 }
 0x21e   : > { %1823 = vmatpush.msra.mxu0 %v1728_v6  ;;  %1843 = vmatpush.msra.mxu2 %v1744_v41  ;;  %v1883_v12 = vsel %vm1484_vm3, %v4420_v52, -inf }
 0x220   : > { %1824 = vmatpush.msra.mxu0 %v1727_v11  ;;  %1844 = vmatpush.msra.mxu2 %v1743_v57  ;;  %v1307_v49 = vpop.f32.mrf.mxu0  ;;  %v4445_v11 = vadd.f32 %v3990_v34, %v1394_v36 }
 0x221   : > { %v4399_v22 = vpop.eup %3140  ;;  %v1408_v47 = vpop.f32.mrf.mxu2 }
 0x222   : > { %1825 = vmatpush.msra.mxu0 %v1726_v40  ;;  %1845 = vmatpush.msra.mxu2 %v1742_v48  ;;  %v2051_v39 = vsel %vm1484_vm3, %v4399_v22, 0.0  ;;  %v4409_v58 = vadd.f32 %v1408_v47, %v1307_v49 }
 0x223   : > { %2052 = vadd.xlane.f32.xlu0 %v2051_v39 }
 0x224   : > { %1826 = vmatpush.msra.mxu0 %v1725_v42  ;;  %1846 = vmatpush.msra.mxu2 %v1741_v23 }
 0x225   : > { %1881 = vmax.xlane.f32.xlu1 %v1880_v45 }
 0x226   : > { %1827 = vmatpush.msra.mxu0 %v1724_v44  ;;  %1847 = vmatpush.msra.mxu2 %v1740_v7  ;;  %v1886_v44 = vsel %vm1484_vm3, %v4445_v11, -inf  ;;  %v1396_v7 = vadd.f32 %v4320_v2, %v4318_v18 }
 0x228   : > { %1828 = vmatpush.msra.mxu0 %v1723_v14  ;;  %1848 = vmatpush.msra.mxu2 %v1739_v4  ;;  %v1309_v38 = vpop.f32.mrf.mxu0  ;;  %v4472_v47 = vadd.f32 %v3990_v34, %v1396_v7 }
 0x229   : > { %v1410_v41 = vpop.f32.mrf.mxu2 }
 0x22a   : > { %1829 = vmatpush.msra.mxu0 %v1722_v8  ;;  %1849 = vmatpush.msra.mxu2 %v1738_v33  ;;  %v4428_v21 = vadd.f32 %v1410_v41, %v1309_v38  ;;  %v1404_v41 = vadd.f32 %v4365_v5, %v4363_v17 }
 0x22b   : > { %1884 = vmax.xlane.f32.xlu0 %v1883_v12  ;;  %v1864_v59 = vpop.xlane.xlu1 %1863 }
 0x22c   : > { %1830 = vmatpush.msra.mxu0 %v1721_v37  ;;  %1850 = vmatpush.msra.mxu2 %v1737_v3  ;;  %v1954_v57 = vsub.f32 %v4100_v53, %v1864_v59  ;;  %v1401_v37 = vadd.f32 %v4340_v56, %v4338_v43  ;;  %v1889_v3 = vsel %vm1484_vm3, %v4472_v47, -inf  ;;  %v4503_v17 = vadd.f32 %v3990_v34, %v1404_v41 }
 0x22e   : > { %1831 = vmatpush.msra.mxu0 %v1720_v63  ;;  %1851 = vmatpush.msra.mxu2 %v1736_v1  ;;  %v1988_v48 = vmul.f32 1.442695, %v1954_v57 }
 0x22f   : > { %3059 = vmatmul.lmr.bf16.vlgmr.msra.gmra.1.mxu2  ;;  %3038 = vmatmul.lmr.bf16.vlgmr.msra.gmra.1.mxu0  ;;  %v1870_v24 = vpop.xlane.xlu2 %1869 }
 0x230   : > { %3142 = vpow2.f32 %v1988_v48  ;;  %v1956_v9 = vsub.f32 %v4116_v46, %v1870_v24  ;;  %v1312_v20 = vpop.f32.mrf.mxu0  ;;  %v1406_v48 = vadd.f32 %v4384_v50, %v4382_v0 }
 0x231   : > { %v1413_v27 = vpop.f32.mrf.mxu2 }
 0x232   : > { %v4432_v23 = vadd.f32 %v1413_v27, %v1312_v20  ;;  %v1992_v30 = vmul.f32 1.442695, %v1956_v9  ;;  %v4506_v5 = vadd.f32 %v3990_v34, %v1406_v48  ;;  %v1898_v27 = vsel %vm1484_vm3, %v4503_v17, -inf }
 0x233   : > { %v1867_v16 = vpop.xlane.xlu1 %1866 }
 0x234   : > { %v1955_v13 = vsub.f32 %v4113_v54, %v1867_v16  ;;  %3144 = vpow2.f32 %v1992_v30  ;;  %v1399_v54 = vadd.f32 %v4328_v26, %v4326_v15  ;;  %v1901_v0 = vsel %vm1484_vm3, %v4506_v5, -inf }
 0x236   : > { %v4437_v51 = vpop.eup %3142  ;;  %v1990_v53 = vmul.f32 1.442695, %v1955_v13  ;;  %v4457_v15 = vadd.f32 %v3990_v34, %v1399_v54 }
 0x237   : > { %v2054_v25 = vsel %vm1484_vm3, %v4437_v51, 0.0  ;;  %v1873_v19 = vpop.xlane.xlu2 %1872 }
 0x238   : > { %3146 = vpow2.f32 %v1990_v53  ;;  %2055 = vadd.xlane.f32.xlu2 %v2054_v25  ;;  %v1957_v46 = vsub.f32 %v4141_v28, %v1873_v19  ;;  %v1314_v6 = vpop.f32.mrf.mxu0  ;;  %v1892_v39 = vsel %vm1484_vm3, %v4457_v15, -inf }
 0x239   : > { %v1415_v60 = vpop.f32.mrf.mxu2 }
 0x23a   : > { %v4447_v55 = vadd.f32 %v1415_v60, %v1314_v6  ;;  %v4449_v61 = vpop.eup %3144  ;;  %v1994_v32 = vmul.f32 1.442695, %v1957_v46 }
 0x23b   : > { %v2060_v40 = vsel %vm1484_vm3, %v4449_v61, 0.0 }
 0x23c   : > { %3148 = vpow2.f32 %v1994_v32  ;;  %2061 = vadd.xlane.f32.xlu0 %v2060_v40 }
 0x23e   : > { %v1876_v42 = vpop.xlane.xlu0 %1875  ;;  %v4459_v26 = vpop.eup %3146 }
 0x23f   : > { %v1958_v28 = vsub.f32 %v4174_v10, %v1876_v42  ;;  %v2057_v45 = vsel %vm1484_vm3, %v4459_v26, 0.0 }
 0x240   : > { %1887 = vmax.xlane.f32.xlu2 %v1886_v44  ;;  %2058 = vadd.xlane.f32.xlu1 %v2057_v45  ;;  %v1317_v14 = vpop.f32.mrf.mxu0 }
 0x241   : > { %v1996_v31 = vmul.f32 1.442695, %v1958_v28  ;;  %v1418_v4 = vpop.f32.mrf.mxu2 }
 0x242   : > { %v4465_v10 = vadd.f32 %v1418_v4, %v1317_v14  ;;  %v4469_v49 = vpop.eup %3148 }
 0x243   : > { %3150 = vpow2.f32 %v1996_v31  ;;  %v2063_v2 = vsel %vm1484_vm3, %v4469_v49, 0.0 }
 0x244   : > { %1893 = vmax.xlane.f32.xlu0 %v1892_v39 }
 0x246   : > { %v1879_v8 = vpop.xlane.xlu2 %1878 }
 0x247   : > { %v1959_v18 = vsub.f32 %v4211_v62, %v1879_v8  ;;  %v4486_v62 = vadd.f32 %v3990_v34, %v1401_v37 }
 0x248   : > { %1890 = vmax.xlane.f32.xlu1 %v1889_v3  ;;  %2064 = vadd.xlane.f32.xlu2 %v2063_v2  ;;  %v1319_v63 = vpop.f32.mrf.mxu0 }
 0x249   : > { %v1998_v33 = vmul.f32 1.442695, %v1959_v18  ;;  %v1420_v1 = vpop.f32.mrf.mxu2  ;;  %v4483_v38 = vpop.eup %3150  ;;  %v1895_v59 = vsel %vm1484_vm3, %v4486_v62, -inf }
 0x24a   : > { %v4481_v12 = vadd.f32 %v1420_v1, %v1319_v63  ;;  %v2066_v43 = vsel %vm1484_vm3, %v4483_v38, 0.0 }
 0x24b   : > { %3152 = vpow2.f32 %v1998_v33 }
 0x250   : > { %1896 = vmax.xlane.f32.xlu2 %v1895_v59  ;;  %2067 = vadd.xlane.f32.xlu1 %v2066_v43  ;;  %v1322_v24 = vpop.f32.mrf.mxu0 }
 0x251   : > { %v4492_v56 = vpop.eup %3152  ;;  %v1423_v9 = vpop.f32.mrf.mxu2 }
 0x252   : > { %v2069_v57 = vsel %vm1484_vm3, %v4492_v56, 0.0  ;;  %v4500_v20 = vadd.f32 %v1423_v9, %v1322_v24 }
 0x253   : > { %2070 = vadd.xlane.f32.xlu0 %v2069_v57 }
 0x258   : > { %1899 = vmax.xlane.f32.xlu1 %v1898_v27  ;;  %v1324_v30 = vpop.f32.mrf.mxu0 }
 0x259   : > { %v1425_v16 = vpop.f32.mrf.mxu2 }
 0x25a   : > { %v4512_v50 = vadd.f32 %v1425_v16, %v1324_v30 }
 0x25b   : > { %1902 = vmax.xlane.f32.xlu0 %v1901_v0 }
 0x260   : > { %v1327_v13 = vpop.f32.mrf.mxu0 }
 0x261   : > { %v1428_v36 = vpop.f32.mrf.mxu2 }
 0x262   : > { %v4514_v53 = vadd.f32 %v1428_v36, %v1327_v13 }
 0x268   : > { %v1329_v25 = vpop.f32.mrf.mxu0 }
 0x269   : > { %v1430_v19 = vpop.f32.mrf.mxu2 }
 0x26a   : > { %v4516_v34 = vadd.f32 %v1430_v19, %v1329_v25 }
 0x270   : > { %v1332_v46 = vpop.f32.mrf.mxu0 }
 0x271   : > { %v1433_v6 = vpop.f32.mrf.mxu2 }
 0x272   : > { %v4518_v60 = vadd.f32 %v1433_v6, %v1332_v46 }
 0x278   : > { %v1334_v54 = vpop.f32.mrf.mxu0 }
 0x279   : > { %v1435_v32 = vpop.f32.mrf.mxu2 }
 0x27a   : > { %v4520_v40 = vadd.f32 %v1435_v32, %v1334_v54 }
 0x280   : > { %v1337_v42 = vpop.f32.mrf.mxu0 }
 0x281   : > { %v1438_v28 = vpop.f32.mrf.mxu2 }
 0x282   : > { %v4522_v44 = vadd.f32 %v1438_v28, %v1337_v42 }
 0x288   : > { %v1339_v7 = vpop.f32.mrf.mxu0 }
 0x289   : > { %v1440_v45 = vpop.f32.mrf.mxu2 }
 0x28a   : > { %v4524_v31 = vadd.f32 %v1440_v45, %v1339_v7 }
 0x290   : > { %v2050_v14 = vpop.xlane.xlu1 %2049  ;;  %v1342_v4 = vpop.f32.mrf.mxu0 }
 0x291   : > { %v1443_v39 = vpop.f32.mrf.mxu2 }
 0x292   : > { %v4526_v8 = vadd.f32 %v1443_v39, %v1342_v4 }
 0x296   : > { %v2053_v2 = vpop.xlane.xlu0 %2052 }
 0x298   : > { %v1882_v18 = vpop.xlane.xlu1 %1881  ;;  %v1344_v3 = vpop.f32.mrf.mxu0 }
 0x299   : > { %v1960_v33 = vsub.f32 %v4389_v29, %v1882_v18  ;;  %v1445_v63 = vpop.f32.mrf.mxu2  ;;  %v4539_v29 = vld [vmem:[%s4955_s10] ss:$0 sm:$0xff] }
 0x29a   : > { %v4529_v1 = vadd.f32 %v1445_v63, %v1344_v3  ;;  %v4543_v24 = vadd.f32 %v4539_v29, %v4409_v58  ;;  %v4553_v13 = vadd.f32 %v4539_v29, %v4428_v21 }
 0x29b   : > { %v2000_v37 = vmul.f32 1.442695, %v1960_v33 }
 0x29c   : > { %v1907_v46 = vsel %vm1484_vm3, %v4553_v13, -inf }
 0x29d   : > { %3154 = vpow2.f32 %v2000_v37 }
 0x29e   : > { %v1885_v41 = vpop.xlane.xlu0 %1884 }
 0x29f   : > { %v1961_v43 = vsub.f32 %v4420_v52, %v1885_v41  ;;  %v1904_v52 = vsel %vm1484_vm3, %v4543_v24, -inf }
 0x2a1   : > { %v2002_v57 = vmul.f32 1.442695, %v1961_v43 }
 0x2a3   : > { %v4532_v59 = vpop.eup %3154  ;;  %3156 = vpow2.f32 %v2002_v57 }
 0x2a4   : > { %v2072_v48 = vsel %vm1484_vm3, %v4532_v59, 0.0  ;;  %3158 = vrcp.f32 %v2050_v14 }
 0x2a5   : > { %2073 = vadd.xlane.f32.xlu2 %v2072_v48  ;;  %3160 = vrcp.f32 %v2053_v2 }
 0x2a9   : > { %v4547_v9 = vpop.eup %3156 }
 0x2aa   : > { %v2075_v27 = vsel %vm1484_vm3, %v4547_v9, 0.0  ;;  %v3159_v58 = vpop.eup %3158 }
 0x2ab   : > { %2076 = vadd.xlane.f32.xlu1 %v2075_v27  ;;  %v2056_v16 = vpop.xlane.xlu2 %2055  ;;  %v2176_v25 = vmul.f32 %v3159_v58, %v4376_v35  ;;  %v3161_v32 = vpop.eup %3160 }
 0x2ac   : > { %v1833_v30 = vpop.f32.mrf.mxu0  ;;  %3162 = vrcp.f32 %v2056_v16  ;;  %v2177_v7 = vmul.f32 %v3161_v32, %v4399_v22  ;;  %v4596_v16 = vadd.f32 %v4539_v29, %v4447_v55 }
 0x2ad   : > { %1905 = vmax.xlane.f32.xlu2 %v1904_v52  ;;  %v4586_v52 = vadd.f32 %v4539_v29, %v4465_v10 }
 0x2af   : > { %v2062_v19 = vpop.xlane.xlu0 %2061 }
 0x2b2   : > { %v1853_v0 = vpop.f32.mrf.mxu2  ;;  %v3163_v39 = vpop.eup %3162 }
 0x2b3   : > { %v1854_v36 = vadd.f32 %v1853_v0, %v1833_v30  ;;  %1908 = vmax.xlane.f32.xlu1 %v1907_v46  ;;  %v1888_v6 = vpop.xlane.xlu2 %1887  ;;  %v2059_v54 = vpop.xlane.xlu1 %2058  ;;  %v2178_v22 = vmul.f32 %v3163_v39, %v4437_v51  ;;  %v1916_v30 = vsel %vm1484_vm3, %v4586_v52, -inf  ;;  %v1913_v46 = vsel %vm1484_vm3, %v4596_v16, -inf }
 0x2b4   : > { %v1962_v21 = vsub.f32 %v4445_v11, %v1888_v6 }
 0x2b5   : > { %2929 = vmatpush.xpose.msk.msrb.mxu1 %vm1484_vm3, %v1854_v36 }
 0x2b6   : > { %v2004_v42 = vmul.f32 1.442695, %v1962_v21 }
 0x2b7   : > { %v1894_v28 = vpop.xlane.xlu0 %1893 }
 0x2b8   : > { %2930 = vmatmul.msk.f32.vlgmr.msrb.gmra.mxu1 %vm1484_vm3, %v2176_v25  ;;  %3164 = vpow2.f32 %v2004_v42  ;;  %v1964_v35 = vsub.f32 %v4457_v15, %v1894_v28  ;;  %v4572_v15 = vadd.f32 %v4539_v29, %v4432_v23 }
 0x2ba   : > { %v2008_v45 = vmul.f32 1.442695, %v1964_v35  ;;  %v1910_v51 = vsel %vm1484_vm3, %v4572_v15, -inf }
 0x2bb   : > { %v1891_v14 = vpop.xlane.xlu1 %1890  ;;  %v2065_v4 = vpop.xlane.xlu2 %2064 }
 0x2bc   : > { %v1963_v18 = vsub.f32 %v4472_v47, %v1891_v14  ;;  %3166 = vpow2.f32 %v2008_v45  ;;  %v4630_v45 = vadd.f32 %v4539_v29, %v4512_v50 }
 0x2bd   : > { %3168 = vrcp.f32 %v2059_v54 }
 0x2be   : > { %v4565_v2 = vpop.eup %3164  ;;  %v2006_v11 = vmul.f32 1.442695, %v1963_v18 }
 0x2bf   : > { %v2078_v33 = vsel %vm1484_vm3, %v4565_v2, 0.0 }
 0x2c0   : > { %2931 = vmatmul.msk.f32.gmra.mxu1 %vm1484_vm3, %v2177_v7  ;;  %3170 = vpow2.f32 %v2006_v11  ;;  %2079 = vadd.xlane.f32.xlu0 %v2078_v33  ;;  %v4626_v7 = vadd.f32 %v4539_v29, %v4500_v20 }
 0x2c1   : > { %3172 = vrcp.f32 %v2062_v19 }
 0x2c2   : > { %v4575_v37 = vpop.eup %3166 }
 0x2c3   : > { %v1897_v47 = vpop.xlane.xlu2 %1896  ;;  %v2068_v3 = vpop.xlane.xlu1 %2067  ;;  %v2084_v43 = vsel %vm1484_vm3, %v4575_v37, 0.0 }
 0x2c4   : > { %v3169_v63 = vpop.eup %3168  ;;  %v1965_v41 = vsub.f32 %v4486_v62, %v1897_v47  ;;  %2085 = vadd.xlane.f32.xlu1 %v2084_v43 }
 0x2c5   : > { %v2179_v62 = vmul.f32 %v3169_v63, %v4459_v26 }
 0x2c6   : > { %v2071_v57 = vpop.xlane.xlu0 %2070  ;;  %v4582_v48 = vpop.eup %3170  ;;  %v2010_v23 = vmul.f32 1.442695, %v1965_v41 }
 0x2c7   : > { %v2081_v27 = vsel %vm1484_vm3, %v4582_v48, 0.0  ;;  %v3173_v10 = vpop.eup %3172 }
 0x2c8   : > { %2932 = vmatmul.msk.f32.gmra.mxu1 %vm1484_vm3, %v2178_v22  ;;  %2082 = vadd.xlane.f32.xlu2 %v2081_v27  ;;  %3174 = vpow2.f32 %v2010_v23  ;;  %v2180_v54 = vmul.f32 %v3173_v10, %v4449_v61  ;;  %v4655_v23 = vadd.f32 %v4539_v29, %v4514_v53 }
 0x2c9   : > { %1911 = vmax.xlane.f32.xlu0 %v1910_v51  ;;  %3176 = vrcp.f32 %v2065_v4  ;;  %v1925_v4 = vsel %vm1484_vm3, %v4630_v45, -inf }
 0x2cb   : > { %v1900_v0 = vpop.xlane.xlu1 %1899 }
 0x2cc   : > { %v1966_v58 = vsub.f32 %v4503_v17, %v1900_v0  ;;  %1917 = vmax.xlane.f32.xlu1 %v1916_v30  ;;  %v4610_v17 = vadd.f32 %v4539_v29, %v4481_v12  ;;  %v4665_v0 = vadd.f32 %v4539_v29, %v4516_v34 }
 0x2ce   : > { %v1903_v36 = vpop.xlane.xlu0 %1902  ;;  %v4600_v25 = vpop.eup %3174  ;;  %v2012_v19 = vmul.f32 1.442695, %v1966_v58  ;;  %v1919_v42 = vsel %vm1484_vm3, %v4610_v17, -inf  ;;  %v1931_v58 = vsel %vm1484_vm3, %v4665_v0, -inf }
 0x2cf   : > { %v1967_v26 = vsub.f32 %v4506_v5, %v1903_v36  ;;  %v2087_v6 = vsel %vm1484_vm3, %v4600_v25, 0.0  ;;  %v3177_v5 = vpop.eup %3176 }
 0x2d0   : > { %2933 = vmatmul.msk.f32.gmra.mxu1 %vm1484_vm3, %v2179_v62  ;;  %1914 = vmax.xlane.f32.xlu2 %v1913_v46  ;;  %3178 = vpow2.f32 %v2012_v19  ;;  %v2181_v28 = vmul.f32 %v3177_v5, %v4469_v49  ;;  %v1922_v49 = vsel %vm1484_vm3, %v4626_v7, -inf }
 0x2d1   : > { %v2014_v55 = vmul.f32 1.442695, %v1967_v26  ;;  %2088 = vadd.xlane.f32.xlu0 %v2087_v6 }
 0x2d3   : > { %3180 = vpow2.f32 %v2014_v55 }
 0x2d4   : > { %3182 = vrcp.f32 %v2068_v3 }
 0x2d5   : > { %3184 = vrcp.f32 %v2071_v57 }
 0x2d6   : > { %v4612_v32 = vpop.eup %3178 }
 0x2d7   : > { %v2090_v61 = vsel %vm1484_vm3, %v4612_v32, 0.0 }
 0x2d8   : > { %2934 = vmatmul.msk.f32.gmra.mxu1 %vm1484_vm3, %v2180_v54  ;;  %2091 = vadd.xlane.f32.xlu2 %v2090_v61 }
 0x2d9   : > { %v4614_v21 = vpop.eup %3180  ;;  %1920 = vmax.xlane.f32.xlu0 %v1919_v42 }
 0x2da   : > { %v2093_v12 = vsel %vm1484_vm3, %v4614_v21, 0.0  ;;  %v3183_v35 = vpop.eup %3182 }
 0x2db   : > { %2094 = vadd.xlane.f32.xlu1 %v2093_v12  ;;  %v2182_v14 = vmul.f32 %v3183_v35, %v4483_v38  ;;  %v3185_v20 = vpop.eup %3184 }
 0x2dc   : > { %v2183_v39 = vmul.f32 %v3185_v20, %v4492_v56  ;;  %v2436_v56 = vld [vmem:[%s4956_s11] sm:$0x3] }
 0x2dd   : > { %v2491_v3 = vsel %vm2489_vm4, %v2436_v56, 0 }
 0x2de   : > { %2500 = vmatpush.bf16.msrb.mxu3 %v2491_v3 }
 0x2e0   : > { %2935 = vmatmul.msk.f32.gmra.mxu1 %vm1484_vm3, %v2181_v28  ;;  %1923 = vmax.xlane.f32.xlu2 %v1922_v49 }
 0x2e3   : > { %1926 = vmax.xlane.f32.xlu1 %v1925_v4 }
 0x2e8   : > { %2936 = vmatmul.msk.f32.gmra.mxu1 %vm1484_vm3, %v2182_v14 }
 0x2f0   : > { %2937 = vmatmul.msk.f32.gmra.mxu1 %vm1484_vm3, %v2183_v39 }
 0x318   : > { %v2074_v50 = vpop.xlane.xlu2 %2073 }
 0x319   : > { %3186 = vrcp.f32 %v2074_v50  ;;  %v4687_v50 = vadd.f32 %v4539_v29, %v4518_v60 }
 0x31e   : > { %v2077_v33 = vpop.xlane.xlu1 %2076 }
 0x31f   : > { %v3187_v18 = vpop.eup %3186  ;;  %3188 = vrcp.f32 %v2077_v33 }
 0x320   : > { %v1906_v11 = vpop.xlane.xlu2 %1905  ;;  %v2184_v22 = vmul.f32 %v3187_v18, %v4532_v59 }
 0x321   : > { %v1968_v38 = vsub.f32 %v4543_v24, %v1906_v11 }
 0x322   : > { %2938 = vmatmul.msk.f32.gmra.mxu1 %vm1484_vm3, %v2184_v22 }
 0x323   : > { %v2016_v47 = vmul.f32 1.442695, %v1968_v38 }
 0x325   : > { %3190 = vpow2.f32 %v2016_v47  ;;  %v3189_v63 = vpop.eup %3188 }
 0x326   : > { %v1909_v41 = vpop.xlane.xlu1 %1908  ;;  %v2185_v43 = vmul.f32 %v3189_v63, %v4547_v9  ;;  %v1928_v9 = vsel %vm1484_vm3, %v4655_v23, -inf  ;;  %v1934_v63 = vsel %vm1484_vm3, %v4687_v50, -inf }
 0x327   : > { %v1969_v59 = vsub.f32 %v4553_v13, %v1909_v41 }
 0x329   : > { %v2018_v57 = vmul.f32 1.442695, %v1969_v59 }
 0x32a   : > { %2939 = vmatmul.msk.f32.gmra.mxu1 %vm1484_vm3, %v2185_v43  ;;  %v4706_v43 = vadd.f32 %v4539_v29, %v4520_v40 }
 0x32b   : > { %v4649_v24 = vpop.eup %3190  ;;  %3192 = vpow2.f32 %v2018_v57 }
 0x32c   : > { %v2096_v51 = vsel %vm1484_vm3, %v4649_v24, 0.0 }
 0x32d   : > { %2097 = vadd.xlane.f32.xlu0 %v2096_v51 }
 0x331   : > { %v4657_v27 = vpop.eup %3192 }
 0x332   : > { %v2099_v13 = vsel %vm1484_vm3, %v4657_v27, 0.0 }
 0x333   : > { %2100 = vadd.xlane.f32.xlu2 %v2099_v13  ;;  %v2080_v30 = vpop.xlane.xlu0 %2079 }
 0x334   : > { %3194 = vrcp.f32 %v2080_v30 }
 0x335   : > { %v2324_v62 = vpop.f32.mrf.mxu1  ;;  %1929 = vmax.xlane.f32.xlu0 %v1928_v9 }
 0x337   : > { %v2086_v36 = vpop.xlane.xlu1 %2085 }
 0x33a   : > { %v3195_v26 = vpop.eup %3194 }
 0x33b   : > { %1932 = vmax.xlane.f32.xlu2 %v1931_v58  ;;  %v2083_v19 = vpop.xlane.xlu2 %2082  ;;  %v2186_v6 = vmul.f32 %v3195_v26, %v4565_v2 }
 0x33c   : > { %v1912_v46 = vpop.xlane.xlu0 %1911  ;;  %3196 = vrcp.f32 %v2083_v19 }
 0x33d   : > { %v2327_v10 = vpop.f32.mrf.mxu1  ;;  %v1970_v55 = vsub.f32 %v4572_v15, %v1912_v46  ;;  %2940 = vmatmul.msk.f32.gmra.mxu1 %vm1484_vm3, %v2186_v6  ;;  %3198 = vrcp.f32 %v2086_v36 }
 0x33e   : > { %v2420_v53 = vpack.c.bf16 %v2327_v10, %v2324_v62 }
 0x33f   : > { %v2020_v34 = vmul.f32 1.442695, %v1970_v55  ;;  %v1918_v5 = vpop.xlane.xlu1 %1917 }
 0x340   : > { %2962 = vmatmul.msk.bf16.vlgmr.msrb.gmra.mxu3 %vm1484_vm3, %v2420_v53  ;;  %v1972_v42 = vsub.f32 %v4586_v52, %v1918_v5 }
 0x341   : > { %3200 = vpow2.f32 %v2020_v34  ;;  %v4739_v34 = vadd.f32 %v4539_v29, %v4526_v8 }
 0x342   : > { %v3197_v61 = vpop.eup %3196  ;;  %v2024_v35 = vmul.f32 1.442695, %v1972_v42 }
 0x343   : > { %v1915_v28 = vpop.xlane.xlu2 %1914  ;;  %v2187_v12 = vmul.f32 %v3197_v61, %v4582_v48  ;;  %v3199_v14 = vpop.eup %3198  ;;  %v1946_v42 = vsel %vm1484_vm3, %v4739_v34, -inf }
 0x344   : > { %v2089_v49 = vpop.xlane.xlu0 %2088  ;;  %v1971_v2 = vsub.f32 %v4596_v16, %v1915_v28  ;;  %3202 = vpow2.f32 %v2024_v35  ;;  %v2188_v48 = vmul.f32 %v3199_v14, %v4575_v37 }
 0x345   : > { %v2330_v54 = vpop.f32.mrf.mxu1  ;;  %2941 = vmatmul.msk.f32.gmra.mxu1 %vm1484_vm3, %v2187_v12  ;;  %3204 = vrcp.f32 %v2089_v49 }
 0x346   : > { %v2022_v4 = vmul.f32 1.442695, %v1971_v2 }
 0x347   : > { %v4677_v15 = vpop.eup %3200 }
 0x348   : > { %v2102_v39 = vsel %vm1484_vm3, %v4677_v15, 0.0  ;;  %3206 = vpow2.f32 %v2022_v4 }
 0x349   : > { %2103 = vadd.xlane.f32.xlu1 %v2102_v39 }
 0x34a   : > { %v4683_v16 = vpop.eup %3202 }
 0x34b   : > { %v2092_v18 = vpop.xlane.xlu2 %2091  ;;  %v2108_v22 = vsel %vm1484_vm3, %v4683_v16, 0.0  ;;  %v3205_v47 = vpop.eup %3204 }
 0x34c   : > { %v1921_v11 = vpop.xlane.xlu0 %1920  ;;  %2109 = vadd.xlane.f32.xlu2 %v2108_v22  ;;  %3208 = vrcp.f32 %v2092_v18  ;;  %v2189_v41 = vmul.f32 %v3205_v47, %v4600_v25  ;;  %v1937_v25 = vsel %vm1484_vm3, %v4706_v43, -inf }
 0x34d   : > { %v2333_v20 = vpop.f32.mrf.mxu1  ;;  %v1973_v33 = vsub.f32 %v4610_v17, %v1921_v11  ;;  %2942 = vmatmul.msk.f32.gmra.mxu1 %vm1484_vm3, %v2188_v48  ;;  %v4701_v17 = vadd.f32 %v4539_v29, %v4522_v44 }
 0x34e   : > { %v2421_v52 = vpack.c.bf16 %v2333_v20, %v2330_v54  ;;  %v2095_v38 = vpop.xlane.xlu1 %2094  ;;  %v4693_v37 = vpop.eup %3206  ;;  %v4743_v54 = vadd.f32 %v4539_v29, %v4529_v1 }
 0x34f   : > { %v2026_v56 = vmul.f32 1.442695, %v1973_v33  ;;  %v2105_v60 = vsel %vm1484_vm3, %v4693_v37, 0.0  ;;  %v1940_v51 = vsel %vm1484_vm3, %v4701_v17, -inf }
 0x350   : > { %2963 = vmatmul.msk.bf16.gmra.mxu3 %vm1484_vm3, %v2421_v52  ;;  %2106 = vadd.xlane.f32.xlu0 %v2105_v60 }
 0x351   : > { %1935 = vmax.xlane.f32.xlu1 %v1934_v63  ;;  %3210 = vpow2.f32 %v2026_v56 }
 0x352   : > { %v3209_v9 = vpop.eup %3208  ;;  %3212 = vrcp.f32 %v2095_v38 }
 0x353   : > { %v1924_v59 = vpop.xlane.xlu2 %1923  ;;  %v2190_v58 = vmul.f32 %v3209_v9, %v4612_v32 }
 0x354   : > { %v1974_v57 = vsub.f32 %v4626_v7, %v1924_v59  ;;  %1941 = vmax.xlane.f32.xlu2 %v1940_v51 }
 0x355   : > { %v2336_v3 = vpop.f32.mrf.mxu1  ;;  %2943 = vmatmul.msk.f32.gmra.mxu1 %vm1484_vm3, %v2189_v41 }
 0x356   : > { %v1927_v62 = vpop.xlane.xlu1 %1926  ;;  %v2028_v40 = vmul.f32 1.442695, %v1974_v57 }
 0x357   : > { %v1975_v44 = vsub.f32 %v4630_v45, %v1927_v62  ;;  %v4713_v13 = vpop.eup %3210  ;;  %v4723_v45 = vadd.f32 %v4539_v29, %v4524_v31 }
 0x358   : > { %v2111_v7 = vsel %vm1484_vm3, %v4713_v13, 0.0  ;;  %1938 = vmax.xlane.f32.xlu0 %v1937_v25  ;;  %3214 = vpow2.f32 %v2028_v40  ;;  %v3213_v36 = vpop.eup %3212 }
 0x359   : > { %v2030_v53 = vmul.f32 1.442695, %v1975_v44  ;;  %2112 = vadd.xlane.f32.xlu1 %v2111_v7  ;;  %v1943_v32 = vsel %vm1484_vm3, %v4723_v45, -inf  ;;  %v2191_v55 = vmul.f32 %v3213_v36, %v4614_v21  ;;  %v1949_v21 = vsel %vm1484_vm3, %v4743_v54, -inf }
 0x35b   : > { %3216 = vpow2.f32 %v2030_v53 }
 0x35d   : > { %v2339_v30 = vpop.f32.mrf.mxu1  ;;  %2944 = vmatmul.msk.f32.gmra.mxu1 %vm1484_vm3, %v2190_v58 }
 0x35e   : > { %v2422_v10 = vpack.c.bf16 %v2339_v30, %v2336_v3  ;;  %v4726_v26 = vpop.eup %3214 }
 0x35f   : > { %v2114_v6 = vsel %vm1484_vm3, %v4726_v26, 0.0 }
 0x360   : > { %2964 = vmatmul.msk.bf16.gmra.mxu3 %vm1484_vm3, %v2422_v10  ;;  %2115 = vadd.xlane.f32.xlu0 %v2114_v6 }
 0x361   : > { %v4728_v46 = vpop.eup %3216  ;;  %1944 = vmax.xlane.f32.xlu1 %v1943_v32 }
 0x362   : > { %v2117_v31 = vsel %vm1484_vm3, %v4728_v46, 0.0 }
 0x363   : > { %2118 = vadd.xlane.f32.xlu2 %v2117_v31 }
 0x365   : > { %v2342_v19 = vpop.f32.mrf.mxu1  ;;  %2945 = vmatmul.msk.f32.gmra.mxu1 %vm1484_vm3, %v2191_v55 }
 0x368   : > { %1947 = vmax.xlane.f32.xlu0 %v1946_v42 }
 0x36b   : > { %1950 = vmax.xlane.f32.xlu2 %v1949_v21 }
 0x36d   : > { %v2345_v5 = vpop.f32.mrf.mxu1 }
 0x36e   : > { %v2423_v61 = vpack.c.bf16 %v2345_v5, %v2342_v19 }
 0x370   : > { %2965 = vmatmul.msk.bf16.gmra.mxu3 %vm1484_vm3, %v2423_v61 }
 0x39f   : > { %v2348_v8 = vpop.f32.mrf.mxu1 }
 0x3a0   : > { %v2098_v28 = vpop.xlane.xlu0 %2097 }
 0x3a1   : > { %3218 = vrcp.f32 %v2098_v28 }
 0x3a6   : > { %v2101_v35 = vpop.xlane.xlu2 %2100 }
 0x3a7   : > { %v3219_v12 = vpop.eup %3218  ;;  %v2351_v1 = vpop.f32.mrf.mxu1  ;;  %3220 = vrcp.f32 %v2101_v35 }
 0x3a8   : > { %v2424_v29 = vpack.c.bf16 %v2351_v1, %v2348_v8  ;;  %v1930_v49 = vpop.xlane.xlu0 %1929  ;;  %v2192_v2 = vmul.f32 %v3219_v12, %v4649_v24 }
 0x3a9   : > { %v1976_v14 = vsub.f32 %v4655_v23, %v1930_v49 }
 0x3aa   : > { %2946 = vmatmul.msk.f32.gmra.mxu1 %vm1484_vm3, %v2192_v2  ;;  %2966 = vmatmul.msk.bf16.gmra.mxu3 %vm1484_vm3, %v2424_v29 }
 0x3ab   : > { %v2032_v4 = vmul.f32 1.442695, %v1976_v14 }
 0x3ad   : > { %3222 = vpow2.f32 %v2032_v4  ;;  %v3221_v20 = vpop.eup %3220 }
 0x3ae   : > { %v1933_v39 = vpop.xlane.xlu2 %1932  ;;  %v2193_v52 = vmul.f32 %v3221_v20, %v4657_v27  ;;  %v4770_v27 = vld [vmem:[%s4957_s12] ss:$0 sm:$0xff] }
 0x3af   : > { %v1977_v48 = vsub.f32 %v4665_v0, %v1933_v39 }
 0x3b1   : > { %v2034_v24 = vmul.f32 1.442695, %v1977_v48 }
 0x3b2   : > { %2947 = vmatmul.msk.f32.gmra.mxu1 %vm1484_vm3, %v2193_v52 }
 0x3b3   : > { %v4758_v18 = vpop.eup %3222  ;;  %3224 = vpow2.f32 %v2034_v24 }
 0x3b4   : > { %v2120_v23 = vsel %vm1484_vm3, %v4758_v18, 0.0 }
 0x3b5   : > { %2121 = vadd.xlane.f32.xlu1 %v2120_v23 }
 0x3b9   : > { %v4762_v11 = vpop.eup %3224 }
 0x3ba   : > { %v2123_v33 = vsel %vm1484_vm3, %v4762_v11, 0.0  ;;  %v2354_v0 = vpop.f32.mrf.mxu1 }
 0x3bb   : > { %2124 = vadd.xlane.f32.xlu0 %v2123_v33 }
 0x3bc   : > { %v2104_v22 = vpop.xlane.xlu1 %2103 }
 0x3bd   : > { %3226 = vrcp.f32 %v2104_v22 }
 0x3bf   : > { %v2110_v56 = vpop.xlane.xlu2 %2109 }
 0x3c2   : > { %v2357_v60 = vpop.f32.mrf.mxu1 }
 0x3c3   : > { %v2502_v38 = vpop.f32.mrf.mxu3  ;;  %v3227_v3 = vpop.eup %3226  ;;  %v2425_v63 = vpack.c.bf16 %v2357_v60, %v2354_v0 }
 0x3c4   : > { %v2503_v47 = vadd.f32 %v4770_v27, %v2502_v38  ;;  %v1936_v41 = vpop.xlane.xlu1 %1935  ;;  %v2107_v59 = vpop.xlane.xlu0 %2106  ;;  %v2194_v57 = vmul.f32 %v3227_v3, %v4677_v15 }
 0x3c5   : > { %v1978_v51 = vsub.f32 %v4687_v50, %v1936_v41  ;;  %3228 = vrcp.f32 %v2107_v59  ;;  %2967 = vmatmul.msk.bf16.gmra.mxu3 %vm1484_vm3, %v2425_v63 }
 0x3c6   : > { %2583 = vst.msk [vmem:[%s4775_s20] sm:$0xff] %vm2582_vm5, %v2503_v47  ;;  %2948 = vmatmul.msk.f32.gmra.mxu1 %vm1484_vm3, %v2194_v57  ;;  %3230 = vrcp.f32 %v2110_v56 }
 0x3c7   : > { %v2036_v44 = vmul.f32 1.442695, %v1978_v51  ;;  %v1942_v25 = vpop.xlane.xlu2 %1941 }
 0x3c8   : > { %v1980_v40 = vsub.f32 %v4701_v17, %v1942_v25 }
 0x3c9   : > { %3232 = vpow2.f32 %v2036_v44 }
 0x3ca   : > { %v2360_v15 = vpop.f32.mrf.mxu1  ;;  %v2040_v10 = vmul.f32 1.442695, %v1980_v40 }
 0x3cb   : > { %v2504_v62 = vpop.f32.mrf.mxu3  ;;  %v3229_v30 = vpop.eup %3228 }
 0x3cc   : > { %v2505_v9 = vadd.f32 %v4770_v27, %v2504_v62  ;;  %v1939_v50 = vpop.xlane.xlu0 %1938  ;;  %v2195_v7 = vmul.f32 %v3229_v30, %v4693_v37  ;;  %v2113_v53 = vpop.xlane.xlu1 %2112  ;;  %3234 = vpow2.f32 %v2040_v10 }
 0x3cd   : > { %v1979_v58 = vsub.f32 %v4706_v43, %v1939_v50  ;;  %v3231_v19 = vpop.eup %3230  ;;  %3236 = vrcp.f32 %v2113_v53 }
 0x3ce   : > { %2584 = vst.msk [vmem:[%s4775_s20 + $0x8] sm:$0xff] %vm2582_vm5, %v2505_v9  ;;  %2949 = vmatmul.msk.f32.gmra.mxu1 %vm1484_vm3, %v2195_v7  ;;  %v2196_v37 = vmul.f32 %v3231_v19, %v4683_v16 }
 0x3cf   : > { %v4792_v32 = vpop.eup %3232  ;;  %v2038_v17 = vmul.f32 1.442695, %v1979_v58 }
 0x3d0   : > { %v2126_v31 = vsel %vm1484_vm3, %v4792_v32, 0.0 }
 0x3d1   : > { %3238 = vpow2.f32 %v2038_v17  ;;  %2127 = vadd.xlane.f32.xlu1 %v2126_v31 }
 0x3d2   : > { %v2363_v43 = vpop.f32.mrf.mxu1  ;;  %v4799_v55 = vpop.eup %3234 }
 0x3d3   : > { %v2507_v36 = vpop.f32.mrf.mxu3  ;;  %v2426_v5 = vpack.c.bf16 %v2363_v43, %v2360_v15  ;;  %v2132_v8 = vsel %vm1484_vm3, %v4799_v55, 0.0  ;;  %v3237_v1 = vpop.eup %3236 }
 0x3d4   : > { %v2508_v6 = vadd.f32 %v4770_v27, %v2507_v36  ;;  %v1945_v42 = vpop.xlane.xlu1 %1944  ;;  %v2116_v61 = vpop.xlane.xlu0 %2115  ;;  %2133 = vadd.xlane.f32.xlu0 %v2132_v8 }
 0x3d5   : > { %v1981_v21 = vsub.f32 %v4723_v45, %v1945_v42  ;;  %2968 = vmatmul.msk.bf16.gmra.mxu3 %vm1484_vm3, %v2426_v5  ;;  %3240 = vrcp.f32 %v2116_v61  ;;  %v2197_v45 = vmul.f32 %v3237_v1, %v4713_v13 }
 0x3d6   : > { %2585 = vst.msk [vmem:[%s4775_s20 + $0x10] sm:$0xff] %vm2582_vm5, %v2508_v6  ;;  %v2119_v12 = vpop.xlane.xlu2 %2118  ;;  %2950 = vmatmul.msk.f32.gmra.mxu1 %vm1484_vm3, %v2196_v37 }
 0x3d7   : > { %v4807_v29 = vpop.eup %3238  ;;  %v2042_v35 = vmul.f32 1.442695, %v1981_v21 }
 0x3d8   : > { %v2129_v49 = vsel %vm1484_vm3, %v4807_v29, 0.0 }
 0x3d9   : > { %2130 = vadd.xlane.f32.xlu2 %v2129_v49  ;;  %3242 = vpow2.f32 %v2042_v35 }
 0x3da   : > { %v2366_v2 = vpop.f32.mrf.mxu1  ;;  %3244 = vrcp.f32 %v2119_v12 }
 0x3db   : > { %v2509_v28 = vpop.f32.mrf.mxu3  ;;  %v3241_v52 = vpop.eup %3240 }
 0x3dc   : > { %v2510_v16 = vadd.f32 %v4770_v27, %v2509_v28  ;;  %v1948_v14 = vpop.xlane.xlu0 %1947  ;;  %v2198_v0 = vmul.f32 %v3241_v52, %v4726_v26 }
 0x3dd   : > { %v1982_v4 = vsub.f32 %v4739_v34, %v1948_v14 }
 0x3de   : > { %2586 = vst.msk [vmem:[%s4775_s20 + $0x18] sm:$0xff] %vm2582_vm5, %v2510_v16  ;;  %v1951_v39 = vpop.xlane.xlu2 %1950  ;;  %2951 = vmatmul.msk.f32.gmra.mxu1 %vm1484_vm3, %v2197_v45 }
 0x3df   : > { %v1983_v24 = vsub.f32 %v4743_v54, %v1951_v39  ;;  %v4818_v23 = vpop.eup %3242  ;;  %v2044_v33 = vmul.f32 1.442695, %v1982_v4 }
 0x3e0   : > { %v2135_v13 = vsel %vm1484_vm3, %v4818_v23, 0.0  ;;  %v3245_v54 = vpop.eup %3244 }
 0x3e1   : > { %v2046_v34 = vmul.f32 1.442695, %v1983_v24  ;;  %3246 = vpow2.f32 %v2044_v33  ;;  %2136 = vadd.xlane.f32.xlu1 %v2135_v13  ;;  %v2199_v41 = vmul.f32 %v3245_v54, %v4728_v46 }
 0x3e2   : > { %v2369_v22 = vpop.f32.mrf.mxu1 }
 0x3e3   : > { %v2512_v20 = vpop.f32.mrf.mxu3  ;;  %3248 = vpow2.f32 %v2046_v34  ;;  %v2427_v38 = vpack.c.bf16 %v2369_v22, %v2366_v2 }
 0x3e4   : > { %v2513_v48 = vadd.f32 %v4770_v27, %v2512_v20 }
 0x3e5   : > { %2969 = vmatmul.msk.bf16.gmra.mxu3 %vm1484_vm3, %v2427_v38 }
 0x3e6   : > { %2587 = vst.msk [vmem:[%s4775_s20 + $0x20] sm:$0xff] %vm2582_vm5, %v2513_v48  ;;  %2952 = vmatmul.msk.f32.gmra.mxu1 %vm1484_vm3, %v2198_v0 }
 0x3e7   : > { %v4828_v3 = vpop.eup %3246 }
 0x3e8   : > { %v2138_v26 = vsel %vm1484_vm3, %v4828_v3, 0.0 }
 0x3e9   : > { %v4830_v60 = vpop.eup %3248  ;;  %2139 = vadd.xlane.f32.xlu2 %v2138_v26 }
 0x3ea   : > { %v2141_v63 = vsel %vm1484_vm3, %v4830_v60, 0.0 }
 0x3eb   : > { %v2514_v47 = vpop.f32.mrf.mxu3  ;;  %2142 = vadd.xlane.f32.xlu0 %v2141_v63 }
 0x3ec   : > { %v2515_v56 = vadd.f32 %v4770_v27, %v2514_v47 }
 0x3ee   : > { %2588 = vst.msk [vmem:[%s4775_s20 + $0x28] sm:$0xff] %vm2582_vm5, %v2515_v56  ;;  %2953 = vmatmul.msk.f32.gmra.mxu1 %vm1484_vm3, %v2199_v41 }
 0x3f3   : > { %v2517_v59 = vpop.f32.mrf.mxu3 }
 0x3f4   : > { %v2518_v57 = vadd.f32 %v4770_v27, %v2517_v59 }
 0x3f6   : > { %2589 = vst.msk [vmem:[%s4775_s20 + $0x30] sm:$0xff] %vm2582_vm5, %v2518_v57 }
 0x3fb   : > { %v2519_v51 = vpop.f32.mrf.mxu3 }
 0x3fc   : > { %v2520_v62 = vadd.f32 %v4770_v27, %v2519_v51 }
 0x3fe   : > { %2590 = vst.msk [vmem:[%s4775_s20 + $0x38] sm:$0xff] %vm2582_vm5, %v2520_v62 }
 0x427   : > { %v2372_v9 = vpop.f32.mrf.mxu1 }
 0x428   : > { %v2122_v44 = vpop.xlane.xlu1 %2121 }
 0x429   : > { %3250 = vrcp.f32 %v2122_v44 }
 0x42d   : > { %v2522_v25 = vpop.f32.mrf.mxu3 }
 0x42e   : > { %v2523_v46 = vadd.f32 %v4770_v27, %v2522_v25  ;;  %v2125_v50 = vpop.xlane.xlu0 %2124 }
 0x42f   : > { %v3251_v40 = vpop.eup %3250  ;;  %v2375_v30 = vpop.f32.mrf.mxu1  ;;  %3252 = vrcp.f32 %v2125_v50 }
 0x430   : > { %2591 = vst.msk [vmem:[%s4775_s20 + $0x40] sm:$0xff] %vm2582_vm5, %v2523_v46  ;;  %v2428_v15 = vpack.c.bf16 %v2375_v30, %v2372_v9  ;;  %v2200_v7 = vmul.f32 %v3251_v40, %v4758_v18 }
 0x432   : > { %2954 = vmatmul.msk.f32.gmra.mxu1 %vm1484_vm3, %v2200_v7  ;;  %2970 = vmatmul.msk.bf16.gmra.mxu3 %vm1484_vm3, %v2428_v15 }
 0x435   : > { %v2524_v10 = vpop.f32.mrf.mxu3  ;;  %v3253_v58 = vpop.eup %3252 }
 0x436   : > { %v2525_v53 = vadd.f32 %v4770_v27, %v2524_v10  ;;  %v2201_v36 = vmul.f32 %v3253_v58, %v4762_v11 }
 0x438   : > { %2592 = vst.msk [vmem:[%s4775_s20 + $0x48] sm:$0xff] %vm2582_vm5, %v2525_v53 }
 0x43a   : > { %2955 = vmatmul.msk.f32.gmra.mxu1 %vm1484_vm3, %v2201_v36 }
 0x443   : > { %v2378_v19 = vpop.f32.mrf.mxu1 }
 0x444   : > { %v2128_v6 = vpop.xlane.xlu1 %2127 }
 0x445   : > { %3254 = vrcp.f32 %v2128_v6 }
 0x447   : > { %v2134_v11 = vpop.xlane.xlu0 %2133 }
 0x448   : > { %v2527_v18 = vpop.f32.mrf.mxu3 }
 0x449   : > { %v2528_v17 = vadd.f32 %v4770_v27, %v2527_v18 }
 0x44b   : > { %v3255_v31 = vpop.eup %3254  ;;  %v2381_v37 = vpop.f32.mrf.mxu1  ;;  %2593 = vst.msk [vmem:[%s4775_s20 + $0x50] sm:$0xff] %vm2582_vm5, %v2528_v17 }
 0x44c   : > { %v2429_v43 = vpack.c.bf16 %v2381_v37, %v2378_v19  ;;  %v2131_v5 = vpop.xlane.xlu2 %2130  ;;  %v2202_v42 = vmul.f32 %v3255_v31, %v4792_v32 }
 0x44d   : > { %3256 = vrcp.f32 %v2131_v5 }
 0x44e   : > { %2956 = vmatmul.msk.f32.gmra.mxu1 %vm1484_vm3, %v2202_v42  ;;  %2971 = vmatmul.msk.bf16.gmra.mxu3 %vm1484_vm3, %v2429_v43  ;;  %3258 = vrcp.f32 %v2134_v11 }
 0x450   : > { %v2529_v61 = vpop.f32.mrf.mxu3 }
 0x451   : > { %v2530_v21 = vadd.f32 %v4770_v27, %v2529_v61 }
 0x453   : > { %v3257_v8 = vpop.eup %3256  ;;  %v2384_v28 = vpop.f32.mrf.mxu1  ;;  %2594 = vst.msk [vmem:[%s4775_s20 + $0x58] sm:$0xff] %vm2582_vm5, %v2530_v21 }
 0x454   : > { %v2203_v12 = vmul.f32 %v3257_v8, %v4807_v29  ;;  %v2137_v32 = vpop.xlane.xlu1 %2136  ;;  %v3259_v1 = vpop.eup %3258 }
 0x455   : > { %3260 = vrcp.f32 %v2137_v32  ;;  %v2204_v49 = vmul.f32 %v3259_v1, %v4799_v55 }
 0x456   : > { %2957 = vmatmul.msk.f32.gmra.mxu1 %vm1484_vm3, %v2203_v12 }
 0x458   : > { %v2532_v16 = vpop.f32.mrf.mxu3 }
 0x459   : > { %v2533_v35 = vadd.f32 %v4770_v27, %v2532_v16 }
 0x45b   : > { %v2387_v45 = vpop.f32.mrf.mxu1  ;;  %2595 = vst.msk [vmem:[%s4775_s20 + $0x60] sm:$0xff] %vm2582_vm5, %v2533_v35  ;;  %v3261_v14 = vpop.eup %3260 }
 0x45c   : > { %v2430_v2 = vpack.c.bf16 %v2387_v45, %v2384_v28  ;;  %v2140_v29 = vpop.xlane.xlu2 %2139  ;;  %v2205_v20 = vmul.f32 %v3261_v14, %v4818_v23 }
 0x45d   : > { %3262 = vrcp.f32 %v2140_v29 }
 0x45e   : > { %2958 = vmatmul.msk.f32.gmra.mxu1 %vm1484_vm3, %v2204_v49  ;;  %2972 = vmatmul.msk.bf16.gmra.mxu3 %vm1484_vm3, %v2430_v2  ;;  %v2143_v55 = vpop.xlane.xlu0 %2142 }
 0x45f   : > { %3264 = vrcp.f32 %v2143_v55 }
 0x460   : > { %v2534_v4 = vpop.f32.mrf.mxu3 }
 0x461   : > { %v2535_v39 = vadd.f32 %v4770_v27, %v2534_v4 }
 0x463   : > { %v2390_v52 = vpop.f32.mrf.mxu1  ;;  %2596 = vst.msk [vmem:[%s4775_s20 + $0x68] sm:$0xff] %vm2582_vm5, %v2535_v39  ;;  %v3263_v48 = vpop.eup %3262 }
 0x464   : > { %v2206_v33 = vmul.f32 %v3263_v48, %v4828_v3 }
 0x465   : > { %v3265_v0 = vpop.eup %3264 }
 0x466   : > { %2959 = vmatmul.msk.f32.gmra.mxu1 %vm1484_vm3, %v2205_v20  ;;  %v2207_v38 = vmul.f32 %v3265_v0, %v4830_v60 }
 0x468   : > { %v2537_v24 = vpop.f32.mrf.mxu3 }
 0x469   : > { %v2538_v13 = vadd.f32 %v4770_v27, %v2537_v24 }
 0x46b   : > { %v2393_v34 = vpop.f32.mrf.mxu1  ;;  %2597 = vst.msk [vmem:[%s4775_s20 + $0x70] sm:$0xff] %vm2582_vm5, %v2538_v13 }
 0x46c   : > { %v2431_v23 = vpack.c.bf16 %v2393_v34, %v2390_v52 }
 0x46e   : > { %2960 = vmatmul.msk.f32.gmra.mxu1 %vm1484_vm3, %v2206_v33  ;;  %2973 = vmatmul.msk.bf16.gmra.mxu3 %vm1484_vm3, %v2431_v23 }
 0x470   : > { %v2539_v22 = vpop.f32.mrf.mxu3 }
 0x471   : > { %v2540_v47 = vadd.f32 %v4770_v27, %v2539_v22 }
 0x473   : > { %2598 = vst.msk [vmem:[%s4775_s20 + $0x78] sm:$0xff] %vm2582_vm5, %v2540_v47 }
 0x476   : > { %2961 = vmatmul.msk.f32.gmra.mxu1 %vm1484_vm3, %v2207_v38 }
 0x4af   : > { %v2396_v54 = vpop.f32.mrf.mxu1 }
 0x4b5   : > { %v2542_v56 = vpop.f32.mrf.mxu3 }
 0x4b6   : > { %v2543_v3 = vadd.f32 %v4770_v27, %v2542_v56 }
 0x4b7   : > { %v2399_v26 = vpop.f32.mrf.mxu1 }
 0x4b8   : > { %2599 = vst.msk [vmem:[%s4775_s20 + $0x80] sm:$0xff] %vm2582_vm5, %v2543_v3  ;;  %v2432_v63 = vpack.c.bf16 %v2399_v26, %v2396_v54 }
 0x4ba   : > { %2974 = vmatmul.msk.bf16.gmra.mxu3 %vm1484_vm3, %v2432_v63 }
 0x4bd   : > { %v2544_v41 = vpop.f32.mrf.mxu3 }
 0x4be   : > { %v2545_v60 = vadd.f32 %v4770_v27, %v2544_v41 }
 0x4c0   : > { %2600 = vst.msk [vmem:[%s4775_s20 + $0x88] sm:$0xff] %vm2582_vm5, %v2545_v60 }
 0x4cb   : > { %v2402_v59 = vpop.f32.mrf.mxu1 }
 0x4d1   : > { %v2547_v57 = vpop.f32.mrf.mxu3 }
 0x4d2   : > { %v2548_v51 = vadd.f32 %v4770_v27, %v2547_v57 }
 0x4d3   : > { %v2405_v62 = vpop.f32.mrf.mxu1 }
 0x4d4   : > { %2601 = vst.msk [vmem:[%s4775_s20 + $0x90] sm:$0xff] %vm2582_vm5, %v2548_v51  ;;  %v2433_v9 = vpack.c.bf16 %v2405_v62, %v2402_v59 }
 0x4d6   : > { %2975 = vmatmul.msk.bf16.gmra.mxu3 %vm1484_vm3, %v2433_v9 }
 0x4d9   : > { %v2549_v44 = vpop.f32.mrf.mxu3 }
 0x4da   : > { %v2550_v25 = vadd.f32 %v4770_v27, %v2549_v44 }
 0x4db   : > { %v2408_v46 = vpop.f32.mrf.mxu1 }
 0x4dc   : > { %2602 = vst.msk [vmem:[%s4775_s20 + $0x98] sm:$0xff] %vm2582_vm5, %v2550_v25 }
 0x4e1   : > { %v2552_v40 = vpop.f32.mrf.mxu3 }
 0x4e2   : > { %v2553_v30 = vadd.f32 %v4770_v27, %v2552_v40 }
 0x4e3   : > { %v2411_v15 = vpop.f32.mrf.mxu1 }
 0x4e4   : > { %2603 = vst.msk [vmem:[%s4775_s20 + $0xa0] sm:$0xff] %vm2582_vm5, %v2553_v30  ;;  %v2434_v50 = vpack.c.bf16 %v2411_v15, %v2408_v46 }
 0x4e6   : > { %2976 = vmatmul.msk.bf16.gmra.mxu3 %vm1484_vm3, %v2434_v50 }
 0x4e9   : > { %v2554_v7 = vpop.f32.mrf.mxu3 }
 0x4ea   : > { %v2555_v10 = vadd.f32 %v4770_v27, %v2554_v7 }
 0x4eb   : > { %v2414_v53 = vpop.f32.mrf.mxu1 }
 0x4ec   : > { %2604 = vst.msk [vmem:[%s4775_s20 + $0xa8] sm:$0xff] %vm2582_vm5, %v2555_v10 }
 0x4f1   : > { %v2557_v58 = vpop.f32.mrf.mxu3 }
 0x4f2   : > { %v2558_v36 = vadd.f32 %v4770_v27, %v2557_v58 }
 0x4f3   : > { %v2417_v19 = vpop.f32.mrf.mxu1 }
 0x4f4   : > { %2605 = vst.msk [vmem:[%s4775_s20 + $0xb0] sm:$0xff] %vm2582_vm5, %v2558_v36  ;;  %v2435_v6 = vpack.c.bf16 %v2417_v19, %v2414_v53 }
 0x4f6   : > { %2977 = vmatmul.msk.bf16.gmra.mxu3 %vm1484_vm3, %v2435_v6 }
 0x4f9   : > { %v2559_v18 = vpop.f32.mrf.mxu3 }
 0x4fa   : > { %v2560_v17 = vadd.f32 %v4770_v27, %v2559_v18 }
 0x4fc   : > { %2606 = vst.msk [vmem:[%s4775_s20 + $0xb8] sm:$0xff] %vm2582_vm5, %v2560_v17 }
 0x53d   : > { %v2562_v31 = vpop.f32.mrf.mxu3 }
 0x53e   : > { %v2563_v37 = vadd.f32 %v4770_v27, %v2562_v31 }
 0x540   : > { %2607 = vst.msk [vmem:[%s4775_s20 + $0xc0] sm:$0xff] %vm2582_vm5, %v2563_v37 }
 0x545   : > { %v2564_v43 = vpop.f32.mrf.mxu3 }
 0x546   : > { %v2565_v5 = vadd.f32 %v4770_v27, %v2564_v43 }
 0x548   : > { %2608 = vst.msk [vmem:[%s4775_s20 + $0xc8] sm:$0xff] %vm2582_vm5, %v2565_v5 }
 0x559   : > { %v2567_v42 = vpop.f32.mrf.mxu3 }
 0x55a   : > { %v2568_v11 = vadd.f32 %v4770_v27, %v2567_v42 }
 0x55c   : > { %2609 = vst.msk [vmem:[%s4775_s20 + $0xd0] sm:$0xff] %vm2582_vm5, %v2568_v11 }
 0x561   : > { %v2569_v61 = vpop.f32.mrf.mxu3 }
 0x562   : > { %v2570_v21 = vadd.f32 %v4770_v27, %v2569_v61 }
 0x564   : > { %2610 = vst.msk [vmem:[%s4775_s20 + $0xd8] sm:$0xff] %vm2582_vm5, %v2570_v21 }
 0x569   : > { %v2572_v8 = vpop.f32.mrf.mxu3 }
 0x56a   : > { %v2573_v28 = vadd.f32 %v4770_v27, %v2572_v8 }
 0x56c   : > { %2611 = vst.msk [vmem:[%s4775_s20 + $0xe0] sm:$0xff] %vm2582_vm5, %v2573_v28 }
 0x571   : > { %v2574_v12 = vpop.f32.mrf.mxu3 }
 0x572   : > { %v2575_v32 = vadd.f32 %v4770_v27, %v2574_v12 }
 0x574   : > { %2612 = vst.msk [vmem:[%s4775_s20 + $0xe8] sm:$0xff] %vm2582_vm5, %v2575_v32 }
 0x579   : > { %v2577_v1 = vpop.f32.mrf.mxu3 }
 0x57a   : > { %v2578_v16 = vadd.f32 %v4770_v27, %v2577_v1 }
 0x57c   : > { %2613 = vst.msk [vmem:[%s4775_s20 + $0xf0] sm:$0xff] %vm2582_vm5, %v2578_v16 }
 0x581   : > { %v2579_v35 = vpop.f32.mrf.mxu3 }
 0x582   : > { %v2580_v49 = vadd.f32 %v4770_v27, %v2579_v35 }
 0x584   : > { %2614 = vst.msk [vmem:[%s4775_s20 + $0xf8] sm:$0xff] %vm2582_vm5, %v2580_v49 }
 0x585 PF: > { %s23_s25 = sadd.s32 1, %s3278_s25  }
 0x586   : > { %p20_p4 = scmp.ge.s32.totalorder %s23_s25, 4  }
 0x588   :  { %22 = sbr.rel (!%p20_p4) target bundleno = 1 (0x1), region = 105 }

</bundles_post_ra>
